<compile_context>
chip_gen: v6e
topology: v6e:2x2x1
jax: 0.10.0
libtpu: 0.0.40
codegen_flags: <defaults>
</compile_context>

<pallas_src>
import numpy as np
import jax
import jax.numpy as jnp
from jax.experimental import pallas as pl
from jax.experimental.pallas import tpu as pltpu

# ---------------- configuration (small shapes consistent with the module) ----------------
IMG_C, IMG_H, IMG_W = 4, 16, 16          # img_size
LATENT_DIM = 16
INIT_C = 32                              # init_channels
N_LAYERS = 2
KSIZE = 3
SCALE = 2 ** N_LAYERS
INIT_H, INIT_W = IMG_H // SCALE, IMG_W // SCALE       # 4, 4
HW0 = INIT_H * INIT_W                                 # 16
C0 = INIT_C                                           # 32
C1 = INIT_C // 2                                      # 16
BATCH = 2

LEAKY_SLOPE = 0.2
BN_EPS = 1e-5

# Per-layer flattened geometry: rows are indexed j = h*Wp + w over the zero-padded image
# (valid outputs are columns w < W; the trailing columns are wrap-around junk that gets dropped).
H1, WP1 = 2 * INIT_H, 2 * INIT_W + 2                  # 8, 10   (conv-1 input: x2 upsample + pad 1)
R1 = H1 * WP1                                         # 80
A1 = (H1 + 2) * WP1 + (KSIZE - 1)                     # 102     (padded rows + tail so taps stay in-bounds)
H2, WP2 = 2 * H1, 2 * (2 * INIT_W) + 2                # 16, 18  (conv-2 / conv-3 input geometry)
R2 = H2 * WP2                                         # 288
A2 = (H2 + 2) * WP2 + (KSIZE - 1)                     # 326
A3 = A2                                               # conv-3 input: same 16x16 (+pad), no upsample


# ---------------- the fused Pallas kernel (one image per grid step) ----------------
def _fused_generator_kernel(z_ref, w1_ref, b1_ref, m1_ref,
                            wc1_ref, s1_ref, bb1_ref,
                            m2_ref, wc2_ref, s2_ref, bb2_ref,
                            wc3_ref, bb3_ref,
                            o_ref,
                            x0_scr, a1_scr, p1_scr, a2_scr, p2_scr, a3_scr, p3_scr):
    f32 = jnp.float32
    z = z_ref[0]                                                   # (1, LATENT_DIM)

    # ---- Linear (eval BN0 folded into the weights), emitted directly in NHWC order ----
    # 16 tiny (1,16)@(16,32) dots avoid any in-kernel lane->sublane reshape of a (1,512) result.
    for s in range(HW0):
        x0_scr[s:s + 1, :] = jnp.dot(z, w1_ref[s], preferred_element_type=f32)
    x0 = x0_scr[...] + b1_ref[...]                                 # (16, C0)

    # ---- nearest upsample x2 + zero-pad(1) fused as one constant 0/1 matmul ----
    a1_scr[...] = jnp.dot(m1_ref[...], x0, preferred_element_type=f32)       # (A1, C0)

    # ---- ConvBlock 1: single stacked-K matmul (K = 9*C0) + folded BN + LeakyReLU ----
    for t in range(KSIZE * KSIZE):
        kh, kw = divmod(t, KSIZE)
        off = kh * WP1 + kw
        p1_scr[:, t * C0:(t + 1) * C0] = a1_scr[off:off + R1, :]
    y1 = jnp.dot(p1_scr[...], wc1_ref[...], preferred_element_type=f32)      # (R1, C0)
    y1 = y1 * s1_ref[...] + bb1_ref[...]
    y1 = jnp.where(y1 > 0.0, y1, LEAKY_SLOPE * y1)

    # ---- nearest upsample x2 + zero-pad(1) (also discards layer-1 junk columns) ----
    a2_scr[...] = jnp.dot(m2_ref[...], y1, preferred_element_type=f32)       # (A2, C0)

    # ---- ConvBlock 2 ----
    for t in range(KSIZE * KSIZE):
        kh, kw = divmod(t, KSIZE)
        off = kh * WP2 + kw
        p2_scr[:, t * C0:(t + 1) * C0] = a2_scr[off:off + R2, :]
    y2 = jnp.dot(p2_scr[...], wc2_ref[...], preferred_element_type=f32)      # (R2, C1)
    y2 = y2 * s2_ref[...] + bb2_ref[...]
    y2 = jnp.where(y2 > 0.0, y2, LEAKY_SLOPE * y2)

    # ---- zero-pad(1) for the last conv (no upsample): row-block copies into VMEM ----
    a3_scr[...] = jnp.zeros_like(a3_scr)
    for h in range(IMG_H):
        dst = (h + 1) * WP2 + 1
        a3_scr[dst:dst + IMG_W, :] = y2[h * WP2:h * WP2 + IMG_W, :]

    # ---- ConvBlock 3: conv + bias + tanh (no BN) ----
    for t in range(KSIZE * KSIZE):
        kh, kw = divmod(t, KSIZE)
        off = kh * WP2 + kw
        p3_scr[:, t * C1:(t + 1) * C1] = a3_scr[off:off + R2, :]
    y3 = jnp.dot(p3_scr[...], wc3_ref[...], preferred_element_type=f32)      # (R2, IMG_C)
    y3 = jnp.tanh(y3 + bb3_ref[...])

    # ---- drop junk columns; only the final image touches HBM (NHWC-flat) ----
    for h in range(IMG_H):
        o_ref[0, h * IMG_W:(h + 1) * IMG_W, :] = y3[h * WP2:h * WP2 + IMG_W, :]


# ---------------- wrapper ----------------
def generator_forward(z, kp):
    """z: (B, latent, 1, 1) -> (B, IMG_C, IMG_H, IMG_W).  kp: arrays only (jit-safe)."""
    B = z.shape[0]
    z3 = z.reshape(B, 1, LATENT_DIM)
    out_flat = pl.pallas_call(
        _fused_generator_kernel,
        out_shape=jax.ShapeDtypeStruct((B, IMG_H * IMG_W, IMG_C), jnp.float32),
        grid=(B,),
        in_specs=[
            pl.BlockSpec((1, 1, LATENT_DIM), lambda b: (b, 0, 0)),        # z
            pl.BlockSpec((HW0, LATENT_DIM, C0), lambda b: (0, 0, 0)),     # w1s (linear, NHWC, BN0 folded)
            pl.BlockSpec((HW0, C0), lambda b: (0, 0)),                    # b1s
            pl.BlockSpec((A1, HW0), lambda b: (0, 0)),                    # m1 (upsample+pad matrix)
            pl.BlockSpec((9 * C0, C0), lambda b: (0, 0)),                 # wc1
            pl.BlockSpec((1, C0), lambda b: (0, 0)),                      # s1
            pl.BlockSpec((1, C0), lambda b: (0, 0)),                      # bb1
            pl.BlockSpec((A2, R1), lambda b: (0, 0)),                     # m2 (upsample+pad matrix)
            pl.BlockSpec((9 * C0, C1), lambda b: (0, 0)),                 # wc2
            pl.BlockSpec((1, C1), lambda b: (0, 0)),                      # s2
            pl.BlockSpec((1, C1), lambda b: (0, 0)),                      # bb2
            pl.BlockSpec((9 * C1, IMG_C), lambda b: (0, 0)),              # wc3
            pl.BlockSpec((1, IMG_C), lambda b: (0, 0)),                   # bb3
        ],
        out_specs=pl.BlockSpec((1, IMG_H * IMG_W, IMG_C), lambda b: (b, 0, 0)),
        scratch_shapes=[
            pltpu.VMEM((HW0, C0), jnp.float32),        # x0
            pltpu.VMEM((A1, C0), jnp.float32),         # act1 (upsampled + padded)
            pltpu.VMEM((R1, 9 * C0), jnp.float32),     # im2col patches 1
            pltpu.VMEM((A2, C0), jnp.float32),         # act2
            pltpu.VMEM((R2, 9 * C0), jnp.float32),     # im2col patches 2
            pltpu.VMEM((A3, C1), jnp.float32),         # act3
            pltpu.VMEM((R2, 9 * C1), jnp.float32),     # im2col patches 3
        ],
        compiler_params=pltpu.CompilerParams(dimension_semantics=("parallel",)),
    )(z3, kp["w1s"], kp["b1s"], kp["m1"], kp["wc1"], kp["s1"], kp["bb1"],
      kp["m2"], kp["wc2"], kp["s2"], kp["bb2"], kp["wc3"], kp["bb3"])
    img = out_flat.reshape(B, IMG_H, IMG_W, IMG_C)
    return jnp.transpose(img, (0, 3, 1, 2))                          # NCHW, as the PyTorch module


# ---------------- parameter construction & kernel-param prep ----------------
def init_params(key):
    """Raw, torch-like parameters (arrays only)."""
    ks = jax.random.split(key, 8)
    out_dim = INIT_C * HW0

    def bn(k, c):
        kk = jax.random.split(k, 4)
        return dict(gamma=1.0 + 0.1 * jax.random.normal(kk[0], (c,), jnp.float32),
                    beta=0.1 * jax.random.normal(kk[1], (c,), jnp.float32),
                    mean=0.1 * jax.random.normal(kk[2], (c,), jnp.float32),
                    var=jax.random.uniform(kk[3], (c,), jnp.float32, minval=0.5, maxval=1.5))

    def conv(k, cin, cout, ksz):
        kk = jax.random.split(k, 2)
        return dict(w=0.05 * jax.random.normal(kk[0], (ksz, ksz, cin, cout), jnp.float32),  # HWIO
                    b=0.05 * jax.random.normal(kk[1], (cout,), jnp.float32))

    return dict(
        l1_w=0.05 * jax.random.normal(ks[0], (LATENT_DIM, out_dim), jnp.float32),
        l1_b=0.05 * jax.random.normal(ks[1], (out_dim,), jnp.float32),
        bn0=bn(ks[2], INIT_C),
        cb1=dict(**conv(ks[3], INIT_C, INIT_C, KSIZE), bn=bn(ks[4], INIT_C)),
        cb2=dict(**conv(ks[5], INIT_C, C1, KSIZE), bn=bn(ks[6], C1)),
        cb3=conv(ks[7], C1, IMG_C, KSIZE),
    )


def _up2_pad1_matrix(h_in, w_in, in_stride, tail):
    """Constant 0/1 matrix mapping a flattened input grid (row stride `in_stride`, valid cols < w_in)
    to its nearest-x2-upsampled, zero-padded(1) image flattened row-major (+`tail` zero rows)."""
    h_up, w_up = 2 * h_in, 2 * w_in
    hp, wp = h_up + 2, w_up + 2
    m = np.zeros((hp * wp + tail, h_in * in_stride), np.float32)
    for r in range(h_up):
        for c in range(w_up):
            m[(r + 1) * wp + (c + 1), (r // 2) * in_stride + (c // 2)] = 1.0
    return jnp.asarray(m)


def prepare_kernel_params(raw):
    """Fold eval-mode BNs, permute the Linear into per-spatial-position NHWC matrices, flatten conv
    weights to (KH*KW*Cin, Cout), and build the constant upsample/pad matrices.  Arrays only."""
    bn0 = raw["bn0"]
    s0 = bn0["gamma"] / jnp.sqrt(bn0["var"] + BN_EPS)                          # (C0,)
    w1 = raw["l1_w"].reshape(LATENT_DIM, INIT_C, HW0)                          # (D, C, S); o = c*S + s
    w1s = jnp.transpose(w1, (2, 0, 1)) * s0[None, None, :]                     # (S, D, C)
    b1 = raw["l1_b"].reshape(INIT_C, HW0).T                                    # (S, C)
    b1s = (b1 - bn0["mean"][None, :]) * s0[None, :] + bn0["beta"][None, :]

    def fold_conv(blk):
        wflat = blk["w"].reshape(-1, blk["w"].shape[-1])                       # (KH*KW*Cin, Cout)
        if "bn" in blk:
            bn = blk["bn"]
            sc = bn["gamma"] / jnp.sqrt(bn["var"] + BN_EPS)
            bi = (blk["b"] - bn["mean"]) * sc + bn["beta"]
        else:
            sc = jnp.ones_like(blk["b"])
            bi = blk["b"]
        return wflat, sc.reshape(1, -1), bi.reshape(1, -1)

    wc1, s1, bb1 = fold_conv(raw["cb1"])
    wc2, s2, bb2 = fold_conv(raw["cb2"])
    wc3, _, bb3 = fold_conv(raw["cb3"])

    return dict(
        w1s=w1s, b1s=b1s,
        m1=_up2_pad1_matrix(INIT_H, INIT_W, INIT_W, KSIZE - 1),                # (102, 16)
        m2=_up2_pad1_matrix(2 * INIT_H, 2 * INIT_W, WP1, KSIZE - 1),           # (326, 80)
        wc1=wc1, s1=s1, bb1=bb1,
        wc2=wc2, s2=s2, bb2=bb2,
        wc3=wc3, bb3=bb3,
    )


# ---------------- pure-JAX reference (correctness check) ----------------
def generator_forward_ref(z, p):
    B = z.shape[0]
    zf = z.reshape(B, LATENT_DIM)
    h = zf @ p["l1_w"] + p["l1_b"]
    x = h.reshape(B, INIT_C, INIT_H, INIT_W)
    bn0 = p["bn0"]
    x = (x - bn0["mean"][None, :, None, None]) / jnp.sqrt(bn0["var"][None, :, None, None] + BN_EPS)
    x = x * bn0["gamma"][None, :, None, None] + bn0["beta"][None, :, None, None]
    x = jnp.transpose(x, (0, 2, 3, 1))                                         # NHWC

    def block(x, blk, upsample, act):
        if upsample:
            x = jnp.repeat(jnp.repeat(x, 2, axis=1), 2, axis=2)
        y = jax.lax.conv_general_dilated(x, blk["w"], (1, 1), "SAME",
                                         dimension_numbers=("NHWC", "HWIO", "NHWC"))
        y = y + blk["b"][None, None, None, :]
        if "bn" in blk:
            bnp = blk["bn"]
            y = (y - bnp["mean"]) / jnp.sqrt(bnp["var"] + BN_EPS) * bnp["gamma"] + bnp["beta"]
        return jnp.where(y > 0.0, y, LEAKY_SLOPE * y) if act == "leakyrelu" else jnp.tanh(y)

    x = block(x, p["cb1"], True, "leakyrelu")
    x = block(x, p["cb2"], True, "leakyrelu")
    x = block(x, p["cb3"], False, "tanh")
    return jnp.transpose(x, (0, 3, 1, 2))


if __name__ == "__main__":
    root = jax.random.PRNGKey(0)
    k_params, k_z = jax.random.split(root)
    raw = init_params(k_params)
    kp = prepare_kernel_params(raw)                      # arrays only -> jit-safe
    z = jax.random.normal(k_z, (BATCH, LATENT_DIM, 1, 1), jnp.float32)

    fwd = jax.jit(generator_forward)
    out = jax.block_until_ready(fwd(z, kp))

    ref = generator_forward_ref(z, raw)
    assert out.shape == (BATCH, IMG_C, IMG_H, IMG_W), out.shape
    max_err = float(jnp.max(jnp.abs(out - ref)))
    assert jnp.allclose(out, ref, atol=5e-2, rtol=5e-2), max_err
    print("KERNEL_OK")
</pallas_src>

<mosaic_0001>
module attributes {stable_mosaic.version = 11 : i64} {
  func.func @_fused_generator_kernel(%arg0: i32, %arg1: memref<1x1x16xf32, #tpu.memory_space<vmem>>, %arg2: memref<16x16x32xf32, #tpu.memory_space<vmem>>, %arg3: memref<16x32xf32, #tpu.memory_space<vmem>>, %arg4: memref<102x16xf32, #tpu.memory_space<vmem>>, %arg5: memref<288x32xf32, #tpu.memory_space<vmem>>, %arg6: memref<1x32xf32, #tpu.memory_space<vmem>>, %arg7: memref<1x32xf32, #tpu.memory_space<vmem>>, %arg8: memref<326x80xf32, #tpu.memory_space<vmem>>, %arg9: memref<288x16xf32, #tpu.memory_space<vmem>>, %arg10: memref<1x16xf32, #tpu.memory_space<vmem>>, %arg11: memref<1x16xf32, #tpu.memory_space<vmem>>, %arg12: memref<144x4xf32, #tpu.memory_space<vmem>>, %arg13: memref<1x4xf32, #tpu.memory_space<vmem>>, %arg14: memref<1x256x4xf32, #tpu.memory_space<vmem>>, %arg15: memref<16x32xf32, #tpu.memory_space<vmem>>, %arg16: memref<102x32xf32, #tpu.memory_space<vmem>>, %arg17: memref<80x288xf32, #tpu.memory_space<vmem>>, %arg18: memref<326x32xf32, #tpu.memory_space<vmem>>, %arg19: memref<288x288xf32, #tpu.memory_space<vmem>>, %arg20: memref<326x16xf32, #tpu.memory_space<vmem>>, %arg21: memref<288x144xf32, #tpu.memory_space<vmem>>) attributes {dimension_semantics = [#tpu.dimension_semantics<parallel>], iteration_bounds = array<i64: 2>, scalar_prefetch = 0 : i64, scratch_operands = 7 : i64, tpu.core_type = #tpu.core_type<tc>, window_params = [{transform_indices = @transform_0, window_bounds = array<i64: 1, 1, 16>}, {pipeline_mode = #tpu.pipeline_mode<synchronous>, transform_indices = @transform_1, window_bounds = array<i64: 16, 16, 32>}, {pipeline_mode = #tpu.pipeline_mode<synchronous>, transform_indices = @transform_2, window_bounds = array<i64: 16, 32>}, {pipeline_mode = #tpu.pipeline_mode<synchronous>, transform_indices = @transform_3, window_bounds = array<i64: 102, 16>}, {pipeline_mode = #tpu.pipeline_mode<synchronous>, transform_indices = @transform_4, window_bounds = array<i64: 288, 32>}, {pipeline_mode = #tpu.pipeline_mode<synchronous>, transform_indices = @transform_5, window_bounds = array<i64: 1, 32>}, {pipeline_mode = #tpu.pipeline_mode<synchronous>, transform_indices = @transform_6, window_bounds = array<i64: 1, 32>}, {pipeline_mode = #tpu.pipeline_mode<synchronous>, transform_indices = @transform_7, window_bounds = array<i64: 326, 80>}, {pipeline_mode = #tpu.pipeline_mode<synchronous>, transform_indices = @transform_8, window_bounds = array<i64: 288, 16>}, {pipeline_mode = #tpu.pipeline_mode<synchronous>, transform_indices = @transform_9, window_bounds = array<i64: 1, 16>}, {pipeline_mode = #tpu.pipeline_mode<synchronous>, transform_indices = @transform_10, window_bounds = array<i64: 1, 16>}, {pipeline_mode = #tpu.pipeline_mode<synchronous>, transform_indices = @transform_11, window_bounds = array<i64: 144, 4>}, {pipeline_mode = #tpu.pipeline_mode<synchronous>, transform_indices = @transform_12, window_bounds = array<i64: 1, 4>}, {transform_indices = @transform_13, window_bounds = array<i64: 1, 256, 4>}]} {
    %c0 = arith.constant 0 : index
    %c0_0 = arith.constant 0 : index
    %c0_1 = arith.constant 0 : index
    %0 = vector.load %arg1[%c0, %c0_0, %c0_1] : memref<1x1x16xf32, #tpu.memory_space<vmem>>, vector<1x1x16xf32>
    %1 = vector.shape_cast %0 : vector<1x1x16xf32> to vector<1x16xf32>
    %c0_2 = arith.constant 0 : index
    %c0_3 = arith.constant 0 : index
    %c0_4 = arith.constant 0 : index
    %2 = vector.load %arg2[%c0_2, %c0_3, %c0_4] : memref<16x16x32xf32, #tpu.memory_space<vmem>>, vector<1x16x32xf32>
    %3 = vector.shape_cast %2 : vector<1x16x32xf32> to vector<16x32xf32>
    %cst = arith.constant dense<0.000000e+00> : vector<1x32xf32>
    %4 = tpu.matmul %1, %3, %cst {dimension_numbers = #tpu.dot_dimension_numbers<[1], [0], [0], [1], [0, 0, 1, 1], [], []>} : vector<1x16xf32>, vector<16x32xf32>, vector<1x32xf32> -> vector<1x32xf32>
    %c0_5 = arith.constant 0 : index
    %c0_6 = arith.constant 0 : index
    %5 = vector.load %arg15[%c0_5, %c0_6] : memref<16x32xf32, #tpu.memory_space<vmem>>, vector<1x32xf32>
    tpu.vector_store %arg15[%c0_5, %c0_6], %4 {strides = array<i32>} : memref<16x32xf32, #tpu.memory_space<vmem>>, vector<1x32xf32>,
    %c1 = arith.constant 1 : index
    %c0_7 = arith.constant 0 : index
    %c0_8 = arith.constant 0 : index
    %6 = vector.load %arg2[%c1, %c0_7, %c0_8] : memref<16x16x32xf32, #tpu.memory_space<vmem>>, vector<1x16x32xf32>
    %7 = vector.shape_cast %6 : vector<1x16x32xf32> to vector<16x32xf32>
    %cst_9 = arith.constant dense<0.000000e+00> : vector<1x32xf32>
    %8 = tpu.matmul %1, %7, %cst_9 {dimension_numbers = #tpu.dot_dimension_numbers<[1], [0], [0], [1], [0, 0, 1, 1], [], []>} : vector<1x16xf32>, vector<16x32xf32>, vector<1x32xf32> -> vector<1x32xf32>
    %c1_10 = arith.constant 1 : index
    %c0_11 = arith.constant 0 : index
    %9 = vector.load %arg15[%c1_10, %c0_11] : memref<16x32xf32, #tpu.memory_space<vmem>>, vector<1x32xf32>
    tpu.vector_store %arg15[%c1_10, %c0_11], %8 {strides = array<i32>} : memref<16x32xf32, #tpu.memory_space<vmem>>, vector<1x32xf32>,
    %c2 = arith.constant 2 : index
    %c0_12 = arith.constant 0 : index
    %c0_13 = arith.constant 0 : index
    %10 = vector.load %arg2[%c2, %c0_12, %c0_13] : memref<16x16x32xf32, #tpu.memory_space<vmem>>, vector<1x16x32xf32>
    %11 = vector.shape_cast %10 : vector<1x16x32xf32> to vector<16x32xf32>
    %cst_14 = arith.constant dense<0.000000e+00> : vector<1x32xf32>
    %12 = tpu.matmul %1, %11, %cst_14 {dimension_numbers = #tpu.dot_dimension_numbers<[1], [0], [0], [1], [0, 0, 1, 1], [], []>} : vector<1x16xf32>, vector<16x32xf32>, vector<1x32xf32> -> vector<1x32xf32>
    %c2_15 = arith.constant 2 : index
    %c0_16 = arith.constant 0 : index
    %13 = vector.load %arg15[%c2_15, %c0_16] : memref<16x32xf32, #tpu.memory_space<vmem>>, vector<1x32xf32>
    tpu.vector_store %arg15[%c2_15, %c0_16], %12 {strides = array<i32>} : memref<16x32xf32, #tpu.memory_space<vmem>>, vector<1x32xf32>,
    %c3 = arith.constant 3 : index
    %c0_17 = arith.constant 0 : index
    %c0_18 = arith.constant 0 : index
    %14 = vector.load %arg2[%c3, %c0_17, %c0_18] : memref<16x16x32xf32, #tpu.memory_space<vmem>>, vector<1x16x32xf32>
    %15 = vector.shape_cast %14 : vector<1x16x32xf32> to vector<16x32xf32>
    %cst_19 = arith.constant dense<0.000000e+00> : vector<1x32xf32>
    %16 = tpu.matmul %1, %15, %cst_19 {dimension_numbers = #tpu.dot_dimension_numbers<[1], [0], [0], [1], [0, 0, 1, 1], [], []>} : vector<1x16xf32>, vector<16x32xf32>, vector<1x32xf32> -> vector<1x32xf32>
    %c3_20 = arith.constant 3 : index
    %c0_21 = arith.constant 0 : index
    %17 = vector.load %arg15[%c3_20, %c0_21] : memref<16x32xf32, #tpu.memory_space<vmem>>, vector<1x32xf32>
    tpu.vector_store %arg15[%c3_20, %c0_21], %16 {strides = array<i32>} : memref<16x32xf32, #tpu.memory_space<vmem>>, vector<1x32xf32>,
    %c4 = arith.constant 4 : index
    %c0_22 = arith.constant 0 : index
    %c0_23 = arith.constant 0 : index
    %18 = vector.load %arg2[%c4, %c0_22, %c0_23] : memref<16x16x32xf32, #tpu.memory_space<vmem>>, vector<1x16x32xf32>
    %19 = vector.shape_cast %18 : vector<1x16x32xf32> to vector<16x32xf32>
    %cst_24 = arith.constant dense<0.000000e+00> : vector<1x32xf32>
    %20 = tpu.matmul %1, %19, %cst_24 {dimension_numbers = #tpu.dot_dimension_numbers<[1], [0], [0], [1], [0, 0, 1, 1], [], []>} : vector<1x16xf32>, vector<16x32xf32>, vector<1x32xf32> -> vector<1x32xf32>
    %c4_25 = arith.constant 4 : index
    %c0_26 = arith.constant 0 : index
    %21 = vector.load %arg15[%c4_25, %c0_26] : memref<16x32xf32, #tpu.memory_space<vmem>>, vector<1x32xf32>
    tpu.vector_store %arg15[%c4_25, %c0_26], %20 {strides = array<i32>} : memref<16x32xf32, #tpu.memory_space<vmem>>, vector<1x32xf32>,
    %c5 = arith.constant 5 : index
    %c0_27 = arith.constant 0 : index
    %c0_28 = arith.constant 0 : index
    %22 = vector.load %arg2[%c5, %c0_27, %c0_28] : memref<16x16x32xf32, #tpu.memory_space<vmem>>, vector<1x16x32xf32>
    %23 = vector.shape_cast %22 : vector<1x16x32xf32> to vector<16x32xf32>
    %cst_29 = arith.constant dense<0.000000e+00> : vector<1x32xf32>
    %24 = tpu.matmul %1, %23, %cst_29 {dimension_numbers = #tpu.dot_dimension_numbers<[1], [0], [0], [1], [0, 0, 1, 1], [], []>} : vector<1x16xf32>, vector<16x32xf32>, vector<1x32xf32> -> vector<1x32xf32>
    %c5_30 = arith.constant 5 : index
    %c0_31 = arith.constant 0 : index
    %25 = vector.load %arg15[%c5_30, %c0_31] : memref<16x32xf32, #tpu.memory_space<vmem>>, vector<1x32xf32>
    tpu.vector_store %arg15[%c5_30, %c0_31], %24 {strides = array<i32>} : memref<16x32xf32, #tpu.memory_space<vmem>>, vector<1x32xf32>,
    %c6 = arith.constant 6 : index
    %c0_32 = arith.constant 0 : index
    %c0_33 = arith.constant 0 : index
    %26 = vector.load %arg2[%c6, %c0_32, %c0_33] : memref<16x16x32xf32, #tpu.memory_space<vmem>>, vector<1x16x32xf32>
    %27 = vector.shape_cast %26 : vector<1x16x32xf32> to vector<16x32xf32>
    %cst_34 = arith.constant dense<0.000000e+00> : vector<1x32xf32>
    %28 = tpu.matmul %1, %27, %cst_34 {dimension_numbers = #tpu.dot_dimension_numbers<[1], [0], [0], [1], [0, 0, 1, 1], [], []>} : vector<1x16xf32>, vector<16x32xf32>, vector<1x32xf32> -> vector<1x32xf32>
    %c6_35 = arith.constant 6 : index
    %c0_36 = arith.constant 0 : index
    %29 = vector.load %arg15[%c6_35, %c0_36] : memref<16x32xf32, #tpu.memory_space<vmem>>, vector<1x32xf32>
    tpu.vector_store %arg15[%c6_35, %c0_36], %28 {strides = array<i32>} : memref<16x32xf32, #tpu.memory_space<vmem>>, vector<1x32xf32>,
    %c7 = arith.constant 7 : index
    %c0_37 = arith.constant 0 : index
    %c0_38 = arith.constant 0 : index
    %30 = vector.load %arg2[%c7, %c0_37, %c0_38] : memref<16x16x32xf32, #tpu.memory_space<vmem>>, vector<1x16x32xf32>
    %31 = vector.shape_cast %30 : vector<1x16x32xf32> to vector<16x32xf32>
    %cst_39 = arith.constant dense<0.000000e+00> : vector<1x32xf32>
    %32 = tpu.matmul %1, %31, %cst_39 {dimension_numbers = #tpu.dot_dimension_numbers<[1], [0], [0], [1], [0, 0, 1, 1], [], []>} : vector<1x16xf32>, vector<16x32xf32>, vector<1x32xf32> -> vector<1x32xf32>
    %c7_40 = arith.constant 7 : index
    %c0_41 = arith.constant 0 : index
    %33 = vector.load %arg15[%c7_40, %c0_41] : memref<16x32xf32, #tpu.memory_space<vmem>>, vector<1x32xf32>
    tpu.vector_store %arg15[%c7_40, %c0_41], %32 {strides = array<i32>} : memref<16x32xf32, #tpu.memory_space<vmem>>, vector<1x32xf32>,
    %c8 = arith.constant 8 : index
    %c0_42 = arith.constant 0 : index
    %c0_43 = arith.constant 0 : index
    %34 = vector.load %arg2[%c8, %c0_42, %c0_43] : memref<16x16x32xf32, #tpu.memory_space<vmem>>, vector<1x16x32xf32>
    %35 = vector.shape_cast %34 : vector<1x16x32xf32> to vector<16x32xf32>
    %cst_44 = arith.constant dense<0.000000e+00> : vector<1x32xf32>
    %36 = tpu.matmul %1, %35, %cst_44 {dimension_numbers = #tpu.dot_dimension_numbers<[1], [0], [0], [1], [0, 0, 1, 1], [], []>} : vector<1x16xf32>, vector<16x32xf32>, vector<1x32xf32> -> vector<1x32xf32>
    %c8_45 = arith.constant 8 : index
    %c0_46 = arith.constant 0 : index
    %37 = vector.load %arg15[%c8_45, %c0_46] : memref<16x32xf32, #tpu.memory_space<vmem>>, vector<1x32xf32>
    tpu.vector_store %arg15[%c8_45, %c0_46], %36 {strides = array<i32>} : memref<16x32xf32, #tpu.memory_space<vmem>>, vector<1x32xf32>,
    %c9 = arith.constant 9 : index
    %c0_47 = arith.constant 0 : index
    %c0_48 = arith.constant 0 : index
    %38 = vector.load %arg2[%c9, %c0_47, %c0_48] : memref<16x16x32xf32, #tpu.memory_space<vmem>>, vector<1x16x32xf32>
    %39 = vector.shape_cast %38 : vector<1x16x32xf32> to vector<16x32xf32>
    %cst_49 = arith.constant dense<0.000000e+00> : vector<1x32xf32>
    %40 = tpu.matmul %1, %39, %cst_49 {dimension_numbers = #tpu.dot_dimension_numbers<[1], [0], [0], [1], [0, 0, 1, 1], [], []>} : vector<1x16xf32>, vector<16x32xf32>, vector<1x32xf32> -> vector<1x32xf32>
    %c9_50 = arith.constant 9 : index
    %c0_51 = arith.constant 0 : index
    %41 = vector.load %arg15[%c9_50, %c0_51] : memref<16x32xf32, #tpu.memory_space<vmem>>, vector<1x32xf32>
    tpu.vector_store %arg15[%c9_50, %c0_51], %40 {strides = array<i32>} : memref<16x32xf32, #tpu.memory_space<vmem>>, vector<1x32xf32>,
    %c10 = arith.constant 10 : index
    %c0_52 = arith.constant 0 : index
    %c0_53 = arith.constant 0 : index
    %42 = vector.load %arg2[%c10, %c0_52, %c0_53] : memref<16x16x32xf32, #tpu.memory_space<vmem>>, vector<1x16x32xf32>
    %43 = vector.shape_cast %42 : vector<1x16x32xf32> to vector<16x32xf32>
    %cst_54 = arith.constant dense<0.000000e+00> : vector<1x32xf32>
    %44 = tpu.matmul %1, %43, %cst_54 {dimension_numbers = #tpu.dot_dimension_numbers<[1], [0], [0], [1], [0, 0, 1, 1], [], []>} : vector<1x16xf32>, vector<16x32xf32>, vector<1x32xf32> -> vector<1x32xf32>
    %c10_55 = arith.constant 10 : index
    %c0_56 = arith.constant 0 : index
    %45 = vector.load %arg15[%c10_55, %c0_56] : memref<16x32xf32, #tpu.memory_space<vmem>>, vector<1x32xf32>
    tpu.vector_store %arg15[%c10_55, %c0_56], %44 {strides = array<i32>} : memref<16x32xf32, #tpu.memory_space<vmem>>, vector<1x32xf32>,
    %c11 = arith.constant 11 : index
    %c0_57 = arith.constant 0 : index
    %c0_58 = arith.constant 0 : index
    %46 = vector.load %arg2[%c11, %c0_57, %c0_58] : memref<16x16x32xf32, #tpu.memory_space<vmem>>, vector<1x16x32xf32>
    %47 = vector.shape_cast %46 : vector<1x16x32xf32> to vector<16x32xf32>
    %cst_59 = arith.constant dense<0.000000e+00> : vector<1x32xf32>
    %48 = tpu.matmul %1, %47, %cst_59 {dimension_numbers = #tpu.dot_dimension_numbers<[1], [0], [0], [1], [0, 0, 1, 1], [], []>} : vector<1x16xf32>, vector<16x32xf32>, vector<1x32xf32> -> vector<1x32xf32>
    %c11_60 = arith.constant 11 : index
    %c0_61 = arith.constant 0 : index
    %49 = vector.load %arg15[%c11_60, %c0_61] : memref<16x32xf32, #tpu.memory_space<vmem>>, vector<1x32xf32>
    tpu.vector_store %arg15[%c11_60, %c0_61], %48 {strides = array<i32>} : memref<16x32xf32, #tpu.memory_space<vmem>>, vector<1x32xf32>,
    %c12 = arith.constant 12 : index
    %c0_62 = arith.constant 0 : index
    %c0_63 = arith.constant 0 : index
    %50 = vector.load %arg2[%c12, %c0_62, %c0_63] : memref<16x16x32xf32, #tpu.memory_space<vmem>>, vector<1x16x32xf32>
    %51 = vector.shape_cast %50 : vector<1x16x32xf32> to vector<16x32xf32>
    %cst_64 = arith.constant dense<0.000000e+00> : vector<1x32xf32>
    %52 = tpu.matmul %1, %51, %cst_64 {dimension_numbers = #tpu.dot_dimension_numbers<[1], [0], [0], [1], [0, 0, 1, 1], [], []>} : vector<1x16xf32>, vector<16x32xf32>, vector<1x32xf32> -> vector<1x32xf32>
    %c12_65 = arith.constant 12 : index
    %c0_66 = arith.constant 0 : index
    %53 = vector.load %arg15[%c12_65, %c0_66] : memref<16x32xf32, #tpu.memory_space<vmem>>, vector<1x32xf32>
    tpu.vector_store %arg15[%c12_65, %c0_66], %52 {strides = array<i32>} : memref<16x32xf32, #tpu.memory_space<vmem>>, vector<1x32xf32>,
    %c13 = arith.constant 13 : index
    %c0_67 = arith.constant 0 : index
    %c0_68 = arith.constant 0 : index
    %54 = vector.load %arg2[%c13, %c0_67, %c0_68] : memref<16x16x32xf32, #tpu.memory_space<vmem>>, vector<1x16x32xf32>
    %55 = vector.shape_cast %54 : vector<1x16x32xf32> to vector<16x32xf32>
    %cst_69 = arith.constant dense<0.000000e+00> : vector<1x32xf32>
    %56 = tpu.matmul %1, %55, %cst_69 {dimension_numbers = #tpu.dot_dimension_numbers<[1], [0], [0], [1], [0, 0, 1, 1], [], []>} : vector<1x16xf32>, vector<16x32xf32>, vector<1x32xf32> -> vector<1x32xf32>
    %c13_70 = arith.constant 13 : index
    %c0_71 = arith.constant 0 : index
    %57 = vector.load %arg15[%c13_70, %c0_71] : memref<16x32xf32, #tpu.memory_space<vmem>>, vector<1x32xf32>
    tpu.vector_store %arg15[%c13_70, %c0_71], %56 {strides = array<i32>} : memref<16x32xf32, #tpu.memory_space<vmem>>, vector<1x32xf32>,
    %c14 = arith.constant 14 : index
    %c0_72 = arith.constant 0 : index
    %c0_73 = arith.constant 0 : index
    %58 = vector.load %arg2[%c14, %c0_72, %c0_73] : memref<16x16x32xf32, #tpu.memory_space<vmem>>, vector<1x16x32xf32>
    %59 = vector.shape_cast %58 : vector<1x16x32xf32> to vector<16x32xf32>
    %cst_74 = arith.constant dense<0.000000e+00> : vector<1x32xf32>
    %60 = tpu.matmul %1, %59, %cst_74 {dimension_numbers = #tpu.dot_dimension_numbers<[1], [0], [0], [1], [0, 0, 1, 1], [], []>} : vector<1x16xf32>, vector<16x32xf32>, vector<1x32xf32> -> vector<1x32xf32>
    %c14_75 = arith.constant 14 : index
    %c0_76 = arith.constant 0 : index
    %61 = vector.load %arg15[%c14_75, %c0_76] : memref<16x32xf32, #tpu.memory_space<vmem>>, vector<1x32xf32>
    tpu.vector_store %arg15[%c14_75, %c0_76], %60 {strides = array<i32>} : memref<16x32xf32, #tpu.memory_space<vmem>>, vector<1x32xf32>,
    %c15 = arith.constant 15 : index
    %c0_77 = arith.constant 0 : index
    %c0_78 = arith.constant 0 : index
    %62 = vector.load %arg2[%c15, %c0_77, %c0_78] : memref<16x16x32xf32, #tpu.memory_space<vmem>>, vector<1x16x32xf32>
    %63 = vector.shape_cast %62 : vector<1x16x32xf32> to vector<16x32xf32>
    %cst_79 = arith.constant dense<0.000000e+00> : vector<1x32xf32>
    %64 = tpu.matmul %1, %63, %cst_79 {dimension_numbers = #tpu.dot_dimension_numbers<[1], [0], [0], [1], [0, 0, 1, 1], [], []>} : vector<1x16xf32>, vector<16x32xf32>, vector<1x32xf32> -> vector<1x32xf32>
    %c15_80 = arith.constant 15 : index
    %c0_81 = arith.constant 0 : index
    %65 = vector.load %arg15[%c15_80, %c0_81] : memref<16x32xf32, #tpu.memory_space<vmem>>, vector<1x32xf32>
    tpu.vector_store %arg15[%c15_80, %c0_81], %64 {strides = array<i32>} : memref<16x32xf32, #tpu.memory_space<vmem>>, vector<1x32xf32>,
    %c0_82 = arith.constant 0 : index
    %c0_83 = arith.constant 0 : index
    %66 = vector.load %arg15[%c0_82, %c0_83] : memref<16x32xf32, #tpu.memory_space<vmem>>, vector<16x32xf32>
    %c0_84 = arith.constant 0 : index
    %c0_85 = arith.constant 0 : index
    %67 = vector.load %arg3[%c0_84, %c0_85] : memref<16x32xf32, #tpu.memory_space<vmem>>, vector<16x32xf32>
    %68 = arith.addf %66, %67 : vector<16x32xf32>
    %c0_86 = arith.constant 0 : index
    %c0_87 = arith.constant 0 : index
    %69 = vector.load %arg4[%c0_86, %c0_87] : memref<102x16xf32, #tpu.memory_space<vmem>>, vector<102x16xf32>
    %cst_88 = arith.constant dense<0.000000e+00> : vector<102x32xf32>
    %70 = tpu.matmul %69, %68, %cst_88 {dimension_numbers = #tpu.dot_dimension_numbers<[1], [0], [0], [1], [0, 0, 1, 1], [], []>} : vector<102x16xf32>, vector<16x32xf32>, vector<102x32xf32> -> vector<102x32xf32>
    %c0_89 = arith.constant 0 : index
    %c0_90 = arith.constant 0 : index
    %71 = vector.load %arg16[%c0_89, %c0_90] : memref<102x32xf32, #tpu.memory_space<vmem>>, vector<102x32xf32>
    tpu.vector_store %arg16[%c0_89, %c0_90], %70 {strides = array<i32>} : memref<102x32xf32, #tpu.memory_space<vmem>>, vector<102x32xf32>,
    %c0_91 = arith.constant 0 : index
    %c0_92 = arith.constant 0 : index
    %72 = vector.load %arg16[%c0_91, %c0_92] : memref<102x32xf32, #tpu.memory_space<vmem>>, vector<80x32xf32>
    %c0_93 = arith.constant 0 : index
    %c0_94 = arith.constant 0 : index
    %73 = vector.load %arg17[%c0_93, %c0_94] : memref<80x288xf32, #tpu.memory_space<vmem>>, vector<80x32xf32>
    tpu.vector_store %arg17[%c0_93, %c0_94], %72 {strides = array<i32>} : memref<80x288xf32, #tpu.memory_space<vmem>>, vector<80x32xf32>,
    %c1_95 = arith.constant 1 : index
    %c0_96 = arith.constant 0 : index
    %74 = vector.load %arg16[%c1_95, %c0_96] : memref<102x32xf32, #tpu.memory_space<vmem>>, vector<80x32xf32>
    %c0_97 = arith.constant 0 : index
    %c32 = arith.constant 32 : index
    %75 = vector.load %arg17[%c0_97, %c32] : memref<80x288xf32, #tpu.memory_space<vmem>>, vector<80x32xf32>
    tpu.vector_store %arg17[%c0_97, %c32], %74 {strides = array<i32>} : memref<80x288xf32, #tpu.memory_space<vmem>>, vector<80x32xf32>,
    %c2_98 = arith.constant 2 : index
    %c0_99 = arith.constant 0 : index
    %76 = vector.load %arg16[%c2_98, %c0_99] : memref<102x32xf32, #tpu.memory_space<vmem>>, vector<80x32xf32>
    %c0_100 = arith.constant 0 : index
    %c64 = arith.constant 64 : index
    %77 = vector.load %arg17[%c0_100, %c64] : memref<80x288xf32, #tpu.memory_space<vmem>>, vector<80x32xf32>
    tpu.vector_store %arg17[%c0_100, %c64], %76 {strides = array<i32>} : memref<80x288xf32, #tpu.memory_space<vmem>>, vector<80x32xf32>,
    %c10_101 = arith.constant 10 : index
    %c0_102 = arith.constant 0 : index
    %78 = vector.load %arg16[%c10_101, %c0_102] : memref<102x32xf32, #tpu.memory_space<vmem>>, vector<80x32xf32>
    %c0_103 = arith.constant 0 : index
    %c96 = arith.constant 96 : index
    %79 = vector.load %arg17[%c0_103, %c96] : memref<80x288xf32, #tpu.memory_space<vmem>>, vector<80x32xf32>
    tpu.vector_store %arg17[%c0_103, %c96], %78 {strides = array<i32>} : memref<80x288xf32, #tpu.memory_space<vmem>>, vector<80x32xf32>,
    %c11_104 = arith.constant 11 : index
    %c0_105 = arith.constant 0 : index
    %80 = vector.load %arg16[%c11_104, %c0_105] : memref<102x32xf32, #tpu.memory_space<vmem>>, vector<80x32xf32>
    %c0_106 = arith.constant 0 : index
    %c128 = arith.constant 128 : index
    %81 = vector.load %arg17[%c0_106, %c128] : memref<80x288xf32, #tpu.memory_space<vmem>>, vector<80x32xf32>
    tpu.vector_store %arg17[%c0_106, %c128], %80 {strides = array<i32>} : memref<80x288xf32, #tpu.memory_space<vmem>>, vector<80x32xf32>,
    %c12_107 = arith.constant 12 : index
    %c0_108 = arith.constant 0 : index
    %82 = vector.load %arg16[%c12_107, %c0_108] : memref<102x32xf32, #tpu.memory_space<vmem>>, vector<80x32xf32>
    %c0_109 = arith.constant 0 : index
    %c160 = arith.constant 160 : index
    %83 = vector.load %arg17[%c0_109, %c160] : memref<80x288xf32, #tpu.memory_space<vmem>>, vector<80x32xf32>
    tpu.vector_store %arg17[%c0_109, %c160], %82 {strides = array<i32>} : memref<80x288xf32, #tpu.memory_space<vmem>>, vector<80x32xf32>,
    %c20 = arith.constant 20 : index
    %c0_110 = arith.constant 0 : index
    %84 = vector.load %arg16[%c20, %c0_110] : memref<102x32xf32, #tpu.memory_space<vmem>>, vector<80x32xf32>
    %c0_111 = arith.constant 0 : index
    %c192 = arith.constant 192 : index
    %85 = vector.load %arg17[%c0_111, %c192] : memref<80x288xf32, #tpu.memory_space<vmem>>, vector<80x32xf32>
    tpu.vector_store %arg17[%c0_111, %c192], %84 {strides = array<i32>} : memref<80x288xf32, #tpu.memory_space<vmem>>, vector<80x32xf32>,
    %c21 = arith.constant 21 : index
    %c0_112 = arith.constant 0 : index
    %86 = vector.load %arg16[%c21, %c0_112] : memref<102x32xf32, #tpu.memory_space<vmem>>, vector<80x32xf32>
    %c0_113 = arith.constant 0 : index
    %c224 = arith.constant 224 : index
    %87 = vector.load %arg17[%c0_113, %c224] : memref<80x288xf32, #tpu.memory_space<vmem>>, vector<80x32xf32>
    tpu.vector_store %arg17[%c0_113, %c224], %86 {strides = array<i32>} : memref<80x288xf32, #tpu.memory_space<vmem>>, vector<80x32xf32>,
    %c22 = arith.constant 22 : index
    %c0_114 = arith.constant 0 : index
    %88 = vector.load %arg16[%c22, %c0_114] : memref<102x32xf32, #tpu.memory_space<vmem>>, vector<80x32xf32>
    %c0_115 = arith.constant 0 : index
    %c256 = arith.constant 256 : index
    %89 = vector.load %arg17[%c0_115, %c256] : memref<80x288xf32, #tpu.memory_space<vmem>>, vector<80x32xf32>
    tpu.vector_store %arg17[%c0_115, %c256], %88 {strides = array<i32>} : memref<80x288xf32, #tpu.memory_space<vmem>>, vector<80x32xf32>,
    %c0_116 = arith.constant 0 : index
    %c0_117 = arith.constant 0 : index
    %90 = vector.load %arg17[%c0_116, %c0_117] : memref<80x288xf32, #tpu.memory_space<vmem>>, vector<80x288xf32>
    %c0_118 = arith.constant 0 : index
    %c0_119 = arith.constant 0 : index
    %91 = vector.load %arg5[%c0_118, %c0_119] : memref<288x32xf32, #tpu.memory_space<vmem>>, vector<288x32xf32>
    %cst_120 = arith.constant dense<0.000000e+00> : vector<80x32xf32>
    %92 = tpu.matmul %90, %91, %cst_120 {dimension_numbers = #tpu.dot_dimension_numbers<[1], [0], [0], [1], [0, 0, 1, 1], [], []>} : vector<80x288xf32>, vector<288x32xf32>, vector<80x32xf32> -> vector<80x32xf32>
    %c0_121 = arith.constant 0 : index
    %c0_122 = arith.constant 0 : index
    %93 = vector.load %arg6[%c0_121, %c0_122] : memref<1x32xf32, #tpu.memory_space<vmem>>, vector<1x32xf32>
    %94 = vector.broadcast %93 : vector<1x32xf32> to vector<80x32xf32>
    %95 = arith.mulf %92, %94 : vector<80x32xf32>
    %c0_123 = arith.constant 0 : index
    %c0_124 = arith.constant 0 : index
    %96 = vector.load %arg7[%c0_123, %c0_124] : memref<1x32xf32, #tpu.memory_space<vmem>>, vector<1x32xf32>
    %97 = vector.broadcast %96 : vector<1x32xf32> to vector<80x32xf32>
    %98 = arith.addf %95, %97 : vector<80x32xf32>
    %cst_125 = arith.constant 0.000000e+00 : f32
    %99 = vector.broadcast %cst_125 : f32 to vector<80x32xf32>
    %100 = arith.cmpf ogt, %98, %99 : vector<80x32xf32>
    %cst_126 = arith.constant 2.000000e-01 : f32
    %101 = vector.broadcast %cst_126 : f32 to vector<80x32xf32>
    %102 = arith.mulf %101, %98 : vector<80x32xf32>
    %103 = arith.select %100, %98, %102 : vector<80x32xi1>, vector<80x32xf32>
    %c0_127 = arith.constant 0 : index
    %c0_128 = arith.constant 0 : index
    %104 = vector.load %arg8[%c0_127, %c0_128] : memref<326x80xf32, #tpu.memory_space<vmem>>, vector<326x80xf32>
    %cst_129 = arith.constant dense<0.000000e+00> : vector<326x32xf32>
    %105 = tpu.matmul %104, %103, %cst_129 {dimension_numbers = #tpu.dot_dimension_numbers<[1], [0], [0], [1], [0, 0, 1, 1], [], []>} : vector<326x80xf32>, vector<80x32xf32>, vector<326x32xf32> -> vector<326x32xf32>
    %c0_130 = arith.constant 0 : index
    %c0_131 = arith.constant 0 : index
    %106 = vector.load %arg18[%c0_130, %c0_131] : memref<326x32xf32, #tpu.memory_space<vmem>>, vector<326x32xf32>
    tpu.vector_store %arg18[%c0_130, %c0_131], %105 {strides = array<i32>} : memref<326x32xf32, #tpu.memory_space<vmem>>, vector<326x32xf32>,
    %c0_132 = arith.constant 0 : index
    %c0_133 = arith.constant 0 : index
    %107 = vector.load %arg18[%c0_132, %c0_133] : memref<326x32xf32, #tpu.memory_space<vmem>>, vector<288x32xf32>
    %c0_134 = arith.constant 0 : index
    %c0_135 = arith.constant 0 : index
    %108 = vector.load %arg19[%c0_134, %c0_135] : memref<288x288xf32, #tpu.memory_space<vmem>>, vector<288x32xf32>
    tpu.vector_store %arg19[%c0_134, %c0_135], %107 {strides = array<i32>} : memref<288x288xf32, #tpu.memory_space<vmem>>, vector<288x32xf32>,
    %c1_136 = arith.constant 1 : index
    %c0_137 = arith.constant 0 : index
    %109 = vector.load %arg18[%c1_136, %c0_137] : memref<326x32xf32, #tpu.memory_space<vmem>>, vector<288x32xf32>
    %c0_138 = arith.constant 0 : index
    %c32_139 = arith.constant 32 : index
    %110 = vector.load %arg19[%c0_138, %c32_139] : memref<288x288xf32, #tpu.memory_space<vmem>>, vector<288x32xf32>
    tpu.vector_store %arg19[%c0_138, %c32_139], %109 {strides = array<i32>} : memref<288x288xf32, #tpu.memory_space<vmem>>, vector<288x32xf32>,
    %c2_140 = arith.constant 2 : index
    %c0_141 = arith.constant 0 : index
    %111 = vector.load %arg18[%c2_140, %c0_141] : memref<326x32xf32, #tpu.memory_space<vmem>>, vector<288x32xf32>
    %c0_142 = arith.constant 0 : index
    %c64_143 = arith.constant 64 : index
    %112 = vector.load %arg19[%c0_142, %c64_143] : memref<288x288xf32, #tpu.memory_space<vmem>>, vector<288x32xf32>
    tpu.vector_store %arg19[%c0_142, %c64_143], %111 {strides = array<i32>} : memref<288x288xf32, #tpu.memory_space<vmem>>, vector<288x32xf32>,
    %c18 = arith.constant 18 : index
    %c0_144 = arith.constant 0 : index
    %113 = vector.load %arg18[%c18, %c0_144] : memref<326x32xf32, #tpu.memory_space<vmem>>, vector<288x32xf32>
    %c0_145 = arith.constant 0 : index
    %c96_146 = arith.constant 96 : index
    %114 = vector.load %arg19[%c0_145, %c96_146] : memref<288x288xf32, #tpu.memory_space<vmem>>, vector<288x32xf32>
    tpu.vector_store %arg19[%c0_145, %c96_146], %113 {strides = array<i32>} : memref<288x288xf32, #tpu.memory_space<vmem>>, vector<288x32xf32>,
    %c19 = arith.constant 19 : index
    %c0_147 = arith.constant 0 : index
    %115 = vector.load %arg18[%c19, %c0_147] : memref<326x32xf32, #tpu.memory_space<vmem>>, vector<288x32xf32>
    %c0_148 = arith.constant 0 : index
    %c128_149 = arith.constant 128 : index
    %116 = vector.load %arg19[%c0_148, %c128_149] : memref<288x288xf32, #tpu.memory_space<vmem>>, vector<288x32xf32>
    tpu.vector_store %arg19[%c0_148, %c128_149], %115 {strides = array<i32>} : memref<288x288xf32, #tpu.memory_space<vmem>>, vector<288x32xf32>,
    %c20_150 = arith.constant 20 : index
    %c0_151 = arith.constant 0 : index
    %117 = vector.load %arg18[%c20_150, %c0_151] : memref<326x32xf32, #tpu.memory_space<vmem>>, vector<288x32xf32>
    %c0_152 = arith.constant 0 : index
    %c160_153 = arith.constant 160 : index
    %118 = vector.load %arg19[%c0_152, %c160_153] : memref<288x288xf32, #tpu.memory_space<vmem>>, vector<288x32xf32>
    tpu.vector_store %arg19[%c0_152, %c160_153], %117 {strides = array<i32>} : memref<288x288xf32, #tpu.memory_space<vmem>>, vector<288x32xf32>,
    %c36 = arith.constant 36 : index
    %c0_154 = arith.constant 0 : index
    %119 = vector.load %arg18[%c36, %c0_154] : memref<326x32xf32, #tpu.memory_space<vmem>>, vector<288x32xf32>
    %c0_155 = arith.constant 0 : index
    %c192_156 = arith.constant 192 : index
    %120 = vector.load %arg19[%c0_155, %c192_156] : memref<288x288xf32, #tpu.memory_space<vmem>>, vector<288x32xf32>
    tpu.vector_store %arg19[%c0_155, %c192_156], %119 {strides = array<i32>} : memref<288x288xf32, #tpu.memory_space<vmem>>, vector<288x32xf32>,
    %c37 = arith.constant 37 : index
    %c0_157 = arith.constant 0 : index
    %121 = vector.load %arg18[%c37, %c0_157] : memref<326x32xf32, #tpu.memory_space<vmem>>, vector<288x32xf32>
    %c0_158 = arith.constant 0 : index
    %c224_159 = arith.constant 224 : index
    %122 = vector.load %arg19[%c0_158, %c224_159] : memref<288x288xf32, #tpu.memory_space<vmem>>, vector<288x32xf32>
    tpu.vector_store %arg19[%c0_158, %c224_159], %121 {strides = array<i32>} : memref<288x288xf32, #tpu.memory_space<vmem>>, vector<288x32xf32>,
    %c38 = arith.constant 38 : index
    %c0_160 = arith.constant 0 : index
    %123 = vector.load %arg18[%c38, %c0_160] : memref<326x32xf32, #tpu.memory_space<vmem>>, vector<288x32xf32>
    %c0_161 = arith.constant 0 : index
    %c256_162 = arith.constant 256 : index
    %124 = vector.load %arg19[%c0_161, %c256_162] : memref<288x288xf32, #tpu.memory_space<vmem>>, vector<288x32xf32>
    tpu.vector_store %arg19[%c0_161, %c256_162], %123 {strides = array<i32>} : memref<288x288xf32, #tpu.memory_space<vmem>>, vector<288x32xf32>,
    %c0_163 = arith.constant 0 : index
    %c0_164 = arith.constant 0 : index
    %125 = vector.load %arg19[%c0_163, %c0_164] : memref<288x288xf32, #tpu.memory_space<vmem>>, vector<288x288xf32>
    %c0_165 = arith.constant 0 : index
    %c0_166 = arith.constant 0 : index
    %126 = vector.load %arg9[%c0_165, %c0_166] : memref<288x16xf32, #tpu.memory_space<vmem>>, vector<288x16xf32>
    %cst_167 = arith.constant dense<0.000000e+00> : vector<288x16xf32>
    %127 = tpu.matmul %125, %126, %cst_167 {dimension_numbers = #tpu.dot_dimension_numbers<[1], [0], [0], [1], [0, 0, 1, 1], [], []>} : vector<288x288xf32>, vector<288x16xf32>, vector<288x16xf32> -> vector<288x16xf32>
    %c0_168 = arith.constant 0 : index
    %c0_169 = arith.constant 0 : index
    %128 = vector.load %arg10[%c0_168, %c0_169] : memref<1x16xf32, #tpu.memory_space<vmem>>, vector<1x16xf32>
    %129 = vector.broadcast %128 : vector<1x16xf32> to vector<288x16xf32>
    %130 = arith.mulf %127, %129 : vector<288x16xf32>
    %c0_170 = arith.constant 0 : index
    %c0_171 = arith.constant 0 : index
    %131 = vector.load %arg11[%c0_170, %c0_171] : memref<1x16xf32, #tpu.memory_space<vmem>>, vector<1x16xf32>
    %132 = vector.broadcast %131 : vector<1x16xf32> to vector<288x16xf32>
    %133 = arith.addf %130, %132 : vector<288x16xf32>
    %cst_172 = arith.constant 0.000000e+00 : f32
    %134 = vector.broadcast %cst_172 : f32 to vector<288x16xf32>
    %135 = arith.cmpf ogt, %133, %134 : vector<288x16xf32>
    %cst_173 = arith.constant 2.000000e-01 : f32
    %136 = vector.broadcast %cst_173 : f32 to vector<288x16xf32>
    %137 = arith.mulf %136, %133 : vector<288x16xf32>
    %138 = arith.select %135, %133, %137 : vector<288x16xi1>, vector<288x16xf32>
    %cst_174 = arith.constant 0.000000e+00 : f32
    %139 = vector.broadcast %cst_174 : f32 to vector<326x16xf32>
    %c0_175 = arith.constant 0 : index
    %c0_176 = arith.constant 0 : index
    %140 = vector.load %arg20[%c0_175, %c0_176] : memref<326x16xf32, #tpu.memory_space<vmem>>, vector<326x16xf32>
    tpu.vector_store %arg20[%c0_175, %c0_176], %139 {strides = array<i32>} : memref<326x16xf32, #tpu.memory_space<vmem>>, vector<326x16xf32>,
    %141 = vector.extract_strided_slice %138 {offsets = [0, 0], sizes = [16, 16], strides = [1, 1]} : vector<288x16xf32> to vector<16x16xf32>
    %c19_177 = arith.constant 19 : index
    %c0_178 = arith.constant 0 : index
    %142 = vector.load %arg20[%c19_177, %c0_178] : memref<326x16xf32, #tpu.memory_space<vmem>>, vector<16x16xf32>
    tpu.vector_store %arg20[%c19_177, %c0_178], %141 {strides = array<i32>} : memref<326x16xf32, #tpu.memory_space<vmem>>, vector<16x16xf32>,
    %143 = vector.extract_strided_slice %138 {offsets = [18, 0], sizes = [16, 16], strides = [1, 1]} : vector<288x16xf32> to vector<16x16xf32>
    %c37_179 = arith.constant 37 : index
    %c0_180 = arith.constant 0 : index
    %144 = vector.load %arg20[%c37_179, %c0_180] : memref<326x16xf32, #tpu.memory_space<vmem>>, vector<16x16xf32>
    tpu.vector_store %arg20[%c37_179, %c0_180], %143 {strides = array<i32>} : memref<326x16xf32, #tpu.memory_space<vmem>>, vector<16x16xf32>,
    %145 = vector.extract_strided_slice %138 {offsets = [36, 0], sizes = [16, 16], strides = [1, 1]} : vector<288x16xf32> to vector<16x16xf32>
    %c55 = arith.constant 55 : index
    %c0_181 = arith.constant 0 : index
    %146 = vector.load %arg20[%c55, %c0_181] : memref<326x16xf32, #tpu.memory_space<vmem>>, vector<16x16xf32>
    tpu.vector_store %arg20[%c55, %c0_181], %145 {strides = array<i32>} : memref<326x16xf32, #tpu.memory_space<vmem>>, vector<16x16xf32>,
    %147 = vector.extract_strided_slice %138 {offsets = [54, 0], sizes = [16, 16], strides = [1, 1]} : vector<288x16xf32> to vector<16x16xf32>
    %c73 = arith.constant 73 : index
    %c0_182 = arith.constant 0 : index
    %148 = vector.load %arg20[%c73, %c0_182] : memref<326x16xf32, #tpu.memory_space<vmem>>, vector<16x16xf32>
    tpu.vector_store %arg20[%c73, %c0_182], %147 {strides = array<i32>} : memref<326x16xf32, #tpu.memory_space<vmem>>, vector<16x16xf32>,
    %149 = vector.extract_strided_slice %138 {offsets = [72, 0], sizes = [16, 16], strides = [1, 1]} : vector<288x16xf32> to vector<16x16xf32>
    %c91 = arith.constant 91 : index
    %c0_183 = arith.constant 0 : index
    %150 = vector.load %arg20[%c91, %c0_183] : memref<326x16xf32, #tpu.memory_space<vmem>>, vector<16x16xf32>
    tpu.vector_store %arg20[%c91, %c0_183], %149 {strides = array<i32>} : memref<326x16xf32, #tpu.memory_space<vmem>>, vector<16x16xf32>,
    %151 = vector.extract_strided_slice %138 {offsets = [90, 0], sizes = [16, 16], strides = [1, 1]} : vector<288x16xf32> to vector<16x16xf32>
    %c109 = arith.constant 109 : index
    %c0_184 = arith.constant 0 : index
    %152 = vector.load %arg20[%c109, %c0_184] : memref<326x16xf32, #tpu.memory_space<vmem>>, vector<16x16xf32>
    tpu.vector_store %arg20[%c109, %c0_184], %151 {strides = array<i32>} : memref<326x16xf32, #tpu.memory_space<vmem>>, vector<16x16xf32>,
    %153 = vector.extract_strided_slice %138 {offsets = [108, 0], sizes = [16, 16], strides = [1, 1]} : vector<288x16xf32> to vector<16x16xf32>
    %c127 = arith.constant 127 : index
    %c0_185 = arith.constant 0 : index
    %154 = vector.load %arg20[%c127, %c0_185] : memref<326x16xf32, #tpu.memory_space<vmem>>, vector<16x16xf32>
    tpu.vector_store %arg20[%c127, %c0_185], %153 {strides = array<i32>} : memref<326x16xf32, #tpu.memory_space<vmem>>, vector<16x16xf32>,
    %155 = vector.extract_strided_slice %138 {offsets = [126, 0], sizes = [16, 16], strides = [1, 1]} : vector<288x16xf32> to vector<16x16xf32>
    %c145 = arith.constant 145 : index
    %c0_186 = arith.constant 0 : index
    %156 = vector.load %arg20[%c145, %c0_186] : memref<326x16xf32, #tpu.memory_space<vmem>>, vector<16x16xf32>
    tpu.vector_store %arg20[%c145, %c0_186], %155 {strides = array<i32>} : memref<326x16xf32, #tpu.memory_space<vmem>>, vector<16x16xf32>,
    %157 = vector.extract_strided_slice %138 {offsets = [144, 0], sizes = [16, 16], strides = [1, 1]} : vector<288x16xf32> to vector<16x16xf32>
    %c163 = arith.constant 163 : index
    %c0_187 = arith.constant 0 : index
    %158 = vector.load %arg20[%c163, %c0_187] : memref<326x16xf32, #tpu.memory_space<vmem>>, vector<16x16xf32>
    tpu.vector_store %arg20[%c163, %c0_187], %157 {strides = array<i32>} : memref<326x16xf32, #tpu.memory_space<vmem>>, vector<16x16xf32>,
    %159 = vector.extract_strided_slice %138 {offsets = [162, 0], sizes = [16, 16], strides = [1, 1]} : vector<288x16xf32> to vector<16x16xf32>
    %c181 = arith.constant 181 : index
    %c0_188 = arith.constant 0 : index
    %160 = vector.load %arg20[%c181, %c0_188] : memref<326x16xf32, #tpu.memory_space<vmem>>, vector<16x16xf32>
    tpu.vector_store %arg20[%c181, %c0_188], %159 {strides = array<i32>} : memref<326x16xf32, #tpu.memory_space<vmem>>, vector<16x16xf32>,
    %161 = vector.extract_strided_slice %138 {offsets = [180, 0], sizes = [16, 16], strides = [1, 1]} : vector<288x16xf32> to vector<16x16xf32>
    %c199 = arith.constant 199 : index
    %c0_189 = arith.constant 0 : index
    %162 = vector.load %arg20[%c199, %c0_189] : memref<326x16xf32, #tpu.memory_space<vmem>>, vector<16x16xf32>
    tpu.vector_store %arg20[%c199, %c0_189], %161 {strides = array<i32>} : memref<326x16xf32, #tpu.memory_space<vmem>>, vector<16x16xf32>,
    %163 = vector.extract_strided_slice %138 {offsets = [198, 0], sizes = [16, 16], strides = [1, 1]} : vector<288x16xf32> to vector<16x16xf32>
    %c217 = arith.constant 217 : index
    %c0_190 = arith.constant 0 : index
    %164 = vector.load %arg20[%c217, %c0_190] : memref<326x16xf32, #tpu.memory_space<vmem>>, vector<16x16xf32>
    tpu.vector_store %arg20[%c217, %c0_190], %163 {strides = array<i32>} : memref<326x16xf32, #tpu.memory_space<vmem>>, vector<16x16xf32>,
    %165 = vector.extract_strided_slice %138 {offsets = [216, 0], sizes = [16, 16], strides = [1, 1]} : vector<288x16xf32> to vector<16x16xf32>
    %c235 = arith.constant 235 : index
    %c0_191 = arith.constant 0 : index
    %166 = vector.load %arg20[%c235, %c0_191] : memref<326x16xf32, #tpu.memory_space<vmem>>, vector<16x16xf32>
    tpu.vector_store %arg20[%c235, %c0_191], %165 {strides = array<i32>} : memref<326x16xf32, #tpu.memory_space<vmem>>, vector<16x16xf32>,
    %167 = vector.extract_strided_slice %138 {offsets = [234, 0], sizes = [16, 16], strides = [1, 1]} : vector<288x16xf32> to vector<16x16xf32>
    %c253 = arith.constant 253 : index
    %c0_192 = arith.constant 0 : index
    %168 = vector.load %arg20[%c253, %c0_192] : memref<326x16xf32, #tpu.memory_space<vmem>>, vector<16x16xf32>
    tpu.vector_store %arg20[%c253, %c0_192], %167 {strides = array<i32>} : memref<326x16xf32, #tpu.memory_space<vmem>>, vector<16x16xf32>,
    %169 = vector.extract_strided_slice %138 {offsets = [252, 0], sizes = [16, 16], strides = [1, 1]} : vector<288x16xf32> to vector<16x16xf32>
    %c271 = arith.constant 271 : index
    %c0_193 = arith.constant 0 : index
    %170 = vector.load %arg20[%c271, %c0_193] : memref<326x16xf32, #tpu.memory_space<vmem>>, vector<16x16xf32>
    tpu.vector_store %arg20[%c271, %c0_193], %169 {strides = array<i32>} : memref<326x16xf32, #tpu.memory_space<vmem>>, vector<16x16xf32>,
    %171 = vector.extract_strided_slice %138 {offsets = [270, 0], sizes = [16, 16], strides = [1, 1]} : vector<288x16xf32> to vector<16x16xf32>
    %c289 = arith.constant 289 : index
    %c0_194 = arith.constant 0 : index
    %172 = vector.load %arg20[%c289, %c0_194] : memref<326x16xf32, #tpu.memory_space<vmem>>, vector<16x16xf32>
    tpu.vector_store %arg20[%c289, %c0_194], %171 {strides = array<i32>} : memref<326x16xf32, #tpu.memory_space<vmem>>, vector<16x16xf32>,
    %c0_195 = arith.constant 0 : index
    %c0_196 = arith.constant 0 : index
    %173 = vector.load %arg20[%c0_195, %c0_196] : memref<326x16xf32, #tpu.memory_space<vmem>>, vector<288x16xf32>
    %c0_197 = arith.constant 0 : index
    %c0_198 = arith.constant 0 : index
    %174 = vector.load %arg21[%c0_197, %c0_198] : memref<288x144xf32, #tpu.memory_space<vmem>>, vector<288x16xf32>
    tpu.vector_store %arg21[%c0_197, %c0_198], %173 {strides = array<i32>} : memref<288x144xf32, #tpu.memory_space<vmem>>, vector<288x16xf32>,
    %c1_199 = arith.constant 1 : index
    %c0_200 = arith.constant 0 : index
    %175 = vector.load %arg20[%c1_199, %c0_200] : memref<326x16xf32, #tpu.memory_space<vmem>>, vector<288x16xf32>
    %c0_201 = arith.constant 0 : index
    %c16 = arith.constant 16 : index
    %176 = vector.load %arg21[%c0_201, %c16] : memref<288x144xf32, #tpu.memory_space<vmem>>, vector<288x16xf32>
    tpu.vector_store %arg21[%c0_201, %c16], %175 {strides = array<i32>} : memref<288x144xf32, #tpu.memory_space<vmem>>, vector<288x16xf32>,
    %c2_202 = arith.constant 2 : index
    %c0_203 = arith.constant 0 : index
    %177 = vector.load %arg20[%c2_202, %c0_203] : memref<326x16xf32, #tpu.memory_space<vmem>>, vector<288x16xf32>
    %c0_204 = arith.constant 0 : index
    %c32_205 = arith.constant 32 : index
    %178 = vector.load %arg21[%c0_204, %c32_205] : memref<288x144xf32, #tpu.memory_space<vmem>>, vector<288x16xf32>
    tpu.vector_store %arg21[%c0_204, %c32_205], %177 {strides = array<i32>} : memref<288x144xf32, #tpu.memory_space<vmem>>, vector<288x16xf32>,
    %c18_206 = arith.constant 18 : index
    %c0_207 = arith.constant 0 : index
    %179 = vector.load %arg20[%c18_206, %c0_207] : memref<326x16xf32, #tpu.memory_space<vmem>>, vector<288x16xf32>
    %c0_208 = arith.constant 0 : index
    %c48 = arith.constant 48 : index
    %180 = vector.load %arg21[%c0_208, %c48] : memref<288x144xf32, #tpu.memory_space<vmem>>, vector<288x16xf32>
    tpu.vector_store %arg21[%c0_208, %c48], %179 {strides = array<i32>} : memref<288x144xf32, #tpu.memory_space<vmem>>, vector<288x16xf32>,
    %c19_209 = arith.constant 19 : index
    %c0_210 = arith.constant 0 : index
    %181 = vector.load %arg20[%c19_209, %c0_210] : memref<326x16xf32, #tpu.memory_space<vmem>>, vector<288x16xf32>
    %c0_211 = arith.constant 0 : index
    %c64_212 = arith.constant 64 : index
    %182 = vector.load %arg21[%c0_211, %c64_212] : memref<288x144xf32, #tpu.memory_space<vmem>>, vector<288x16xf32>
    tpu.vector_store %arg21[%c0_211, %c64_212], %181 {strides = array<i32>} : memref<288x144xf32, #tpu.memory_space<vmem>>, vector<288x16xf32>,
    %c20_213 = arith.constant 20 : index
    %c0_214 = arith.constant 0 : index
    %183 = vector.load %arg20[%c20_213, %c0_214] : memref<326x16xf32, #tpu.memory_space<vmem>>, vector<288x16xf32>
    %c0_215 = arith.constant 0 : index
    %c80 = arith.constant 80 : index
    %184 = vector.load %arg21[%c0_215, %c80] : memref<288x144xf32, #tpu.memory_space<vmem>>, vector<288x16xf32>
    tpu.vector_store %arg21[%c0_215, %c80], %183 {strides = array<i32>} : memref<288x144xf32, #tpu.memory_space<vmem>>, vector<288x16xf32>,
    %c36_216 = arith.constant 36 : index
    %c0_217 = arith.constant 0 : index
    %185 = vector.load %arg20[%c36_216, %c0_217] : memref<326x16xf32, #tpu.memory_space<vmem>>, vector<288x16xf32>
    %c0_218 = arith.constant 0 : index
    %c96_219 = arith.constant 96 : index
    %186 = vector.load %arg21[%c0_218, %c96_219] : memref<288x144xf32, #tpu.memory_space<vmem>>, vector<288x16xf32>
    tpu.vector_store %arg21[%c0_218, %c96_219], %185 {strides = array<i32>} : memref<288x144xf32, #tpu.memory_space<vmem>>, vector<288x16xf32>,
    %c37_220 = arith.constant 37 : index
    %c0_221 = arith.constant 0 : index
    %187 = vector.load %arg20[%c37_220, %c0_221] : memref<326x16xf32, #tpu.memory_space<vmem>>, vector<288x16xf32>
    %c0_222 = arith.constant 0 : index
    %c112 = arith.constant 112 : index
    %188 = vector.load %arg21[%c0_222, %c112] : memref<288x144xf32, #tpu.memory_space<vmem>>, vector<288x16xf32>
    tpu.vector_store %arg21[%c0_222, %c112], %187 {strides = array<i32>} : memref<288x144xf32, #tpu.memory_space<vmem>>, vector<288x16xf32>,
    %c38_223 = arith.constant 38 : index
    %c0_224 = arith.constant 0 : index
    %189 = vector.load %arg20[%c38_223, %c0_224] : memref<326x16xf32, #tpu.memory_space<vmem>>, vector<288x16xf32>
    %c0_225 = arith.constant 0 : index
    %c128_226 = arith.constant 128 : index
    %190 = vector.load %arg21[%c0_225, %c128_226] : memref<288x144xf32, #tpu.memory_space<vmem>>, vector<288x16xf32>
    tpu.vector_store %arg21[%c0_225, %c128_226], %189 {strides = array<i32>} : memref<288x144xf32, #tpu.memory_space<vmem>>, vector<288x16xf32>,
    %c0_227 = arith.constant 0 : index
    %c0_228 = arith.constant 0 : index
    %191 = vector.load %arg21[%c0_227, %c0_228] : memref<288x144xf32, #tpu.memory_space<vmem>>, vector<288x144xf32>
    %c0_229 = arith.constant 0 : index
    %c0_230 = arith.constant 0 : index
    %192 = vector.load %arg12[%c0_229, %c0_230] : memref<144x4xf32, #tpu.memory_space<vmem>>, vector<144x4xf32>
    %cst_231 = arith.constant dense<0.000000e+00> : vector<288x4xf32>
    %193 = tpu.matmul %191, %192, %cst_231 {dimension_numbers = #tpu.dot_dimension_numbers<[1], [0], [0], [1], [0, 0, 1, 1], [], []>} : vector<288x144xf32>, vector<144x4xf32>, vector<288x4xf32> -> vector<288x4xf32>
    %c0_232 = arith.constant 0 : index
    %c0_233 = arith.constant 0 : index
    %194 = vector.load %arg13[%c0_232, %c0_233] : memref<1x4xf32, #tpu.memory_space<vmem>>, vector<1x4xf32>
    %195 = vector.broadcast %194 : vector<1x4xf32> to vector<288x4xf32>
    %196 = arith.addf %193, %195 : vector<288x4xf32>
    %197 = math.tanh %196 : vector<288x4xf32>
    %198 = vector.extract_strided_slice %197 {offsets = [0, 0], sizes = [16, 4], strides = [1, 1]} : vector<288x4xf32> to vector<16x4xf32>
    %c0_234 = arith.constant 0 : index
    %c0_235 = arith.constant 0 : index
    %c0_236 = arith.constant 0 : index
    %199 = vector.load %arg14[%c0_234, %c0_235, %c0_236] : memref<1x256x4xf32, #tpu.memory_space<vmem>>, vector<1x16x4xf32>
    %200 = vector.shape_cast %199 : vector<1x16x4xf32> to vector<16x4xf32>
    %201 = vector.shape_cast %198 : vector<16x4xf32> to vector<1x16x4xf32>
    tpu.vector_store %arg14[%c0_234, %c0_235, %c0_236], %201 {strides = array<i32>} : memref<1x256x4xf32, #tpu.memory_space<vmem>>, vector<1x16x4xf32>,
    %202 = vector.extract_strided_slice %197 {offsets = [18, 0], sizes = [16, 4], strides = [1, 1]} : vector<288x4xf32> to vector<16x4xf32>
    %c0_237 = arith.constant 0 : index
    %c16_238 = arith.constant 16 : index
    %c0_239 = arith.constant 0 : index
    %203 = vector.load %arg14[%c0_237, %c16_238, %c0_239] : memref<1x256x4xf32, #tpu.memory_space<vmem>>, vector<1x16x4xf32>
    %204 = vector.shape_cast %203 : vector<1x16x4xf32> to vector<16x4xf32>
    %205 = vector.shape_cast %202 : vector<16x4xf32> to vector<1x16x4xf32>
    tpu.vector_store %arg14[%c0_237, %c16_238, %c0_239], %205 {strides = array<i32>} : memref<1x256x4xf32, #tpu.memory_space<vmem>>, vector<1x16x4xf32>,
    %206 = vector.extract_strided_slice %197 {offsets = [36, 0], sizes = [16, 4], strides = [1, 1]} : vector<288x4xf32> to vector<16x4xf32>
    %c0_240 = arith.constant 0 : index
    %c32_241 = arith.constant 32 : index
    %c0_242 = arith.constant 0 : index
    %207 = vector.load %arg14[%c0_240, %c32_241, %c0_242] : memref<1x256x4xf32, #tpu.memory_space<vmem>>, vector<1x16x4xf32>
    %208 = vector.shape_cast %207 : vector<1x16x4xf32> to vector<16x4xf32>
    %209 = vector.shape_cast %206 : vector<16x4xf32> to vector<1x16x4xf32>
    tpu.vector_store %arg14[%c0_240, %c32_241, %c0_242], %209 {strides = array<i32>} : memref<1x256x4xf32, #tpu.memory_space<vmem>>, vector<1x16x4xf32>,
    %210 = vector.extract_strided_slice %197 {offsets = [54, 0], sizes = [16, 4], strides = [1, 1]} : vector<288x4xf32> to vector<16x4xf32>
    %c0_243 = arith.constant 0 : index
    %c48_244 = arith.constant 48 : index
    %c0_245 = arith.constant 0 : index
    %211 = vector.load %arg14[%c0_243, %c48_244, %c0_245] : memref<1x256x4xf32, #tpu.memory_space<vmem>>, vector<1x16x4xf32>
    %212 = vector.shape_cast %211 : vector<1x16x4xf32> to vector<16x4xf32>
    %213 = vector.shape_cast %210 : vector<16x4xf32> to vector<1x16x4xf32>
    tpu.vector_store %arg14[%c0_243, %c48_244, %c0_245], %213 {strides = array<i32>} : memref<1x256x4xf32, #tpu.memory_space<vmem>>, vector<1x16x4xf32>,
    %214 = vector.extract_strided_slice %197 {offsets = [72, 0], sizes = [16, 4], strides = [1, 1]} : vector<288x4xf32> to vector<16x4xf32>
    %c0_246 = arith.constant 0 : index
    %c64_247 = arith.constant 64 : index
    %c0_248 = arith.constant 0 : index
    %215 = vector.load %arg14[%c0_246, %c64_247, %c0_248] : memref<1x256x4xf32, #tpu.memory_space<vmem>>, vector<1x16x4xf32>
    %216 = vector.shape_cast %215 : vector<1x16x4xf32> to vector<16x4xf32>
    %217 = vector.shape_cast %214 : vector<16x4xf32> to vector<1x16x4xf32>
    tpu.vector_store %arg14[%c0_246, %c64_247, %c0_248], %217 {strides = array<i32>} : memref<1x256x4xf32, #tpu.memory_space<vmem>>, vector<1x16x4xf32>,
    %218 = vector.extract_strided_slice %197 {offsets = [90, 0], sizes = [16, 4], strides = [1, 1]} : vector<288x4xf32> to vector<16x4xf32>
    %c0_249 = arith.constant 0 : index
    %c80_250 = arith.constant 80 : index
    %c0_251 = arith.constant 0 : index
    %219 = vector.load %arg14[%c0_249, %c80_250, %c0_251] : memref<1x256x4xf32, #tpu.memory_space<vmem>>, vector<1x16x4xf32>
    %220 = vector.shape_cast %219 : vector<1x16x4xf32> to vector<16x4xf32>
    %221 = vector.shape_cast %218 : vector<16x4xf32> to vector<1x16x4xf32>
    tpu.vector_store %arg14[%c0_249, %c80_250, %c0_251], %221 {strides = array<i32>} : memref<1x256x4xf32, #tpu.memory_space<vmem>>, vector<1x16x4xf32>,
    %222 = vector.extract_strided_slice %197 {offsets = [108, 0], sizes = [16, 4], strides = [1, 1]} : vector<288x4xf32> to vector<16x4xf32>
    %c0_252 = arith.constant 0 : index
    %c96_253 = arith.constant 96 : index
    %c0_254 = arith.constant 0 : index
    %223 = vector.load %arg14[%c0_252, %c96_253, %c0_254] : memref<1x256x4xf32, #tpu.memory_space<vmem>>, vector<1x16x4xf32>
    %224 = vector.shape_cast %223 : vector<1x16x4xf32> to vector<16x4xf32>
    %225 = vector.shape_cast %222 : vector<16x4xf32> to vector<1x16x4xf32>
    tpu.vector_store %arg14[%c0_252, %c96_253, %c0_254], %225 {strides = array<i32>} : memref<1x256x4xf32, #tpu.memory_space<vmem>>, vector<1x16x4xf32>,
    %226 = vector.extract_strided_slice %197 {offsets = [126, 0], sizes = [16, 4], strides = [1, 1]} : vector<288x4xf32> to vector<16x4xf32>
    %c0_255 = arith.constant 0 : index
    %c112_256 = arith.constant 112 : index
    %c0_257 = arith.constant 0 : index
    %227 = vector.load %arg14[%c0_255, %c112_256, %c0_257] : memref<1x256x4xf32, #tpu.memory_space<vmem>>, vector<1x16x4xf32>
    %228 = vector.shape_cast %227 : vector<1x16x4xf32> to vector<16x4xf32>
    %229 = vector.shape_cast %226 : vector<16x4xf32> to vector<1x16x4xf32>
    tpu.vector_store %arg14[%c0_255, %c112_256, %c0_257], %229 {strides = array<i32>} : memref<1x256x4xf32, #tpu.memory_space<vmem>>, vector<1x16x4xf32>,
    %230 = vector.extract_strided_slice %197 {offsets = [144, 0], sizes = [16, 4], strides = [1, 1]} : vector<288x4xf32> to vector<16x4xf32>
    %c0_258 = arith.constant 0 : index
    %c128_259 = arith.constant 128 : index
    %c0_260 = arith.constant 0 : index
    %231 = vector.load %arg14[%c0_258, %c128_259, %c0_260] : memref<1x256x4xf32, #tpu.memory_space<vmem>>, vector<1x16x4xf32>
    %232 = vector.shape_cast %231 : vector<1x16x4xf32> to vector<16x4xf32>
    %233 = vector.shape_cast %230 : vector<16x4xf32> to vector<1x16x4xf32>
    tpu.vector_store %arg14[%c0_258, %c128_259, %c0_260], %233 {strides = array<i32>} : memref<1x256x4xf32, #tpu.memory_space<vmem>>, vector<1x16x4xf32>,
    %234 = vector.extract_strided_slice %197 {offsets = [162, 0], sizes = [16, 4], strides = [1, 1]} : vector<288x4xf32> to vector<16x4xf32>
    %c0_261 = arith.constant 0 : index
    %c144 = arith.constant 144 : index
    %c0_262 = arith.constant 0 : index
    %235 = vector.load %arg14[%c0_261, %c144, %c0_262] : memref<1x256x4xf32, #tpu.memory_space<vmem>>, vector<1x16x4xf32>
    %236 = vector.shape_cast %235 : vector<1x16x4xf32> to vector<16x4xf32>
    %237 = vector.shape_cast %234 : vector<16x4xf32> to vector<1x16x4xf32>
    tpu.vector_store %arg14[%c0_261, %c144, %c0_262], %237 {strides = array<i32>} : memref<1x256x4xf32, #tpu.memory_space<vmem>>, vector<1x16x4xf32>,
    %238 = vector.extract_strided_slice %197 {offsets = [180, 0], sizes = [16, 4], strides = [1, 1]} : vector<288x4xf32> to vector<16x4xf32>
    %c0_263 = arith.constant 0 : index
    %c160_264 = arith.constant 160 : index
    %c0_265 = arith.constant 0 : index
    %239 = vector.load %arg14[%c0_263, %c160_264, %c0_265] : memref<1x256x4xf32, #tpu.memory_space<vmem>>, vector<1x16x4xf32>
    %240 = vector.shape_cast %239 : vector<1x16x4xf32> to vector<16x4xf32>
    %241 = vector.shape_cast %238 : vector<16x4xf32> to vector<1x16x4xf32>
    tpu.vector_store %arg14[%c0_263, %c160_264, %c0_265], %241 {strides = array<i32>} : memref<1x256x4xf32, #tpu.memory_space<vmem>>, vector<1x16x4xf32>,
    %242 = vector.extract_strided_slice %197 {offsets = [198, 0], sizes = [16, 4], strides = [1, 1]} : vector<288x4xf32> to vector<16x4xf32>
    %c0_266 = arith.constant 0 : index
    %c176 = arith.constant 176 : index
    %c0_267 = arith.constant 0 : index
    %243 = vector.load %arg14[%c0_266, %c176, %c0_267] : memref<1x256x4xf32, #tpu.memory_space<vmem>>, vector<1x16x4xf32>
    %244 = vector.shape_cast %243 : vector<1x16x4xf32> to vector<16x4xf32>
    %245 = vector.shape_cast %242 : vector<16x4xf32> to vector<1x16x4xf32>
    tpu.vector_store %arg14[%c0_266, %c176, %c0_267], %245 {strides = array<i32>} : memref<1x256x4xf32, #tpu.memory_space<vmem>>, vector<1x16x4xf32>,
    %246 = vector.extract_strided_slice %197 {offsets = [216, 0], sizes = [16, 4], strides = [1, 1]} : vector<288x4xf32> to vector<16x4xf32>
    %c0_268 = arith.constant 0 : index
    %c192_269 = arith.constant 192 : index
    %c0_270 = arith.constant 0 : index
    %247 = vector.load %arg14[%c0_268, %c192_269, %c0_270] : memref<1x256x4xf32, #tpu.memory_space<vmem>>, vector<1x16x4xf32>
    %248 = vector.shape_cast %247 : vector<1x16x4xf32> to vector<16x4xf32>
    %249 = vector.shape_cast %246 : vector<16x4xf32> to vector<1x16x4xf32>
    tpu.vector_store %arg14[%c0_268, %c192_269, %c0_270], %249 {strides = array<i32>} : memref<1x256x4xf32, #tpu.memory_space<vmem>>, vector<1x16x4xf32>,
    %250 = vector.extract_strided_slice %197 {offsets = [234, 0], sizes = [16, 4], strides = [1, 1]} : vector<288x4xf32> to vector<16x4xf32>
    %c0_271 = arith.constant 0 : index
    %c208 = arith.constant 208 : index
    %c0_272 = arith.constant 0 : index
    %251 = vector.load %arg14[%c0_271, %c208, %c0_272] : memref<1x256x4xf32, #tpu.memory_space<vmem>>, vector<1x16x4xf32>
    %252 = vector.shape_cast %251 : vector<1x16x4xf32> to vector<16x4xf32>
    %253 = vector.shape_cast %250 : vector<16x4xf32> to vector<1x16x4xf32>
    tpu.vector_store %arg14[%c0_271, %c208, %c0_272], %253 {strides = array<i32>} : memref<1x256x4xf32, #tpu.memory_space<vmem>>, vector<1x16x4xf32>,
    %254 = vector.extract_strided_slice %197 {offsets = [252, 0], sizes = [16, 4], strides = [1, 1]} : vector<288x4xf32> to vector<16x4xf32>
    %c0_273 = arith.constant 0 : index
    %c224_274 = arith.constant 224 : index
    %c0_275 = arith.constant 0 : index
    %255 = vector.load %arg14[%c0_273, %c224_274, %c0_275] : memref<1x256x4xf32, #tpu.memory_space<vmem>>, vector<1x16x4xf32>
    %256 = vector.shape_cast %255 : vector<1x16x4xf32> to vector<16x4xf32>
    %257 = vector.shape_cast %254 : vector<16x4xf32> to vector<1x16x4xf32>
    tpu.vector_store %arg14[%c0_273, %c224_274, %c0_275], %257 {strides = array<i32>} : memref<1x256x4xf32, #tpu.memory_space<vmem>>, vector<1x16x4xf32>,
    %258 = vector.extract_strided_slice %197 {offsets = [270, 0], sizes = [16, 4], strides = [1, 1]} : vector<288x4xf32> to vector<16x4xf32>
    %c0_276 = arith.constant 0 : index
    %c240 = arith.constant 240 : index
    %c0_277 = arith.constant 0 : index
    %259 = vector.load %arg14[%c0_276, %c240, %c0_277] : memref<1x256x4xf32, #tpu.memory_space<vmem>>, vector<1x16x4xf32>
    %260 = vector.shape_cast %259 : vector<1x16x4xf32> to vector<16x4xf32>
    %261 = vector.shape_cast %258 : vector<16x4xf32> to vector<1x16x4xf32>
    tpu.vector_store %arg14[%c0_276, %c240, %c0_277], %261 {strides = array<i32>} : memref<1x256x4xf32, #tpu.memory_space<vmem>>, vector<1x16x4xf32>,
    return
  }
  func.func @transform_0(%arg0: i32) -> (i32, i32, i32) {
    %c0_i32 = arith.constant 0 : i32
    %c0_i32_0 = arith.constant 0 : i32
    %c0_i32_1 = arith.constant 0 : i32
    return %arg0, %c0_i32, %c0_i32_0 : i32, i32, i32
  }
  func.func @transform_1(%arg0: i32) -> (i32, i32, i32) {
    %c0_i32 = arith.constant 0 : i32
    %c0_i32_0 = arith.constant 0 : i32
    %c0_i32_1 = arith.constant 0 : i32
    %c0_i32_2 = arith.constant 0 : i32
    return %c0_i32, %c0_i32_0, %c0_i32_1 : i32, i32, i32
  }
  func.func @transform_2(%arg0: i32) -> (i32, i32) {
    %c0_i32 = arith.constant 0 : i32
    %c0_i32_0 = arith.constant 0 : i32
    %c0_i32_1 = arith.constant 0 : i32
    return %c0_i32, %c0_i32_0 : i32, i32
  }
  func.func @transform_3(%arg0: i32) -> (i32, i32) {
    %c0_i32 = arith.constant 0 : i32
    %c0_i32_0 = arith.constant 0 : i32
    %c0_i32_1 = arith.constant 0 : i32
    return %c0_i32, %c0_i32_0 : i32, i32
  }
  func.func @transform_4(%arg0: i32) -> (i32, i32) {
    %c0_i32 = arith.constant 0 : i32
    %c0_i32_0 = arith.constant 0 : i32
    %c0_i32_1 = arith.constant 0 : i32
    return %c0_i32, %c0_i32_0 : i32, i32
  }
  func.func @transform_5(%arg0: i32) -> (i32, i32) {
    %c0_i32 = arith.constant 0 : i32
    %c0_i32_0 = arith.constant 0 : i32
    %c0_i32_1 = arith.constant 0 : i32
    return %c0_i32, %c0_i32_0 : i32, i32
  }
  func.func @transform_6(%arg0: i32) -> (i32, i32) {
    %c0_i32 = arith.constant 0 : i32
    %c0_i32_0 = arith.constant 0 : i32
    %c0_i32_1 = arith.constant 0 : i32
    return %c0_i32, %c0_i32_0 : i32, i32
  }
  func.func @transform_7(%arg0: i32) -> (i32, i32) {
    %c0_i32 = arith.constant 0 : i32
    %c0_i32_0 = arith.constant 0 : i32
    %c0_i32_1 = arith.constant 0 : i32
    return %c0_i32, %c0_i32_0 : i32, i32
  }
  func.func @transform_8(%arg0: i32) -> (i32, i32) {
    %c0_i32 = arith.constant 0 : i32
    %c0_i32_0 = arith.constant 0 : i32
    %c0_i32_1 = arith.constant 0 : i32
    return %c0_i32, %c0_i32_0 : i32, i32
  }
  func.func @transform_9(%arg0: i32) -> (i32, i32) {
    %c0_i32 = arith.constant 0 : i32
    %c0_i32_0 = arith.constant 0 : i32
    %c0_i32_1 = arith.constant 0 : i32
    return %c0_i32, %c0_i32_0 : i32, i32
  }
  func.func @transform_10(%arg0: i32) -> (i32, i32) {
    %c0_i32 = arith.constant 0 : i32
    %c0_i32_0 = arith.constant 0 : i32
    %c0_i32_1 = arith.constant 0 : i32
    return %c0_i32, %c0_i32_0 : i32, i32
  }
  func.func @transform_11(%arg0: i32) -> (i32, i32) {
    %c0_i32 = arith.constant 0 : i32
    %c0_i32_0 = arith.constant 0 : i32
    %c0_i32_1 = arith.constant 0 : i32
    return %c0_i32, %c0_i32_0 : i32, i32
  }
  func.func @transform_12(%arg0: i32) -> (i32, i32) {
    %c0_i32 = arith.constant 0 : i32
    %c0_i32_0 = arith.constant 0 : i32
    %c0_i32_1 = arith.constant 0 : i32
    return %c0_i32, %c0_i32_0 : i32, i32
  }
  func.func @transform_13(%arg0: i32) -> (i32, i32, i32) {
    %c0_i32 = arith.constant 0 : i32
    %c0_i32_0 = arith.constant 0 : i32
    %c0_i32_1 = arith.constant 0 : i32
    return %arg0, %c0_i32, %c0_i32_0 : i32, i32, i32
  }
}

</mosaic_0001>

<bundles_post_ra>
// kernel: generator_forward.1
= control target key start
LH: loop header
LB: loop body
LE: loop exit
PB: predicated region body
PF: predicated region fallthrough
CT: control target
= control target key end

     0   :  { %s8958_s25 = smov 0   ;;  %s11844_s0 = inlined_call_operand.vmem [shape: f32[2,1,16], index: 0, kind: input, shape index: {}]   ;;  %s11845_s1 = inlined_call_operand.vmem [shape: f32[16,16,32], index: 1, kind: input, shape index: {}]   ;;  %s11846_s2 = inlined_call_operand.vmem [shape: f32[16,32], index: 2, kind: input, shape index: {}]   ;;  %s11847_s3 = inlined_call_operand.vmem [shape: f32[102,16], index: 3, kind: input, shape index: {}]   ;;  %s11848_s4 = inlined_call_operand.vmem [shape: f32[288,32], index: 4, kind: input, shape index: {}]   ;;  %s11849_s5 = inlined_call_operand.vmem [shape: f32[1,32], index: 5, kind: input, shape index: {}]   ;;  %s11850_s6 = inlined_call_operand.vmem [shape: f32[1,32], index: 6, kind: input, shape index: {}]   ;;  %s11851_s7 = inlined_call_operand.vmem [shape: f32[326,80], index: 7, kind: input, shape index: {}]   ;;  %s11852_s8 = inlined_call_operand.vmem [shape: f32[288,16], index: 8, kind: input, shape index: {}]   ;;  %s11853_s9 = inlined_call_operand.vmem [shape: f32[1,16], index: 9, kind: input, shape index: {}]   ;;  %s11854_s10 = inlined_call_operand.vmem [shape: f32[1,16], index: 10, kind: input, shape index: {}]   ;;  %s11855_s11 = inlined_call_operand.vmem [shape: f32[144,4], index: 11, kind: input, shape index: {}]   ;;  %s11856_s12 = inlined_call_operand.vmem [shape: f32[1,4], index: 12, kind: input, shape index: {}]   ;;  %s11857_s13 = inlined_call_operand.vmem [shape: f32[2,256,4], index: 13, kind: output, shape index: {}]  }
   0x1 LB: > { %s7907_s26 = sadd.s32 4294967295, %s8877_s25   ;;  %p7911_p0 = scmp.ge.s32.totalorder %s8877_s25, 1  ;;  %s8877_s25 = sphi %s8958_s25, %s23_s25  }
   0x2   : > { %p385_p1 = scmp.lt.s32.totalorder %s8877_s25, 3 }
   0x4   : > { %p386_p2 = pnand %p7911_p0, %p385_p1 }
   0x5   : > { %p427_p3 = scmp.lt.s32.totalorder (!%p386_p2), %s7907_s26, 1  ;;  %s8881_s23 = smov (!%p386_p2), 64  }
   0x6   : > { %389 = sbr.rel (%p386_p2) target bundleno = 2756 (0xac4), region = 72  ;;  %s8882_s24 = smov (!%p386_p2), 32  }
   0x7   : > { %s8883_s18 = smov (!%p386_p2), 96   ;;  %s8884_s14 = smov (!%p386_p2), 16  }
   0x8   : > { %s8885_s22 = smov (!%p386_p2), 112   ;;  %s8886_s27 = smov (!%p386_p2), 80  }
   0x9   : > { %s8887_s19 = smov (!%p386_p2), 48  }
   0xb   : > { %v437_v0 = vld [vmem:[%s11845_s1 + $0x8] sm:$0xff]  ;;  %v7916_v1 = vld [vmem:[%s11845_s1 + $0x18] sm:$0xff]  ;;  %v8879_v2 = vmov 0.0   ;;  %v436_v3 = vld [vmem:[%s11845_s1] sm:$0xff]  ;;  %vm438_vm0 = vcmask 130048   ;;  %s11859_s26 = smov (!%p427_p3, %s7907_s26), 1 }
   0xc   : > { %8334 = vmatprep.subr.mxu0 %v8879_v2  ;;  %8341 = vmatprep.subr.mxu1 %v8879_v2  ;;  %v7915_v4 = vld [vmem:[%s11845_s1 + $0x10] sm:$0xff]  ;;  %5564 = vst.msk [vmem:[#allocation7] sm:$0xff] %vm438_vm0, %v8879_v2  ;;  %5565 = vst.msk [vmem:[#allocation7 + $0x8] sm:$0xff] %vm438_vm0, %v8879_v2  ;;  %vm8880_vm1 = vmmov 0   ;;  %s429_s20 = scalar_lea.vmem %s11844_s0, %s11859_s26  ;;  %v7919_v6 = vld [vmem:[%s11845_s1 + $0x28] sm:$0xff]  ;;  %vm512_vm2 = vcmask 253952  }
   0xd   : > { %8335 = vmatpush3.msra.mxu0 %v437_v0  ;;  %8342 = vmatpush3.msra.mxu1 %v7916_v1  ;;  %5566 = vst.msk [vmem:[#allocation7 + $0x10] sm:$0xff] %vm438_vm0, %v8879_v2  ;;  %5567 = vst.msk [vmem:[#allocation7 + $0x18] sm:$0xff] %vm438_vm0, %v8879_v2  ;;  %v9072_v5 = vld [vmem:[%s429_s20] sm:$0x1]  ;;  %v7922_v7 = vld [vmem:[%s11845_s1 + $0x38] sm:$0xff]  ;;  %vm1812_vm3 = vcmask 261120  }
   0xe   : > { %5568 = vst.msk [vmem:[#allocation7 + $0x20] sm:$0xff] %vm438_vm0, %v8879_v2  ;;  %5569 = vst.msk [vmem:[#allocation7 + $0x28] sm:$0xff] %vm438_vm0, %v8879_v2  ;;  %8336 = vmatprep.subr.mxu0 %v8879_v2  ;;  %8343 = vmatprep.subr.mxu1 %v8879_v2  ;;  %v7918_v8 = vld [vmem:[%s11845_s1 + $0x20] sm:$0xff]  ;;  %v7921_v9 = vld [vmem:[%s11845_s1 + $0x30] sm:$0xff]  ;;  %vm1825_vm4 = vcmask 259072   ;;  %vm1897_vm5 = vcmask 523520  }
   0xf   : > { %5570 = vst.msk [vmem:[#allocation7 + $0x30] sm:$0xff] %vm438_vm0, %v8879_v2  ;;  %5571 = vst.msk [vmem:[#allocation7 + $0x38] sm:$0xff] %vm438_vm0, %v8879_v2  ;;  %8337 = vmatpush3.msra.mxu0 %v436_v3  ;;  %8338 = vmatprep.mubr.msk.f32.mxu0 %vm8880_vm1, %v8879_v2  ;;  %v7925_v10 = vld [vmem:[%s11845_s1 + $0x48] sm:$0xff]  ;;  %v7928_v11 = vld [vmem:[%s11845_s1 + $0x58] sm:$0xff]  ;;  %vm1958_vm6 = vcmask 785920   ;;  %vm2019_vm7 = vcmask 1048320  }
  0x10   : > { %5572 = vst.msk [vmem:[#allocation7 + $0x40] sm:$0xff] %vm438_vm0, %v8879_v2  ;;  %5573 = vst.msk [vmem:[#allocation7 + $0x48] sm:$0xff] %vm438_vm0, %v8879_v2  ;;  %8344 = vmatpush3.msra.mxu1 %v7915_v4  ;;  %8345 = vmatprep.mubr.msk.f32.mxu1 %vm8880_vm1, %v8879_v2  ;;  %v7924_v12 = vld [vmem:[%s11845_s1 + $0x40] sm:$0xff]  ;;  %v7927_v13 = vld [vmem:[%s11845_s1 + $0x50] sm:$0xff]  ;;  %s8103_s28 = sshll.u32 %s11859_s26, 8 }
  0x11   : > { %5574 = vst.msk [vmem:[#allocation7 + $0x50] sm:$0xff] %vm438_vm0, %v8879_v2  ;;  %5575 = vst.msk [vmem:[#allocation7 + $0x58] sm:$0xff] %vm438_vm0, %v8879_v2  ;;  %8339 = vmatmul.mubr.msk.f32.vlgmr.msra.gmra.mxu0 %vm438_vm0, %v9072_v5  ;;  %8346 = vmatmul.mubr.msk.f32.vlgmr.msra.gmra.mxu1 %vm438_vm0, %v9072_v5  ;;  %v7931_v14 = vld [vmem:[%s11845_s1 + $0x68] sm:$0xff]  ;;  %v7934_v15 = vld [vmem:[%s11845_s1 + $0x78] sm:$0xff]  ;;  %s11484_s15 = scalar_lea.vmem %s11857_s13, %s8103_s28 }
  0x12   : > { %5576 = vst.msk [vmem:[#allocation7 + $0x60] sm:$0xff] %vm438_vm0, %v8879_v2  ;;  %5577 = vst.msk [vmem:[#allocation7 + $0x68] sm:$0xff] %vm438_vm0, %v8879_v2  ;;  %8348 = vmatprep.subr.mxu0 %v8879_v2  ;;  %8355 = vmatprep.subr.mxu1 %v8879_v2  ;;  %v7930_v16 = vld [vmem:[%s11845_s1 + $0x60] sm:$0xff]  ;;  %v7933_v17 = vld [vmem:[%s11845_s1 + $0x70] sm:$0xff] }
  0x13   : > { %5578 = vst.msk [vmem:[#allocation7 + $0x70] sm:$0xff] %vm438_vm0, %v8879_v2  ;;  %5579 = vst.msk [vmem:[#allocation7 + $0x78] sm:$0xff] %vm438_vm0, %v8879_v2  ;;  %8349 = vmatpush3.msra.mxu0 %v7919_v6  ;;  %8356 = vmatpush3.msra.mxu1 %v7922_v7  ;;  %v7937_v18 = vld [vmem:[%s11845_s1 + $0x88] sm:$0xff]  ;;  %v7940_v19 = vld [vmem:[%s11845_s1 + $0x98] sm:$0xff] }
  0x14   : > { %5580 = vst.msk [vmem:[#allocation7 + $0x80] sm:$0xff] %vm438_vm0, %v8879_v2  ;;  %5581 = vst.msk [vmem:[#allocation7 + $0x88] sm:$0xff] %vm438_vm0, %v8879_v2  ;;  %8350 = vmatprep.subr.mxu0 %v8879_v2  ;;  %8357 = vmatprep.subr.mxu1 %v8879_v2  ;;  %v7936_v20 = vld [vmem:[%s11845_s1 + $0x80] sm:$0xff]  ;;  %v7939_v21 = vld [vmem:[%s11845_s1 + $0x90] sm:$0xff] }
  0x15   : > { %5582 = vst.msk [vmem:[#allocation7 + $0x90] sm:$0xff] %vm438_vm0, %v8879_v2  ;;  %5583 = vst.msk [vmem:[#allocation7 + $0x98] sm:$0xff] %vm438_vm0, %v8879_v2  ;;  %8351 = vmatpush3.msra.mxu0 %v7918_v8  ;;  %8352 = vmatprep.mubr.msk.f32.mxu0 %vm8880_vm1, %v8879_v2  ;;  %v7943_v22 = vld [vmem:[%s11845_s1 + $0xa8] sm:$0xff]  ;;  %v7946_v23 = vld [vmem:[%s11845_s1 + $0xb8] sm:$0xff] }
  0x16   : > { %5584 = vst.msk [vmem:[#allocation7 + $0xa0] sm:$0xff] %vm438_vm0, %v8879_v2  ;;  %5585 = vst.msk [vmem:[#allocation7 + $0xa8] sm:$0xff] %vm438_vm0, %v8879_v2  ;;  %8358 = vmatpush3.msra.mxu1 %v7921_v9  ;;  %8359 = vmatprep.mubr.msk.f32.mxu1 %vm8880_vm1, %v8879_v2  ;;  %v7942_v24 = vld [vmem:[%s11845_s1 + $0xa0] sm:$0xff]  ;;  %v7945_v25 = vld [vmem:[%s11845_s1 + $0xb0] sm:$0xff] }
  0x17   : > { %5586 = vst.msk [vmem:[#allocation7 + $0xb0] sm:$0xff] %vm438_vm0, %v8879_v2  ;;  %5587 = vst.msk [vmem:[#allocation7 + $0xb8] sm:$0xff] %vm438_vm0, %v8879_v2  ;;  %8353 = vmatmul.mubr.msk.f32.vlgmr.msra.gmra.mxu0 %vm438_vm0, %v9072_v5  ;;  %8360 = vmatmul.mubr.msk.f32.vlgmr.msra.gmra.mxu1 %vm438_vm0, %v9072_v5  ;;  %v7949_v26 = vld [vmem:[%s11845_s1 + $0xc8] sm:$0xff]  ;;  %v7952_v27 = vld [vmem:[%s11845_s1 + $0xd8] sm:$0xff] }
  0x18   : > { %5588 = vst.msk [vmem:[#allocation7 + $0xc0] sm:$0xff] %vm438_vm0, %v8879_v2  ;;  %5589 = vst.msk [vmem:[#allocation7 + $0xc8] sm:$0xff] %vm438_vm0, %v8879_v2  ;;  %8362 = vmatprep.subr.mxu0 %v8879_v2  ;;  %8369 = vmatprep.subr.mxu1 %v8879_v2  ;;  %v7948_v28 = vld [vmem:[%s11845_s1 + $0xc0] sm:$0xff]  ;;  %v7951_v29 = vld [vmem:[%s11845_s1 + $0xd0] sm:$0xff] }
  0x19   : > { %5590 = vst.msk [vmem:[#allocation7 + $0xd0] sm:$0xff] %vm438_vm0, %v8879_v2  ;;  %5591 = vst.msk [vmem:[#allocation7 + $0xd8] sm:$0xff] %vm438_vm0, %v8879_v2  ;;  %8363 = vmatpush3.msra.mxu0 %v7925_v10  ;;  %8370 = vmatpush3.msra.mxu1 %v7928_v11  ;;  %v7955_v30 = vld [vmem:[%s11845_s1 + $0xe8] sm:$0xff]  ;;  %v7958_v31 = vld [vmem:[%s11845_s1 + $0xf8] sm:$0xff] }
  0x1a   : > { %5592 = vst.msk [vmem:[#allocation7 + $0xe0] sm:$0xff] %vm438_vm0, %v8879_v2  ;;  %5593 = vst.msk [vmem:[#allocation7 + $0xe8] sm:$0xff] %vm438_vm0, %v8879_v2  ;;  %8364 = vmatprep.subr.mxu0 %v8879_v2  ;;  %8371 = vmatprep.subr.mxu1 %v8879_v2  ;;  %v7954_v32 = vld [vmem:[%s11845_s1 + $0xe0] sm:$0xff]  ;;  %v7957_v33 = vld [vmem:[%s11845_s1 + $0xf0] sm:$0xff] }
  0x1b   : > { %5594 = vst.msk [vmem:[#allocation7 + $0xf0] sm:$0xff] %vm438_vm0, %v8879_v2  ;;  %5595 = vst.msk [vmem:[#allocation7 + $0xf8] sm:$0xff] %vm438_vm0, %v8879_v2  ;;  %8365 = vmatpush3.msra.mxu0 %v7924_v12  ;;  %8366 = vmatprep.mubr.msk.f32.mxu0 %vm8880_vm1, %v8879_v2  ;;  %v1627_v3 = vld [vmem:[%s11846_s2 + $0x8] sm:$0xff]  ;;  %v1626_v6 = vld [vmem:[%s11846_s2] sm:$0xff] }
  0x1c   : > { %5596 = vst.msk [vmem:[#allocation7 + $0x100] sm:$0xff] %vm438_vm0, %v8879_v2  ;;  %5597 = vst.msk [vmem:[#allocation7 + $0x108] sm:$0xff] %vm438_vm0, %v8879_v2  ;;  %8372 = vmatpush3.msra.mxu1 %v7927_v13  ;;  %8373 = vmatprep.mubr.msk.f32.mxu1 %vm8880_vm1, %v8879_v2  ;;  %v1630_v9 = vld [vmem:[%s11847_s3] sm:$0xff]  ;;  %v1631_v10 = vld [vmem:[%s11847_s3 + $0x8] sm:$0xff] }
  0x1d   : > { %5598 = vst.msk [vmem:[#allocation7 + $0x110] sm:$0xff] %vm438_vm0, %v8879_v2  ;;  %5599 = vst.msk [vmem:[#allocation7 + $0x118] sm:$0xff] %vm438_vm0, %v8879_v2  ;;  %8367 = vmatmul.mubr.msk.f32.vlgmr.msra.gmra.mxu0 %vm438_vm0, %v9072_v5  ;;  %8374 = vmatmul.mubr.msk.f32.vlgmr.msra.gmra.mxu1 %vm438_vm0, %v9072_v5  ;;  %v1632_v11 = vld [vmem:[%s11847_s3 + $0x10] sm:$0xff]  ;;  %v1633_v12 = vld [vmem:[%s11847_s3 + $0x18] sm:$0xff] }
  0x1e   : > { %5600 = vst.msk [vmem:[#allocation7 + $0x120] sm:$0xff] %vm438_vm0, %v8879_v2  ;;  %5601 = vst.msk [vmem:[#allocation7 + $0x128] sm:$0xff] %vm438_vm0, %v8879_v2  ;;  %8376 = vmatprep.subr.mxu0 %v8879_v2  ;;  %8383 = vmatprep.subr.mxu1 %v8879_v2  ;;  %v1634_v13 = vld [vmem:[%s11847_s3 + $0x20] sm:$0xff] }
  0x1f   : > { %5602 = vst.msk [vmem:[#allocation7 + $0x130] sm:$0xff] %vm438_vm0, %v8879_v2  ;;  %5603 = vst.msk [vmem:[#allocation7 + $0x138] sm:$0xff] %vm438_vm0, %v8879_v2  ;;  %8377 = vmatpush3.msra.mxu0 %v7931_v14  ;;  %8384 = vmatpush3.msra.mxu1 %v7934_v15  ;;  %v1635_v14 = vld [vmem:[%s11847_s3 + $0x28] sm:$0xff]  ;;  %v1636_v15 = vld [vmem:[%s11847_s3 + $0x30] sm:$0xff] }
  0x20   : > { %8378 = vmatprep.subr.mxu0 %v8879_v2  ;;  %8385 = vmatprep.subr.mxu1 %v8879_v2 }
  0x21   : > { %8379 = vmatpush3.msra.mxu0 %v7930_v16  ;;  %8380 = vmatprep.mubr.msk.f32.mxu0 %vm8880_vm1, %v8879_v2  ;;  %v1637_v16 = vld [vmem:[%s11847_s3 + $0x38] sm:$0xff] }
  0x22   : > { %8386 = vmatpush3.msra.mxu1 %v7933_v17  ;;  %8387 = vmatprep.mubr.msk.f32.mxu1 %vm8880_vm1, %v8879_v2  ;;  %v1638_v17 = vld [vmem:[%s11847_s3 + $0x40] sm:$0xff] }
  0x23   : > { %8381 = vmatmul.mubr.msk.f32.vlgmr.msra.gmra.mxu0 %vm438_vm0, %v9072_v5  ;;  %8388 = vmatmul.mubr.msk.f32.vlgmr.msra.gmra.mxu1 %vm438_vm0, %v9072_v5 }
  0x24   : > { %8390 = vmatprep.subr.mxu0 %v8879_v2  ;;  %8397 = vmatprep.subr.mxu1 %v8879_v2 }
  0x25   : > { %8391 = vmatpush3.msra.mxu0 %v7937_v18  ;;  %8398 = vmatpush3.msra.mxu1 %v7940_v19  ;;  %v1639_v18 = vld [vmem:[%s11847_s3 + $0x48] sm:$0xff]  ;;  %v1640_v19 = vld [vmem:[%s11847_s3 + $0x50] sm:$0xff] }
  0x26   : > { %8392 = vmatprep.subr.mxu0 %v8879_v2  ;;  %8399 = vmatprep.subr.mxu1 %v8879_v2 }
  0x27   : > { %8393 = vmatpush3.msra.mxu0 %v7936_v20  ;;  %8394 = vmatprep.mubr.msk.f32.mxu0 %vm8880_vm1, %v8879_v2  ;;  %v1641_v20 = vld [vmem:[%s11847_s3 + $0x58] sm:$0xff] }
  0x28   : > { %8400 = vmatpush3.msra.mxu1 %v7939_v21  ;;  %8401 = vmatprep.mubr.msk.f32.mxu1 %vm8880_vm1, %v8879_v2  ;;  %v1642_v21 = vld [vmem:[%s11847_s3 + $0x60] sm:$0x3f] }
  0x29   : > { %8395 = vmatmul.mubr.msk.f32.vlgmr.msra.gmra.mxu0 %vm438_vm0, %v9072_v5  ;;  %8402 = vmatmul.mubr.msk.f32.vlgmr.msra.gmra.mxu1 %vm438_vm0, %v9072_v5 }
  0x2a   : > { %8404 = vmatprep.subr.mxu0 %v8879_v2  ;;  %8411 = vmatprep.subr.mxu1 %v8879_v2 }
  0x2b   : > { %8405 = vmatpush3.msra.mxu0 %v7943_v22  ;;  %8412 = vmatpush3.msra.mxu1 %v7946_v23  ;;  %v2311_v22 = vld [vmem:[%s11848_s4 + $0xf8] sm:$0xff] }
  0x2c   : > { %8406 = vmatprep.subr.mxu0 %v8879_v2  ;;  %8413 = vmatprep.subr.mxu1 %v8879_v2  ;;  %v2295_v23 = vld [vmem:[%s11848_s4 + $0x78] sm:$0xff] }
  0x2d   : > { %8407 = vmatpush3.msra.mxu0 %v7942_v24  ;;  %8408 = vmatprep.mubr.msk.f32.mxu0 %vm8880_vm1, %v8879_v2  ;;  %v2310_v24 = vld [vmem:[%s11848_s4 + $0xf0] sm:$0xff] }
  0x2e   : > { %8414 = vmatpush3.msra.mxu1 %v7945_v25  ;;  %8415 = vmatprep.mubr.msk.f32.mxu1 %vm8880_vm1, %v8879_v2  ;;  %v2294_v25 = vld [vmem:[%s11848_s4 + $0x70] sm:$0xff] }
  0x2f   : > { %8409 = vmatmul.mubr.msk.f32.vlgmr.msra.gmra.mxu0 %vm438_vm0, %v9072_v5  ;;  %8416 = vmatmul.mubr.msk.f32.vlgmr.msra.gmra.mxu1 %vm438_vm0, %v9072_v5 }
  0x30   : > { %8418 = vmatprep.subr.mxu0 %v8879_v2  ;;  %8425 = vmatprep.subr.mxu1 %v8879_v2 }
  0x31   : > { %8419 = vmatpush3.msra.mxu0 %v7949_v26  ;;  %8426 = vmatpush3.msra.mxu1 %v7952_v27  ;;  %v2309_v26 = vld [vmem:[%s11848_s4 + $0xe8] sm:$0xff] }
  0x32   : > { %8420 = vmatprep.subr.mxu0 %v8879_v2  ;;  %8427 = vmatprep.subr.mxu1 %v8879_v2  ;;  %v2293_v27 = vld [vmem:[%s11848_s4 + $0x68] sm:$0xff] }
  0x33   : > { %8421 = vmatpush3.msra.mxu0 %v7948_v28  ;;  %8422 = vmatprep.mubr.msk.f32.mxu0 %vm8880_vm1, %v8879_v2 }
  0x34   : > { %8428 = vmatpush3.msra.mxu1 %v7951_v29  ;;  %8429 = vmatprep.mubr.msk.f32.mxu1 %vm8880_vm1, %v8879_v2  ;;  %v2308_v29 = vld [vmem:[%s11848_s4 + $0xe0] sm:$0xff] }
  0x35   : > { %8423 = vmatmul.mubr.msk.f32.vlgmr.msra.gmra.mxu0 %vm438_vm0, %v9072_v5  ;;  %8430 = vmatmul.mubr.msk.f32.vlgmr.msra.gmra.mxu1 %vm438_vm0, %v9072_v5 }
  0x36   : > { %8432 = vmatprep.subr.mxu0 %v8879_v2  ;;  %8439 = vmatprep.subr.mxu1 %v8879_v2 }
  0x37   : > { %8433 = vmatpush3.msra.mxu0 %v7955_v30  ;;  %8440 = vmatpush3.msra.mxu1 %v7958_v31  ;;  %v2292_v30 = vld [vmem:[%s11848_s4 + $0x60] sm:$0xff]  ;;  %v2307_v31 = vld [vmem:[%s11848_s4 + $0xd8] sm:$0xff] }
  0x38   : > { %8434 = vmatprep.subr.mxu0 %v8879_v2  ;;  %8441 = vmatprep.subr.mxu1 %v8879_v2 }
  0x39   : > { %8435 = vmatpush3.msra.mxu0 %v7954_v32  ;;  %8436 = vmatprep.mubr.msk.f32.mxu0 %vm8880_vm1, %v8879_v2  ;;  %v2291_v32 = vld [vmem:[%s11848_s4 + $0x58] sm:$0xff] }
  0x3a   : > { %8442 = vmatpush3.msra.mxu1 %v7957_v33  ;;  %8443 = vmatprep.mubr.msk.f32.mxu1 %vm8880_vm1, %v8879_v2 }
  0x3b   : > { %8437 = vmatmul.mubr.msk.f32.vlgmr.msra.gmra.mxu0 %vm438_vm0, %v9072_v5  ;;  %8444 = vmatmul.mubr.msk.f32.vlgmr.msra.gmra.mxu1 %vm438_vm0, %v9072_v5 }
  0x3c   : > { %8446 = vmatprep.subr.mxu0 %v8879_v2  ;;  %8450 = vmatprep.mubr.msk.f32.mxu0 %vm8880_vm1, %v8879_v2 }
  0x3d   : > { %8167 = vmatprep.subr.mxu1 %v2311_v22 }
  0x3e   : > { %8168 = vmatpush3.msra.mxu1 %v2295_v23 }
  0x3f   : > { %8169 = vmatprep.subr.mxu1 %v2310_v24  ;;  %v2280_v24 = vld [vmem:[%s11848_s4] sm:$0xff] }
  0x40   : > { %8170 = vmatpush3.msra.mxu1 %v2294_v25 }
  0x41   : > { %8171 = vmatprep.subr.mxu1 %v2309_v26 }
  0x42   : > { %8172 = vmatpush3.msra.mxu1 %v2293_v27 }
  0x43   : > { %8173 = vmatprep.subr.mxu1 %v2308_v29 }
  0x44   : > { %8174 = vmatpush3.msra.mxu1 %v2292_v30 }
  0x45   : > { %8175 = vmatprep.subr.mxu1 %v2307_v31 }
  0x46   : > { %8176 = vmatpush3.msra.mxu1 %v2291_v32 }
  0xd1   : > { %v508_v34 = vpop.f32.mrf.mxu0  ;;  %v583_v35 = vpop.f32.mrf.mxu1 }
  0xd2   : > { %513 = vst.msk [vmem:[#allocation2] sm:$0x1] %vm512_vm2, %v508_v34  ;;  %587 = vst.msk [vmem:[#allocation2 + $0x1] sm:$0x1] %vm512_vm2, %v583_v35  ;;  %v2306_v35 = vld [vmem:[%s11848_s4 + $0xd0] sm:$0xff] }
  0xd3   : > { %v8340_v36 = vpop.f32.mrf.mxu0  ;;  %v8347_v37 = vpop.f32.mrf.mxu1  ;;  %8177 = vmatprep.subr.mxu1 %v2306_v35 }
  0xd4   : > { %v2290_v36 = vld [vmem:[%s11848_s4 + $0x50] sm:$0xff]  ;;  %v2305_v37 = vld [vmem:[%s11848_s4 + $0xc8] sm:$0xff] }
  0xd5   : > { %8178 = vmatpush3.msra.mxu1 %v2290_v36 }
  0xd6   : > { %8179 = vmatprep.subr.mxu1 %v2305_v37 }
  0xd7   : > { %v657_v38 = vpop.f32.mrf.mxu0  ;;  %v731_v39 = vpop.f32.mrf.mxu1 }
  0xd8   : > { %661 = vst.msk [vmem:[#allocation2 + $0x2] sm:$0x1] %vm512_vm2, %v657_v38  ;;  %735 = vst.msk [vmem:[#allocation2 + $0x3] sm:$0x1] %vm512_vm2, %v731_v39  ;;  %v2289_v38 = vld [vmem:[%s11848_s4 + $0x48] sm:$0xff] }
  0xd9   : > { %v8354_v40 = vpop.f32.mrf.mxu0  ;;  %v8361_v41 = vpop.f32.mrf.mxu1  ;;  %8180 = vmatpush3.msra.mxu1 %v2289_v38 }
  0xdd   : > { %v805_v42 = vpop.f32.mrf.mxu0  ;;  %v879_v43 = vpop.f32.mrf.mxu1 }
  0xde   : > { %809 = vst.msk [vmem:[#allocation2 + $0x4] sm:$0x1] %vm512_vm2, %v805_v42  ;;  %883 = vst.msk [vmem:[#allocation2 + $0x5] sm:$0x1] %vm512_vm2, %v879_v43  ;;  %v2304_v42 = vld [vmem:[%s11848_s4 + $0xc0] sm:$0xff] }
  0xdf   : > { %v8368_v44 = vpop.f32.mrf.mxu0  ;;  %v8375_v45 = vpop.f32.mrf.mxu1  ;;  %v2288_v43 = vld [vmem:[%s11848_s4 + $0x40] sm:$0xff]  ;;  %8181 = vmatprep.subr.mxu1 %v2304_v42 }
  0xe0   : > { %v2303_v44 = vld [vmem:[%s11848_s4 + $0xb8] sm:$0xff]  ;;  %8182 = vmatpush3.msra.mxu1 %v2288_v43 }
  0xe1   : > { %v2287_v45 = vld [vmem:[%s11848_s4 + $0x38] sm:$0xff]  ;;  %8183 = vmatprep.subr.mxu1 %v2303_v44 }
  0xe2   : > { %8184 = vmatpush3.msra.mxu1 %v2287_v45 }
  0xe3   : > { %v953_v46 = vpop.f32.mrf.mxu0  ;;  %v1027_v47 = vpop.f32.mrf.mxu1 }
  0xe4   : > { %957 = vst.msk [vmem:[#allocation2 + $0x6] sm:$0x1] %vm512_vm2, %v953_v46  ;;  %1031 = vst.msk [vmem:[#allocation2 + $0x7] sm:$0x1] %vm512_vm2, %v1027_v47 }
  0xe5   : > { %v8382_v48 = vpop.f32.mrf.mxu0  ;;  %v8389_v49 = vpop.f32.mrf.mxu1 }
  0xe9   : > { %v1101_v50 = vpop.f32.mrf.mxu0  ;;  %v1175_v51 = vpop.f32.mrf.mxu1 }
  0xea   : > { %1105 = vst.msk [vmem:[#allocation2 + $0x8] sm:$0x1] %vm512_vm2, %v1101_v50  ;;  %1179 = vst.msk [vmem:[#allocation2 + $0x9] sm:$0x1] %vm512_vm2, %v1175_v51  ;;  %v2302_v51 = vld [vmem:[%s11848_s4 + $0xb0] sm:$0xff] }
  0xeb   : > { %v8396_v52 = vpop.f32.mrf.mxu0  ;;  %v8403_v53 = vpop.f32.mrf.mxu1  ;;  %v1624_v5 = vld [vmem:[#allocation2] sm:$0xff]  ;;  %8185 = vmatprep.subr.mxu1 %v2302_v51 }
  0xec   : > { %v1628_v8 = vadd.f32 %v1626_v6, %v1624_v5  ;;  %v2286_v52 = vld [vmem:[%s11848_s4 + $0x30] sm:$0xff]  ;;  %v2283_v6 = vld [vmem:[%s11848_s4 + $0x18] sm:$0xff] }
  0xed   : > { %8186 = vmatpush3.msra.mxu1 %v2286_v52 }
  0xef   : > { %v1249_v54 = vpop.f32.mrf.mxu0  ;;  %v1323_v55 = vpop.f32.mrf.mxu1 }
  0xf0   : > { %1253 = vst.msk [vmem:[#allocation2 + $0xa] sm:$0x1] %vm512_vm2, %v1249_v54  ;;  %1327 = vst.msk [vmem:[#allocation2 + $0xb] sm:$0x1] %vm512_vm2, %v1323_v55  ;;  %v2301_v54 = vld [vmem:[%s11848_s4 + $0xa8] sm:$0xff] }
  0xf1   : > { %v8410_v56 = vpop.f32.mrf.mxu0  ;;  %v8417_v57 = vpop.f32.mrf.mxu1  ;;  %v2285_v55 = vld [vmem:[%s11848_s4 + $0x28] sm:$0xff]  ;;  %8187 = vmatprep.subr.mxu1 %v2301_v54 }
  0xf2   : > { %8188 = vmatpush3.msra.mxu1 %v2285_v55 }
  0xf5   : > { %v1397_v58 = vpop.f32.mrf.mxu0  ;;  %v1471_v59 = vpop.f32.mrf.mxu1 }
  0xf6   : > { %1401 = vst.msk [vmem:[#allocation2 + $0xc] sm:$0x1] %vm512_vm2, %v1397_v58  ;;  %1475 = vst.msk [vmem:[#allocation2 + $0xd] sm:$0x1] %vm512_vm2, %v1471_v59 }
  0xf7   : > { %v8424_v60 = vpop.f32.mrf.mxu0  ;;  %v8431_v61 = vpop.f32.mrf.mxu1 }
  0xf8   : > { %v2300_v60 = vld [vmem:[%s11848_s4 + $0xa0] sm:$0xff] }
  0xf9   : > { %v2284_v61 = vld [vmem:[%s11848_s4 + $0x20] sm:$0xff]  ;;  %8189 = vmatprep.subr.mxu1 %v2300_v60 }
  0xfa   : > { %8190 = vmatpush3.msra.mxu1 %v2284_v61 }
  0xfb   : > { %v1545_v62 = vpop.f32.mrf.mxu0  ;;  %v1619_v63 = vpop.f32.mrf.mxu1 }
  0xfc   : > { %1549 = vst.msk [vmem:[#allocation2 + $0xe] sm:$0x1] %vm512_vm2, %v1545_v62  ;;  %1623 = vst.msk [vmem:[#allocation2 + $0xf] sm:$0x1] %vm512_vm2, %v1619_v63 }
  0xfd   : > { %v8438_v0 = vpop.f32.mrf.mxu0  ;;  %v8445_v1 = vpop.f32.mrf.mxu1 }
  0xfe   : > { %v2299_v1 = vld [vmem:[%s11848_s4 + $0x98] sm:$0xff] }
  0xff   : > { %8191 = vmatprep.subr.mxu1 %v2299_v1 }
 0x100   : > { %8192 = vmatpush3.msra.mxu1 %v2283_v6 }
 0x103   : > { %v1625_v4 = vld [vmem:[#allocation2 + $0x8] sm:$0xff] }
 0x104   : > { %v1629_v7 = vadd.f32 %v1627_v3, %v1625_v4 }
 0x106   : > { %8447 = vmatpush3.msra.mxu0 %v1629_v7 }
 0x107   : > { %8448 = vmatprep.subr.mxu0 %v8879_v2 }
 0x108   : > { %8449 = vmatpush3.msra.mxu0 %v1628_v8 }
 0x109   : > { %8451 = vmatmul.mubr.msk.f32.vlgmr.msra.gmra.mxu0 %vm438_vm0, %v1630_v9  ;;  %4880 = vmatprep.subr.mxu0 %v8879_v2  ;;  %v2298_v9 = vld [vmem:[%s11848_s4 + $0x90] sm:$0xff] }
 0x10a   : > { %8453 = vmatprep.mubr.msk.f32.mxu0 %vm8880_vm1, %v8879_v2  ;;  %8193 = vmatprep.subr.mxu1 %v2298_v9 }
 0x10d   : > { %8454 = vmatmul.mubr.msk.f32.gmra.mxu0 %vm438_vm0, %v1631_v10  ;;  %v2282_v10 = vld [vmem:[%s11848_s4 + $0x10] sm:$0xff] }
 0x10e   : > { %8456 = vmatprep.mubr.msk.f32.mxu0 %vm8880_vm1, %v8879_v2  ;;  %8194 = vmatpush3.msra.mxu1 %v2282_v10 }
 0x111   : > { %8457 = vmatmul.mubr.msk.f32.gmra.mxu0 %vm438_vm0, %v1632_v11 }
 0x112   : > { %8459 = vmatprep.mubr.msk.f32.mxu0 %vm8880_vm1, %v8879_v2 }
 0x115   : > { %8460 = vmatmul.mubr.msk.f32.gmra.mxu0 %vm438_vm0, %v1633_v12 }
 0x116   : > { %8462 = vmatprep.mubr.msk.f32.mxu0 %vm8880_vm1, %v8879_v2 }
 0x119   : > { %8463 = vmatmul.mubr.msk.f32.gmra.mxu0 %vm438_vm0, %v1634_v13 }
 0x11a   : > { %8465 = vmatprep.mubr.msk.f32.mxu0 %vm8880_vm1, %v8879_v2 }
 0x11d   : > { %8466 = vmatmul.mubr.msk.f32.gmra.mxu0 %vm438_vm0, %v1635_v14 }
 0x11e   : > { %8468 = vmatprep.mubr.msk.f32.mxu0 %vm8880_vm1, %v8879_v2 }
 0x121   : > { %8469 = vmatmul.mubr.msk.f32.gmra.mxu0 %vm438_vm0, %v1636_v15  ;;  %v2297_v15 = vld [vmem:[%s11848_s4 + $0x88] sm:$0xff] }
 0x122   : > { %8471 = vmatprep.mubr.msk.f32.mxu0 %vm8880_vm1, %v8879_v2  ;;  %8195 = vmatprep.subr.mxu1 %v2297_v15 }
 0x125   : > { %8472 = vmatmul.mubr.msk.f32.gmra.mxu0 %vm438_vm0, %v1637_v16  ;;  %v2281_v16 = vld [vmem:[%s11848_s4 + $0x8] sm:$0xff] }
 0x126   : > { %8474 = vmatprep.mubr.msk.f32.mxu0 %vm8880_vm1, %v8879_v2  ;;  %8196 = vmatpush3.msra.mxu1 %v2281_v16 }
 0x129   : > { %8475 = vmatmul.mubr.msk.f32.gmra.mxu0 %vm438_vm0, %v1638_v17 }
 0x12a   : > { %8477 = vmatprep.mubr.msk.f32.mxu0 %vm8880_vm1, %v8879_v2 }
 0x12d   : > { %8478 = vmatmul.mubr.msk.f32.gmra.mxu0 %vm438_vm0, %v1639_v18 }
 0x12e   : > { %8480 = vmatprep.mubr.msk.f32.mxu0 %vm8880_vm1, %v8879_v2 }
 0x131   : > { %8481 = vmatmul.mubr.msk.f32.gmra.mxu0 %vm438_vm0, %v1640_v19 }
 0x132   : > { %8483 = vmatprep.mubr.msk.f32.mxu0 %vm8880_vm1, %v8879_v2 }
 0x135   : > { %8484 = vmatmul.mubr.msk.f32.gmra.mxu0 %vm438_vm0, %v1641_v20  ;;  %v2296_v20 = vld [vmem:[%s11848_s4 + $0x80] sm:$0xff] }
 0x136   : > { %8486 = vmatprep.mubr.msk.f32.mxu0 %vm8880_vm1, %v8879_v2  ;;  %8197 = vmatprep.subr.mxu1 %v2296_v20 }
 0x137   : > { %8198 = vmatpush3.msra.mxu1 %v2280_v24 }
 0x139   : > { %8487 = vmatmul.mubr.msk.f32.gmra.mxu0 %vm438_vm0, %v1642_v21 }
 0x1c9   : > { %v1748_v28 = vpop.f32.mrf.mxu0 }
 0x1ca   : > { %1813 = vst.msk [vmem:[#allocation3] sm:$0xff] %vm1812_vm3, %v1748_v28 }
 0x1cb   : > { %v8452_v33 = vpop.f32.mrf.mxu0 }
 0x1cd   : > { %v1753_v34 = vpop.f32.mrf.mxu0 }
 0x1ce   : > { %1814 = vst.msk [vmem:[#allocation3 + $0x8] sm:$0xff] %vm1812_vm3, %v1753_v34 }
 0x1cf   : > { %v8455_v39 = vpop.f32.mrf.mxu0 }
 0x1d1   : > { %v1758_v40 = vpop.f32.mrf.mxu0  ;;  %v1827_v41 = vld [vmem:[#allocation3] sm:$0xff] }
 0x1d2   : > { %1815 = vst.msk [vmem:[#allocation3 + $0x10] sm:$0xff] %vm1812_vm3, %v1758_v40  ;;  %1837 = vst.msk [vmem:[#allocation4] sm:$0xff] %vm1812_vm3, %v1827_v41 }
 0x1d3   : > { %v8458_v46 = vpop.f32.mrf.mxu0 }
 0x1d5   : > { %v1763_v47 = vpop.f32.mrf.mxu0  ;;  %v1908_v48 = vld [vmem:[#allocation3 + $0x2] sm:$0xff] }
 0x1d6   : > { %v1847_v49 = vld [vmem:[#allocation3 + $0x1] sm:$0xff]  ;;  %1816 = vst.msk [vmem:[#allocation3 + $0x18] sm:$0xff] %vm1812_vm3, %v1763_v47  ;;  %1928 = vrot.lane.b32.xlu1 %v1908_v48, %s8881_s23 }
 0x1d7   : > { %v1828_v50 = vld [vmem:[#allocation3 + $0x8] sm:$0xff]  ;;  %1867 = vrot.lane.b32.xlu0 %v1847_v49, %s8882_s24  ;;  %v8461_v53 = vpop.f32.mrf.mxu0 }
 0x1d8   : > { %1838 = vst.msk [vmem:[#allocation4 + $0x18] sm:$0xff] %vm1812_vm3, %v1828_v50 }
 0x1d9   : > { %v1768_v56 = vpop.f32.mrf.mxu0  ;;  %v2050_v57 = vld [vmem:[#allocation3 + $0xc] sm:$0xff] }
 0x1da   : > { %v1969_v58 = vld [vmem:[#allocation3 + $0xa] sm:$0xff]  ;;  %1817 = vst.msk [vmem:[#allocation3 + $0x20] sm:$0xff] %vm1812_vm3, %v1768_v56 }
 0x1db   : > { %2070 = vrot.lane.b32.xlu0 %v2050_v57, %s8882_s24  ;;  %1989 = vrot.lane.b32.xlu1 %v1969_v58, %s8883_s18  ;;  %v2030_v59 = vld [vmem:[#allocation3 + $0xb] sm:$0xff]  ;;  %v8464_v62 = vpop.f32.mrf.mxu0 }
 0x1dc   : > { %2040 = vst.msk [vmem:[#allocation4 + $0x8] sm:$0xff] %vm1812_vm3, %v2030_v59  ;;  %v1829_v63 = vld [vmem:[#allocation3 + $0x10] sm:$0xff] }
 0x1dd   : > { %v1848_v0 = vld [vmem:[#allocation3 + $0x9] sm:$0xff]  ;;  %1839 = vst.msk [vmem:[#allocation4 + $0x30] sm:$0xff] %vm1812_vm3, %v1829_v63  ;;  %v2230_v3 = vld [vmem:[#allocation3 + $0x16] sm:$0xff]  ;;  %v1773_v4 = vpop.f32.mrf.mxu0 }
 0x1de   : > { %v2170_v5 = vld [vmem:[#allocation3 + $0x15] sm:$0xff]  ;;  %2240 = vst.msk [vmem:[#allocation4 + $0x10] sm:$0xff] %vm1812_vm3, %v2230_v3  ;;  %1818 = vst.msk [vmem:[#allocation3 + $0x28] sm:$0xff] %vm1812_vm3, %v1773_v4 }
 0x1df   : > { %1869 = vrot.lane.b32.xlu1 %v1848_v0, %s8882_s24  ;;  %2190 = vrot.lane.b32.xlu0 %v2170_v5, %s8883_s18  ;;  %v2031_v7 = vld [vmem:[#allocation3 + $0x13] sm:$0xff]  ;;  %v8467_v8 = vpop.f32.mrf.mxu0 }
 0x1e0   : > { %2041 = vst.msk [vmem:[#allocation4 + $0x20] sm:$0xff] %vm1812_vm3, %v2031_v7  ;;  %v1830_v11 = vld [vmem:[#allocation3 + $0x18] sm:$0xff] }
 0x1e1   : > { %v2231_v12 = vld [vmem:[#allocation3 + $0x1e] sm:$0xff]  ;;  %v2051_v13 = vld [vmem:[#allocation3 + $0x14] sm:$0xff]  ;;  %v1778_v14 = vpop.f32.mrf.mxu0  ;;  %1840 = vst.msk [vmem:[#allocation4 + $0x48] sm:$0xff] %vm1812_vm3, %v1830_v11 }
 0x1e2   : > { %2241 = vst.msk [vmem:[#allocation4 + $0x28] sm:$0xff] %vm1812_vm3, %v2231_v12  ;;  %1819 = vst.msk [vmem:[#allocation3 + $0x30] sm:$0xff] %vm1812_vm3, %v1778_v14  ;;  %v2032_v17 = vld [vmem:[#allocation3 + $0x1b] sm:$0xff]  ;;  %v1970_v29 = vld [vmem:[#allocation3 + $0x12] sm:$0xff] }
 0x1e3   : > { %1930 = vrot.lane.b32.xlu1 %v1969_v58, %s8881_s23  ;;  %2072 = vrot.lane.b32.xlu0 %v2051_v13, %s8882_s24  ;;  %v8470_v18 = vpop.f32.mrf.mxu0  ;;  %2042 = vst.msk [vmem:[#allocation4 + $0x38] sm:$0xff] %vm1812_vm3, %v2032_v17  ;;  %v1831_v19 = vld [vmem:[#allocation3 + $0x20] sm:$0xff]  ;;  %v1849_v35 = vld [vmem:[#allocation3 + $0x11] sm:$0xff]  ;;  %v9531_v12 = vld [vmem:[%s11848_s4 + $0x118] sm:$0xff] }
 0x1e4   : > { %1841 = vst.msk [vmem:[#allocation4 + $0x60] sm:$0xff] %vm1812_vm3, %v1831_v19  ;;  %v2111_v22 = vld [vmem:[#allocation3 + $0x1c] sm:$0xff]  ;;  %8489 = vmatprep.subr.mxu1 %v9531_v12 }
 0x1e5   : > { %v2232_v21 = vld [vmem:[#allocation3 + $0x26] sm:$0xff]  ;;  %v1783_v23 = vpop.f32.mrf.mxu0  ;;  %v2171_v30 = vld [vmem:[#allocation3 + $0x1d] sm:$0xff] }
 0x1e6   : > { %2242 = vst.msk [vmem:[#allocation4 + $0x40] sm:$0xff] %vm1812_vm3, %v2232_v21  ;;  %1820 = vst.msk [vmem:[#allocation3 + $0x38] sm:$0xff] %vm1812_vm3, %v1783_v23  ;;  %v2033_v25 = vld [vmem:[#allocation3 + $0x23] sm:$0xff]  ;;  %v1971_v47 = vld [vmem:[#allocation3 + $0x1a] sm:$0xff] }
 0x1e7   : > { %2130 = vrot.lane.b32.xlu1 %v2051_v13, %s8881_s23  ;;  %2132 = vrot.lane.b32.xlu0 %v2111_v22, %s8881_s23  ;;  %v8473_v26 = vpop.f32.mrf.mxu0  ;;  %2043 = vst.msk [vmem:[#allocation4 + $0x50] sm:$0xff] %vm1812_vm3, %v2033_v25  ;;  %v1832_v27 = vld [vmem:[#allocation3 + $0x28] sm:$0xff]  ;;  %v1850_v54 = vld [vmem:[#allocation3 + $0x19] sm:$0xff] }
 0x1e8   : > { %1842 = vst.msk [vmem:[#allocation4 + $0x78] sm:$0xff] %vm1812_vm3, %v1832_v27  ;;  %v2112_v41 = vld [vmem:[#allocation3 + $0x24] sm:$0xff] }
 0x1e9   : > { %v2233_v28 = vld [vmem:[#allocation3 + $0x2e] sm:$0xff]  ;;  %v1788_v31 = vpop.f32.mrf.mxu0  ;;  %v2172_v48 = vld [vmem:[#allocation3 + $0x25] sm:$0xff] }
 0x1ea   : > { %2243 = vst.msk [vmem:[#allocation4 + $0x58] sm:$0xff] %vm1812_vm3, %v2233_v28  ;;  %1821 = vst.msk [vmem:[#allocation3 + $0x40] sm:$0xff] %vm1812_vm3, %v1788_v31  ;;  %v2034_v32 = vld [vmem:[#allocation3 + $0x2b] sm:$0xff]  ;;  %v1972_v62 = vld [vmem:[#allocation3 + $0x22] sm:$0xff] }
 0x1eb   : > { %1991 = vrot.lane.b32.xlu1 %v1970_v29, %s8883_s18  ;;  %2192 = vrot.lane.b32.xlu0 %v2171_v30, %s8883_s18  ;;  %v8476_v33 = vpop.f32.mrf.mxu0  ;;  %2044 = vst.msk [vmem:[#allocation4 + $0x68] sm:$0xff] %vm1812_vm3, %v2034_v32  ;;  %v1833_v34 = vld [vmem:[#allocation3 + $0x30] sm:$0xff]  ;;  %v1851_v1 = vld [vmem:[#allocation3 + $0x21] sm:$0xff] }
 0x1ec   : > { %1843 = vst.msk [vmem:[#allocation4 + $0x90] sm:$0xff] %vm1812_vm3, %v1833_v34  ;;  %v2113_v59 = vld [vmem:[#allocation3 + $0x2c] sm:$0xff] }
 0x1ed   : > { %v2234_v36 = vld [vmem:[#allocation3 + $0x36] sm:$0xff]  ;;  %v1793_v37 = vpop.f32.mrf.mxu0  ;;  %v2173_v63 = vld [vmem:[#allocation3 + $0x2d] sm:$0xff] }
 0x1ee   : > { %2244 = vst.msk [vmem:[#allocation4 + $0x70] sm:$0xff] %vm1812_vm3, %v2234_v36  ;;  %1822 = vst.msk [vmem:[#allocation3 + $0x48] sm:$0xff] %vm1812_vm3, %v1793_v37  ;;  %v2035_v38 = vld [vmem:[#allocation3 + $0x33] sm:$0xff]  ;;  %v1973_v4 = vld [vmem:[#allocation3 + $0x2a] sm:$0xff] }
 0x1ef   : > { %1871 = vrot.lane.b32.xlu1 %v1849_v35, %s8882_s24  ;;  %2074 = vrot.lane.b32.xlu0 %v2111_v22, %s8882_s24  ;;  %v8479_v39 = vpop.f32.mrf.mxu0  ;;  %2045 = vst.msk [vmem:[#allocation4 + $0x80] sm:$0xff] %vm1812_vm3, %v2035_v38  ;;  %v1834_v40 = vld [vmem:[#allocation3 + $0x38] sm:$0xff]  ;;  %v1852_v6 = vld [vmem:[#allocation3 + $0x29] sm:$0xff] }
 0x1f0   : > { %1844 = vst.msk [vmem:[#allocation4 + $0xa8] sm:$0xff] %vm1812_vm3, %v1834_v40  ;;  %v2114_v3 = vld [vmem:[#allocation3 + $0x34] sm:$0xff] }
 0x1f1   : > { %v2235_v42 = vld [vmem:[#allocation3 + $0x3e] sm:$0xff]  ;;  %v1798_v43 = vpop.f32.mrf.mxu0  ;;  %v2174_v5 = vld [vmem:[#allocation3 + $0x35] sm:$0xff] }
 0x1f2   : > { %2245 = vst.msk [vmem:[#allocation4 + $0x88] sm:$0xff] %vm1812_vm3, %v2235_v42  ;;  %1823 = vst.msk [vmem:[#allocation3 + $0x50] sm:$0xff] %vm1812_vm3, %v1798_v43  ;;  %v2036_v44 = vld [vmem:[#allocation3 + $0x3b] sm:$0xff]  ;;  %v1974_v8 = vld [vmem:[#allocation3 + $0x32] sm:$0xff] }
 0x1f3   : > { %1932 = vrot.lane.b32.xlu1 %v1970_v29, %s8881_s23  ;;  %2134 = vrot.lane.b32.xlu0 %v2112_v41, %s8881_s23  ;;  %v8482_v45 = vpop.f32.mrf.mxu0  ;;  %2046 = vst.msk [vmem:[#allocation4 + $0x98] sm:$0xff] %vm1812_vm3, %v2036_v44  ;;  %v1835_v46 = vld [vmem:[#allocation3 + $0x40] sm:$0xff]  ;;  %v1853_v10 = vld [vmem:[#allocation3 + $0x31] sm:$0xff] }
 0x1f4   : > { %1845 = vst.msk [vmem:[#allocation4 + $0xc0] sm:$0xff] %vm1812_vm3, %v1835_v46  ;;  %v2115_v7 = vld [vmem:[#allocation3 + $0x3c] sm:$0xff] }
 0x1f5   : > { %v2236_v49 = vld [vmem:[#allocation3 + $0x46] sm:$0xff]  ;;  %v1803_v50 = vpop.f32.mrf.mxu0  ;;  %v2175_v9 = vld [vmem:[#allocation3 + $0x3d] sm:$0xff] }
 0x1f6   : > { %2246 = vst.msk [vmem:[#allocation4 + $0xa0] sm:$0xff] %vm1812_vm3, %v2236_v49  ;;  %1824 = vst.msk [vmem:[#allocation3 + $0x58] sm:$0xff] %vm1812_vm3, %v1803_v50  ;;  %v2037_v51 = vld [vmem:[#allocation3 + $0x43] sm:$0xff]  ;;  %v1975_v13 = vld [vmem:[#allocation3 + $0x3a] sm:$0xff] }
 0x1f7   : > { %1993 = vrot.lane.b32.xlu1 %v1971_v47, %s8883_s18  ;;  %2194 = vrot.lane.b32.xlu0 %v2172_v48, %s8883_s18  ;;  %v8485_v52 = vpop.f32.mrf.mxu0  ;;  %2047 = vst.msk [vmem:[#allocation4 + $0xb0] sm:$0xff] %vm1812_vm3, %v2037_v51  ;;  %v1836_v53 = vld [vmem:[#allocation3 + $0x48] sm:$0xff]  ;;  %v1854_v15 = vld [vmem:[#allocation3 + $0x39] sm:$0xff]  ;;  %v2312_v49 = vld [vmem:[%s11848_s4 + $0x100] sm:$0xff] }
 0x1f8   : > { %1846 = vst.msk [vmem:[#allocation4 + $0xd8] sm:$0xff] %vm1812_vm3, %v1836_v53  ;;  %v2116_v11 = vld [vmem:[#allocation3 + $0x44] sm:$0xff] }
 0x1f9   : > { %v2237_v55 = vld [vmem:[#allocation3 + $0x4e] sm:$0xff]  ;;  %v1808_v56 = vpop.f32.mrf.mxu0  ;;  %v2176_v14 = vld [vmem:[#allocation3 + $0x45] sm:$0xff] }
 0x1fa   : > { %2247 = vst.msk [vmem:[#allocation4 + $0xb8] sm:$0xff] %vm1812_vm3, %v2237_v55  ;;  %v2038_v57 = vld [vmem:[#allocation3 + $0x4b] sm:$0xff]  ;;  %v1976_v17 = vld [vmem:[#allocation3 + $0x42] sm:$0xff] }
 0x1fb   : > { %1873 = vrot.lane.b32.xlu1 %v1850_v54, %s8882_s24  ;;  %2076 = vrot.lane.b32.xlu0 %v2112_v41, %s8882_s24  ;;  %1826 = vst.msk [vmem:[#allocation3 + $0x60] sm:$0x3f] %vm1825_vm4, %v1808_v56  ;;  %v8488_v58 = vpop.f32.mrf.mxu0  ;;  %v2117_v16 = vld [vmem:[#allocation3 + $0x4c] sm:$0xff]  ;;  %v1855_v19 = vld [vmem:[#allocation3 + $0x41] sm:$0xff] }
 0x1fc   : > { %2048 = vst.msk [vmem:[#allocation4 + $0xc8] sm:$0xff] %vm1812_vm3, %v2038_v57  ;;  %v2177_v18 = vld [vmem:[#allocation3 + $0x4d] sm:$0xff]  ;;  %v2314_v43 = vld [vmem:[%s11848_s4 + $0x110] sm:$0xff] }
 0x1fd   : > { %v2238_v60 = vld [vmem:[#allocation3 + $0x56] sm:$0xff]  ;;  %v1977_v21 = vld [vmem:[#allocation3 + $0x4a] sm:$0xff] }
 0x1fe   : > { %2248 = vst.msk [vmem:[#allocation4 + $0xd0] sm:$0xff] %vm1812_vm3, %v2238_v60  ;;  %v2039_v61 = vld [vmem:[#allocation3 + $0x53] sm:$0xff]  ;;  %v1856_v23 = vld [vmem:[#allocation3 + $0x49] sm:$0xff] }
 0x1ff   : > { %1934 = vrot.lane.b32.xlu1 %v1971_v47, %s8881_s23  ;;  %2136 = vrot.lane.b32.xlu0 %v2113_v59, %s8881_s23  ;;  %2049 = vst.msk [vmem:[#allocation4 + $0xe0] sm:$0xff] %vm1812_vm3, %v2039_v61  ;;  %v2118_v20 = vld [vmem:[#allocation3 + $0x54] sm:$0xff] }
 0x200   : > { %v2178_v22 = vld [vmem:[#allocation3 + $0x55] sm:$0xff] }
 0x201   : > { %v1978_v27 = vld [vmem:[#allocation3 + $0x52] sm:$0xff] }
 0x202   : > { %v2239_v0 = vld [vmem:[#allocation3 + $0x5e] sm:$0xff] }
 0x203   : > { %1995 = vrot.lane.b32.xlu1 %v1972_v62, %s8883_s18  ;;  %2196 = vrot.lane.b32.xlu0 %v2173_v63, %s8883_s18  ;;  %2249 = vst.msk [vmem:[#allocation4 + $0xe8] sm:$0xff] %vm1812_vm3, %v2239_v0  ;;  %v2119_v24 = vld [vmem:[#allocation3 + $0x5c] sm:$0xff] }
 0x204   : > { %v2179_v28 = vld [vmem:[#allocation3 + $0x5d] sm:$0xff] }
 0x205   : > { %v2313_v47 = vld [vmem:[%s11848_s4 + $0x108] sm:$0xff] }
 0x207   : > { %1875 = vrot.lane.b32.xlu1 %v1851_v1, %s8882_s24  ;;  %2078 = vrot.lane.b32.xlu0 %v2113_v59, %s8882_s24 }
 0x20b   : > { %1936 = vrot.lane.b32.xlu1 %v1972_v62, %s8881_s23  ;;  %2138 = vrot.lane.b32.xlu0 %v2114_v3, %s8881_s23 }
 0x20f   : > { %1997 = vrot.lane.b32.xlu1 %v1973_v4, %s8883_s18  ;;  %2198 = vrot.lane.b32.xlu0 %v2174_v5, %s8883_s18 }
 0x213   : > { %1877 = vrot.lane.b32.xlu1 %v1852_v6, %s8882_s24  ;;  %2080 = vrot.lane.b32.xlu0 %v2114_v3, %s8882_s24 }
 0x217   : > { %1938 = vrot.lane.b32.xlu1 %v1973_v4, %s8881_s23  ;;  %2140 = vrot.lane.b32.xlu0 %v2115_v7, %s8881_s23 }
 0x21b   : > { %1999 = vrot.lane.b32.xlu1 %v1974_v8, %s8883_s18  ;;  %2200 = vrot.lane.b32.xlu0 %v2175_v9, %s8883_s18 }
 0x21f   : > { %1879 = vrot.lane.b32.xlu1 %v1853_v10, %s8882_s24  ;;  %2082 = vrot.lane.b32.xlu0 %v2115_v7, %s8882_s24 }
 0x223   : > { %1940 = vrot.lane.b32.xlu1 %v1974_v8, %s8881_s23  ;;  %2142 = vrot.lane.b32.xlu0 %v2116_v11, %s8881_s23 }
 0x227   : > { %2001 = vrot.lane.b32.xlu1 %v1975_v13, %s8883_s18  ;;  %2202 = vrot.lane.b32.xlu0 %v2176_v14, %s8883_s18 }
 0x22b   : > { %1881 = vrot.lane.b32.xlu1 %v1854_v15, %s8882_s24  ;;  %2084 = vrot.lane.b32.xlu0 %v2116_v11, %s8882_s24 }
 0x22f   : > { %1942 = vrot.lane.b32.xlu1 %v1975_v13, %s8881_s23  ;;  %2144 = vrot.lane.b32.xlu0 %v2117_v16, %s8881_s23 }
 0x233   : > { %2003 = vrot.lane.b32.xlu1 %v1976_v17, %s8883_s18  ;;  %2204 = vrot.lane.b32.xlu0 %v2177_v18, %s8883_s18 }
 0x237   : > { %1883 = vrot.lane.b32.xlu1 %v1855_v19, %s8882_s24  ;;  %2086 = vrot.lane.b32.xlu0 %v2117_v16, %s8882_s24 }
 0x23b   : > { %1944 = vrot.lane.b32.xlu1 %v1976_v17, %s8881_s23  ;;  %2146 = vrot.lane.b32.xlu0 %v2118_v20, %s8881_s23 }
 0x23f   : > { %2005 = vrot.lane.b32.xlu1 %v1977_v21, %s8883_s18  ;;  %2206 = vrot.lane.b32.xlu0 %v2178_v22, %s8883_s18 }
 0x243   : > { %1885 = vrot.lane.b32.xlu1 %v1856_v23, %s8882_s24  ;;  %2088 = vrot.lane.b32.xlu0 %v2118_v20, %s8882_s24 }
 0x247   : > { %1946 = vrot.lane.b32.xlu1 %v1977_v21, %s8881_s23  ;;  %2148 = vrot.lane.b32.xlu0 %v2119_v24, %s8881_s23 }
 0x248   : > { %v1929_v25 = vpop.permute.xlu1 %1928 }
 0x249   : > { %v1868_v26 = vpop.permute.xlu0 %1867 }
 0x24a   : > { %1898 = vst.msk [vmem:[#allocation4] sm:$0xff] %vm1897_vm5, %v1868_v26 }
 0x24b   : > { %2007 = vrot.lane.b32.xlu1 %v1978_v27, %s8883_s18  ;;  %2208 = vrot.lane.b32.xlu0 %v2179_v28, %s8883_s18  ;;  %1959 = vst.msk [vmem:[#allocation4] sm:$0xff] %vm1958_vm6, %v1929_v25 }
 0x24d   : > { %v2071_v29 = vpop.permute.xlu0 %2070  ;;  %v1990_v30 = vpop.permute.xlu1 %1989 }
 0x24e   : > { %2100 = vst.msk [vmem:[#allocation4 + $0x8] sm:$0xff] %vm1897_vm5, %v2071_v29 }
 0x24f   : > { %2020 = vst.msk [vmem:[#allocation4] sm:$0xff] %vm2019_vm7, %v1990_v30 }
 0x251   : > { %v1870_v31 = vpop.permute.xlu1 %1869  ;;  %v2191_v32 = vpop.permute.xlu0 %2190 }
 0x252   : > { %1899 = vst.msk [vmem:[#allocation4 + $0x18] sm:$0xff] %vm1897_vm5, %v1870_v31 }
 0x255   : > { %v1931_v33 = vpop.permute.xlu1 %1930  ;;  %v2073_v34 = vpop.permute.xlu0 %2072 }
 0x256   : > { %1960 = vst.msk [vmem:[#allocation4 + $0x18] sm:$0xff] %vm1958_vm6, %v1931_v33  ;;  %v2250_v42 = vld [vmem:[#allocation4] sm:$0xff] }
 0x257   : > { %2101 = vst.msk [vmem:[#allocation4 + $0x20] sm:$0xff] %vm1897_vm5, %v2073_v34 }
 0x259   : > { %v2131_v35 = vpop.permute.xlu1 %2130  ;;  %v2133_v36 = vpop.permute.xlu0 %2132 }
 0x25a   : > { %2160 = vst.msk [vmem:[#allocation4 + $0x8] sm:$0xff] %vm1958_vm6, %v2131_v35  ;;  %2161 = vst.msk [vmem:[#allocation4 + $0x20] sm:$0xff] %vm1958_vm6, %v2133_v36 }
 0x25b   : > { %2220 = vst.msk [vmem:[#allocation4 + $0x8] sm:$0xff] %vm2019_vm7, %v2191_v32 }
 0x25d   : > { %v1992_v37 = vpop.permute.xlu1 %1991  ;;  %v2193_v38 = vpop.permute.xlu0 %2192 }
 0x25e   : > { %2021 = vst.msk [vmem:[#allocation4 + $0x18] sm:$0xff] %vm2019_vm7, %v1992_v37  ;;  %2221 = vst.msk [vmem:[#allocation4 + $0x20] sm:$0xff] %vm2019_vm7, %v2193_v38 }
 0x261   : > { %v1872_v39 = vpop.permute.xlu1 %1871  ;;  %v2075_v40 = vpop.permute.xlu0 %2074 }
 0x262   : > { %1900 = vst.msk [vmem:[#allocation4 + $0x30] sm:$0xff] %vm1897_vm5, %v1872_v39  ;;  %2102 = vst.msk [vmem:[#allocation4 + $0x38] sm:$0xff] %vm1897_vm5, %v2075_v40  ;;  %v2251_v41 = vld [vmem:[#allocation4 + $0x8] sm:$0xff] }
 0x263   : > { %2410 = vmatprep.mubr.f32.mxu1 %v2251_v41 }
 0x264   : > { %2411 = vmatmul.mubr.f32.vlgmr.msra.gmra.mxu1 %v2250_v42 }
 0x265   : > { %v1933_v44 = vpop.permute.xlu1 %1932  ;;  %v2135_v45 = vpop.permute.xlu0 %2134  ;;  %v2254_v46 = vld [vmem:[#allocation4 + $0x20] sm:$0xff]  ;;  %8490 = vmatpush3.msra.mxu1 %v9531_v12  ;;  %v2253_v48 = vld [vmem:[#allocation4 + $0x18] sm:$0xff] }
 0x266   : > { %1961 = vst.msk [vmem:[#allocation4 + $0x30] sm:$0xff] %vm1958_vm6, %v1933_v44  ;;  %2162 = vst.msk [vmem:[#allocation4 + $0x38] sm:$0xff] %vm1958_vm6, %v2135_v45  ;;  %2415 = vmatprep.mubr.f32.mxu1 %v2254_v46  ;;  %8491 = vmatprep.subr.mxu1 %v2314_v43 }
 0x267   : > { %8492 = vmatpush3.msra.mxu1 %v2314_v43 }
 0x268   : > { %2416 = vmatmul.mubr.f32.gmra.mxu1 %v2253_v48  ;;  %8493 = vmatprep.subr.mxu1 %v2313_v47  ;;  %v2255_v48 = vld [vmem:[#allocation4 + $0x28] sm:$0xff] }
 0x269   : > { %v1994_v50 = vpop.permute.xlu1 %1993  ;;  %v2195_v51 = vpop.permute.xlu0 %2194  ;;  %8494 = vmatpush3.msra.mxu1 %v2313_v47  ;;  %v2252_v47 = vld [vmem:[#allocation4 + $0x10] sm:$0xff] }
 0x26a   : > { %2022 = vst.msk [vmem:[#allocation4 + $0x30] sm:$0xff] %vm2019_vm7, %v1994_v50  ;;  %2222 = vst.msk [vmem:[#allocation4 + $0x38] sm:$0xff] %vm2019_vm7, %v2195_v51  ;;  %8495 = vmatprep.subr.mxu1 %v2312_v49  ;;  %v2261_v50 = vld [vmem:[#allocation4 + $0x58] sm:$0xff]  ;;  %v2264_v51 = vld [vmem:[#allocation4 + $0x70] sm:$0xff] }
 0x26b   : > { %8496 = vmatpush3.msra.mxu1 %v2312_v49  ;;  %v2258_v49 = vld [vmem:[#allocation4 + $0x40] sm:$0xff] }
 0x26c   : > { %8512 = vmatprep.subr.mxu1 %v8879_v2 }
 0x26d   : > { %v1874_v52 = vpop.permute.xlu1 %1873  ;;  %v2077_v53 = vpop.permute.xlu0 %2076 }
 0x26e   : > { %1901 = vst.msk [vmem:[#allocation4 + $0x48] sm:$0xff] %vm1897_vm5, %v1874_v52  ;;  %2103 = vst.msk [vmem:[#allocation4 + $0x50] sm:$0xff] %vm1897_vm5, %v2077_v53  ;;  %v2267_v52 = vld [vmem:[#allocation4 + $0x88] sm:$0xff]  ;;  %v2270_v53 = vld [vmem:[#allocation4 + $0xa0] sm:$0xff] }
 0x271   : > { %v1935_v54 = vpop.permute.xlu1 %1934  ;;  %v2137_v55 = vpop.permute.xlu0 %2136  ;;  %v2257_v56 = vld [vmem:[#allocation4 + $0x38] sm:$0xff]  ;;  %v2256_v57 = vld [vmem:[#allocation4 + $0x30] sm:$0xff] }
 0x272   : > { %1962 = vst.msk [vmem:[#allocation4 + $0x48] sm:$0xff] %vm1958_vm6, %v1935_v54  ;;  %2163 = vst.msk [vmem:[#allocation4 + $0x50] sm:$0xff] %vm1958_vm6, %v2137_v55  ;;  %2420 = vmatprep.mubr.f32.mxu1 %v2257_v56  ;;  %v2273_v54 = vld [vmem:[#allocation4 + $0xb8] sm:$0xff]  ;;  %v2276_v55 = vld [vmem:[#allocation4 + $0xd0] sm:$0xff] }
 0x273   : > { %2421 = vmatmul.mubr.f32.gmra.mxu1 %v2256_v57  ;;  %v2279_v56 = vld [vmem:[#allocation4 + $0xe8] sm:$0xff] }
 0x275   : > { %v1996_v58 = vpop.permute.xlu1 %1995  ;;  %v2197_v59 = vpop.permute.xlu0 %2196 }
 0x276   : > { %2023 = vst.msk [vmem:[#allocation4 + $0x48] sm:$0xff] %vm2019_vm7, %v1996_v58  ;;  %2223 = vst.msk [vmem:[#allocation4 + $0x50] sm:$0xff] %vm2019_vm7, %v2197_v59 }
 0x279   : > { %v1876_v60 = vpop.permute.xlu1 %1875  ;;  %v2079_v61 = vpop.permute.xlu0 %2078 }
 0x27a   : > { %1902 = vst.msk [vmem:[#allocation4 + $0x60] sm:$0xff] %vm1897_vm5, %v1876_v60  ;;  %2104 = vst.msk [vmem:[#allocation4 + $0x68] sm:$0xff] %vm1897_vm5, %v2079_v61 }
 0x27d   : > { %v1937_v62 = vpop.permute.xlu1 %1936  ;;  %v2139_v63 = vpop.permute.xlu0 %2138  ;;  %v2260_v0 = vld [vmem:[#allocation4 + $0x50] sm:$0xff]  ;;  %v2259_v1 = vld [vmem:[#allocation4 + $0x48] sm:$0xff] }
 0x27e   : > { %1963 = vst.msk [vmem:[#allocation4 + $0x60] sm:$0xff] %vm1958_vm6, %v1937_v62  ;;  %2164 = vst.msk [vmem:[#allocation4 + $0x68] sm:$0xff] %vm1958_vm6, %v2139_v63  ;;  %2425 = vmatprep.mubr.f32.mxu1 %v2260_v0 }
 0x27f   : > { %2426 = vmatmul.mubr.f32.gmra.mxu1 %v2259_v1 }
 0x281   : > { %v1998_v3 = vpop.permute.xlu1 %1997  ;;  %v2199_v4 = vpop.permute.xlu0 %2198 }
 0x282   : > { %2024 = vst.msk [vmem:[#allocation4 + $0x60] sm:$0xff] %vm2019_vm7, %v1998_v3  ;;  %2224 = vst.msk [vmem:[#allocation4 + $0x68] sm:$0xff] %vm2019_vm7, %v2199_v4 }
 0x285   : > { %v1878_v5 = vpop.permute.xlu1 %1877  ;;  %v2081_v6 = vpop.permute.xlu0 %2080 }
 0x286   : > { %1903 = vst.msk [vmem:[#allocation4 + $0x78] sm:$0xff] %vm1897_vm5, %v1878_v5  ;;  %2105 = vst.msk [vmem:[#allocation4 + $0x80] sm:$0xff] %vm1897_vm5, %v2081_v6 }
 0x289   : > { %v1939_v7 = vpop.permute.xlu1 %1938  ;;  %v2141_v8 = vpop.permute.xlu0 %2140  ;;  %v2263_v9 = vld [vmem:[#allocation4 + $0x68] sm:$0xff]  ;;  %v2262_v10 = vld [vmem:[#allocation4 + $0x60] sm:$0xff] }
 0x28a   : > { %1964 = vst.msk [vmem:[#allocation4 + $0x78] sm:$0xff] %vm1958_vm6, %v1939_v7  ;;  %2165 = vst.msk [vmem:[#allocation4 + $0x80] sm:$0xff] %vm1958_vm6, %v2141_v8  ;;  %2430 = vmatprep.mubr.f32.mxu1 %v2263_v9 }
 0x28b   : > { %2431 = vmatmul.mubr.f32.gmra.mxu1 %v2262_v10 }
 0x28d   : > { %v2000_v11 = vpop.permute.xlu1 %1999  ;;  %v2201_v12 = vpop.permute.xlu0 %2200 }
 0x28e   : > { %2025 = vst.msk [vmem:[#allocation4 + $0x78] sm:$0xff] %vm2019_vm7, %v2000_v11  ;;  %2225 = vst.msk [vmem:[#allocation4 + $0x80] sm:$0xff] %vm2019_vm7, %v2201_v12 }
 0x291   : > { %v1880_v13 = vpop.permute.xlu1 %1879  ;;  %v2083_v14 = vpop.permute.xlu0 %2082 }
 0x292   : > { %1904 = vst.msk [vmem:[#allocation4 + $0x90] sm:$0xff] %vm1897_vm5, %v1880_v13  ;;  %2106 = vst.msk [vmem:[#allocation4 + $0x98] sm:$0xff] %vm1897_vm5, %v2083_v14 }
 0x295   : > { %v1941_v15 = vpop.permute.xlu1 %1940  ;;  %v2143_v16 = vpop.permute.xlu0 %2142  ;;  %v2266_v17 = vld [vmem:[#allocation4 + $0x80] sm:$0xff]  ;;  %v2265_v18 = vld [vmem:[#allocation4 + $0x78] sm:$0xff] }
 0x296   : > { %1965 = vst.msk [vmem:[#allocation4 + $0x90] sm:$0xff] %vm1958_vm6, %v1941_v15  ;;  %2166 = vst.msk [vmem:[#allocation4 + $0x98] sm:$0xff] %vm1958_vm6, %v2143_v16  ;;  %2435 = vmatprep.mubr.f32.mxu1 %v2266_v17 }
 0x297   : > { %2436 = vmatmul.mubr.f32.gmra.mxu1 %v2265_v18 }
 0x299   : > { %v2002_v19 = vpop.permute.xlu1 %2001  ;;  %v2203_v20 = vpop.permute.xlu0 %2202 }
 0x29a   : > { %2026 = vst.msk [vmem:[#allocation4 + $0x90] sm:$0xff] %vm2019_vm7, %v2002_v19  ;;  %2226 = vst.msk [vmem:[#allocation4 + $0x98] sm:$0xff] %vm2019_vm7, %v2203_v20 }
 0x29d   : > { %v1882_v21 = vpop.permute.xlu1 %1881  ;;  %v2085_v22 = vpop.permute.xlu0 %2084 }
 0x29e   : > { %1905 = vst.msk [vmem:[#allocation4 + $0xa8] sm:$0xff] %vm1897_vm5, %v1882_v21  ;;  %2107 = vst.msk [vmem:[#allocation4 + $0xb0] sm:$0xff] %vm1897_vm5, %v2085_v22 }
 0x2a1   : > { %v1943_v23 = vpop.permute.xlu1 %1942  ;;  %v2145_v24 = vpop.permute.xlu0 %2144  ;;  %v2269_v25 = vld [vmem:[#allocation4 + $0x98] sm:$0xff]  ;;  %v2268_v26 = vld [vmem:[#allocation4 + $0x90] sm:$0xff] }
 0x2a2   : > { %1966 = vst.msk [vmem:[#allocation4 + $0xa8] sm:$0xff] %vm1958_vm6, %v1943_v23  ;;  %2167 = vst.msk [vmem:[#allocation4 + $0xb0] sm:$0xff] %vm1958_vm6, %v2145_v24  ;;  %2440 = vmatprep.mubr.f32.mxu1 %v2269_v25 }
 0x2a3   : > { %2441 = vmatmul.mubr.f32.gmra.mxu1 %v2268_v26 }
 0x2a5   : > { %v2004_v27 = vpop.permute.xlu1 %2003  ;;  %v2205_v28 = vpop.permute.xlu0 %2204 }
 0x2a6   : > { %2027 = vst.msk [vmem:[#allocation4 + $0xa8] sm:$0xff] %vm2019_vm7, %v2004_v27  ;;  %2227 = vst.msk [vmem:[#allocation4 + $0xb0] sm:$0xff] %vm2019_vm7, %v2205_v28 }
 0x2a9   : > { %v1884_v29 = vpop.permute.xlu1 %1883  ;;  %v2087_v30 = vpop.permute.xlu0 %2086 }
 0x2aa   : > { %1906 = vst.msk [vmem:[#allocation4 + $0xc0] sm:$0xff] %vm1897_vm5, %v1884_v29  ;;  %2108 = vst.msk [vmem:[#allocation4 + $0xc8] sm:$0xff] %vm1897_vm5, %v2087_v30  ;;  %v7983_v29 = vld [vmem:[%s11849_s5] ss:$0 sm:$0xff] }
 0x2ad   : > { %v1945_v31 = vpop.permute.xlu1 %1944  ;;  %v2147_v32 = vpop.permute.xlu0 %2146  ;;  %v2272_v33 = vld [vmem:[#allocation4 + $0xb0] sm:$0xff]  ;;  %v2271_v34 = vld [vmem:[#allocation4 + $0xa8] sm:$0xff] }
 0x2ae   : > { %1967 = vst.msk [vmem:[#allocation4 + $0xc0] sm:$0xff] %vm1958_vm6, %v1945_v31  ;;  %2168 = vst.msk [vmem:[#allocation4 + $0xc8] sm:$0xff] %vm1958_vm6, %v2147_v32  ;;  %2445 = vmatprep.mubr.f32.mxu1 %v2272_v33 }
 0x2af   : > { %2446 = vmatmul.mubr.f32.gmra.mxu1 %v2271_v34 }
 0x2b1   : > { %v2006_v35 = vpop.permute.xlu1 %2005  ;;  %v2207_v36 = vpop.permute.xlu0 %2206 }
 0x2b2   : > { %2028 = vst.msk [vmem:[#allocation4 + $0xc0] sm:$0xff] %vm2019_vm7, %v2006_v35  ;;  %2228 = vst.msk [vmem:[#allocation4 + $0xc8] sm:$0xff] %vm2019_vm7, %v2207_v36 }
 0x2b5   : > { %v1886_v37 = vpop.permute.xlu1 %1885  ;;  %v2089_v38 = vpop.permute.xlu0 %2088 }
 0x2b6   : > { %1907 = vst.msk [vmem:[#allocation4 + $0xd8] sm:$0xff] %vm1897_vm5, %v1886_v37  ;;  %2109 = vst.msk [vmem:[#allocation4 + $0xe0] sm:$0xff] %vm1897_vm5, %v2089_v38 }
 0x2b9   : > { %v1947_v39 = vpop.permute.xlu1 %1946  ;;  %v2149_v40 = vpop.permute.xlu0 %2148  ;;  %v2275_v41 = vld [vmem:[#allocation4 + $0xc8] sm:$0xff]  ;;  %v2274_v42 = vld [vmem:[#allocation4 + $0xc0] sm:$0xff] }
 0x2ba   : > { %1968 = vst.msk [vmem:[#allocation4 + $0xd8] sm:$0xff] %vm1958_vm6, %v1947_v39  ;;  %2169 = vst.msk [vmem:[#allocation4 + $0xe0] sm:$0xff] %vm1958_vm6, %v2149_v40  ;;  %2450 = vmatprep.mubr.f32.mxu1 %v2275_v41 }
 0x2bb   : > { %2451 = vmatmul.mubr.f32.gmra.mxu1 %v2274_v42  ;;  %v7984_v42 = vld [vmem:[%s11850_s6] ss:$0 sm:$0xff] }
 0x2bd   : > { %v2008_v43 = vpop.permute.xlu1 %2007  ;;  %v2209_v44 = vpop.permute.xlu0 %2208 }
 0x2be   : > { %2029 = vst.msk [vmem:[#allocation4 + $0xd8] sm:$0xff] %vm2019_vm7, %v2008_v43  ;;  %2229 = vst.msk [vmem:[#allocation4 + $0xe0] sm:$0xff] %vm2019_vm7, %v2209_v44 }
 0x2c5   : > { %v2278_v45 = vld [vmem:[#allocation4 + $0xe0] sm:$0xff]  ;;  %v2277_v46 = vld [vmem:[#allocation4 + $0xd8] sm:$0xff] }
 0x2c6   : > { %2455 = vmatprep.mubr.f32.mxu1 %v2278_v45 }
 0x2c7   : > { %2456 = vmatmul.mubr.f32.gmra.mxu1 %v2277_v46 }
 0x2c8   : > { %8497 = vmatprep.mubr.msk.f32.mxu1 %vm1812_vm3, %v2252_v47 }
 0x2cb   : > { %8498 = vmatmul.mubr.msk.f32.vlgmr.msra.gmra.mxu1 %vm1812_vm3, %v2255_v48 }
 0x2cc   : > { %8500 = vmatprep.mubr.msk.f32.mxu1 %vm1812_vm3, %v2258_v49 }
 0x2cf   : > { %8501 = vmatmul.mubr.msk.f32.gmra.mxu1 %vm1812_vm3, %v2261_v50 }
 0x2d0   : > { %8503 = vmatprep.mubr.msk.f32.mxu1 %vm1812_vm3, %v2264_v51 }
 0x2d3   : > { %8504 = vmatmul.mubr.msk.f32.gmra.mxu1 %vm1812_vm3, %v2267_v52 }
 0x2d4   : > { %8506 = vmatprep.mubr.msk.f32.mxu1 %vm1812_vm3, %v2270_v53 }
 0x2d7   : > { %8507 = vmatmul.mubr.msk.f32.gmra.mxu1 %vm1812_vm3, %v2273_v54 }
 0x2d8   : > { %8509 = vmatprep.mubr.msk.f32.mxu1 %vm1812_vm3, %v2276_v55 }
 0x2db   : > { %8510 = vmatmul.mubr.msk.f32.gmra.mxu1 %vm1812_vm3, %v2279_v56 }
 0x2dc   : > { %8532 = vmatprep.mubr.msk.f32.mxu1 %vm8880_vm1, %v8879_v2 }
 0x324   : > { %v8199_v57 = vpop.f32.mrf.mxu1 }
 0x326   : > { %v8200_v58 = vpop.f32.mrf.mxu1 }
 0x327   : > { %v8201_v54 = vadd.f32 %v8200_v58, %v8199_v57 }
 0x328   : > { %v8202_v59 = vpop.f32.mrf.mxu1 }
 0x32a   : > { %v8203_v60 = vpop.f32.mrf.mxu1 }
 0x32b   : > { %v8204_v48 = vadd.f32 %v8203_v60, %v8202_v59 }
 0x333   : > { %v8205_v61 = vpop.f32.mrf.mxu1 }
 0x335   : > { %v8206_v62 = vpop.f32.mrf.mxu1 }
 0x336   : > { %v8207_v41 = vadd.f32 %v8206_v62, %v8205_v61 }
 0x33f   : > { %v8208_v63 = vpop.f32.mrf.mxu1 }
 0x341   : > { %v8209_v0 = vpop.f32.mrf.mxu1 }
 0x342   : > { %v8210_v35 = vadd.f32 %v8209_v0, %v8208_v63 }
 0x34b   : > { %v8211_v1 = vpop.f32.mrf.mxu1 }
 0x34d   : > { %v8212_v3 = vpop.f32.mrf.mxu1 }
 0x34e   : > { %v8213_v28 = vadd.f32 %v8212_v3, %v8211_v1 }
 0x357   : > { %v8214_v4 = vpop.f32.mrf.mxu1 }
 0x359   : > { %v8215_v5 = vpop.f32.mrf.mxu1 }
 0x35a   : > { %v8216_v24 = vadd.f32 %v8215_v5, %v8214_v4 }
 0x363   : > { %v8217_v6 = vpop.f32.mrf.mxu1 }
 0x365   : > { %v8218_v7 = vpop.f32.mrf.mxu1 }
 0x366   : > { %v8219_v22 = vadd.f32 %v8218_v7, %v8217_v6 }
 0x36f   : > { %v8220_v8 = vpop.f32.mrf.mxu1 }
 0x371   : > { %v8221_v9 = vpop.f32.mrf.mxu1 }
 0x372   : > { %v8222_v20 = vadd.f32 %v8221_v9, %v8220_v8 }
 0x37b   : > { %v8223_v10 = vpop.f32.mrf.mxu1 }
 0x37d   : > { %v8224_v11 = vpop.f32.mrf.mxu1 }
 0x37e   : > { %v8225_v32 = vadd.f32 %v8224_v11, %v8223_v10 }
 0x387   : > { %v8226_v12 = vpop.f32.mrf.mxu1 }
 0x389   : > { %v8227_v13 = vpop.f32.mrf.mxu1 }
 0x38a   : > { %v8228_v26 = vadd.f32 %v8227_v13, %v8226_v12 }
 0x38b   : > { %v8499_v14 = vpop.f32.mrf.mxu1 }
 0x38c   : > { %v2533_v55 = vadd.f32 %v8499_v14, %v8204_v48  ;;  %v2660_v48 = vld [vmem:[%s11851_s7 + $0xa0] sm:$0xff] }
 0x38d   : > { %v2527_v15 = vpop.f32.mrf.mxu1 }
 0x38e   : > { %v2528_v1 = vadd.f32 %v8201_v54, %v2527_v15  ;;  %v2584_v5 = vmul.f32 %v7983_v29, %v2533_v55  ;;  %v2665_v54 = vld [vmem:[%s11851_s7 + $0xc8] sm:$0xff]  ;;  %v2666_v55 = vld [vmem:[%s11851_s7 + $0xd0] sm:$0xff] }
 0x38f   : > { %v8502_v16 = vpop.f32.mrf.mxu1 }
 0x390   : > { %v2543_v43 = vadd.f32 %v8502_v16, %v8210_v35  ;;  %v2583_v7 = vmul.f32 %v7983_v29, %v2528_v1  ;;  %v2601_v11 = vadd.f32 %v7984_v42, %v2584_v5  ;;  %v2652_v35 = vld [vmem:[%s11851_s7 + $0x60] sm:$0xff]  ;;  %v4751_v1 = vld [vmem:[%s11852_s8 + $0x78] sm:$0xff]  ;;  %v4749_v5 = vld [vmem:[%s11852_s8 + $0x68] sm:$0xff] }
 0x391   : > { %v2537_v17 = vpop.f32.mrf.mxu1  ;;  %4881 = vmatpush1.msra.mxu0 %v4751_v1 }
 0x392   : > { %v2538_v49 = vadd.f32 %v8207_v41, %v2537_v17  ;;  %v2586_v56 = vmul.f32 %v7983_v29, %v2543_v43  ;;  %v2600_v14 = vadd.f32 %v7984_v42, %v2583_v7  ;;  %vm2611_vm2 = vcmp.gt.f32.partialorder %v2601_v11, 0.0  ;;  %v5728_v41 = vld [vmem:[#allocation7 + $0x9] sm:$0xff]  ;;  %4882 = vmatprep.subr.mxu0 %v8879_v2 }
 0x393   : > { %v8505_v18 = vpop.f32.mrf.mxu1  ;;  %5801 = vrot.lane.b32.xlu1 %v5728_v41, %s8884_s14  ;;  %v5945_v43 = vld [vmem:[#allocation7 + $0xa] sm:$0xff] }
 0x394   : > { %v2553_v30 = vadd.f32 %v8505_v18, %v8216_v24  ;;  %v2585_v3 = vmul.f32 %v7983_v29, %v2538_v49  ;;  %v2603_v57 = vadd.f32 %v7984_v42, %v2586_v56  ;;  %v2621_v18 = vmul.f32 0.2, %v2601_v11  ;;  %v2641_v24 = vld [vmem:[%s11851_s7 + $0x8] sm:$0xff]  ;;  %v2667_v56 = vld [vmem:[%s11851_s7 + $0xd8] sm:$0xff] }
 0x395   : > { %v2547_v19 = vpop.f32.mrf.mxu1  ;;  %v7063_v49 = vld [vmem:[#allocation7 + $0x135] sm:$0xff]  ;;  %v4747_v7 = vld [vmem:[%s11852_s8 + $0x58] sm:$0xff] }
 0x396   : > { %v2548_v36 = vadd.f32 %v8213_v28, %v2547_v19  ;;  %v2588_v44 = vmul.f32 %v7983_v29, %v2553_v30  ;;  %v2602_v8 = vadd.f32 %v7984_v42, %v2585_v3  ;;  %v2623_v13 = vmul.f32 0.2, %v2603_v57  ;;  %v2645_v28 = vld [vmem:[%s11851_s7 + $0x28] sm:$0xff]  ;;  %v2647_v30 = vld [vmem:[%s11851_s7 + $0x38] sm:$0xff]  ;;  %v5655_v3 = vld [vmem:[#allocation7] sm:$0xff] }
 0x397   : > { %v8508_v21 = vpop.f32.mrf.mxu1  ;;  %vm2613_vm14 = vcmp.gt.f32.partialorder %v2603_v57, 0.0  ;;  %6018 = vrot.lane.b32.xlu1 %v5945_v43, %s8882_s24  ;;  %5691 = vst.msk [vmem:[#allocation8] sm:$0xff] %vm438_vm0, %v5655_v3  ;;  %v4764_v3 = vld [vmem:[%s11852_s8 + $0xe0] sm:$0xff] }
 0x398   : > { %v2563_v23 = vadd.f32 %v8508_v21, %v8222_v20  ;;  %v2587_v50 = vmul.f32 %v7983_v29, %v2548_v36  ;;  %v2605_v61 = vadd.f32 %v7984_v42, %v2588_v44  ;;  %v2622_v16 = vmul.f32 0.2, %v2602_v8  ;;  %v2653_v36 = vld [vmem:[%s11851_s7 + $0x68] sm:$0xff]  ;;  %v5727_v44 = vld [vmem:[#allocation7 + $0x1] sm:$0xff] }
 0x399   : > { %v2557_v25 = vpop.f32.mrf.mxu1  ;;  %vm2612_vm15 = vcmp.gt.f32.partialorder %v2602_v8, 0.0  ;;  %v2633_v17 = vsel %vm2613_vm14, %v2603_v57, %v2623_v13  ;;  %v2620_v20 = vmul.f32 0.2, %v2600_v14  ;;  %v2631_v21 = vsel %vm2611_vm2, %v2601_v11, %v2621_v18  ;;  %5799 = vrot.lane.b32.xlu0 %v5727_v44, %s8884_s14  ;;  %v4748_v57 = vld [vmem:[%s11852_s8 + $0x60] sm:$0xff] }
 0x39a   : > { %v2558_v27 = vadd.f32 %v8219_v22, %v2557_v25  ;;  %v2590_v33 = vmul.f32 %v7983_v29, %v2563_v23  ;;  %v2604_v4 = vadd.f32 %v7984_v42, %v2587_v50  ;;  %v2625_v6 = vmul.f32 0.2, %v2605_v61  ;;  %v2640_v22 = vld [vmem:[%s11851_s7] sm:$0xff]  ;;  %v2642_v25 = vld [vmem:[%s11851_s7 + $0x10] sm:$0xff]  ;;  %v2661_v50 = vld [vmem:[%s11851_s7 + $0xa8] sm:$0xff] }
 0x39b   : > { %v8511_v31 = vpop.f32.mrf.mxu1  ;;  %vm2615_vm12 = vcmp.gt.f32.partialorder %v2605_v61, 0.0  ;;  %v2632_v19 = vsel %vm2612_vm15, %v2602_v8, %v2622_v16  ;;  %v4744_v13 = vld [vmem:[%s11852_s8 + $0x40] sm:$0xff]  ;;  %vm5613_vm14 = vcmask 130052  }
 0x39c   : > { %v2573_v34 = vadd.f32 %v8511_v31, %v8228_v26  ;;  %v2589_v38 = vmul.f32 %v7983_v29, %v2558_v27  ;;  %v2607_v45 = vadd.f32 %v7984_v42, %v2590_v33  ;;  %v2624_v10 = vmul.f32 0.2, %v2604_v4  ;;  %v2643_v26 = vld [vmem:[%s11851_s7 + $0x18] sm:$0xff]  ;;  %v2644_v27 = vld [vmem:[%s11851_s7 + $0x20] sm:$0xff]  ;;  %v2650_v33 = vld [vmem:[%s11851_s7 + $0x50] sm:$0xff] }
 0x39d   : > { %v2567_v37 = vpop.f32.mrf.mxu1  ;;  %vm2614_vm13 = vcmp.gt.f32.partialorder %v2604_v4, 0.0  ;;  %v2635_v12 = vsel %vm2615_vm12, %v2605_v61, %v2625_v6  ;;  %v2648_v31 = vld [vmem:[%s11851_s7 + $0x40] sm:$0xff]  ;;  %vm5611_vm12 = vcmask 123904  }
 0x39e   : > { %v2592_v39 = vmul.f32 %v7983_v29, %v2573_v34  ;;  %v2568_v40 = vadd.f32 %v8225_v32, %v2567_v37  ;;  %v2606_v51 = vadd.f32 %v7984_v42, %v2589_v38  ;;  %v2627_v0 = vmul.f32 0.2, %v2607_v45  ;;  %v2649_v32 = vld [vmem:[%s11851_s7 + $0x48] sm:$0xff]  ;;  %v2651_v34 = vld [vmem:[%s11851_s7 + $0x58] sm:$0xff]  ;;  %v2654_v37 = vld [vmem:[%s11851_s7 + $0x70] sm:$0xff] }
 0x39f   : > { %vm2617_vm10 = vcmp.gt.f32.partialorder %v2607_v45, 0.0  ;;  %v2634_v15 = vsel %vm2614_vm13, %v2604_v4, %v2624_v10  ;;  %v2655_v38 = vld [vmem:[%s11851_s7 + $0x78] sm:$0xff]  ;;  %v2668_v61 = vld [vmem:[%s11851_s7 + $0xe0] sm:$0xff]  ;;  %v4750_v4 = vld [vmem:[%s11852_s8 + $0x70] sm:$0xff] }
 0x3a0   : > { %v2609_v46 = vadd.f32 %v7984_v42, %v2592_v39  ;;  %v2591_v47 = vmul.f32 %v7983_v29, %v2568_v40  ;;  %v2626_v60 = vmul.f32 0.2, %v2606_v51  ;;  %vm2616_vm11 = vcmp.gt.f32.partialorder %v2606_v51, 0.0  ;;  %v2646_v29 = vld [vmem:[%s11851_s7 + $0x30] sm:$0xff]  ;;  %v2656_v39 = vld [vmem:[%s11851_s7 + $0x80] sm:$0xff]  ;;  %v2657_v40 = vld [vmem:[%s11851_s7 + $0x88] sm:$0xff]  ;;  %4883 = vmatpush1.msra.mxu0 %v4750_v4 }
 0x3a1   : > { %v2637_v58 = vsel %vm2617_vm10, %v2607_v45, %v2627_v0  ;;  %v2659_v45 = vld [vmem:[%s11851_s7 + $0x98] sm:$0xff]  ;;  %vm5907_vm10 = vcmask 261248   ;;  %4884 = vmatprep.subr.mxu0 %v8879_v2  ;;  %v4745_v10 = vld [vmem:[%s11852_s8 + $0x48] sm:$0xff] }
 0x3a2   : > { %v2608_v52 = vadd.f32 %v7984_v42, %v2591_v47  ;;  %vm2619_vm8 = vcmp.gt.f32.partialorder %v2609_v46, 0.0  ;;  %v2629_v53 = vmul.f32 0.2, %v2609_v46  ;;  %v2636_v9 = vsel %vm2616_vm11, %v2606_v51, %v2626_v60  ;;  %v2658_v42 = vld [vmem:[%s11851_s7 + $0x90] sm:$0xff]  ;;  %4885 = vmatpush1.msra.mxu0 %v4749_v5 }
 0x3a3   : > { %v5944_v47 = vld [vmem:[#allocation7 + $0x2] sm:$0xff]  ;;  %vm6124_vm11 = vcmask 392448   ;;  %4886 = vmatprep.subr.mxu0 %v8879_v2 }
 0x3a4   : > { %v2639_v62 = vsel %vm2619_vm8, %v2609_v46, %v2629_v53  ;;  %vm2618_vm9 = vcmp.gt.f32.partialorder %v2608_v52, 0.0  ;;  %v2628_v63 = vmul.f32 0.2, %v2608_v52  ;;  %vm2610_vm8 = vcmp.gt.f32.partialorder %v2600_v14, 0.0  ;;  %v6846_v46 = vld [vmem:[#allocation7 + $0x134] sm:$0xff]  ;;  %6016 = vrot.lane.b32.xlu0 %v5944_v47, %s8882_s24  ;;  %v2662_v51 = vld [vmem:[%s11851_s7 + $0xb0] sm:$0xff]  ;;  %4887 = vmatpush1.msra.mxu0 %v4748_v57 }
 0x3a5   : > { %8513 = vmatpush3.msra.mxu1 %v2639_v62  ;;  %v2630_v23 = vsel %vm2610_vm8, %v2600_v14, %v2620_v20  ;;  %6952 = vrot.lane.b32.xlu1 %v6846_v46, %s8883_s18  ;;  %v2664_v53 = vld [vmem:[%s11851_s7 + $0xc0] sm:$0xff]  ;;  %v2669_v62 = vld [vmem:[%s11851_s7 + $0xe8] sm:$0xff]  ;;  %v2671_v14 = vld [vmem:[%s11851_s7 + $0xf8] sm:$0xff]  ;;  %vm5616_vm8 = vcmask 125952  }
 0x3a6   : > { %8514 = vmatprep.subr.mxu1 %v8879_v2  ;;  %v2638_v59 = vsel %vm2618_vm9, %v2608_v52, %v2628_v63  ;;  %vm2681_vm9 = vcmask 654336   ;;  %v2663_v52 = vld [vmem:[%s11851_s7 + $0xb8] sm:$0xff]  ;;  %4888 = vmatprep.subr.mxu0 %v8879_v2  ;;  %v4741_v20 = vld [vmem:[%s11852_s8 + $0x28] sm:$0xff] }
 0x3a7   : > { %8515 = vmatpush3.msra.mxu1 %v2638_v59  ;;  %v5656_v63 = vld [vmem:[#allocation7 + $0x8] sm:$0xff]  ;;  %4889 = vmatpush1.msra.mxu0 %v4747_v7 }
 0x3a8   : > { %8516 = vmatprep.subr.mxu1 %v8879_v2  ;;  %5692 = vst.msk [vmem:[#allocation8 + $0x10] sm:$0xff] %vm438_vm0, %v5656_v63  ;;  %4890 = vmatprep.subr.mxu0 %v8879_v2  ;;  %v4767_v46 = vld [vmem:[%s11852_s8 + $0xf8] sm:$0xff] }
 0x3a9   : > { %8517 = vmatpush3.msra.mxu1 %v2637_v58  ;;  %7169 = vrot.lane.b32.xlu1 %v7063_v49, %s8885_s22  ;;  %v2670_v58 = vld [vmem:[%s11851_s7 + $0xf0] sm:$0xff] }
 0x3aa   : > { %8518 = vmatprep.subr.mxu1 %v8879_v2 }
 0x3ab   : > { %8519 = vmatpush3.msra.mxu1 %v2636_v9  ;;  %v4746_v9 = vld [vmem:[%s11852_s8 + $0x50] sm:$0xff] }
 0x3ac   : > { %8520 = vmatprep.subr.mxu1 %v8879_v2  ;;  %4891 = vmatpush1.msra.mxu0 %v4746_v9 }
 0x3ad   : > { %8521 = vmatpush3.msra.mxu1 %v2635_v12  ;;  %4892 = vmatprep.subr.mxu0 %v8879_v2 }
 0x3ae   : > { %8522 = vmatprep.subr.mxu1 %v8879_v2  ;;  %4893 = vmatpush1.msra.mxu0 %v4745_v10 }
 0x3af   : > { %8523 = vmatpush3.msra.mxu1 %v2634_v15  ;;  %4894 = vmatprep.subr.mxu0 %v8879_v2  ;;  %v4743_v15 = vld [vmem:[%s11852_s8 + $0x38] sm:$0xff] }
 0x3b0   : > { %8524 = vmatprep.subr.mxu1 %v8879_v2  ;;  %4895 = vmatpush1.msra.mxu0 %v4744_v13 }
 0x3b1   : > { %8525 = vmatpush3.msra.mxu1 %v2633_v17  ;;  %4896 = vmatprep.subr.mxu0 %v8879_v2 }
 0x3b2   : > { %8526 = vmatprep.subr.mxu1 %v8879_v2  ;;  %4897 = vmatpush1.msra.mxu0 %v4743_v15 }
 0x3b3   : > { %8527 = vmatpush3.msra.mxu1 %v2632_v19  ;;  %4898 = vmatprep.subr.mxu0 %v8879_v2  ;;  %v4742_v19 = vld [vmem:[%s11852_s8 + $0x30] sm:$0xff] }
 0x3b4   : > { %8528 = vmatprep.subr.mxu1 %v8879_v2  ;;  %4899 = vmatpush1.msra.mxu0 %v4742_v19 }
 0x3b5   : > { %8529 = vmatpush3.msra.mxu1 %v2631_v21  ;;  %4900 = vmatprep.subr.mxu0 %v8879_v2 }
 0x3b6   : > { %8530 = vmatprep.subr.mxu1 %v8879_v2  ;;  %4901 = vmatpush1.msra.mxu0 %v4741_v20 }
 0x3b7   : > { %8531 = vmatpush3.msra.mxu1 %v2630_v23  ;;  %4902 = vmatprep.subr.mxu0 %v8879_v2 }
 0x3b8   : > { %8533 = vmatmul.mubr.msk.f32.vlgmr.msra.gmra.mxu1 %vm2681_vm9, %v2640_v22  ;;  %8717 = vmatprep.subr.mxu1 %v8879_v2 }
 0x3b9   : > { %8535 = vmatprep.mubr.msk.f32.mxu1 %vm8880_vm1, %v8879_v2  ;;  %8749 = vmatpush1.msra.mxu1 %v4751_v1 }
 0x3ba   : > { %8718 = vmatprep.subr.mxu1 %v8879_v2 }
 0x3bb   : > { %8750 = vmatpush1.msra.mxu1 %v4750_v4 }
 0x3bc   : > { %8536 = vmatmul.mubr.msk.f32.gmra.mxu1 %vm2681_vm9, %v2641_v24  ;;  %8719 = vmatprep.subr.mxu1 %v8879_v2 }
 0x3bd   : > { %8538 = vmatprep.mubr.msk.f32.mxu1 %vm8880_vm1, %v8879_v2  ;;  %8751 = vmatpush1.msra.mxu1 %v4749_v5  ;;  %v4763_v5 = vld [vmem:[%s11852_s8 + $0xd8] sm:$0xff] }
 0x3be   : > { %8720 = vmatprep.subr.mxu1 %v8879_v2 }
 0x3bf   : > { %8752 = vmatpush1.msra.mxu1 %v4748_v57 }
 0x3c0   : > { %8539 = vmatmul.mubr.msk.f32.gmra.mxu1 %vm2681_vm9, %v2642_v25  ;;  %8721 = vmatprep.subr.mxu1 %v8879_v2  ;;  %v4740_v25 = vld [vmem:[%s11852_s8 + $0x20] sm:$0xff] }
 0x3c1   : > { %8541 = vmatprep.mubr.msk.f32.mxu1 %vm8880_vm1, %v8879_v2  ;;  %8753 = vmatpush1.msra.mxu1 %v4747_v7 }
 0x3c2   : > { %8722 = vmatprep.subr.mxu1 %v8879_v2  ;;  %4903 = vmatpush1.msra.mxu0 %v4740_v25 }
 0x3c3   : > { %8754 = vmatpush1.msra.mxu1 %v4746_v9  ;;  %4904 = vmatprep.subr.mxu0 %v8879_v2 }
 0x3c4   : > { %8542 = vmatmul.mubr.msk.f32.gmra.mxu1 %vm2681_vm9, %v2643_v26  ;;  %8723 = vmatprep.subr.mxu1 %v8879_v2  ;;  %v4739_v26 = vld [vmem:[%s11852_s8 + $0x18] sm:$0xff] }
 0x3c5   : > { %8544 = vmatprep.mubr.msk.f32.mxu1 %vm8880_vm1, %v8879_v2  ;;  %8755 = vmatpush1.msra.mxu1 %v4745_v10 }
 0x3c6   : > { %8724 = vmatprep.subr.mxu1 %v8879_v2  ;;  %4905 = vmatpush1.msra.mxu0 %v4739_v26 }
 0x3c7   : > { %8756 = vmatpush1.msra.mxu1 %v4744_v13  ;;  %4906 = vmatprep.subr.mxu0 %v8879_v2 }
 0x3c8   : > { %8545 = vmatmul.mubr.msk.f32.gmra.mxu1 %vm2681_vm9, %v2644_v27  ;;  %8725 = vmatprep.subr.mxu1 %v8879_v2 }
 0x3c9   : > { %8547 = vmatprep.mubr.msk.f32.mxu1 %vm8880_vm1, %v8879_v2  ;;  %8757 = vmatpush1.msra.mxu1 %v4743_v15 }
 0x3ca   : > { %8726 = vmatprep.subr.mxu1 %v8879_v2 }
 0x3cb   : > { %8758 = vmatpush1.msra.mxu1 %v4742_v19 }
 0x3cc   : > { %8548 = vmatmul.mubr.msk.f32.gmra.mxu1 %vm2681_vm9, %v2645_v28  ;;  %8727 = vmatprep.subr.mxu1 %v8879_v2 }
 0x3cd   : > { %8550 = vmatprep.mubr.msk.f32.mxu1 %vm8880_vm1, %v8879_v2  ;;  %8759 = vmatpush1.msra.mxu1 %v4741_v20  ;;  %v10031_v20 = vld [vmem:[%s11852_s8 + $0xc0] sm:$0xff] }
 0x3ce   : > { %8728 = vmatprep.subr.mxu1 %v8879_v2 }
 0x3cf   : > { %8760 = vmatpush1.msra.mxu1 %v4740_v25 }
 0x3d0   : > { %8551 = vmatmul.mubr.msk.f32.gmra.mxu1 %vm2681_vm9, %v2646_v29  ;;  %8729 = vmatprep.subr.mxu1 %v8879_v2 }
 0x3d1   : > { %8553 = vmatprep.mubr.msk.f32.mxu1 %vm8880_vm1, %v8879_v2  ;;  %8761 = vmatpush1.msra.mxu1 %v4739_v26  ;;  %v2674_v26 = vld [vmem:[%s11851_s7 + $0x110] sm:$0xff] }
 0x3d2   : > { %8730 = vmatprep.subr.mxu1 %v8879_v2 }
 0x3d4   : > { %8554 = vmatmul.mubr.msk.f32.gmra.mxu1 %vm2681_vm9, %v2647_v30 }
 0x3d5   : > { %8556 = vmatprep.mubr.msk.f32.mxu1 %vm8880_vm1, %v8879_v2 }
 0x3d8   : > { %8557 = vmatmul.mubr.msk.f32.gmra.mxu1 %vm2681_vm9, %v2648_v31 }
 0x3d9   : > { %8559 = vmatprep.mubr.msk.f32.mxu1 %vm8880_vm1, %v8879_v2 }
 0x3dc   : > { %8560 = vmatmul.mubr.msk.f32.gmra.mxu1 %vm2681_vm9, %v2649_v32  ;;  %v4738_v32 = vld [vmem:[%s11852_s8 + $0x10] sm:$0xff] }
 0x3dd   : > { %8562 = vmatprep.mubr.msk.f32.mxu1 %vm8880_vm1, %v8879_v2  ;;  %4907 = vmatpush1.msra.mxu0 %v4738_v32 }
 0x3de   : > { %4908 = vmatprep.subr.mxu0 %v8879_v2  ;;  %8762 = vmatpush1.msra.mxu1 %v4738_v32  ;;  %v10057_v32 = vld [vmem:[%s11852_s8 + $0xb0] sm:$0xff] }
 0x3df   : > { %8731 = vmatprep.subr.mxu1 %v8879_v2 }
 0x3e0   : > { %8563 = vmatmul.mubr.msk.f32.gmra.mxu1 %vm2681_vm9, %v2650_v33 }
 0x3e1   : > { %8565 = vmatprep.mubr.msk.f32.mxu1 %vm8880_vm1, %v8879_v2 }
 0x3e4   : > { %8566 = vmatmul.mubr.msk.f32.gmra.mxu1 %vm2681_vm9, %v2651_v34  ;;  %v4737_v34 = vld [vmem:[%s11852_s8 + $0x8] sm:$0xff] }
 0x3e5   : > { %8568 = vmatprep.mubr.msk.f32.mxu1 %vm8880_vm1, %v8879_v2  ;;  %4909 = vmatpush1.msra.mxu0 %v4737_v34 }
 0x3e6   : > { %4910 = vmatprep.subr.mxu0 %v8879_v2  ;;  %8763 = vmatpush1.msra.mxu1 %v4737_v34 }
 0x3e7   : > { %8732 = vmatprep.subr.mxu1 %v8879_v2 }
 0x3e8   : > { %8569 = vmatmul.mubr.msk.f32.gmra.mxu1 %vm2681_vm9, %v2652_v35 }
 0x3e9   : > { %8571 = vmatprep.mubr.msk.f32.mxu1 %vm8880_vm1, %v8879_v2 }
 0x3ec   : > { %8572 = vmatmul.mubr.msk.f32.gmra.mxu1 %vm2681_vm9, %v2653_v36 }
 0x3ed   : > { %8574 = vmatprep.mubr.msk.f32.mxu1 %vm8880_vm1, %v8879_v2 }
 0x3f0   : > { %8575 = vmatmul.mubr.msk.f32.gmra.mxu1 %vm2681_vm9, %v2654_v37 }
 0x3f1   : > { %8577 = vmatprep.mubr.msk.f32.mxu1 %vm8880_vm1, %v8879_v2 }
 0x3f4   : > { %8578 = vmatmul.mubr.msk.f32.gmra.mxu1 %vm2681_vm9, %v2655_v38 }
 0x3f5   : > { %8580 = vmatprep.mubr.msk.f32.mxu1 %vm8880_vm1, %v8879_v2 }
 0x3f8   : > { %8581 = vmatmul.mubr.msk.f32.gmra.mxu1 %vm2681_vm9, %v2656_v39 }
 0x3f9   : > { %8583 = vmatprep.mubr.msk.f32.mxu1 %vm8880_vm1, %v8879_v2 }
 0x3fc   : > { %8584 = vmatmul.mubr.msk.f32.gmra.mxu1 %vm2681_vm9, %v2657_v40  ;;  %v4736_v40 = vld [vmem:[%s11852_s8] sm:$0xff] }
 0x3fd   : > { %8586 = vmatprep.mubr.msk.f32.mxu1 %vm8880_vm1, %v8879_v2  ;;  %4911 = vmatpush1.msra.mxu0 %v4736_v40 }
 0x3fe   : > { %4912 = vmatprep.subr.mxu0 %v8879_v2  ;;  %8764 = vmatpush1.msra.mxu1 %v4736_v40  ;;  %v10086_v40 = vld [vmem:[%s11852_s8 + $0xa0] sm:$0xff] }
 0x3ff   : > { %4913 = vmatpush2.msra.mxu0 %v4767_v46  ;;  %8733 = vmatprep.subr.mxu1 %v8879_v2 }
 0x400   : > { %8587 = vmatmul.mubr.msk.f32.gmra.mxu1 %vm2681_vm9, %v2658_v42  ;;  %v2672_v42 = vld [vmem:[%s11851_s7 + $0x100] sm:$0xff]  ;;  %4914 = vmatprep.subr.mxu0 %v8879_v2 }
 0x401   : > { %8589 = vmatprep.mubr.msk.f32.mxu1 %vm8880_vm1, %v8879_v2  ;;  %8765 = vmatpush2.msra.mxu1 %v4767_v46 }
 0x402   : > { %8734 = vmatprep.subr.mxu1 %v8879_v2 }
 0x404   : > { %8590 = vmatmul.mubr.msk.f32.gmra.mxu1 %vm2681_vm9, %v2659_v45 }
 0x405   : > { %8592 = vmatprep.mubr.msk.f32.mxu1 %vm8880_vm1, %v8879_v2  ;;  %v5802_v0 = vpop.permute.xlu1 %5801 }
 0x406   : > { %5909 = vst.msk [vmem:[#allocation8 + $0x10] sm:$0xff] %vm5907_vm10, %v5802_v0 }
 0x408   : > { %8593 = vmatmul.mubr.msk.f32.gmra.mxu1 %vm2681_vm9, %v2660_v48 }
 0x409   : > { %8595 = vmatprep.mubr.msk.f32.mxu1 %vm8880_vm1, %v8879_v2  ;;  %v6019_v59 = vpop.permute.xlu1 %6018 }
 0x40a   : > { %6126 = vst.msk [vmem:[#allocation8 + $0x10] sm:$0xff] %vm6124_vm11, %v6019_v59 }
 0x40b   : > { %v5800_v60 = vpop.permute.xlu0 %5799 }
 0x40c   : > { %8596 = vmatmul.mubr.msk.f32.gmra.mxu1 %vm2681_vm9, %v2661_v50  ;;  %5908 = vst.msk [vmem:[#allocation8] sm:$0xff] %vm5907_vm10, %v5800_v60  ;;  %v4766_v50 = vld [vmem:[%s11852_s8 + $0xf0] sm:$0xff] }
 0x40d   : > { %8598 = vmatprep.mubr.msk.f32.mxu1 %vm8880_vm1, %v8879_v2  ;;  %4915 = vmatpush2.msra.mxu0 %v4766_v50 }
 0x40e   : > { %4916 = vmatprep.subr.mxu0 %v8879_v2  ;;  %8766 = vmatpush2.msra.mxu1 %v4766_v50 }
 0x40f   : > { %8735 = vmatprep.subr.mxu1 %v8879_v2 }
 0x410   : > { %8599 = vmatmul.mubr.msk.f32.gmra.mxu1 %vm2681_vm9, %v2662_v51 }
 0x411   : > { %8601 = vmatprep.mubr.msk.f32.mxu1 %vm8880_vm1, %v8879_v2 }
 0x414   : > { %8602 = vmatmul.mubr.msk.f32.gmra.mxu1 %vm2681_vm9, %v2663_v52 }
 0x415   : > { %8604 = vmatprep.mubr.msk.f32.mxu1 %vm8880_vm1, %v8879_v2 }
 0x416   : > { %v6017_v6 = vpop.permute.xlu0 %6016 }
 0x417   : > { %6125 = vst.msk [vmem:[#allocation8] sm:$0xff] %vm6124_vm11, %v6017_v6 }
 0x418   : > { %8605 = vmatmul.mubr.msk.f32.gmra.mxu1 %vm2681_vm9, %v2664_v53 }
 0x419   : > { %8607 = vmatprep.mubr.msk.f32.mxu1 %vm8880_vm1, %v8879_v2 }
 0x41c   : > { %8608 = vmatmul.mubr.msk.f32.gmra.mxu1 %vm2681_vm9, %v2665_v54  ;;  %v4765_v54 = vld [vmem:[%s11852_s8 + $0xe8] sm:$0xff] }
 0x41d   : > { %8610 = vmatprep.mubr.msk.f32.mxu1 %vm8880_vm1, %v8879_v2  ;;  %4917 = vmatpush2.msra.mxu0 %v4765_v54 }
 0x41e   : > { %4918 = vmatprep.subr.mxu0 %v8879_v2  ;;  %8767 = vmatpush2.msra.mxu1 %v4765_v54 }
 0x41f   : > { %4919 = vmatpush2.msra.mxu0 %v4764_v3  ;;  %8736 = vmatprep.subr.mxu1 %v8879_v2 }
 0x420   : > { %8611 = vmatmul.mubr.msk.f32.gmra.mxu1 %vm2681_vm9, %v2666_v55  ;;  %4920 = vmatprep.subr.mxu0 %v8879_v2 }
 0x421   : > { %8613 = vmatprep.mubr.msk.f32.mxu1 %vm8880_vm1, %v8879_v2  ;;  %4921 = vmatpush2.msra.mxu0 %v4763_v5 }
 0x422   : > { %4922 = vmatprep.subr.mxu0 %v8879_v2  ;;  %8768 = vmatpush2.msra.mxu1 %v4764_v3 }
 0x423   : > { %8737 = vmatprep.subr.mxu1 %v8879_v2 }
 0x424   : > { %8614 = vmatmul.mubr.msk.f32.gmra.mxu1 %vm2681_vm9, %v2667_v56 }
 0x425   : > { %8616 = vmatprep.mubr.msk.f32.mxu1 %vm8880_vm1, %v8879_v2  ;;  %8769 = vmatpush2.msra.mxu1 %v4763_v5 }
 0x426   : > { %8738 = vmatprep.subr.mxu1 %v8879_v2 }
 0x428   : > { %8617 = vmatmul.mubr.msk.f32.gmra.mxu1 %vm2681_vm9, %v2668_v61  ;;  %v2673_v61 = vld [vmem:[%s11851_s7 + $0x108] sm:$0xff] }
 0x429   : > { %8619 = vmatprep.mubr.msk.f32.mxu1 %vm8880_vm1, %v8879_v2 }
 0x42c   : > { %8620 = vmatmul.mubr.msk.f32.gmra.mxu1 %vm2681_vm9, %v2669_v62 }
 0x42d   : > { %8622 = vmatprep.mubr.msk.f32.mxu1 %vm8880_vm1, %v8879_v2 }
 0x430   : > { %8623 = vmatmul.mubr.msk.f32.gmra.mxu1 %vm2681_vm9, %v2670_v58 }
 0x431   : > { %8625 = vmatprep.mubr.msk.f32.mxu1 %vm8880_vm1, %v8879_v2 }
 0x434   : > { %8626 = vmatmul.mubr.msk.f32.gmra.mxu1 %vm2681_vm9, %v2671_v14 }
 0x435   : > { %8628 = vmatprep.mubr.msk.f32.mxu1 %vm8880_vm1, %v8879_v2 }
 0x438   : > { %8629 = vmatmul.mubr.msk.f32.gmra.mxu1 %vm2681_vm9, %v2672_v42  ;;  %v2675_v42 = vld [vmem:[%s11851_s7 + $0x118] sm:$0xff] }
 0x439   : > { %8631 = vmatprep.mubr.msk.f32.mxu1 %vm8880_vm1, %v8879_v2 }
 0x43c   : > { %8632 = vmatmul.mubr.msk.f32.gmra.mxu1 %vm2681_vm9, %v2673_v61  ;;  %v10129_v61 = vld [vmem:[%s11852_s8 + $0x88] sm:$0xff] }
 0x43d   : > { %8634 = vmatprep.mubr.msk.f32.mxu1 %vm8880_vm1, %v8879_v2 }
 0x440   : > { %8635 = vmatmul.mubr.msk.f32.gmra.mxu1 %vm2681_vm9, %v2674_v26 }
 0x441   : > { %8637 = vmatprep.mubr.msk.f32.mxu1 %vm8880_vm1, %v8879_v2 }
 0x444   : > { %8638 = vmatmul.mubr.msk.f32.gmra.mxu1 %vm2681_vm9, %v2675_v42 }
 0x445   : > { %8640 = vmatprep.mubr.msk.f32.mxu1 %vm8880_vm1, %v8879_v2 }
 0x478   : > { %v2871_v8 = vpop.f32.mrf.mxu1 }
 0x479   : > { %3075 = vst.msk [vmem:[#allocation5] sm:$0xff] %vm1812_vm3, %v2871_v8  ;;  %v10009_v8 = vld [vmem:[%s11852_s8 + $0xd0] sm:$0xff] }
 0x47a   : > { %v8534_v11 = vpop.f32.mrf.mxu1  ;;  %4923 = vmatpush2.msra.mxu0 %v10009_v8  ;;  %8770 = vmatpush2.msra.mxu1 %v10009_v8 }
 0x47b   : > { %4924 = vmatprep.subr.mxu0 %v8879_v2  ;;  %8739 = vmatprep.subr.mxu1 %v8879_v2 }
 0x47c   : > { %v2876_v12 = vpop.f32.mrf.mxu1 }
 0x47d   : > { %3076 = vst.msk [vmem:[#allocation5 + $0x8] sm:$0xff] %vm1812_vm3, %v2876_v12 }
 0x47e   : > { %v8537_v16 = vpop.f32.mrf.mxu1 }
 0x47f   : > { %v10019_v16 = vld [vmem:[%s11852_s8 + $0xc8] sm:$0xff] }
 0x480   : > { %v2881_v17 = vpop.f32.mrf.mxu1  ;;  %v3116_v18 = vld [vmem:[#allocation5] sm:$0xff]  ;;  %4925 = vmatpush2.msra.mxu0 %v10019_v16  ;;  %8771 = vmatpush2.msra.mxu1 %v10019_v16 }
 0x481   : > { %3077 = vst.msk [vmem:[#allocation5 + $0x10] sm:$0xff] %vm1812_vm3, %v2881_v17  ;;  %3152 = vst.msk [vmem:[#allocation6] sm:$0xff] %vm1812_vm3, %v3116_v18  ;;  %4926 = vmatprep.subr.mxu0 %v8879_v2  ;;  %8740 = vmatprep.subr.mxu1 %v8879_v2 }
 0x482   : > { %v8540_v21 = vpop.f32.mrf.mxu1  ;;  %4927 = vmatpush2.msra.mxu0 %v10031_v20  ;;  %8772 = vmatpush2.msra.mxu1 %v10031_v20 }
 0x483   : > { %4928 = vmatprep.subr.mxu0 %v8879_v2  ;;  %8741 = vmatprep.subr.mxu1 %v8879_v2 }
 0x484   : > { %v2886_v22 = vpop.f32.mrf.mxu1  ;;  %v3188_v23 = vld [vmem:[#allocation5 + $0x1] sm:$0xff] }
 0x485   : > { %v3117_v24 = vld [vmem:[#allocation5 + $0x8] sm:$0xff]  ;;  %3078 = vst.msk [vmem:[#allocation5 + $0x18] sm:$0xff] %vm1812_vm3, %v2886_v22  ;;  %3260 = vrot.lane.b32.xlu0 %v3188_v23, %s8882_s24 }
 0x486   : > { %3153 = vst.msk [vmem:[#allocation6 + $0x18] sm:$0xff] %vm1812_vm3, %v3117_v24  ;;  %v8543_v27 = vpop.f32.mrf.mxu1  ;;  %v3404_v29 = vld [vmem:[#allocation5 + $0x2] sm:$0xff]  ;;  %v10044_v24 = vld [vmem:[%s11852_s8 + $0xb8] sm:$0xff] }
 0x487   : > { %4929 = vmatpush2.msra.mxu0 %v10044_v24  ;;  %8773 = vmatpush2.msra.mxu1 %v10044_v24 }
 0x488   : > { %v2891_v28 = vpop.f32.mrf.mxu1  ;;  %v3189_v30 = vld [vmem:[#allocation5 + $0x9] sm:$0xff]  ;;  %4930 = vmatprep.subr.mxu0 %v8879_v2  ;;  %8742 = vmatprep.subr.mxu1 %v8879_v2 }
 0x489   : > { %v3118_v31 = vld [vmem:[#allocation5 + $0x10] sm:$0xff]  ;;  %3079 = vst.msk [vmem:[#allocation5 + $0x20] sm:$0xff] %vm1812_vm3, %v2891_v28  ;;  %3476 = vrot.lane.b32.xlu0 %v3404_v29, %s8881_s23  ;;  %3262 = vrot.lane.b32.xlu1 %v3189_v30, %s8882_s24 }
 0x48a   : > { %3154 = vst.msk [vmem:[#allocation6 + $0x30] sm:$0xff] %vm1812_vm3, %v3118_v31  ;;  %v8546_v33 = vpop.f32.mrf.mxu1  ;;  %v3405_v36 = vld [vmem:[#allocation5 + $0xa] sm:$0xff]  ;;  %4931 = vmatpush2.msra.mxu0 %v10057_v32  ;;  %8774 = vmatpush2.msra.mxu1 %v10057_v32 }
 0x48b   : > { %4932 = vmatprep.subr.mxu0 %v8879_v2  ;;  %8743 = vmatprep.subr.mxu1 %v8879_v2 }
 0x48c   : > { %v2896_v35 = vpop.f32.mrf.mxu1  ;;  %v3190_v37 = vld [vmem:[#allocation5 + $0x11] sm:$0xff] }
 0x48d   : > { %3080 = vst.msk [vmem:[#allocation5 + $0x28] sm:$0xff] %vm1812_vm3, %v2896_v35  ;;  %3478 = vrot.lane.b32.xlu1 %v3405_v36, %s8881_s23  ;;  %3264 = vrot.lane.b32.xlu0 %v3190_v37, %s8882_s24  ;;  %v3119_v38 = vld [vmem:[#allocation5 + $0x18] sm:$0xff]  ;;  %v10072_v36 = vld [vmem:[%s11852_s8 + $0xa8] sm:$0xff] }
 0x48e   : > { %v3836_v39 = vld [vmem:[#allocation5 + $0x13] sm:$0xff]  ;;  %v8549_v41 = vpop.f32.mrf.mxu1  ;;  %3155 = vst.msk [vmem:[#allocation6 + $0x48] sm:$0xff] %vm1812_vm3, %v3119_v38  ;;  %4933 = vmatpush2.msra.mxu0 %v10072_v36  ;;  %8775 = vmatpush2.msra.mxu1 %v10072_v36 }
 0x48f   : > { %3872 = vst.msk [vmem:[#allocation6 + $0x8] sm:$0xff] %vm1812_vm3, %v3836_v39  ;;  %v3406_v43 = vld [vmem:[#allocation5 + $0x12] sm:$0xff]  ;;  %4934 = vmatprep.subr.mxu0 %v8879_v2  ;;  %8744 = vmatprep.subr.mxu1 %v8879_v2 }
 0x490   : > { %v3191_v44 = vld [vmem:[#allocation5 + $0x19] sm:$0xff]  ;;  %v2901_v45 = vpop.f32.mrf.mxu1  ;;  %4935 = vmatpush2.msra.mxu0 %v10086_v40  ;;  %8776 = vmatpush2.msra.mxu1 %v10086_v40 }
 0x491   : > { %3480 = vrot.lane.b32.xlu0 %v3406_v43, %s8881_s23  ;;  %3266 = vrot.lane.b32.xlu1 %v3191_v44, %s8882_s24  ;;  %3081 = vst.msk [vmem:[#allocation5 + $0x30] sm:$0xff] %vm1812_vm3, %v2901_v45  ;;  %v3837_v47 = vld [vmem:[#allocation5 + $0x1b] sm:$0xff] }
 0x492   : > { %v3120_v48 = vld [vmem:[#allocation5 + $0x20] sm:$0xff]  ;;  %v8552_v49 = vpop.f32.mrf.mxu1  ;;  %3873 = vst.msk [vmem:[#allocation6 + $0x20] sm:$0xff] %vm1812_vm3, %v3837_v47  ;;  %v3908_v0 = vld [vmem:[#allocation5 + $0x14] sm:$0xff]  ;;  %4936 = vmatprep.subr.mxu0 %v8879_v2  ;;  %8745 = vmatprep.subr.mxu1 %v8879_v2 }
 0x493   : > { %3156 = vst.msk [vmem:[#allocation6 + $0x60] sm:$0xff] %vm1812_vm3, %v3120_v48  ;;  %v3407_v52 = vld [vmem:[#allocation5 + $0x1a] sm:$0xff]  ;;  %v10101_v48 = vld [vmem:[%s11852_s8 + $0x98] sm:$0xff] }
 0x494   : > { %v4556_v51 = vld [vmem:[#allocation5 + $0x26] sm:$0xff]  ;;  %v2906_v53 = vpop.f32.mrf.mxu1  ;;  %v3909_v58 = vld [vmem:[#allocation5 + $0x1c] sm:$0xff]  ;;  %4937 = vmatpush2.msra.mxu0 %v10101_v48  ;;  %8777 = vmatpush2.msra.mxu1 %v10101_v48 }
 0x495   : > { %4592 = vst.msk [vmem:[#allocation6 + $0x10] sm:$0xff] %vm1812_vm3, %v4556_v51  ;;  %3692 = vrot.lane.b32.xlu0 %v3406_v43, %s8883_s18  ;;  %3482 = vrot.lane.b32.xlu1 %v3407_v52, %s8881_s23  ;;  %3082 = vst.msk [vmem:[#allocation5 + $0x38] sm:$0xff] %vm1812_vm3, %v2906_v53  ;;  %v3121_v55 = vld [vmem:[#allocation5 + $0x28] sm:$0xff] }
 0x496   : > { %v8555_v56 = vpop.f32.mrf.mxu1  ;;  %3157 = vst.msk [vmem:[#allocation6 + $0x78] sm:$0xff] %vm1812_vm3, %v3121_v55  ;;  %v3838_v62 = vld [vmem:[#allocation5 + $0x23] sm:$0xff]  ;;  %4938 = vmatprep.subr.mxu0 %v8879_v2  ;;  %8746 = vmatprep.subr.mxu1 %v8879_v2 }
 0x497   : > { %3874 = vst.msk [vmem:[#allocation6 + $0x38] sm:$0xff] %vm1812_vm3, %v3838_v62  ;;  %v3192_v6 = vld [vmem:[#allocation5 + $0x21] sm:$0xff] }
 0x498   : > { %v4557_v63 = vld [vmem:[#allocation5 + $0x2e] sm:$0xff]  ;;  %v2911_v1 = vpop.f32.mrf.mxu1  ;;  %v3408_v12 = vld [vmem:[#allocation5 + $0x22] sm:$0xff] }
 0x499   : > { %4593 = vst.msk [vmem:[#allocation6 + $0x28] sm:$0xff] %vm1812_vm3, %v4557_v63  ;;  %3980 = vrot.lane.b32.xlu0 %v3908_v0, %s8882_s24  ;;  %3694 = vrot.lane.b32.xlu1 %v3407_v52, %s8883_s18  ;;  %3083 = vst.msk [vmem:[#allocation5 + $0x40] sm:$0xff] %vm1812_vm3, %v2911_v1  ;;  %v3839_v59 = vld [vmem:[#allocation5 + $0x2b] sm:$0xff] }
 0x49a   : > { %v8558_v4 = vpop.f32.mrf.mxu1  ;;  %v3122_v60 = vld [vmem:[#allocation5 + $0x30] sm:$0xff]  ;;  %3875 = vst.msk [vmem:[#allocation6 + $0x50] sm:$0xff] %vm1812_vm3, %v3839_v59  ;;  %v3910_v29 = vld [vmem:[#allocation5 + $0x24] sm:$0xff]  ;;  %v10141_v59 = vld [vmem:[%s11852_s8 + $0x80] sm:$0xff] }
 0x49b   : > { %3158 = vst.msk [vmem:[#allocation6 + $0x90] sm:$0xff] %vm1812_vm3, %v3122_v60  ;;  %v3193_v13 = vld [vmem:[#allocation5 + $0x29] sm:$0xff] }
 0x49c   : > { %v4558_v57 = vld [vmem:[#allocation5 + $0x36] sm:$0xff]  ;;  %v2916_v7 = vpop.f32.mrf.mxu1  ;;  %v3409_v21 = vld [vmem:[#allocation5 + $0x2a] sm:$0xff] }
 0x49d   : > { %4594 = vst.msk [vmem:[#allocation6 + $0x40] sm:$0xff] %vm1812_vm3, %v4558_v57  ;;  %3982 = vrot.lane.b32.xlu1 %v3909_v58, %s8882_s24  ;;  %3268 = vrot.lane.b32.xlu0 %v3192_v6, %s8882_s24  ;;  %3084 = vst.msk [vmem:[#allocation5 + $0x48] sm:$0xff] %vm1812_vm3, %v2916_v7  ;;  %v3840_v10 = vld [vmem:[#allocation5 + $0x33] sm:$0xff]  ;;  %v4340_v45 = vld [vmem:[#allocation5 + $0x25] sm:$0xff] }
 0x49e   : > { %v8561_v9 = vpop.f32.mrf.mxu1  ;;  %v3123_v11 = vld [vmem:[#allocation5 + $0x38] sm:$0xff]  ;;  %3876 = vst.msk [vmem:[#allocation6 + $0x68] sm:$0xff] %vm1812_vm3, %v3840_v10  ;;  %v3911_v37 = vld [vmem:[#allocation5 + $0x2c] sm:$0xff] }
 0x49f   : > { %3159 = vst.msk [vmem:[#allocation6 + $0xa8] sm:$0xff] %vm1812_vm3, %v3123_v11  ;;  %v10116_v52 = vld [vmem:[%s11852_s8 + $0x90] sm:$0xff]  ;;  %v4126_v54 = vld [vmem:[#allocation5 + $0x34] sm:$0xff] }
 0x4a0   : > { %v4559_v14 = vld [vmem:[#allocation5 + $0x3e] sm:$0xff]  ;;  %v2921_v15 = vpop.f32.mrf.mxu1  ;;  %v4341_v53 = vld [vmem:[#allocation5 + $0x2d] sm:$0xff]  ;;  %4939 = vmatpush2.msra.mxu0 %v10116_v52  ;;  %8778 = vmatpush2.msra.mxu1 %v10116_v52 }
 0x4a1   : > { %3484 = vrot.lane.b32.xlu0 %v3408_v12, %s8881_s23  ;;  %3270 = vrot.lane.b32.xlu1 %v3193_v13, %s8882_s24  ;;  %4595 = vst.msk [vmem:[#allocation6 + $0x58] sm:$0xff] %vm1812_vm3, %v4559_v14  ;;  %3085 = vst.msk [vmem:[#allocation5 + $0x50] sm:$0xff] %vm1812_vm3, %v2921_v15  ;;  %v3841_v18 = vld [vmem:[#allocation5 + $0x3b] sm:$0xff]  ;;  %v3194_v1 = vld [vmem:[#allocation5 + $0x31] sm:$0xff] }
 0x4a2   : > { %v8564_v17 = vpop.f32.mrf.mxu1  ;;  %v3124_v19 = vld [vmem:[#allocation5 + $0x40] sm:$0xff]  ;;  %3877 = vst.msk [vmem:[#allocation6 + $0x80] sm:$0xff] %vm1812_vm3, %v3841_v18  ;;  %4940 = vmatprep.subr.mxu0 %v8879_v2  ;;  %v3410_v58 = vld [vmem:[#allocation5 + $0x32] sm:$0xff]  ;;  %8747 = vmatprep.subr.mxu1 %v8879_v2 }
 0x4a3   : > { %3160 = vst.msk [vmem:[#allocation6 + $0xc0] sm:$0xff] %vm1812_vm3, %v3124_v19  ;;  %4941 = vmatpush2.msra.mxu0 %v10129_v61  ;;  %v3195_v6 = vld [vmem:[#allocation5 + $0x39] sm:$0xff]  ;;  %8779 = vmatpush2.msra.mxu1 %v10129_v61  ;;  %v2679_v52 = vld [vmem:[%s11851_s7 + $0x138] sm:$0xff] }
 0x4a4   : > { %v4560_v22 = vld [vmem:[#allocation5 + $0x46] sm:$0xff]  ;;  %v2926_v23 = vpop.f32.mrf.mxu1  ;;  %4942 = vmatprep.subr.mxu0 %v8879_v2  ;;  %v2676_v9 = vld [vmem:[%s11851_s7 + $0x120] sm:$0xff]  ;;  %8748 = vmatprep.subr.mxu1 %v8879_v2 }
 0x4a5   : > { %3696 = vrot.lane.b32.xlu0 %v3408_v12, %s8883_s18  ;;  %3486 = vrot.lane.b32.xlu1 %v3409_v21, %s8881_s23  ;;  %4596 = vst.msk [vmem:[#allocation6 + $0x70] sm:$0xff] %vm1812_vm3, %v4560_v22  ;;  %3086 = vst.msk [vmem:[#allocation5 + $0x58] sm:$0xff] %vm1812_vm3, %v2926_v23  ;;  %v3842_v27 = vld [vmem:[#allocation5 + $0x43] sm:$0xff]  ;;  %v3411_v13 = vld [vmem:[#allocation5 + $0x3a] sm:$0xff] }
 0x4a6   : > { %v8567_v25 = vpop.f32.mrf.mxu1  ;;  %3878 = vst.msk [vmem:[#allocation6 + $0x98] sm:$0xff] %vm1812_vm3, %v3842_v27  ;;  %v3125_v28 = vld [vmem:[#allocation5 + $0x48] sm:$0xff]  ;;  %4943 = vmatpush2.msra.mxu0 %v10141_v59  ;;  %8641 = vmatmul.mubr.msk.f32.gmra.mxu1 %vm2681_vm9, %v2676_v9  ;;  %v4342_v19 = vld [vmem:[#allocation5 + $0x35] sm:$0xff]  ;;  %v2677_v22 = vld [vmem:[%s11851_s7 + $0x128] sm:$0xff] }
 0x4a7   : > { %3161 = vst.msk [vmem:[#allocation6 + $0xd8] sm:$0xff] %vm1812_vm3, %v3125_v28  ;;  %7523 = vmatprep.subr.mxu0 %v8879_v2  ;;  %8643 = vmatprep.mubr.msk.f32.mxu1 %vm8880_vm1, %v8879_v2  ;;  %v4343_v26 = vld [vmem:[#allocation5 + $0x3d] sm:$0xff] }
 0x4a8   : > { %v4561_v30 = vld [vmem:[#allocation5 + $0x4e] sm:$0xff]  ;;  %v2931_v31 = vpop.f32.mrf.mxu1  ;;  %v4127_v27 = vld [vmem:[#allocation5 + $0x3c] sm:$0xff]  ;;  %8780 = vmatpush2.msra.mxu1 %v10141_v59 }
 0x4a9   : > { %3984 = vrot.lane.b32.xlu0 %v3910_v29, %s8882_s24  ;;  %3698 = vrot.lane.b32.xlu1 %v3409_v21, %s8883_s18  ;;  %4597 = vst.msk [vmem:[#allocation6 + $0x88] sm:$0xff] %vm1812_vm3, %v4561_v30  ;;  %3087 = vst.msk [vmem:[#allocation5 + $0x60] sm:$0xff] %vm1812_vm3, %v2931_v31  ;;  %v3843_v34 = vld [vmem:[#allocation5 + $0x4b] sm:$0xff]  ;;  %v3196_v40 = vld [vmem:[#allocation5 + $0x41] sm:$0xff] }
 0x4aa   : > { %v8570_v33 = vpop.f32.mrf.mxu1  ;;  %v3126_v35 = vld [vmem:[#allocation5 + $0x50] sm:$0xff]  ;;  %3879 = vst.msk [vmem:[#allocation6 + $0xb0] sm:$0xff] %vm1812_vm3, %v3843_v34  ;;  %8644 = vmatmul.mubr.msk.f32.gmra.mxu1 %vm2681_vm9, %v2677_v22 }
 0x4ab   : > { %3162 = vst.msk [vmem:[#allocation6 + $0xf0] sm:$0xff] %vm1812_vm3, %v3126_v35  ;;  %8646 = vmatprep.mubr.msk.f32.mxu1 %vm8880_vm1, %v8879_v2  ;;  %v4344_v33 = vld [vmem:[#allocation5 + $0x45] sm:$0xff] }
 0x4ac   : > { %v4562_v38 = vld [vmem:[#allocation5 + $0x56] sm:$0xff]  ;;  %v2936_v39 = vpop.f32.mrf.mxu1 }
 0x4ad   : > { %4196 = vrot.lane.b32.xlu0 %v3910_v29, %s8881_s23  ;;  %3986 = vrot.lane.b32.xlu1 %v3911_v37, %s8882_s24  ;;  %4598 = vst.msk [vmem:[#allocation6 + $0xa0] sm:$0xff] %vm1812_vm3, %v4562_v38  ;;  %3088 = vst.msk [vmem:[#allocation5 + $0x68] sm:$0xff] %vm1812_vm3, %v2936_v39  ;;  %v3844_v43 = vld [vmem:[#allocation5 + $0x53] sm:$0xff]  ;;  %v3914_v39 = vld [vmem:[#allocation5 + $0x44] sm:$0xff] }
 0x4ae   : > { %v8573_v41 = vpop.f32.mrf.mxu1  ;;  %v3127_v44 = vld [vmem:[#allocation5 + $0x58] sm:$0xff]  ;;  %3880 = vst.msk [vmem:[#allocation6 + $0xc8] sm:$0xff] %vm1812_vm3, %v3844_v43 }
 0x4af   : > { %3163 = vst.msk [vmem:[#allocation6 + $0x108] sm:$0xff] %vm1812_vm3, %v3127_v44  ;;  %v3412_v44 = vld [vmem:[#allocation5 + $0x42] sm:$0xff] }
 0x4b0   : > { %v4563_v46 = vld [vmem:[#allocation5 + $0x5e] sm:$0xff]  ;;  %v2941_v47 = vpop.f32.mrf.mxu1 }
 0x4b1   : > { %4412 = vrot.lane.b32.xlu0 %v4340_v45, %s8883_s18  ;;  %4198 = vrot.lane.b32.xlu1 %v3911_v37, %s8881_s23  ;;  %4599 = vst.msk [vmem:[#allocation6 + $0xb8] sm:$0xff] %vm1812_vm3, %v4563_v46  ;;  %3089 = vst.msk [vmem:[#allocation5 + $0x70] sm:$0xff] %vm1812_vm3, %v2941_v47  ;;  %v3845_v49 = vld [vmem:[#allocation5 + $0x5b] sm:$0xff]  ;;  %v3197_v45 = vld [vmem:[#allocation5 + $0x49] sm:$0xff] }
 0x4b2   : > { %v8576_v50 = vpop.f32.mrf.mxu1  ;;  %3881 = vst.msk [vmem:[#allocation6 + $0xe0] sm:$0xff] %vm1812_vm3, %v3845_v49  ;;  %v3128_v51 = vld [vmem:[#allocation5 + $0x60] sm:$0xff]  ;;  %v2678_v47 = vld [vmem:[%s11851_s7 + $0x130] sm:$0xff] }
 0x4b3   : > { %3164 = vst.msk [vmem:[#allocation6 + $0x120] sm:$0xff] %vm1812_vm3, %v3128_v51  ;;  %8647 = vmatmul.mubr.msk.f32.gmra.mxu1 %vm2681_vm9, %v2678_v47  ;;  %v3413_v50 = vld [vmem:[#allocation5 + $0x4a] sm:$0xff]  ;;  %v3415_v9 = vld [vmem:[#allocation5 + $0x5a] sm:$0xff] }
 0x4b4   : > { %v4564_v55 = vld [vmem:[#allocation5 + $0x66] sm:$0xff]  ;;  %v2946_v56 = vpop.f32.mrf.mxu1  ;;  %8649 = vmatprep.mubr.msk.f32.mxu1 %vm8880_vm1, %v8879_v2 }
 0x4b5   : > { %4414 = vrot.lane.b32.xlu0 %v4341_v53, %s8883_s18  ;;  %4200 = vrot.lane.b32.xlu1 %v4126_v54, %s8881_s23  ;;  %4600 = vst.msk [vmem:[#allocation6 + $0xd0] sm:$0xff] %vm1812_vm3, %v4564_v55  ;;  %3090 = vst.msk [vmem:[#allocation5 + $0x78] sm:$0xff] %vm1812_vm3, %v2946_v56  ;;  %v3846_v62 = vld [vmem:[#allocation5 + $0x63] sm:$0xff]  ;;  %v4345_v55 = vld [vmem:[#allocation5 + $0x4d] sm:$0xff] }
 0x4b6   : > { %v8579_v63 = vpop.f32.mrf.mxu1  ;;  %3882 = vst.msk [vmem:[#allocation6 + $0xf8] sm:$0xff] %vm1812_vm3, %v3846_v62  ;;  %v3129_v0 = vld [vmem:[#allocation5 + $0x68] sm:$0xff] }
 0x4b7   : > { %3165 = vst.msk [vmem:[#allocation6 + $0x138] sm:$0xff] %vm1812_vm3, %v3129_v0  ;;  %8650 = vmatmul.mubr.msk.f32.gmra.mxu1 %vm2681_vm9, %v2679_v52  ;;  %v4129_v56 = vld [vmem:[#allocation5 + $0x4c] sm:$0xff]  ;;  %v4346_v0 = vld [vmem:[#allocation5 + $0x55] sm:$0xff] }
 0x4b8   : > { %v4565_v3 = vld [vmem:[#allocation5 + $0x6e] sm:$0xff]  ;;  %v2951_v4 = vpop.f32.mrf.mxu1  ;;  %8652 = vmatprep.mubr.msk.f32.mxu1 %vm8880_vm1, %v8879_v2  ;;  %vm5604_vm1 = vcmask 128000  }
 0x4b9   : > { %3988 = vrot.lane.b32.xlu1 %v4126_v54, %s8882_s24  ;;  %3272 = vrot.lane.b32.xlu0 %v3194_v1, %s8882_s24  ;;  %4601 = vst.msk [vmem:[#allocation6 + $0xe8] sm:$0xff] %vm1812_vm3, %v4565_v3  ;;  %3091 = vst.msk [vmem:[#allocation5 + $0x80] sm:$0xff] %vm1812_vm3, %v2951_v4  ;;  %v3847_v60 = vld [vmem:[#allocation5 + $0x6b] sm:$0xff]  ;;  %v3916_v3 = vld [vmem:[#allocation5 + $0x54] sm:$0xff] }
 0x4ba   : > { %v8582_v5 = vpop.f32.mrf.mxu1  ;;  %3883 = vst.msk [vmem:[#allocation6 + $0x110] sm:$0xff] %vm1812_vm3, %v3847_v60  ;;  %v3130_v57 = vld [vmem:[#allocation5 + $0x70] sm:$0xff] }
 0x4bb   : > { %3166 = vst.msk [vmem:[#allocation6 + $0x150] sm:$0xff] %vm1812_vm3, %v3130_v57  ;;  %v3198_v4 = vld [vmem:[#allocation5 + $0x51] sm:$0xff] }
 0x4bc   : > { %v4566_v7 = vld [vmem:[#allocation5 + $0x76] sm:$0xff]  ;;  %v2956_v8 = vpop.f32.mrf.mxu1  ;;  %5605 = vst.msk [vmem:[#allocation7 + $0x140] sm:$0x3f] %vm5604_vm1, %v8879_v2 }
 0x4bd   : > { %3488 = vrot.lane.b32.xlu0 %v3410_v58, %s8881_s23  ;;  %3274 = vrot.lane.b32.xlu1 %v3195_v6, %s8882_s24  ;;  %4602 = vst.msk [vmem:[#allocation6 + $0x100] sm:$0xff] %vm1812_vm3, %v4566_v7  ;;  %3092 = vst.msk [vmem:[#allocation5 + $0x88] sm:$0xff] %vm1812_vm3, %v2956_v8  ;;  %v3848_v11 = vld [vmem:[#allocation5 + $0x73] sm:$0xff]  ;;  %v10253_v7 = vpop.permute.xlu1 %6952 }
 0x4be   : > { %v8585_v10 = vpop.f32.mrf.mxu1  ;;  %v3131_v12 = vld [vmem:[#allocation5 + $0x78] sm:$0xff]  ;;  %3884 = vst.msk [vmem:[#allocation6 + $0x128] sm:$0xff] %vm1812_vm3, %v3848_v11 }
 0x4bf   : > { %3167 = vst.msk [vmem:[#allocation6 + $0x168] sm:$0xff] %vm1812_vm3, %v3131_v12  ;;  %v2680_v5 = vld [vmem:[%s11851_s7 + $0x140] sm:$0x3f] }
 0x4c0   : > { %v4567_v14 = vld [vmem:[#allocation5 + $0x7e] sm:$0xff]  ;;  %v2961_v15 = vpop.f32.mrf.mxu1  ;;  %8653 = vmatmul.mubr.msk.f32.gmra.mxu1 %vm2681_vm9, %v2680_v5  ;;  %v3414_v57 = vld [vmem:[#allocation5 + $0x52] sm:$0xff]  ;;  %vm5618_vm9 = vcmask 130054  }
 0x4c1   : > { %3700 = vrot.lane.b32.xlu0 %v3410_v58, %s8883_s18  ;;  %3490 = vrot.lane.b32.xlu1 %v3411_v13, %s8881_s23  ;;  %4603 = vst.msk [vmem:[#allocation6 + $0x118] sm:$0xff] %vm1812_vm3, %v4567_v14  ;;  %3093 = vst.msk [vmem:[#allocation5 + $0x90] sm:$0xff] %vm1812_vm3, %v2961_v15  ;;  %v3849_v16 = vld [vmem:[#allocation5 + $0x7b] sm:$0xff]  ;;  %v10259_v10 = vpop.permute.xlu1 %7169 }
 0x4c2   : > { %v8588_v17 = vpop.f32.mrf.mxu1  ;;  %3885 = vst.msk [vmem:[#allocation6 + $0x140] sm:$0xff] %vm1812_vm3, %v3849_v16  ;;  %v3132_v18 = vld [vmem:[#allocation5 + $0x80] sm:$0xff] }
 0x4c3   : > { %3168 = vst.msk [vmem:[#allocation6 + $0x180] sm:$0xff] %vm1812_vm3, %v3132_v18  ;;  %v3199_v58 = vld [vmem:[#allocation5 + $0x59] sm:$0xff] }
 0x4c4   : > { %v4568_v20 = vld [vmem:[#allocation5 + $0x86] sm:$0xff]  ;;  %v2966_v21 = vpop.f32.mrf.mxu1  ;;  %v4347_v14 = vld [vmem:[#allocation5 + $0x5d] sm:$0xff] }
 0x4c5   : > { %4416 = vrot.lane.b32.xlu0 %v4342_v19, %s8883_s18  ;;  %3702 = vrot.lane.b32.xlu1 %v3411_v13, %s8883_s18  ;;  %4604 = vst.msk [vmem:[#allocation6 + $0x130] sm:$0xff] %vm1812_vm3, %v4568_v20  ;;  %3094 = vst.msk [vmem:[#allocation5 + $0x98] sm:$0xff] %vm1812_vm3, %v2966_v21  ;;  %v3850_v24 = vld [vmem:[#allocation5 + $0x83] sm:$0xff]  ;;  %v3419_v5 = vld [vmem:[#allocation5 + $0x7a] sm:$0xff] }
 0x4c6   : > { %v8591_v23 = vpop.f32.mrf.mxu1  ;;  %v3133_v25 = vld [vmem:[#allocation5 + $0x88] sm:$0xff]  ;;  %3886 = vst.msk [vmem:[#allocation6 + $0x158] sm:$0xff] %vm1812_vm3, %v3850_v24  ;;  %v4131_v16 = vld [vmem:[#allocation5 + $0x5c] sm:$0xff] }
 0x4c7   : > { %3169 = vst.msk [vmem:[#allocation6 + $0x198] sm:$0xff] %vm1812_vm3, %v3133_v25  ;;  %v4348_v21 = vld [vmem:[#allocation5 + $0x65] sm:$0xff] }
 0x4c8   : > { %v4569_v28 = vld [vmem:[#allocation5 + $0x8e] sm:$0xff]  ;;  %v2971_v29 = vpop.f32.mrf.mxu1  ;;  %v3918_v25 = vld [vmem:[#allocation5 + $0x64] sm:$0xff] }
 0x4c9   : > { %4418 = vrot.lane.b32.xlu0 %v4343_v26, %s8883_s18  ;;  %4202 = vrot.lane.b32.xlu1 %v4127_v27, %s8881_s23  ;;  %4605 = vst.msk [vmem:[#allocation6 + $0x148] sm:$0xff] %vm1812_vm3, %v4569_v28  ;;  %3095 = vst.msk [vmem:[#allocation5 + $0xa0] sm:$0xff] %vm1812_vm3, %v2971_v29  ;;  %v3851_v30 = vld [vmem:[#allocation5 + $0x8b] sm:$0xff]  ;;  %v3200_v26 = vld [vmem:[#allocation5 + $0x61] sm:$0xff] }
 0x4ca   : > { %v8594_v31 = vpop.f32.mrf.mxu1  ;;  %3887 = vst.msk [vmem:[#allocation6 + $0x170] sm:$0xff] %vm1812_vm3, %v3851_v30  ;;  %v3134_v32 = vld [vmem:[#allocation5 + $0x90] sm:$0xff] }
 0x4cb   : > { %3170 = vst.msk [vmem:[#allocation6 + $0x1b0] sm:$0xff] %vm1812_vm3, %v3134_v32  ;;  %v3416_v31 = vld [vmem:[#allocation5 + $0x62] sm:$0xff] }
 0x4cc   : > { %v4570_v34 = vld [vmem:[#allocation5 + $0x96] sm:$0xff]  ;;  %v2976_v35 = vpop.f32.mrf.mxu1  ;;  %v3201_v32 = vld [vmem:[#allocation5 + $0x69] sm:$0xff] }
 0x4cd   : > { %3990 = vrot.lane.b32.xlu0 %v4127_v27, %s8882_s24  ;;  %4420 = vrot.lane.b32.xlu1 %v4344_v33, %s8883_s18  ;;  %4606 = vst.msk [vmem:[#allocation6 + $0x160] sm:$0xff] %vm1812_vm3, %v4570_v34  ;;  %3096 = vst.msk [vmem:[#allocation5 + $0xa8] sm:$0xff] %vm1812_vm3, %v2976_v35  ;;  %v3852_v36 = vld [vmem:[#allocation5 + $0x93] sm:$0xff] }
 0x4ce   : > { %v8597_v37 = vpop.f32.mrf.mxu1  ;;  %3888 = vst.msk [vmem:[#allocation6 + $0x188] sm:$0xff] %vm1812_vm3, %v3852_v36  ;;  %v3135_v38 = vld [vmem:[#allocation5 + $0x98] sm:$0xff]  ;;  %v3417_v36 = vld [vmem:[#allocation5 + $0x6a] sm:$0xff] }
 0x4cf   : > { %3171 = vst.msk [vmem:[#allocation6 + $0x1c8] sm:$0xff] %vm1812_vm3, %v3135_v38 }
 0x4d0   : > { %v4571_v41 = vld [vmem:[#allocation5 + $0x9e] sm:$0xff]  ;;  %v2981_v48 = vpop.f32.mrf.mxu1 }
 0x4d1   : > { %3992 = vrot.lane.b32.xlu1 %v3914_v39, %s8882_s24  ;;  %3276 = vrot.lane.b32.xlu0 %v3196_v40, %s8882_s24  ;;  %4607 = vst.msk [vmem:[#allocation6 + $0x178] sm:$0xff] %vm1812_vm3, %v4571_v41  ;;  %v3853_v42 = vld [vmem:[#allocation5 + $0x9b] sm:$0xff]  ;;  %3097 = vst.msk [vmem:[#allocation5 + $0xb0] sm:$0xff] %vm1812_vm3, %v2981_v48 }
 0x4d2   : > { %3889 = vst.msk [vmem:[#allocation6 + $0x1a0] sm:$0xff] %vm1812_vm3, %v3853_v42  ;;  %v3136_v43 = vld [vmem:[#allocation5 + $0xa0] sm:$0xff]  ;;  %v8600_v51 = vpop.f32.mrf.mxu1 }
 0x4d3   : > { %3172 = vst.msk [vmem:[#allocation6 + $0x1e0] sm:$0xff] %vm1812_vm3, %v3136_v43  ;;  %v4350_v51 = vld [vmem:[#allocation5 + $0x75] sm:$0xff] }
 0x4d4   : > { %v4572_v46 = vld [vmem:[#allocation5 + $0xa6] sm:$0xff]  ;;  %v2986_v54 = vpop.f32.mrf.mxu1 }
 0x4d5   : > { %3492 = vrot.lane.b32.xlu0 %v3412_v44, %s8881_s23  ;;  %3278 = vrot.lane.b32.xlu1 %v3197_v45, %s8882_s24  ;;  %4608 = vst.msk [vmem:[#allocation6 + $0x190] sm:$0xff] %vm1812_vm3, %v4572_v46  ;;  %v3854_v49 = vld [vmem:[#allocation5 + $0xa3] sm:$0xff]  ;;  %3098 = vst.msk [vmem:[#allocation5 + $0xb8] sm:$0xff] %vm1812_vm3, %v2986_v54  ;;  %v4133_v45 = vld [vmem:[#allocation5 + $0x6c] sm:$0xff] }
 0x4d6   : > { %3890 = vst.msk [vmem:[#allocation6 + $0x1b8] sm:$0xff] %vm1812_vm3, %v3854_v49  ;;  %v8603_v61 = vpop.f32.mrf.mxu1  ;;  %v3137_v62 = vld [vmem:[#allocation5 + $0xa8] sm:$0xff] }
 0x4d7   : > { %3173 = vst.msk [vmem:[#allocation6 + $0x1f8] sm:$0xff] %vm1812_vm3, %v3137_v62 }
 0x4d8   : > { %v4573_v53 = vld [vmem:[#allocation5 + $0xae] sm:$0xff]  ;;  %v2991_v6 = vpop.f32.mrf.mxu1 }
 0x4d9   : > { %3704 = vrot.lane.b32.xlu0 %v3412_v44, %s8883_s18  ;;  %3494 = vrot.lane.b32.xlu1 %v3413_v50, %s8881_s23  ;;  %4609 = vst.msk [vmem:[#allocation6 + $0x1a8] sm:$0xff] %vm1812_vm3, %v4573_v53  ;;  %v3855_v63 = vld [vmem:[#allocation5 + $0xab] sm:$0xff]  ;;  %3099 = vst.msk [vmem:[#allocation5 + $0xc0] sm:$0xff] %vm1812_vm3, %v2991_v6 }
 0x4da   : > { %3891 = vst.msk [vmem:[#allocation6 + $0x1d0] sm:$0xff] %vm1812_vm3, %v3855_v63  ;;  %v3138_v60 = vld [vmem:[#allocation5 + $0xb0] sm:$0xff]  ;;  %v8606_v8 = vpop.f32.mrf.mxu1 }
 0x4db   : > { %3174 = vst.msk [vmem:[#allocation6 + $0x210] sm:$0xff] %vm1812_vm3, %v3138_v60  ;;  %v4349_v44 = vld [vmem:[#allocation5 + $0x6d] sm:$0xff] }
 0x4dc   : > { %v4574_v1 = vld [vmem:[#allocation5 + $0xb6] sm:$0xff]  ;;  %v2996_v12 = vpop.f32.mrf.mxu1 }
 0x4dd   : > { %4204 = vrot.lane.b32.xlu0 %v3914_v39, %s8881_s23  ;;  %3706 = vrot.lane.b32.xlu1 %v3413_v50, %s8883_s18  ;;  %4610 = vst.msk [vmem:[#allocation6 + $0x1c0] sm:$0xff] %vm1812_vm3, %v4574_v1  ;;  %v3856_v59 = vld [vmem:[#allocation5 + $0xb3] sm:$0xff]  ;;  %3100 = vst.msk [vmem:[#allocation5 + $0xc8] sm:$0xff] %vm1812_vm3, %v2996_v12 }
 0x4de   : > { %3892 = vst.msk [vmem:[#allocation6 + $0x1e8] sm:$0xff] %vm1812_vm3, %v3856_v59  ;;  %v8609_v15 = vpop.f32.mrf.mxu1  ;;  %v3139_v17 = vld [vmem:[#allocation5 + $0xb8] sm:$0xff] }
 0x4df   : > { %3175 = vst.msk [vmem:[#allocation6 + $0x228] sm:$0xff] %vm1812_vm3, %v3139_v17  ;;  %v3418_v1 = vld [vmem:[#allocation5 + $0x72] sm:$0xff] }
 0x4e0   : > { %v4575_v11 = vld [vmem:[#allocation5 + $0xbe] sm:$0xff]  ;;  %v3001_v33 = vpop.f32.mrf.mxu1 }
 0x4e1   : > { %4422 = vrot.lane.b32.xlu0 %v4345_v55, %s8883_s18  ;;  %4206 = vrot.lane.b32.xlu1 %v4129_v56, %s8881_s23  ;;  %4611 = vst.msk [vmem:[#allocation6 + $0x1d8] sm:$0xff] %vm1812_vm3, %v4575_v11  ;;  %v3857_v18 = vld [vmem:[#allocation5 + $0xbb] sm:$0xff]  ;;  %3101 = vst.msk [vmem:[#allocation5 + $0xd0] sm:$0xff] %vm1812_vm3, %v3001_v33 }
 0x4e2   : > { %3893 = vst.msk [vmem:[#allocation6 + $0x200] sm:$0xff] %vm1812_vm3, %v3857_v18  ;;  %v3140_v28 = vld [vmem:[#allocation5 + $0xc0] sm:$0xff]  ;;  %v8612_v37 = vpop.f32.mrf.mxu1  ;;  %v3920_v55 = vld [vmem:[#allocation5 + $0x74] sm:$0xff] }
 0x4e3   : > { %3176 = vst.msk [vmem:[#allocation6 + $0x240] sm:$0xff] %vm1812_vm3, %v3140_v28  ;;  %v3204_v28 = vld [vmem:[#allocation5 + $0x81] sm:$0xff] }
 0x4e4   : > { %v4576_v22 = vld [vmem:[#allocation5 + $0xc6] sm:$0xff]  ;;  %v3006_v41 = vpop.f32.mrf.mxu1 }
 0x4e5   : > { %3994 = vrot.lane.b32.xlu0 %v4129_v56, %s8882_s24  ;;  %4424 = vrot.lane.b32.xlu1 %v4346_v0, %s8883_s18  ;;  %4612 = vst.msk [vmem:[#allocation6 + $0x1f0] sm:$0xff] %vm1812_vm3, %v4576_v22  ;;  %v3858_v27 = vld [vmem:[#allocation5 + $0xc3] sm:$0xff]  ;;  %3102 = vst.msk [vmem:[#allocation5 + $0xd8] sm:$0xff] %vm1812_vm3, %v3006_v41  ;;  %v3202_v56 = vld [vmem:[#allocation5 + $0x71] sm:$0xff] }
 0x4e6   : > { %3894 = vst.msk [vmem:[#allocation6 + $0x218] sm:$0xff] %vm1812_vm3, %v3858_v27  ;;  %v8615_v46 = vpop.f32.mrf.mxu1  ;;  %v3141_v47 = vld [vmem:[#allocation5 + $0xc8] sm:$0xff] }
 0x4e7   : > { %3177 = vst.msk [vmem:[#allocation6 + $0x258] sm:$0xff] %vm1812_vm3, %v3141_v47  ;;  %v3922_v27 = vld [vmem:[#allocation5 + $0x84] sm:$0xff] }
 0x4e8   : > { %v4577_v40 = vld [vmem:[#allocation5 + $0xce] sm:$0xff] }
 0x4e9   : > { %3996 = vrot.lane.b32.xlu1 %v3916_v3, %s8882_s24  ;;  %3280 = vrot.lane.b32.xlu0 %v3198_v4, %s8882_s24  ;;  %4613 = vst.msk [vmem:[#allocation6 + $0x208] sm:$0xff] %vm1812_vm3, %v4577_v40  ;;  %v3859_v48 = vld [vmem:[#allocation5 + $0xcb] sm:$0xff]  ;;  %v3011_v4 = vpop.f32.mrf.mxu1 }
 0x4ea   : > { %3895 = vst.msk [vmem:[#allocation6 + $0x230] sm:$0xff] %vm1812_vm3, %v3859_v48  ;;  %v3142_v62 = vld [vmem:[#allocation5 + $0xd0] sm:$0xff]  ;;  %3103 = vst.msk [vmem:[#allocation5 + $0xe0] sm:$0xff] %vm1812_vm3, %v3011_v4 }
 0x4eb   : > { %3178 = vst.msk [vmem:[#allocation6 + $0x270] sm:$0xff] %vm1812_vm3, %v3142_v62  ;;  %v4137_v48 = vld [vmem:[#allocation5 + $0x8c] sm:$0xff] }
 0x4ec   : > { %v4578_v52 = vld [vmem:[#allocation5 + $0xd6] sm:$0xff] }
 0x4ed   : > { %3496 = vrot.lane.b32.xlu0 %v3414_v57, %s8881_s23  ;;  %3282 = vrot.lane.b32.xlu1 %v3199_v58, %s8882_s24  ;;  %4614 = vst.msk [vmem:[#allocation6 + $0x220] sm:$0xff] %vm1812_vm3, %v4578_v52  ;;  %v3860_v61 = vld [vmem:[#allocation5 + $0xd3] sm:$0xff] }
 0x4ee   : > { %3896 = vst.msk [vmem:[#allocation6 + $0x248] sm:$0xff] %vm1812_vm3, %v3860_v61  ;;  %v3206_v4 = vld [vmem:[#allocation5 + $0x91] sm:$0xff] }
 0x4f1   : > { %3708 = vrot.lane.b32.xlu0 %v3414_v57, %s8883_s18  ;;  %3498 = vrot.lane.b32.xlu1 %v3415_v9, %s8881_s23  ;;  %v8618_v57 = vpop.f32.mrf.mxu1  ;;  %v4579_v8 = vld [vmem:[#allocation5 + $0xde] sm:$0xff] }
 0x4f2   : > { %4615 = vst.msk [vmem:[#allocation6 + $0x238] sm:$0xff] %vm1812_vm3, %v4579_v8  ;;  %v3861_v17 = vld [vmem:[#allocation5 + $0xdb] sm:$0xff] }
 0x4f3   : > { %3897 = vst.msk [vmem:[#allocation6 + $0x260] sm:$0xff] %vm1812_vm3, %v3861_v17 }
 0x4f5   : > { %4208 = vrot.lane.b32.xlu0 %v3916_v3, %s8881_s23  ;;  %3710 = vrot.lane.b32.xlu1 %v3415_v9, %s8883_s18  ;;  %v3203_v3 = vld [vmem:[#allocation5 + $0x79] sm:$0xff]  ;;  %v3016_v9 = vpop.f32.mrf.mxu1 }
 0x4f6   : > { %3104 = vst.msk [vmem:[#allocation5 + $0xe8] sm:$0xff] %vm1812_vm3, %v3016_v9 }
 0x4f7   : > { %v3261_v13 = vpop.permute.xlu0 %3260  ;;  %v8621_v15 = vpop.f32.mrf.mxu1 }
 0x4f8   : > { %3368 = vst.msk [vmem:[#allocation6] sm:$0xff] %vm1897_vm5, %v3261_v13  ;;  %v4351_v13 = vld [vmem:[#allocation5 + $0x7d] sm:$0xff] }
 0x4f9   : > { %4426 = vrot.lane.b32.xlu0 %v4347_v14, %s8883_s18  ;;  %4210 = vrot.lane.b32.xlu1 %v4131_v16, %s8881_s23  ;;  %v4135_v14 = vld [vmem:[#allocation5 + $0x7c] sm:$0xff] }
 0x4fb   : > { %v3263_v19 = vpop.permute.xlu1 %3262  ;;  %v3477_v20 = vpop.permute.xlu0 %3476 }
 0x4fc   : > { %3369 = vst.msk [vmem:[#allocation6 + $0x18] sm:$0xff] %vm1897_vm5, %v3263_v19 }
 0x4fd   : > { %3584 = vst.msk [vmem:[#allocation6] sm:$0xff] %vm1958_vm6, %v3477_v20  ;;  %3998 = vrot.lane.b32.xlu0 %v4131_v16, %s8882_s24  ;;  %4428 = vrot.lane.b32.xlu1 %v4348_v21, %s8883_s18  ;;  %v3143_v16 = vld [vmem:[#allocation5 + $0xd8] sm:$0xff]  ;;  %v4352_v21 = vld [vmem:[#allocation5 + $0x85] sm:$0xff] }
 0x4fe   : > { %3179 = vst.msk [vmem:[#allocation6 + $0x288] sm:$0xff] %vm1812_vm3, %v3143_v16  ;;  %v3145_v52 = vld [vmem:[#allocation5 + $0xe8] sm:$0xff] }
 0x4ff   : > { %v3479_v23 = vpop.permute.xlu1 %3478  ;;  %v3265_v24 = vpop.permute.xlu0 %3264  ;;  %3181 = vst.msk [vmem:[#allocation6 + $0x2b8] sm:$0xff] %vm1812_vm3, %v3145_v52  ;;  %v4141_v52 = vld [vmem:[#allocation5 + $0xac] sm:$0xff] }
 0x500   : > { %3585 = vst.msk [vmem:[#allocation6 + $0x18] sm:$0xff] %vm1958_vm6, %v3479_v23  ;;  %v4580_v23 = vld [vmem:[#allocation5 + $0xe6] sm:$0xff] }
 0x501   : > { %3370 = vst.msk [vmem:[#allocation6 + $0x30] sm:$0xff] %vm1897_vm5, %v3265_v24  ;;  %4000 = vrot.lane.b32.xlu1 %v3918_v25, %s8882_s24  ;;  %3284 = vrot.lane.b32.xlu0 %v3200_v26, %s8882_s24 }
 0x502   : > { %4616 = vst.msk [vmem:[#allocation6 + $0x250] sm:$0xff] %vm1812_vm3, %v4580_v23 }
 0x503   : > { %v3267_v29 = vpop.permute.xlu1 %3266  ;;  %v3481_v30 = vpop.permute.xlu0 %3480 }
 0x504   : > { %3371 = vst.msk [vmem:[#allocation6 + $0x48] sm:$0xff] %vm1897_vm5, %v3267_v29  ;;  %v3862_v29 = vld [vmem:[#allocation5 + $0xe3] sm:$0xff] }
 0x505   : > { %3586 = vst.msk [vmem:[#allocation6 + $0x30] sm:$0xff] %vm1958_vm6, %v3481_v30  ;;  %3500 = vrot.lane.b32.xlu0 %v3416_v31, %s8881_s23  ;;  %3286 = vrot.lane.b32.xlu1 %v3201_v32, %s8882_s24 }
 0x506   : > { %3898 = vst.msk [vmem:[#allocation6 + $0x278] sm:$0xff] %vm1812_vm3, %v3862_v29  ;;  %v4356_v29 = vld [vmem:[#allocation5 + $0xa5] sm:$0xff] }
 0x507   : > { %v3483_v34 = vpop.permute.xlu1 %3482  ;;  %v3693_v35 = vpop.permute.xlu0 %3692 }
 0x508   : > { %3587 = vst.msk [vmem:[#allocation6 + $0x48] sm:$0xff] %vm1958_vm6, %v3483_v34  ;;  %v3420_v34 = vld [vmem:[#allocation5 + $0x82] sm:$0xff] }
 0x509   : > { %3800 = vst.msk [vmem:[#allocation6] sm:$0xff] %vm2019_vm7, %v3693_v35  ;;  %3712 = vrot.lane.b32.xlu0 %v3416_v31, %s8883_s18  ;;  %3502 = vrot.lane.b32.xlu1 %v3417_v36, %s8881_s23  ;;  %v3144_v31 = vld [vmem:[#allocation5 + $0xe0] sm:$0xff]  ;;  %v3205_v35 = vld [vmem:[#allocation5 + $0x89] sm:$0xff] }
 0x50a   : > { %3180 = vst.msk [vmem:[#allocation6 + $0x2a0] sm:$0xff] %vm1812_vm3, %v3144_v31 }
 0x50b   : > { %v3695_v38 = vpop.permute.xlu1 %3694  ;;  %v3981_v39 = vpop.permute.xlu0 %3980 }
 0x50c   : > { %3801 = vst.msk [vmem:[#allocation6 + $0x18] sm:$0xff] %vm2019_vm7, %v3695_v38 }
 0x50d   : > { %4088 = vst.msk [vmem:[#allocation6 + $0x8] sm:$0xff] %vm1897_vm5, %v3981_v39  ;;  %4212 = vrot.lane.b32.xlu0 %v3918_v25, %s8881_s23  ;;  %3714 = vrot.lane.b32.xlu1 %v3417_v36, %s8883_s18  ;;  %v3021_v36 = vpop.f32.mrf.mxu1  ;;  %v3421_v39 = vld [vmem:[#allocation5 + $0x8a] sm:$0xff] }
 0x50e   : > { %3105 = vst.msk [vmem:[#allocation5 + $0xf0] sm:$0xff] %vm1812_vm3, %v3021_v36  ;;  %v3208_v36 = vld [vmem:[#allocation5 + $0xa1] sm:$0xff] }
 0x50f   : > { %v3983_v42 = vpop.permute.xlu1 %3982  ;;  %v3269_v43 = vpop.permute.xlu0 %3268 }
 0x510   : > { %4089 = vst.msk [vmem:[#allocation6 + $0x20] sm:$0xff] %vm1897_vm5, %v3983_v42  ;;  %3372 = vst.msk [vmem:[#allocation6 + $0x60] sm:$0xff] %vm1897_vm5, %v3269_v43  ;;  %v4628_v22 = vld [vmem:[#allocation6] sm:$0xff]  ;;  %v8624_v40 = vpop.f32.mrf.mxu1 }
 0x511   : > { %4430 = vrot.lane.b32.xlu0 %v4349_v44, %s8883_s18  ;;  %4214 = vrot.lane.b32.xlu1 %v4133_v45, %s8881_s23 }
 0x512   : > { %v3026_v44 = vpop.f32.mrf.mxu1 }
 0x513   : > { %v3271_v49 = vpop.permute.xlu1 %3270  ;;  %v3485_v50 = vpop.permute.xlu0 %3484  ;;  %v4631_v30 = vld [vmem:[#allocation6 + $0x18] sm:$0xff]  ;;  %3106 = vst.msk [vmem:[#allocation5 + $0xf8] sm:$0xff] %vm1812_vm3, %v3026_v44 }
 0x514   : > { %3373 = vst.msk [vmem:[#allocation6 + $0x78] sm:$0xff] %vm1897_vm5, %v3271_v49  ;;  %v4353_v49 = vld [vmem:[#allocation5 + $0x8d] sm:$0xff] }
 0x515   : > { %3588 = vst.msk [vmem:[#allocation6 + $0x60] sm:$0xff] %vm1958_vm6, %v3485_v50  ;;  %4002 = vrot.lane.b32.xlu0 %v4133_v45, %s8882_s24  ;;  %4432 = vrot.lane.b32.xlu1 %v4350_v51, %s8883_s18  ;;  %v4581_v43 = vld [vmem:[#allocation5 + $0xee] sm:$0xff]  ;;  %v8627_v50 = vpop.f32.mrf.mxu1 }
 0x516   : > { %4617 = vst.msk [vmem:[#allocation6 + $0x268] sm:$0xff] %vm1812_vm3, %v4581_v43 }
 0x517   : > { %v3487_v53 = vpop.permute.xlu1 %3486  ;;  %v3697_v54 = vpop.permute.xlu0 %3696 }
 0x518   : > { %3589 = vst.msk [vmem:[#allocation6 + $0x78] sm:$0xff] %vm1958_vm6, %v3487_v53  ;;  %v3863_v53 = vld [vmem:[#allocation5 + $0xeb] sm:$0xff] }
 0x519   : > { %3802 = vst.msk [vmem:[#allocation6 + $0x30] sm:$0xff] %vm2019_vm7, %v3697_v54  ;;  %4004 = vrot.lane.b32.xlu1 %v3920_v55, %s8882_s24  ;;  %3288 = vrot.lane.b32.xlu0 %v3202_v56, %s8882_s24  ;;  %v4354_v56 = vld [vmem:[#allocation5 + $0x95] sm:$0xff] }
 0x51a   : > { %3899 = vst.msk [vmem:[#allocation6 + $0x290] sm:$0xff] %vm1812_vm3, %v3863_v53  ;;  %v4582_v62 = vld [vmem:[#allocation5 + $0xf6] sm:$0xff] }
 0x51b   : > { %v3699_v63 = vpop.permute.xlu1 %3698  ;;  %v3985_v0 = vpop.permute.xlu0 %3984  ;;  %4618 = vst.msk [vmem:[#allocation6 + $0x280] sm:$0xff] %vm1812_vm3, %v4582_v62 }
 0x51c   : > { %3803 = vst.msk [vmem:[#allocation6 + $0x48] sm:$0xff] %vm2019_vm7, %v3699_v63 }
 0x51d   : > { %4090 = vst.msk [vmem:[#allocation6 + $0x38] sm:$0xff] %vm1897_vm5, %v3985_v0  ;;  %3504 = vrot.lane.b32.xlu0 %v3418_v1, %s8881_s23  ;;  %3290 = vrot.lane.b32.xlu1 %v3203_v3, %s8882_s24  ;;  %v3924_v3 = vld [vmem:[#allocation5 + $0x94] sm:$0xff] }
 0x51f   : > { %v3987_v59 = vpop.permute.xlu1 %3986  ;;  %v4197_v60 = vpop.permute.xlu0 %4196 }
 0x520   : > { %4091 = vst.msk [vmem:[#allocation6 + $0x50] sm:$0xff] %vm1897_vm5, %v3987_v59  ;;  %v4634_v51 = vld [vmem:[#allocation6 + $0x30] sm:$0xff] }
 0x521   : > { %4304 = vst.msk [vmem:[#allocation6 + $0x8] sm:$0xff] %vm1958_vm6, %v4197_v60  ;;  %3716 = vrot.lane.b32.xlu0 %v3418_v1, %s8883_s18  ;;  %3506 = vrot.lane.b32.xlu1 %v3419_v5, %s8881_s23  ;;  %v3864_v59 = vld [vmem:[#allocation5 + $0xf3] sm:$0xff] }
 0x522   : > { %v3146_v60 = vld [vmem:[#allocation5 + $0xf0] sm:$0xff]  ;;  %3900 = vst.msk [vmem:[#allocation6 + $0x2a8] sm:$0xff] %vm1812_vm3, %v3864_v59 }
 0x523   : > { %v4199_v58 = vpop.permute.xlu1 %4198  ;;  %v4413_v6 = vpop.permute.xlu0 %4412  ;;  %v4637_v63 = vld [vmem:[#allocation6 + $0x48] sm:$0xff]  ;;  %3182 = vst.msk [vmem:[#allocation6 + $0x2d0] sm:$0xff] %vm1812_vm3, %v3146_v60 }
 0x524   : > { %4305 = vst.msk [vmem:[#allocation6 + $0x20] sm:$0xff] %vm1958_vm6, %v4199_v58  ;;  %v3207_v58 = vld [vmem:[#allocation5 + $0x99] sm:$0xff] }
 0x525   : > { %4520 = vst.msk [vmem:[#allocation6 + $0x8] sm:$0xff] %vm2019_vm7, %v4413_v6  ;;  %4216 = vrot.lane.b32.xlu0 %v3920_v55, %s8881_s23  ;;  %3718 = vrot.lane.b32.xlu1 %v3419_v5, %s8883_s18  ;;  %v3422_v6 = vld [vmem:[#allocation5 + $0x92] sm:$0xff] }
 0x527   : > { %v4201_v11 = vpop.permute.xlu1 %4200  ;;  %v4415_v12 = vpop.permute.xlu0 %4414 }
 0x528   : > { %4306 = vst.msk [vmem:[#allocation6 + $0x38] sm:$0xff] %vm1958_vm6, %v4201_v11  ;;  %v3423_v11 = vld [vmem:[#allocation5 + $0x9a] sm:$0xff] }
 0x529   : > { %4521 = vst.msk [vmem:[#allocation6 + $0x20] sm:$0xff] %vm2019_vm7, %v4415_v12  ;;  %4434 = vrot.lane.b32.xlu0 %v4351_v13, %s8883_s18  ;;  %4218 = vrot.lane.b32.xlu1 %v4135_v14, %s8881_s23  ;;  %v3031_v12 = vpop.f32.mrf.mxu1 }
 0x52a   : > { %3107 = vst.msk [vmem:[#allocation5 + $0x100] sm:$0xff] %vm1812_vm3, %v3031_v12 }
 0x52b   : > { %v3989_v18 = vpop.permute.xlu1 %3988  ;;  %v3273_v19 = vpop.permute.xlu0 %3272 }
 0x52c   : > { %v4629_v20 = vld [vmem:[#allocation6 + $0x8] sm:$0xff]  ;;  %4092 = vst.msk [vmem:[#allocation6 + $0x68] sm:$0xff] %vm1897_vm5, %v3989_v18  ;;  %3374 = vst.msk [vmem:[#allocation6 + $0x90] sm:$0xff] %vm1897_vm5, %v3273_v19  ;;  %v8630_v13 = vpop.f32.mrf.mxu1  ;;  %v4139_v18 = vld [vmem:[#allocation5 + $0x9c] sm:$0xff] }
 0x52d   : > { %4944 = vmatprep.mubr.f32.mxu0 %v4629_v20  ;;  %4006 = vrot.lane.b32.xlu0 %v4135_v14, %s8882_s24  ;;  %v3147_v19 = vld [vmem:[#allocation5 + $0xf8] sm:$0xff] }
 0x52e   : > { %4436 = vrot.lane.b32.xlu1 %v4352_v21, %s8883_s18  ;;  %4945 = vmatmul.mubr.f32.vlgmr.msra.gmra.mxu0 %v4628_v22  ;;  %v4355_v20 = vld [vmem:[#allocation5 + $0x9d] sm:$0xff]  ;;  %v3036_v23 = vpop.f32.mrf.mxu1  ;;  %3183 = vst.msk [vmem:[#allocation6 + $0x2e8] sm:$0xff] %vm1812_vm3, %v3147_v19 }
 0x52f   : > { %v3275_v24 = vpop.permute.xlu1 %3274  ;;  %v3489_v25 = vpop.permute.xlu0 %3488  ;;  %3108 = vst.msk [vmem:[#allocation5 + $0x108] sm:$0xff] %vm1812_vm3, %v3036_v23  ;;  %v3427_v19 = vld [vmem:[#allocation5 + $0xba] sm:$0xff] }
 0x530   : > { %v4632_v26 = vld [vmem:[#allocation6 + $0x20] sm:$0xff]  ;;  %3375 = vst.msk [vmem:[#allocation6 + $0xa8] sm:$0xff] %vm1897_vm5, %v3275_v24 }
 0x531   : > { %3590 = vst.msk [vmem:[#allocation6 + $0x90] sm:$0xff] %vm1958_vm6, %v3489_v25  ;;  %4949 = vmatprep.mubr.f32.mxu0 %v4632_v26  ;;  %3292 = vrot.lane.b32.xlu0 %v3204_v28, %s8882_s24  ;;  %v4583_v22 = vld [vmem:[#allocation5 + $0xfe] sm:$0xff]  ;;  %v8633_v25 = vpop.f32.mrf.mxu1 }
 0x532   : > { %4008 = vrot.lane.b32.xlu1 %v3922_v27, %s8882_s24  ;;  %4950 = vmatmul.mubr.f32.gmra.mxu0 %v4631_v30  ;;  %4619 = vst.msk [vmem:[#allocation6 + $0x298] sm:$0xff] %vm1812_vm3, %v4583_v22  ;;  %v3865_v26 = vld [vmem:[#allocation5 + $0xfb] sm:$0xff] }
 0x533   : > { %v3491_v32 = vpop.permute.xlu1 %3490  ;;  %v3701_v33 = vpop.permute.xlu0 %3700  ;;  %3901 = vst.msk [vmem:[#allocation6 + $0x2c0] sm:$0xff] %vm1812_vm3, %v3865_v26 }
 0x534   : > { %3591 = vst.msk [vmem:[#allocation6 + $0xa8] sm:$0xff] %vm1958_vm6, %v3491_v32 }
 0x535   : > { %3804 = vst.msk [vmem:[#allocation6 + $0x60] sm:$0xff] %vm2019_vm7, %v3701_v33  ;;  %3508 = vrot.lane.b32.xlu0 %v3420_v34, %s8881_s23 }
 0x536   : > { %3294 = vrot.lane.b32.xlu1 %v3205_v35, %s8882_s24  ;;  %v3926_v35 = vld [vmem:[#allocation5 + $0xa4] sm:$0xff] }
 0x537   : > { %v3703_v37 = vpop.permute.xlu1 %3702  ;;  %v4417_v38 = vpop.permute.xlu0 %4416  ;;  %v3149_v53 = vld [vmem:[#allocation5 + $0x108] sm:$0xff] }
 0x538   : > { %3805 = vst.msk [vmem:[#allocation6 + $0x78] sm:$0xff] %vm2019_vm7, %v3703_v37  ;;  %4522 = vst.msk [vmem:[#allocation6 + $0x38] sm:$0xff] %vm2019_vm7, %v4417_v38  ;;  %v4584_v37 = vld [vmem:[#allocation5 + $0x106] sm:$0xff] }
 0x539   : > { %3720 = vrot.lane.b32.xlu0 %v3420_v34, %s8883_s18  ;;  %v3148_v34 = vld [vmem:[#allocation5 + $0x100] sm:$0xff]  ;;  %4620 = vst.msk [vmem:[#allocation6 + $0x2b0] sm:$0xff] %vm1812_vm3, %v4584_v37  ;;  %3185 = vst.msk [vmem:[#allocation6 + $0x318] sm:$0xff] %vm1812_vm3, %v3149_v53 }
 0x53a   : > { %3510 = vrot.lane.b32.xlu1 %v3421_v39, %s8881_s23  ;;  %3184 = vst.msk [vmem:[#allocation6 + $0x300] sm:$0xff] %vm1812_vm3, %v3148_v34  ;;  %v3866_v38 = vld [vmem:[#allocation5 + $0x103] sm:$0xff] }
 0x53b   : > { %v4203_v41 = vpop.permute.xlu1 %4202  ;;  %v4419_v42 = vpop.permute.xlu0 %4418  ;;  %3902 = vst.msk [vmem:[#allocation6 + $0x2d8] sm:$0xff] %vm1812_vm3, %v3866_v38 }
 0x53c   : > { %4307 = vst.msk [vmem:[#allocation6 + $0x50] sm:$0xff] %vm1958_vm6, %v4203_v41  ;;  %v4640_v24 = vld [vmem:[#allocation6 + $0x60] sm:$0xff] }
 0x53d   : > { %4523 = vst.msk [vmem:[#allocation6 + $0x50] sm:$0xff] %vm2019_vm7, %v4419_v42  ;;  %4220 = vrot.lane.b32.xlu0 %v3922_v27, %s8881_s23  ;;  %v3209_v41 = vld [vmem:[#allocation5 + $0xa9] sm:$0xff] }
 0x53e   : > { %3722 = vrot.lane.b32.xlu1 %v3421_v39, %s8883_s18  ;;  %v3424_v42 = vld [vmem:[#allocation5 + $0xa2] sm:$0xff] }
 0x53f   : > { %v4421_v45 = vpop.permute.xlu1 %4420  ;;  %v3991_v46 = vpop.permute.xlu0 %3990  ;;  %v4635_v47 = vld [vmem:[#allocation6 + $0x38] sm:$0xff] }
 0x540   : > { %4093 = vst.msk [vmem:[#allocation6 + $0x80] sm:$0xff] %vm1897_vm5, %v3991_v46  ;;  %4954 = vmatprep.mubr.f32.mxu0 %v4635_v47  ;;  %v4643_v31 = vld [vmem:[#allocation6 + $0x78] sm:$0xff]  ;;  %v3041_v46 = vpop.f32.mrf.mxu1 }
 0x541   : > { %4438 = vrot.lane.b32.xlu0 %v4353_v49, %s8883_s18  ;;  %4955 = vmatmul.mubr.f32.gmra.mxu0 %v4634_v51  ;;  %3109 = vst.msk [vmem:[#allocation5 + $0x110] sm:$0xff] %vm1812_vm3, %v3041_v46 }
 0x542   : > { %4222 = vrot.lane.b32.xlu1 %v4137_v48, %s8881_s23  ;;  %v8636_v47 = vpop.f32.mrf.mxu1 }
 0x543   : > { %v3993_v54 = vpop.permute.xlu1 %3992  ;;  %v3277_v55 = vpop.permute.xlu0 %3276  ;;  %v3213_v47 = vld [vmem:[#allocation5 + $0xc9] sm:$0xff] }
 0x544   : > { %4094 = vst.msk [vmem:[#allocation6 + $0x98] sm:$0xff] %vm1897_vm5, %v3993_v54  ;;  %3376 = vst.msk [vmem:[#allocation6 + $0xc0] sm:$0xff] %vm1897_vm5, %v3277_v55  ;;  %v4638_v61 = vld [vmem:[#allocation6 + $0x50] sm:$0xff]  ;;  %v4357_v54 = vld [vmem:[#allocation5 + $0xad] sm:$0xff] }
 0x545   : > { %4010 = vrot.lane.b32.xlu0 %v4137_v48, %s8882_s24  ;;  %4959 = vmatprep.mubr.f32.mxu0 %v4638_v61  ;;  %v3046_v61 = vpop.f32.mrf.mxu1 }
 0x546   : > { %4440 = vrot.lane.b32.xlu1 %v4354_v56, %s8883_s18  ;;  %4960 = vmatmul.mubr.f32.gmra.mxu0 %v4637_v63  ;;  %3110 = vst.msk [vmem:[#allocation5 + $0x118] sm:$0xff] %vm1812_vm3, %v3046_v61 }
 0x547   : > { %v3279_v0 = vpop.permute.xlu1 %3278  ;;  %v3493_v1 = vpop.permute.xlu0 %3492 }
 0x548   : > { %3377 = vst.msk [vmem:[#allocation6 + $0xd8] sm:$0xff] %vm1897_vm5, %v3279_v0  ;;  %v4585_v56 = vld [vmem:[#allocation5 + $0x10e] sm:$0xff]  ;;  %v8639_v63 = vpop.f32.mrf.mxu1 }
 0x549   : > { %3592 = vst.msk [vmem:[#allocation6 + $0xc0] sm:$0xff] %vm1958_vm6, %v3493_v1  ;;  %3296 = vrot.lane.b32.xlu0 %v3206_v4, %s8882_s24  ;;  %v3867_v0 = vld [vmem:[#allocation5 + $0x10b] sm:$0xff]  ;;  %v4358_v4 = vld [vmem:[#allocation5 + $0xb5] sm:$0xff] }
 0x54a   : > { %4012 = vrot.lane.b32.xlu1 %v3924_v3, %s8882_s24  ;;  %4621 = vst.msk [vmem:[#allocation6 + $0x2c8] sm:$0xff] %vm1812_vm3, %v4585_v56  ;;  %3903 = vst.msk [vmem:[#allocation6 + $0x2f0] sm:$0xff] %vm1812_vm3, %v3867_v0  ;;  %v4145_v0 = vld [vmem:[#allocation5 + $0xcc] sm:$0xff] }
 0x54b   : > { %v3495_v5 = vpop.permute.xlu1 %3494  ;;  %v3705_v57 = vpop.permute.xlu0 %3704 }
 0x54c   : > { %3593 = vst.msk [vmem:[#allocation6 + $0xd8] sm:$0xff] %vm1958_vm6, %v3495_v5 }
 0x54d   : > { %3806 = vst.msk [vmem:[#allocation6 + $0x90] sm:$0xff] %vm2019_vm7, %v3705_v57  ;;  %3512 = vrot.lane.b32.xlu0 %v3422_v6, %s8881_s23 }
 0x54e   : > { %3298 = vrot.lane.b32.xlu1 %v3207_v58, %s8882_s24  ;;  %v3150_v58 = vld [vmem:[#allocation5 + $0x110] sm:$0xff] }
 0x54f   : > { %v3707_v8 = vpop.permute.xlu1 %3706  ;;  %v4205_v9 = vpop.permute.xlu0 %4204  ;;  %3186 = vst.msk [vmem:[#allocation6 + $0x330] sm:$0xff] %vm1812_vm3, %v3150_v58  ;;  %v4362_v58 = vld [vmem:[#allocation5 + $0xd5] sm:$0xff] }
 0x550   : > { %3807 = vst.msk [vmem:[#allocation6 + $0xa8] sm:$0xff] %vm2019_vm7, %v3707_v8  ;;  %v3210_v8 = vld [vmem:[#allocation5 + $0xb1] sm:$0xff] }
 0x551   : > { %4308 = vst.msk [vmem:[#allocation6 + $0x68] sm:$0xff] %vm1958_vm6, %v4205_v9  ;;  %3724 = vrot.lane.b32.xlu0 %v3422_v6, %s8883_s18  ;;  %v3928_v6 = vld [vmem:[#allocation5 + $0xb4] sm:$0xff] }
 0x552   : > { %4524 = vst.msk [vmem:[#allocation6 + $0x68] sm:$0xff] %vm2019_vm7, %v4421_v45  ;;  %3514 = vrot.lane.b32.xlu1 %v3423_v11, %s8881_s23  ;;  %v3425_v45 = vld [vmem:[#allocation5 + $0xaa] sm:$0xff]  ;;  %v4586_v9 = vld [vmem:[#allocation5 + $0x116] sm:$0xff] }
 0x553   : > { %v4207_v14 = vpop.permute.xlu1 %4206  ;;  %v4423_v15 = vpop.permute.xlu0 %4422  ;;  %4622 = vst.msk [vmem:[#allocation6 + $0x2e0] sm:$0xff] %vm1812_vm3, %v4586_v9 }
 0x554   : > { %4309 = vst.msk [vmem:[#allocation6 + $0x80] sm:$0xff] %vm1958_vm6, %v4207_v14  ;;  %v4646_v62 = vld [vmem:[#allocation6 + $0x90] sm:$0xff] }
 0x555   : > { %4525 = vst.msk [vmem:[#allocation6 + $0x80] sm:$0xff] %vm2019_vm7, %v4423_v15  ;;  %4224 = vrot.lane.b32.xlu0 %v3924_v3, %s8881_s23  ;;  %v3211_v14 = vld [vmem:[#allocation5 + $0xb9] sm:$0xff] }
 0x556   : > { %3726 = vrot.lane.b32.xlu1 %v3423_v11, %s8883_s18  ;;  %v3868_v11 = vld [vmem:[#allocation5 + $0x113] sm:$0xff] }
 0x557   : > { %v4425_v16 = vpop.permute.xlu1 %4424  ;;  %v3995_v17 = vpop.permute.xlu0 %3994  ;;  %v4649_v60 = vld [vmem:[#allocation6 + $0xa8] sm:$0xff]  ;;  %3904 = vst.msk [vmem:[#allocation6 + $0x308] sm:$0xff] %vm1812_vm3, %v3868_v11 }
 0x558   : > { %4095 = vst.msk [vmem:[#allocation6 + $0xb0] sm:$0xff] %vm1897_vm5, %v3995_v17  ;;  %v3426_v15 = vld [vmem:[#allocation5 + $0xb2] sm:$0xff] }
 0x559   : > { %v4641_v21 = vld [vmem:[#allocation6 + $0x68] sm:$0xff]  ;;  %4442 = vrot.lane.b32.xlu0 %v4355_v20, %s8883_s18 }
 0x55a   : > { %4226 = vrot.lane.b32.xlu1 %v4139_v18, %s8881_s23  ;;  %4964 = vmatprep.mubr.f32.mxu0 %v4641_v21 }
 0x55b   : > { %4965 = vmatmul.mubr.f32.gmra.mxu0 %v4640_v24  ;;  %v3997_v27 = vpop.permute.xlu1 %3996  ;;  %v3281_v28 = vpop.permute.xlu0 %3280 }
 0x55c   : > { %4096 = vst.msk [vmem:[#allocation6 + $0xc8] sm:$0xff] %vm1897_vm5, %v3997_v27  ;;  %3378 = vst.msk [vmem:[#allocation6 + $0xf0] sm:$0xff] %vm1897_vm5, %v3281_v28  ;;  %v4644_v30 = vld [vmem:[#allocation6 + $0x80] sm:$0xff]  ;;  %v4143_v27 = vld [vmem:[#allocation5 + $0xbc] sm:$0xff] }
 0x55d   : > { %4014 = vrot.lane.b32.xlu0 %v4139_v18, %s8882_s24  ;;  %4969 = vmatprep.mubr.f32.mxu0 %v4644_v30  ;;  %v4359_v28 = vld [vmem:[#allocation5 + $0xbd] sm:$0xff] }
 0x55e   : > { %4444 = vrot.lane.b32.xlu1 %v4356_v29, %s8883_s18 }
 0x55f   : > { %4970 = vmatmul.mubr.f32.gmra.mxu0 %v4643_v31  ;;  %v3283_v32 = vpop.permute.xlu1 %3282  ;;  %v3497_v33 = vpop.permute.xlu0 %3496  ;;  %v3151_v31 = vld [vmem:[#allocation5 + $0x118] sm:$0xff] }
 0x560   : > { %3379 = vst.msk [vmem:[#allocation6 + $0x108] sm:$0xff] %vm1897_vm5, %v3283_v32 }
 0x561   : > { %3594 = vst.msk [vmem:[#allocation6 + $0xf0] sm:$0xff] %vm1958_vm6, %v3497_v33  ;;  %3300 = vrot.lane.b32.xlu0 %v3208_v36, %s8882_s24  ;;  %v4360_v36 = vld [vmem:[#allocation5 + $0xc5] sm:$0xff] }
 0x562   : > { %4016 = vrot.lane.b32.xlu1 %v3926_v35, %s8882_s24  ;;  %3187 = vst.msk [vmem:[#allocation6 + $0x348] sm:$0xff] %vm1812_vm3, %v3151_v31 }
 0x563   : > { %v3499_v39 = vpop.permute.xlu1 %3498  ;;  %v3709_v40 = vpop.permute.xlu0 %3708 }
 0x564   : > { %3595 = vst.msk [vmem:[#allocation6 + $0x108] sm:$0xff] %vm1958_vm6, %v3499_v39 }
 0x565   : > { %3808 = vst.msk [vmem:[#allocation6 + $0xc0] sm:$0xff] %vm2019_vm7, %v3709_v40  ;;  %3516 = vrot.lane.b32.xlu0 %v3424_v42, %s8881_s23 }
 0x566   : > { %3302 = vrot.lane.b32.xlu1 %v3209_v41, %s8882_s24 }
 0x567   : > { %v3711_v43 = vpop.permute.xlu1 %3710  ;;  %v4209_v44 = vpop.permute.xlu0 %4208 }
 0x568   : > { %3809 = vst.msk [vmem:[#allocation6 + $0xd8] sm:$0xff] %vm2019_vm7, %v3711_v43  ;;  %v3212_v43 = vld [vmem:[#allocation5 + $0xc1] sm:$0xff] }
 0x569   : > { %4310 = vst.msk [vmem:[#allocation6 + $0x98] sm:$0xff] %vm1958_vm6, %v4209_v44  ;;  %3728 = vrot.lane.b32.xlu0 %v3424_v42, %s8883_s18  ;;  %v3930_v42 = vld [vmem:[#allocation5 + $0xc4] sm:$0xff] }
 0x56a   : > { %4526 = vst.msk [vmem:[#allocation6 + $0x98] sm:$0xff] %vm2019_vm7, %v4425_v16  ;;  %3518 = vrot.lane.b32.xlu1 %v3425_v45, %s8881_s23  ;;  %v3051_v16 = vpop.f32.mrf.mxu1 }
 0x56b   : > { %v4211_v48 = vpop.permute.xlu1 %4210  ;;  %v4427_v49 = vpop.permute.xlu0 %4426  ;;  %3111 = vst.msk [vmem:[#allocation5 + $0x120] sm:$0xff] %vm1812_vm3, %v3051_v16 }
 0x56c   : > { %4311 = vst.msk [vmem:[#allocation6 + $0xb0] sm:$0xff] %vm1958_vm6, %v4211_v48  ;;  %v8642_v20 = vpop.f32.mrf.mxu1  ;;  %v4652_v33 = vld [vmem:[#allocation6 + $0xc0] sm:$0xff] }
 0x56d   : > { %4527 = vst.msk [vmem:[#allocation6 + $0xb0] sm:$0xff] %vm2019_vm7, %v4427_v49  ;;  %4228 = vrot.lane.b32.xlu0 %v3926_v35, %s8881_s23  ;;  %v3428_v48 = vld [vmem:[#allocation5 + $0xc2] sm:$0xff] }
 0x56e   : > { %3730 = vrot.lane.b32.xlu1 %v3425_v45, %s8883_s18  ;;  %v3056_v24 = vpop.f32.mrf.mxu1 }
 0x56f   : > { %v4429_v50 = vpop.permute.xlu1 %4428  ;;  %v3999_v51 = vpop.permute.xlu0 %3998  ;;  %3112 = vst.msk [vmem:[#allocation5 + $0x128] sm:$0xff] %vm1812_vm3, %v3056_v24  ;;  %v4655_v38 = vld [vmem:[#allocation6 + $0xd8] sm:$0xff] }
 0x570   : > { %4097 = vst.msk [vmem:[#allocation6 + $0xe0] sm:$0xff] %vm1897_vm5, %v3999_v51  ;;  %v8645_v30 = vpop.f32.mrf.mxu1 }
 0x571   : > { %v4647_v55 = vld [vmem:[#allocation6 + $0x98] sm:$0xff]  ;;  %4446 = vrot.lane.b32.xlu0 %v4357_v54, %s8883_s18 }
 0x572   : > { %4230 = vrot.lane.b32.xlu1 %v4141_v52, %s8881_s23  ;;  %4974 = vmatprep.mubr.f32.mxu0 %v4647_v55  ;;  %v4587_v23 = vld [vmem:[#allocation5 + $0x11e] sm:$0xff] }
 0x573   : > { %4975 = vmatmul.mubr.f32.gmra.mxu0 %v4646_v62  ;;  %v4001_v1 = vpop.permute.xlu1 %4000  ;;  %v3285_v3 = vpop.permute.xlu0 %3284  ;;  %4623 = vst.msk [vmem:[#allocation6 + $0x2f8] sm:$0xff] %vm1812_vm3, %v4587_v23  ;;  %v3869_v32 = vld [vmem:[#allocation5 + $0x11b] sm:$0xff] }
 0x574   : > { %4098 = vst.msk [vmem:[#allocation6 + $0xf8] sm:$0xff] %vm1897_vm5, %v4001_v1  ;;  %3380 = vst.msk [vmem:[#allocation6 + $0x120] sm:$0xff] %vm1897_vm5, %v3285_v3  ;;  %v4650_v59 = vld [vmem:[#allocation6 + $0xb0] sm:$0xff]  ;;  %v3061_v49 = vpop.f32.mrf.mxu1  ;;  %v4361_v1 = vld [vmem:[#allocation5 + $0xcd] sm:$0xff] }
 0x575   : > { %4018 = vrot.lane.b32.xlu0 %v4141_v52, %s8882_s24  ;;  %4979 = vmatprep.mubr.f32.mxu0 %v4650_v59  ;;  %3905 = vst.msk [vmem:[#allocation6 + $0x320] sm:$0xff] %vm1812_vm3, %v3869_v32  ;;  %3113 = vst.msk [vmem:[#allocation5 + $0x130] sm:$0xff] %vm1812_vm3, %v3061_v49  ;;  %v3429_v52 = vld [vmem:[#allocation5 + $0xca] sm:$0xff]  ;;  %v3431_v23 = vld [vmem:[#allocation5 + $0xda] sm:$0xff] }
 0x576   : > { %4448 = vrot.lane.b32.xlu1 %v4358_v4, %s8883_s18  ;;  %v4588_v39 = vld [vmem:[#allocation5 + $0x126] sm:$0xff]  ;;  %v8648_v53 = vpop.f32.mrf.mxu1  ;;  %v4363_v30 = vld [vmem:[#allocation5 + $0xdd] sm:$0xff] }
 0x577   : > { %4980 = vmatmul.mubr.f32.gmra.mxu0 %v4649_v60  ;;  %v3287_v5 = vpop.permute.xlu1 %3286  ;;  %v3501_v57 = vpop.permute.xlu0 %3500  ;;  %4624 = vst.msk [vmem:[#allocation6 + $0x310] sm:$0xff] %vm1812_vm3, %v4588_v39  ;;  %v3870_v44 = vld [vmem:[#allocation5 + $0x123] sm:$0xff]  ;;  %v4149_v53 = vld [vmem:[#allocation5 + $0xec] sm:$0xff] }
 0x578   : > { %3381 = vst.msk [vmem:[#allocation6 + $0x138] sm:$0xff] %vm1897_vm5, %v3287_v5  ;;  %v3066_v61 = vpop.f32.mrf.mxu1 }
 0x579   : > { %3596 = vst.msk [vmem:[#allocation6 + $0x120] sm:$0xff] %vm1958_vm6, %v3501_v57  ;;  %3304 = vrot.lane.b32.xlu0 %v3210_v8, %s8882_s24 }
 0x57a   : > { %4020 = vrot.lane.b32.xlu1 %v3928_v6, %s8882_s24  ;;  %3906 = vst.msk [vmem:[#allocation6 + $0x338] sm:$0xff] %vm1812_vm3, %v3870_v44  ;;  %3114 = vst.msk [vmem:[#allocation5 + $0x138] sm:$0xff] %vm1812_vm3, %v3066_v61  ;;  %v8651_v4 = vpop.f32.mrf.mxu1  ;;  %v3217_v44 = vld [vmem:[#allocation5 + $0xe9] sm:$0xff] }
 0x57b   : > { %v3503_v12 = vpop.permute.xlu1 %3502  ;;  %v3713_v13 = vpop.permute.xlu0 %3712 }
 0x57c   : > { %3597 = vst.msk [vmem:[#allocation6 + $0x138] sm:$0xff] %vm1958_vm6, %v3503_v12  ;;  %v4589_v56 = vld [vmem:[#allocation5 + $0x12e] sm:$0xff] }
 0x57d   : > { %3810 = vst.msk [vmem:[#allocation6 + $0xf0] sm:$0xff] %vm2019_vm7, %v3713_v13  ;;  %3520 = vrot.lane.b32.xlu0 %v3426_v15, %s8881_s23  ;;  %v3871_v59 = vld [vmem:[#allocation5 + $0x12b] sm:$0xff]  ;;  %v3932_v13 = vld [vmem:[#allocation5 + $0xd4] sm:$0xff] }
 0x57e   : > { %3306 = vrot.lane.b32.xlu1 %v3211_v14, %s8882_s24  ;;  %4625 = vst.msk [vmem:[#allocation6 + $0x328] sm:$0xff] %vm1812_vm3, %v4589_v56  ;;  %3907 = vst.msk [vmem:[#allocation6 + $0x350] sm:$0xff] %vm1812_vm3, %v3871_v59  ;;  %v3214_v14 = vld [vmem:[#allocation5 + $0xd1] sm:$0xff] }
 0x57f   : > { %v3715_v17 = vpop.permute.xlu1 %3714  ;;  %v4213_v18 = vpop.permute.xlu0 %4212  ;;  %v3936_v59 = vld [vmem:[#allocation5 + $0xf4] sm:$0xff] }
 0x580   : > { %3811 = vst.msk [vmem:[#allocation6 + $0x108] sm:$0xff] %vm2019_vm7, %v3715_v17 }
 0x581   : > { %4312 = vst.msk [vmem:[#allocation6 + $0xc8] sm:$0xff] %vm1958_vm6, %v4213_v18  ;;  %3732 = vrot.lane.b32.xlu0 %v3426_v15, %s8883_s18  ;;  %v4590_v9 = vld [vmem:[#allocation5 + $0x136] sm:$0xff]  ;;  %v3071_v15 = vpop.f32.mrf.mxu1 }
 0x582   : > { %4528 = vst.msk [vmem:[#allocation6 + $0xc8] sm:$0xff] %vm2019_vm7, %v4429_v50  ;;  %3522 = vrot.lane.b32.xlu1 %v3427_v19, %s8881_s23  ;;  %v3215_v18 = vld [vmem:[#allocation5 + $0xd9] sm:$0xff] }
 0x583   : > { %v4215_v21 = vpop.permute.xlu1 %4214  ;;  %v4431_v22 = vpop.permute.xlu0 %4430  ;;  %4626 = vst.msk [vmem:[#allocation6 + $0x340] sm:$0xff] %vm1812_vm3, %v4590_v9 }
 0x584   : > { %4313 = vst.msk [vmem:[#allocation6 + $0xe0] sm:$0xff] %vm1958_vm6, %v4215_v21  ;;  %v4658_v60 = vld [vmem:[#allocation6 + $0xf0] sm:$0xff]  ;;  %v8654_v20 = vpop.f32.mrf.mxu1 }
 0x585   : > { %4529 = vst.msk [vmem:[#allocation6 + $0xe0] sm:$0xff] %vm2019_vm7, %v4431_v22  ;;  %4232 = vrot.lane.b32.xlu0 %v3928_v6, %s8881_s23 }
 0x586   : > { %3734 = vrot.lane.b32.xlu1 %v3427_v19, %s8883_s18  ;;  %3115 = vst.msk [vmem:[#allocation5 + $0x140] sm:$0x3f] %vm1825_vm4, %v3071_v15  ;;  %v3430_v19 = vld [vmem:[#allocation5 + $0xd2] sm:$0xff] }
 0x587   : > { %v4433_v25 = vpop.permute.xlu1 %4432  ;;  %v4003_v26 = vpop.permute.xlu0 %4002  ;;  %v4661_v8 = vld [vmem:[#allocation6 + $0x108] sm:$0xff] }
 0x588   : > { %4099 = vst.msk [vmem:[#allocation6 + $0x110] sm:$0xff] %vm1897_vm5, %v4003_v26 }
 0x589   : > { %v4653_v29 = vld [vmem:[#allocation6 + $0xc8] sm:$0xff]  ;;  %4450 = vrot.lane.b32.xlu0 %v4359_v28, %s8883_s18 }
 0x58a   : > { %4234 = vrot.lane.b32.xlu1 %v4143_v27, %s8881_s23  ;;  %4984 = vmatprep.mubr.f32.mxu0 %v4653_v29  ;;  %v4147_v29 = vld [vmem:[#allocation5 + $0xdc] sm:$0xff] }
 0x58b   : > { %4985 = vmatmul.mubr.f32.gmra.mxu0 %v4652_v33  ;;  %v4005_v34 = vpop.permute.xlu1 %4004  ;;  %v3289_v35 = vpop.permute.xlu0 %3288 }
 0x58c   : > { %4100 = vst.msk [vmem:[#allocation6 + $0x128] sm:$0xff] %vm1897_vm5, %v4005_v34  ;;  %3382 = vst.msk [vmem:[#allocation6 + $0x150] sm:$0xff] %vm1897_vm5, %v3289_v35  ;;  %v4656_v37 = vld [vmem:[#allocation6 + $0xe0] sm:$0xff] }
 0x58d   : > { %4022 = vrot.lane.b32.xlu0 %v4143_v27, %s8882_s24  ;;  %4989 = vmatprep.mubr.f32.mxu0 %v4656_v37  ;;  %v4591_v24 = vld [vmem:[#allocation5 + $0x13e] sm:$0xff] }
 0x58e   : > { %4452 = vrot.lane.b32.xlu1 %v4360_v36, %s8883_s18  ;;  %4627 = vst.msk [vmem:[#allocation6 + $0x358] sm:$0xff] %vm1812_vm3, %v4591_v24  ;;  %v4364_v35 = vld [vmem:[#allocation5 + $0xe5] sm:$0xff] }
 0x58f   : > { %4990 = vmatmul.mubr.f32.gmra.mxu0 %v4655_v38  ;;  %v3291_v40 = vpop.permute.xlu1 %3290  ;;  %v3505_v41 = vpop.permute.xlu0 %3504 }
 0x590   : > { %3383 = vst.msk [vmem:[#allocation6 + $0x168] sm:$0xff] %vm1897_vm5, %v3291_v40  ;;  %v3934_v40 = vld [vmem:[#allocation5 + $0xe4] sm:$0xff] }
 0x591   : > { %3598 = vst.msk [vmem:[#allocation6 + $0x150] sm:$0xff] %vm1958_vm6, %v3505_v41  ;;  %3308 = vrot.lane.b32.xlu0 %v3212_v43, %s8882_s24  ;;  %v3216_v41 = vld [vmem:[#allocation5 + $0xe1] sm:$0xff] }
 0x592   : > { %4024 = vrot.lane.b32.xlu1 %v3930_v42, %s8882_s24 }
 0x593   : > { %v3507_v45 = vpop.permute.xlu1 %3506  ;;  %v3717_v46 = vpop.permute.xlu0 %3716 }
 0x594   : > { %3599 = vst.msk [vmem:[#allocation6 + $0x168] sm:$0xff] %vm1958_vm6, %v3507_v45  ;;  %v3432_v45 = vld [vmem:[#allocation5 + $0xe2] sm:$0xff] }
 0x595   : > { %3812 = vst.msk [vmem:[#allocation6 + $0x120] sm:$0xff] %vm2019_vm7, %v3717_v46  ;;  %3524 = vrot.lane.b32.xlu0 %v3428_v48, %s8881_s23 }
 0x596   : > { %3310 = vrot.lane.b32.xlu1 %v3213_v47, %s8882_s24 }
 0x597   : > { %v3719_v50 = vpop.permute.xlu1 %3718  ;;  %v4217_v51 = vpop.permute.xlu0 %4216 }
 0x598   : > { %3813 = vst.msk [vmem:[#allocation6 + $0x138] sm:$0xff] %vm2019_vm7, %v3719_v50 }
 0x599   : > { %4314 = vst.msk [vmem:[#allocation6 + $0xf8] sm:$0xff] %vm1958_vm6, %v4217_v51  ;;  %3736 = vrot.lane.b32.xlu0 %v3428_v48, %s8883_s18  ;;  %v3433_v48 = vld [vmem:[#allocation5 + $0xea] sm:$0xff] }
 0x59a   : > { %4530 = vst.msk [vmem:[#allocation6 + $0xf8] sm:$0xff] %vm2019_vm7, %v4433_v25  ;;  %3526 = vrot.lane.b32.xlu1 %v3429_v52, %s8881_s23 }
 0x59b   : > { %v4219_v54 = vpop.permute.xlu1 %4218  ;;  %v4435_v55 = vpop.permute.xlu0 %4434 }
 0x59c   : > { %4315 = vst.msk [vmem:[#allocation6 + $0x110] sm:$0xff] %vm1958_vm6, %v4219_v54  ;;  %v4664_v32 = vld [vmem:[#allocation6 + $0x120] sm:$0xff] }
 0x59d   : > { %4531 = vst.msk [vmem:[#allocation6 + $0x110] sm:$0xff] %vm2019_vm7, %v4435_v55  ;;  %4236 = vrot.lane.b32.xlu0 %v3930_v42, %s8881_s23  ;;  %v4365_v54 = vld [vmem:[#allocation5 + $0xed] sm:$0xff] }
 0x59e   : > { %3738 = vrot.lane.b32.xlu1 %v3429_v52, %s8883_s18 }
 0x59f   : > { %v4007_v63 = vpop.permute.xlu0 %4006  ;;  %v4667_v37 = vld [vmem:[#allocation6 + $0x138] sm:$0xff] }
 0x5a0   : > { %v4437_v62 = vpop.permute.xlu1 %4436  ;;  %4101 = vst.msk [vmem:[#allocation6 + $0x140] sm:$0xff] %vm1897_vm5, %v4007_v63  ;;  %v4366_v63 = vld [vmem:[#allocation5 + $0xf5] sm:$0xff] }
 0x5a1   : > { %v4659_v3 = vld [vmem:[#allocation6 + $0xf8] sm:$0xff]  ;;  %4454 = vrot.lane.b32.xlu0 %v4361_v1, %s8883_s18 }
 0x5a2   : > { %4238 = vrot.lane.b32.xlu1 %v4145_v0, %s8881_s23  ;;  %4994 = vmatprep.mubr.f32.mxu0 %v4659_v3 }
 0x5a3   : > { %4995 = vmatmul.mubr.f32.gmra.mxu0 %v4658_v60  ;;  %v3293_v57 = vpop.permute.xlu0 %3292  ;;  %v3218_v60 = vld [vmem:[#allocation5 + $0xf1] sm:$0xff] }
 0x5a4   : > { %v4009_v5 = vpop.permute.xlu1 %4008  ;;  %3384 = vst.msk [vmem:[#allocation6 + $0x180] sm:$0xff] %vm1897_vm5, %v3293_v57  ;;  %v4662_v6 = vld [vmem:[#allocation6 + $0x110] sm:$0xff] }
 0x5a5   : > { %4102 = vst.msk [vmem:[#allocation6 + $0x158] sm:$0xff] %vm1897_vm5, %v4009_v5  ;;  %4026 = vrot.lane.b32.xlu0 %v4145_v0, %s8882_s24  ;;  %4999 = vmatprep.mubr.f32.mxu0 %v4662_v6  ;;  %v3434_v6 = vld [vmem:[#allocation5 + $0xf2] sm:$0xff] }
 0x5a6   : > { %4456 = vrot.lane.b32.xlu1 %v4362_v58, %s8883_s18  ;;  %v3219_v58 = vld [vmem:[#allocation5 + $0xf9] sm:$0xff] }
 0x5a7   : > { %5000 = vmatmul.mubr.f32.gmra.mxu0 %v4661_v8  ;;  %v3509_v12 = vpop.permute.xlu0 %3508 }
 0x5a8   : > { %v3295_v11 = vpop.permute.xlu1 %3294  ;;  %3600 = vst.msk [vmem:[#allocation6 + $0x180] sm:$0xff] %vm1958_vm6, %v3509_v12 }
 0x5a9   : > { %3385 = vst.msk [vmem:[#allocation6 + $0x198] sm:$0xff] %vm1897_vm5, %v3295_v11  ;;  %3312 = vrot.lane.b32.xlu0 %v3214_v14, %s8882_s24  ;;  %v3435_v11 = vld [vmem:[#allocation5 + $0xfa] sm:$0xff] }
 0x5aa   : > { %4028 = vrot.lane.b32.xlu1 %v3932_v13, %s8882_s24 }
 0x5ab   : > { %v3721_v17 = vpop.permute.xlu0 %3720 }
 0x5ac   : > { %v3511_v16 = vpop.permute.xlu1 %3510  ;;  %3814 = vst.msk [vmem:[#allocation6 + $0x150] sm:$0xff] %vm2019_vm7, %v3721_v17  ;;  %v4367_v17 = vld [vmem:[#allocation5 + $0xfd] sm:$0xff] }
 0x5ad   : > { %3601 = vst.msk [vmem:[#allocation6 + $0x198] sm:$0xff] %vm1958_vm6, %v3511_v16  ;;  %3528 = vrot.lane.b32.xlu0 %v3430_v19, %s8881_s23  ;;  %v4151_v16 = vld [vmem:[#allocation5 + $0xfc] sm:$0xff] }
 0x5ae   : > { %3314 = vrot.lane.b32.xlu1 %v3215_v18, %s8882_s24 }
 0x5af   : > { %v4221_v22 = vpop.permute.xlu0 %4220 }
 0x5b0   : > { %v3723_v21 = vpop.permute.xlu1 %3722  ;;  %4316 = vst.msk [vmem:[#allocation6 + $0x128] sm:$0xff] %vm1958_vm6, %v4221_v22  ;;  %v4368_v22 = vld [vmem:[#allocation5 + $0x105] sm:$0xff] }
 0x5b1   : > { %3815 = vst.msk [vmem:[#allocation6 + $0x168] sm:$0xff] %vm2019_vm7, %v3723_v21  ;;  %4532 = vst.msk [vmem:[#allocation6 + $0x128] sm:$0xff] %vm2019_vm7, %v4437_v62  ;;  %3740 = vrot.lane.b32.xlu0 %v3430_v19, %s8883_s18 }
 0x5b2   : > { %3530 = vrot.lane.b32.xlu1 %v3431_v23, %s8881_s23 }
 0x5b3   : > { %v4439_v26 = vpop.permute.xlu0 %4438  ;;  %v4670_v56 = vld [vmem:[#allocation6 + $0x150] sm:$0xff] }
 0x5b4   : > { %v4223_v25 = vpop.permute.xlu1 %4222 }
 0x5b5   : > { %4317 = vst.msk [vmem:[#allocation6 + $0x140] sm:$0xff] %vm1958_vm6, %v4223_v25  ;;  %4240 = vrot.lane.b32.xlu0 %v3932_v13, %s8881_s23 }
 0x5b6   : > { %4533 = vst.msk [vmem:[#allocation6 + $0x140] sm:$0xff] %vm2019_vm7, %v4439_v26  ;;  %3742 = vrot.lane.b32.xlu1 %v3431_v23, %s8883_s18 }
 0x5b7   : > { %v4011_v28 = vpop.permute.xlu0 %4010 }
 0x5b8   : > { %v4441_v27 = vpop.permute.xlu1 %4440  ;;  %4103 = vst.msk [vmem:[#allocation6 + $0x170] sm:$0xff] %vm1897_vm5, %v4011_v28  ;;  %v4665_v31 = vld [vmem:[#allocation6 + $0x128] sm:$0xff] }
 0x5b9   : > { %4458 = vrot.lane.b32.xlu0 %v4363_v30, %s8883_s18  ;;  %5004 = vmatprep.mubr.f32.mxu0 %v4665_v31  ;;  %v4673_v1 = vld [vmem:[#allocation6 + $0x168] sm:$0xff]  ;;  %v3220_v30 = vld [vmem:[#allocation5 + $0x101] sm:$0xff] }
 0x5ba   : > { %4242 = vrot.lane.b32.xlu1 %v4147_v29, %s8881_s23  ;;  %5005 = vmatmul.mubr.f32.gmra.mxu0 %v4664_v32 }
 0x5bb   : > { %v3297_v34 = vpop.permute.xlu0 %3296 }
 0x5bc   : > { %v4013_v33 = vpop.permute.xlu1 %4012  ;;  %3386 = vst.msk [vmem:[#allocation6 + $0x1b0] sm:$0xff] %vm1897_vm5, %v3297_v34 }
 0x5bd   : > { %4104 = vst.msk [vmem:[#allocation6 + $0x188] sm:$0xff] %vm1897_vm5, %v4013_v33  ;;  %v4668_v36 = vld [vmem:[#allocation6 + $0x140] sm:$0xff]  ;;  %4030 = vrot.lane.b32.xlu0 %v4147_v29, %s8882_s24 }
 0x5be   : > { %4460 = vrot.lane.b32.xlu1 %v4364_v35, %s8883_s18  ;;  %5009 = vmatprep.mubr.f32.mxu0 %v4668_v36  ;;  %v3938_v29 = vld [vmem:[#allocation5 + $0x104] sm:$0xff] }
 0x5bf   : > { %5010 = vmatmul.mubr.f32.gmra.mxu0 %v4667_v37  ;;  %v3513_v39 = vpop.permute.xlu0 %3512  ;;  %v3221_v35 = vld [vmem:[#allocation5 + $0x109] sm:$0xff] }
 0x5c0   : > { %v3299_v38 = vpop.permute.xlu1 %3298  ;;  %3602 = vst.msk [vmem:[#allocation6 + $0x1b0] sm:$0xff] %vm1958_vm6, %v3513_v39  ;;  %v3436_v36 = vld [vmem:[#allocation5 + $0x102] sm:$0xff]  ;;  %v3437_v39 = vld [vmem:[#allocation5 + $0x10a] sm:$0xff] }
 0x5c1   : > { %3387 = vst.msk [vmem:[#allocation6 + $0x1c8] sm:$0xff] %vm1897_vm5, %v3299_v38  ;;  %3316 = vrot.lane.b32.xlu0 %v3216_v41, %s8882_s24 }
 0x5c2   : > { %4032 = vrot.lane.b32.xlu1 %v3934_v40, %s8882_s24 }
 0x5c3   : > { %v3725_v43 = vpop.permute.xlu0 %3724 }
 0x5c4   : > { %v3515_v42 = vpop.permute.xlu1 %3514  ;;  %3816 = vst.msk [vmem:[#allocation6 + $0x180] sm:$0xff] %vm2019_vm7, %v3725_v43 }
 0x5c5   : > { %3603 = vst.msk [vmem:[#allocation6 + $0x1c8] sm:$0xff] %vm1958_vm6, %v3515_v42  ;;  %3532 = vrot.lane.b32.xlu0 %v3432_v45, %s8881_s23 }
 0x5c6   : > { %3318 = vrot.lane.b32.xlu1 %v3217_v44, %s8882_s24  ;;  %v4153_v44 = vld [vmem:[#allocation5 + $0x10c] sm:$0xff] }
 0x5c7   : > { %v4225_v47 = vpop.permute.xlu0 %4224 }
 0x5c8   : > { %v3727_v46 = vpop.permute.xlu1 %3726  ;;  %4318 = vst.msk [vmem:[#allocation6 + $0x158] sm:$0xff] %vm1958_vm6, %v4225_v47 }
 0x5c9   : > { %3817 = vst.msk [vmem:[#allocation6 + $0x198] sm:$0xff] %vm2019_vm7, %v3727_v46  ;;  %4534 = vst.msk [vmem:[#allocation6 + $0x158] sm:$0xff] %vm2019_vm7, %v4441_v27  ;;  %3744 = vrot.lane.b32.xlu0 %v3432_v45, %s8883_s18  ;;  %v4369_v45 = vld [vmem:[#allocation5 + $0x10d] sm:$0xff] }
 0x5ca   : > { %3534 = vrot.lane.b32.xlu1 %v3433_v48, %s8881_s23 }
 0x5cb   : > { %v4443_v50 = vpop.permute.xlu0 %4442  ;;  %v4676_v19 = vld [vmem:[#allocation6 + $0x180] sm:$0xff] }
 0x5cc   : > { %v4227_v49 = vpop.permute.xlu1 %4226 }
 0x5cd   : > { %4319 = vst.msk [vmem:[#allocation6 + $0x170] sm:$0xff] %vm1958_vm6, %v4227_v49  ;;  %4244 = vrot.lane.b32.xlu0 %v3934_v40, %s8881_s23 }
 0x5ce   : > { %4535 = vst.msk [vmem:[#allocation6 + $0x170] sm:$0xff] %vm2019_vm7, %v4443_v50  ;;  %3746 = vrot.lane.b32.xlu1 %v3433_v48, %s8883_s18 }
 0x5cf   : > { %v4015_v52 = vpop.permute.xlu0 %4014 }
 0x5d0   : > { %v4445_v51 = vpop.permute.xlu1 %4444  ;;  %4105 = vst.msk [vmem:[#allocation6 + $0x1a0] sm:$0xff] %vm1897_vm5, %v4015_v52  ;;  %v4671_v55 = vld [vmem:[#allocation6 + $0x158] sm:$0xff]  ;;  %v4370_v52 = vld [vmem:[#allocation5 + $0x115] sm:$0xff] }
 0x5d1   : > { %4462 = vrot.lane.b32.xlu0 %v4365_v54, %s8883_s18  ;;  %5014 = vmatprep.mubr.f32.mxu0 %v4671_v55  ;;  %v4679_v25 = vld [vmem:[#allocation6 + $0x198] sm:$0xff] }
 0x5d2   : > { %4246 = vrot.lane.b32.xlu1 %v4149_v53, %s8881_s23  ;;  %5015 = vmatmul.mubr.f32.gmra.mxu0 %v4670_v56 }
 0x5d3   : > { %v3301_v62 = vpop.permute.xlu0 %3300 }
 0x5d4   : > { %v4017_v61 = vpop.permute.xlu1 %4016  ;;  %3388 = vst.msk [vmem:[#allocation6 + $0x1e0] sm:$0xff] %vm1897_vm5, %v3301_v62  ;;  %v3940_v62 = vld [vmem:[#allocation5 + $0x114] sm:$0xff] }
 0x5d5   : > { %4106 = vst.msk [vmem:[#allocation6 + $0x1b8] sm:$0xff] %vm1897_vm5, %v4017_v61  ;;  %v4674_v0 = vld [vmem:[#allocation6 + $0x170] sm:$0xff]  ;;  %4034 = vrot.lane.b32.xlu0 %v4149_v53, %s8882_s24 }
 0x5d6   : > { %4464 = vrot.lane.b32.xlu1 %v4366_v63, %s8883_s18  ;;  %5019 = vmatprep.mubr.f32.mxu0 %v4674_v0  ;;  %v3222_v63 = vld [vmem:[#allocation5 + $0x111] sm:$0xff] }
 0x5d7   : > { %5020 = vmatmul.mubr.f32.gmra.mxu0 %v4673_v1  ;;  %v3517_v4 = vpop.permute.xlu0 %3516 }
 0x5d8   : > { %v3303_v3 = vpop.permute.xlu1 %3302  ;;  %3604 = vst.msk [vmem:[#allocation6 + $0x1e0] sm:$0xff] %vm1958_vm6, %v3517_v4  ;;  %v3223_v4 = vld [vmem:[#allocation5 + $0x119] sm:$0xff] }
 0x5d9   : > { %3389 = vst.msk [vmem:[#allocation6 + $0x1f8] sm:$0xff] %vm1897_vm5, %v3303_v3  ;;  %3320 = vrot.lane.b32.xlu0 %v3218_v60, %s8882_s24 }
 0x5da   : > { %4036 = vrot.lane.b32.xlu1 %v3936_v59, %s8882_s24 }
 0x5db   : > { %v3729_v57 = vpop.permute.xlu0 %3728 }
 0x5dc   : > { %v3519_v5 = vpop.permute.xlu1 %3518  ;;  %3818 = vst.msk [vmem:[#allocation6 + $0x1b0] sm:$0xff] %vm2019_vm7, %v3729_v57  ;;  %v3439_v57 = vld [vmem:[#allocation5 + $0x11a] sm:$0xff] }
 0x5dd   : > { %3605 = vst.msk [vmem:[#allocation6 + $0x1f8] sm:$0xff] %vm1958_vm6, %v3519_v5  ;;  %3536 = vrot.lane.b32.xlu0 %v3434_v6, %s8881_s23 }
 0x5de   : > { %3322 = vrot.lane.b32.xlu1 %v3219_v58, %s8882_s24 }
 0x5df   : > { %v4229_v9 = vpop.permute.xlu0 %4228 }
 0x5e0   : > { %v3731_v8 = vpop.permute.xlu1 %3730  ;;  %4320 = vst.msk [vmem:[#allocation6 + $0x188] sm:$0xff] %vm1958_vm6, %v4229_v9 }
 0x5e1   : > { %3819 = vst.msk [vmem:[#allocation6 + $0x1c8] sm:$0xff] %vm2019_vm7, %v3731_v8  ;;  %4536 = vst.msk [vmem:[#allocation6 + $0x188] sm:$0xff] %vm2019_vm7, %v4445_v51  ;;  %3748 = vrot.lane.b32.xlu0 %v3434_v6, %s8883_s18 }
 0x5e2   : > { %3538 = vrot.lane.b32.xlu1 %v3435_v11, %s8881_s23 }
 0x5e3   : > { %v4447_v13 = vpop.permute.xlu0 %4446  ;;  %v4682_v48 = vld [vmem:[#allocation6 + $0x1b0] sm:$0xff] }
 0x5e4   : > { %v4231_v12 = vpop.permute.xlu1 %4230 }
 0x5e5   : > { %4321 = vst.msk [vmem:[#allocation6 + $0x1a0] sm:$0xff] %vm1958_vm6, %v4231_v12  ;;  %4248 = vrot.lane.b32.xlu0 %v3936_v59, %s8881_s23  ;;  %v3438_v59 = vld [vmem:[#allocation5 + $0x112] sm:$0xff] }
 0x5e6   : > { %4537 = vst.msk [vmem:[#allocation6 + $0x1a0] sm:$0xff] %vm2019_vm7, %v4447_v13  ;;  %3750 = vrot.lane.b32.xlu1 %v3435_v11, %s8883_s18  ;;  %v4155_v11 = vld [vmem:[#allocation5 + $0x11c] sm:$0xff] }
 0x5e7   : > { %v4019_v15 = vpop.permute.xlu0 %4018 }
 0x5e8   : > { %v4449_v14 = vpop.permute.xlu1 %4448  ;;  %4107 = vst.msk [vmem:[#allocation6 + $0x1d0] sm:$0xff] %vm1897_vm5, %v4019_v15  ;;  %v4677_v18 = vld [vmem:[#allocation6 + $0x188] sm:$0xff] }
 0x5e9   : > { %4466 = vrot.lane.b32.xlu0 %v4367_v17, %s8883_s18  ;;  %5024 = vmatprep.mubr.f32.mxu0 %v4677_v18  ;;  %v4685_v54 = vld [vmem:[#allocation6 + $0x1c8] sm:$0xff]  ;;  %v3942_v17 = vld [vmem:[#allocation5 + $0x124] sm:$0xff] }
 0x5ea   : > { %4250 = vrot.lane.b32.xlu1 %v4151_v16, %s8881_s23  ;;  %5025 = vmatmul.mubr.f32.gmra.mxu0 %v4676_v19  ;;  %v4371_v18 = vld [vmem:[#allocation5 + $0x11d] sm:$0xff] }
 0x5eb   : > { %v3305_v21 = vpop.permute.xlu0 %3304 }
 0x5ec   : > { %v4021_v20 = vpop.permute.xlu1 %4020  ;;  %3390 = vst.msk [vmem:[#allocation6 + $0x210] sm:$0xff] %vm1897_vm5, %v3305_v21 }
 0x5ed   : > { %4108 = vst.msk [vmem:[#allocation6 + $0x1e8] sm:$0xff] %vm1897_vm5, %v4021_v20  ;;  %v4680_v23 = vld [vmem:[#allocation6 + $0x1a0] sm:$0xff]  ;;  %4038 = vrot.lane.b32.xlu0 %v4151_v16, %s8882_s24 }
 0x5ee   : > { %4468 = vrot.lane.b32.xlu1 %v4368_v22, %s8883_s18  ;;  %v10568_v24 = vpop.f32.mrf.mxu0  ;;  %5029 = vmatprep.mubr.f32.mxu0 %v4680_v23 }
 0x5ef   : > { %5030 = vmatmul.mubr.f32.gmra.mxu0 %v4679_v25  ;;  %v3521_v27 = vpop.permute.xlu0 %3520 }
 0x5f0   : > { %v3307_v26 = vpop.permute.xlu1 %3306  ;;  %3606 = vst.msk [vmem:[#allocation6 + $0x210] sm:$0xff] %vm1958_vm6, %v3521_v27  ;;  %v4948_v28 = vpop.f32.mrf.mxu0  ;;  %v3654_v27 = vld [vmem:[#allocation5 + $0x122] sm:$0xff] }
 0x5f1   : > { %3391 = vst.msk [vmem:[#allocation6 + $0x228] sm:$0xff] %vm1897_vm5, %v3307_v26  ;;  %3324 = vrot.lane.b32.xlu0 %v3220_v30, %s8882_s24  ;;  %v4372_v26 = vld [vmem:[#allocation5 + $0x125] sm:$0xff] }
 0x5f2   : > { %4040 = vrot.lane.b32.xlu1 %v3938_v29, %s8882_s24  ;;  %v10574_v31 = vpop.f32.mrf.mxu0 }
 0x5f3   : > { %v3733_v33 = vpop.permute.xlu0 %3732 }
 0x5f4   : > { %v3523_v32 = vpop.permute.xlu1 %3522  ;;  %3820 = vst.msk [vmem:[#allocation6 + $0x1e0] sm:$0xff] %vm2019_vm7, %v3733_v33  ;;  %v4953_v34 = vpop.f32.mrf.mxu0 }
 0x5f5   : > { %3607 = vst.msk [vmem:[#allocation6 + $0x228] sm:$0xff] %vm1958_vm6, %v3523_v32  ;;  %3540 = vrot.lane.b32.xlu0 %v3436_v36, %s8881_s23  ;;  %v3655_v32 = vld [vmem:[#allocation5 + $0x12a] sm:$0xff] }
 0x5f6   : > { %3326 = vrot.lane.b32.xlu1 %v3221_v35, %s8882_s24  ;;  %v4157_v35 = vld [vmem:[#allocation5 + $0x12c] sm:$0xff] }
 0x5f7   : > { %v4233_v38 = vpop.permute.xlu0 %4232 }
 0x5f8   : > { %v3735_v37 = vpop.permute.xlu1 %3734  ;;  %4322 = vst.msk [vmem:[#allocation6 + $0x1b8] sm:$0xff] %vm1958_vm6, %v4233_v38  ;;  %v10644_v38 = vld [vmem:[%s11852_s8 + $0x118] sm:$0xff] }
 0x5f9   : > { %3821 = vst.msk [vmem:[#allocation6 + $0x1f8] sm:$0xff] %vm2019_vm7, %v3735_v37  ;;  %4538 = vst.msk [vmem:[#allocation6 + $0x1b8] sm:$0xff] %vm2019_vm7, %v4449_v14  ;;  %3752 = vrot.lane.b32.xlu0 %v3436_v36, %s8883_s18  ;;  %v4373_v36 = vld [vmem:[#allocation5 + $0x12d] sm:$0xff]  ;;  %8655 = vmatprep.subr.mxu1 %v10644_v38 }
 0x5fa   : > { %3542 = vrot.lane.b32.xlu1 %v3437_v39, %s8881_s23 }
 0x5fb   : > { %v4451_v41 = vpop.permute.xlu0 %4450  ;;  %v4688_v13 = vld [vmem:[#allocation6 + $0x1e0] sm:$0xff] }
 0x5fc   : > { %v4235_v40 = vpop.permute.xlu1 %4234 }
 0x5fd   : > { %4323 = vst.msk [vmem:[#allocation6 + $0x1d0] sm:$0xff] %vm1958_vm6, %v4235_v40  ;;  %4252 = vrot.lane.b32.xlu0 %v3938_v29, %s8881_s23  ;;  %v4158_v40 = vld [vmem:[#allocation5 + $0x134] sm:$0xff] }
 0x5fe   : > { %4539 = vst.msk [vmem:[#allocation6 + $0x1d0] sm:$0xff] %vm2019_vm7, %v4451_v41  ;;  %3754 = vrot.lane.b32.xlu1 %v3437_v39, %s8883_s18  ;;  %v4375_v41 = vld [vmem:[#allocation5 + $0x13d] sm:$0xff] }
 0x5ff   : > { %v4023_v43 = vpop.permute.xlu0 %4022 }
 0x600   : > { %v4453_v42 = vpop.permute.xlu1 %4452  ;;  %4109 = vst.msk [vmem:[#allocation6 + $0x200] sm:$0xff] %vm1897_vm5, %v4023_v43  ;;  %v4683_v46 = vld [vmem:[#allocation6 + $0x1b8] sm:$0xff] }
 0x601   : > { %4470 = vrot.lane.b32.xlu0 %v4369_v45, %s8883_s18  ;;  %v10592_v47 = vpop.f32.mrf.mxu0  ;;  %5034 = vmatprep.mubr.f32.mxu0 %v4683_v46  ;;  %v4691_v21 = vld [vmem:[#allocation6 + $0x1f8] sm:$0xff] }
 0x602   : > { %4254 = vrot.lane.b32.xlu1 %v4153_v44, %s8881_s23  ;;  %5035 = vmatmul.mubr.f32.gmra.mxu0 %v4682_v48 }
 0x603   : > { %v3309_v50 = vpop.permute.xlu0 %3308  ;;  %v4958_v51 = vpop.f32.mrf.mxu0 }
 0x604   : > { %v4025_v49 = vpop.permute.xlu1 %4024  ;;  %3392 = vst.msk [vmem:[#allocation6 + $0x240] sm:$0xff] %vm1897_vm5, %v3309_v50  ;;  %v4159_v51 = vld [vmem:[#allocation5 + $0x13c] sm:$0xff] }
 0x605   : > { %4110 = vst.msk [vmem:[#allocation6 + $0x218] sm:$0xff] %vm1897_vm5, %v4025_v49  ;;  %v4686_v53 = vld [vmem:[#allocation6 + $0x1d0] sm:$0xff]  ;;  %4042 = vrot.lane.b32.xlu0 %v4153_v44, %s8882_s24 }
 0x606   : > { %4472 = vrot.lane.b32.xlu1 %v4370_v52, %s8883_s18  ;;  %5039 = vmatprep.mubr.f32.mxu0 %v4686_v53  ;;  %v10598_v55 = vpop.f32.mrf.mxu0  ;;  %v4374_v44 = vld [vmem:[#allocation5 + $0x135] sm:$0xff] }
 0x607   : > { %5040 = vmatmul.mubr.f32.gmra.mxu0 %v4685_v54  ;;  %v3525_v61 = vpop.permute.xlu0 %3524 }
 0x608   : > { %v3311_v56 = vpop.permute.xlu1 %3310  ;;  %3608 = vst.msk [vmem:[#allocation6 + $0x240] sm:$0xff] %vm1958_vm6, %v3525_v61  ;;  %v4963_v0 = vpop.f32.mrf.mxu0 }
 0x609   : > { %3393 = vst.msk [vmem:[#allocation6 + $0x258] sm:$0xff] %vm1897_vm5, %v3311_v56  ;;  %3328 = vrot.lane.b32.xlu0 %v3222_v63, %s8882_s24 }
 0x60a   : > { %4044 = vrot.lane.b32.xlu1 %v3940_v62, %s8882_s24 }
 0x60b   : > { %v3737_v3 = vpop.permute.xlu0 %3736 }
 0x60c   : > { %v3527_v1 = vpop.permute.xlu1 %3526  ;;  %3822 = vst.msk [vmem:[#allocation6 + $0x210] sm:$0xff] %vm2019_vm7, %v3737_v3 }
 0x60d   : > { %3609 = vst.msk [vmem:[#allocation6 + $0x258] sm:$0xff] %vm1958_vm6, %v3527_v1  ;;  %3544 = vrot.lane.b32.xlu0 %v3438_v59, %s8881_s23 }
 0x60e   : > { %3330 = vrot.lane.b32.xlu1 %v3223_v4, %s8882_s24 }
 0x60f   : > { %v4237_v5 = vpop.permute.xlu0 %4236 }
 0x610   : > { %v3739_v60 = vpop.permute.xlu1 %3738  ;;  %4324 = vst.msk [vmem:[#allocation6 + $0x1e8] sm:$0xff] %vm1958_vm6, %v4237_v5 }
 0x611   : > { %3823 = vst.msk [vmem:[#allocation6 + $0x228] sm:$0xff] %vm2019_vm7, %v3739_v60  ;;  %3756 = vrot.lane.b32.xlu0 %v3438_v59, %s8883_s18  ;;  %4540 = vst.msk [vmem:[#allocation6 + $0x1e8] sm:$0xff] %vm2019_vm7, %v4453_v42 }
 0x612   : > { %3546 = vrot.lane.b32.xlu1 %v3439_v57, %s8881_s23 }
 0x613   : > { %v4455_v6 = vpop.permute.xlu0 %4454  ;;  %v4694_v46 = vld [vmem:[#allocation6 + $0x210] sm:$0xff] }
 0x614   : > { %v4239_v58 = vpop.permute.xlu1 %4238 }
 0x615   : > { %4325 = vst.msk [vmem:[#allocation6 + $0x200] sm:$0xff] %vm1958_vm6, %v4239_v58  ;;  %4256 = vrot.lane.b32.xlu0 %v3940_v62, %s8881_s23 }
 0x616   : > { %4541 = vst.msk [vmem:[#allocation6 + $0x200] sm:$0xff] %vm2019_vm7, %v4455_v6  ;;  %3758 = vrot.lane.b32.xlu1 %v3439_v57, %s8883_s18 }
 0x617   : > { %v4027_v9 = vpop.permute.xlu0 %4026 }
 0x618   : > { %v4457_v8 = vpop.permute.xlu1 %4456  ;;  %4111 = vst.msk [vmem:[#allocation6 + $0x230] sm:$0xff] %vm1897_vm5, %v4027_v9  ;;  %v4689_v12 = vld [vmem:[#allocation6 + $0x1e8] sm:$0xff] }
 0x619   : > { %4046 = vrot.lane.b32.xlu0 %v4155_v11, %s8882_s24  ;;  %5044 = vmatprep.mubr.f32.mxu0 %v4689_v12  ;;  %v4697_v54 = vld [vmem:[#allocation6 + $0x228] sm:$0xff] }
 0x61a   : > { %4258 = vrot.lane.b32.xlu1 %v4155_v11, %s8881_s23  ;;  %5045 = vmatmul.mubr.f32.gmra.mxu0 %v4688_v13 }
 0x61b   : > { %v10620_v14 = vpop.f32.mrf.mxu0  ;;  %v3313_v16 = vpop.permute.xlu0 %3312 }
 0x61c   : > { %v4029_v15 = vpop.permute.xlu1 %4028  ;;  %3394 = vst.msk [vmem:[#allocation6 + $0x270] sm:$0xff] %vm1897_vm5, %v3313_v16 }
 0x61d   : > { %4112 = vst.msk [vmem:[#allocation6 + $0x248] sm:$0xff] %vm1897_vm5, %v4029_v15  ;;  %v4692_v19 = vld [vmem:[#allocation6 + $0x200] sm:$0xff]  ;;  %v4968_v20 = vpop.f32.mrf.mxu0  ;;  %4474 = vrot.lane.b32.xlu0 %v4371_v18, %s8883_s18 }
 0x61e   : > { %4048 = vrot.lane.b32.xlu1 %v3942_v17, %s8882_s24  ;;  %5049 = vmatprep.mubr.f32.mxu0 %v4692_v19 }
 0x61f   : > { %v10626_v22 = vpop.f32.mrf.mxu0  ;;  %5050 = vmatmul.mubr.f32.gmra.mxu0 %v4691_v21  ;;  %v3529_v25 = vpop.permute.xlu0 %3528 }
 0x620   : > { %v3315_v23 = vpop.permute.xlu1 %3314  ;;  %3610 = vst.msk [vmem:[#allocation6 + $0x270] sm:$0xff] %vm1958_vm6, %v3529_v25 }
 0x621   : > { %3395 = vst.msk [vmem:[#allocation6 + $0x288] sm:$0xff] %vm1897_vm5, %v3315_v23  ;;  %v4973_v28 = vpop.f32.mrf.mxu0  ;;  %3760 = vrot.lane.b32.xlu0 %v3654_v27, %s8883_s18 }
 0x622   : > { %4476 = vrot.lane.b32.xlu1 %v4372_v26, %s8883_s18 }
 0x623   : > { %v3741_v30 = vpop.permute.xlu0 %3740 }
 0x624   : > { %v3531_v29 = vpop.permute.xlu1 %3530  ;;  %3824 = vst.msk [vmem:[#allocation6 + $0x240] sm:$0xff] %vm2019_vm7, %v3741_v30 }
 0x625   : > { %3611 = vst.msk [vmem:[#allocation6 + $0x288] sm:$0xff] %vm1958_vm6, %v3531_v29  ;;  %4260 = vrot.lane.b32.xlu0 %v3942_v17, %s8881_s23 }
 0x626   : > { %3762 = vrot.lane.b32.xlu1 %v3655_v32, %s8883_s18 }
 0x627   : > { %v4241_v34 = vpop.permute.xlu0 %4240 }
 0x628   : > { %v3743_v33 = vpop.permute.xlu1 %3742  ;;  %4326 = vst.msk [vmem:[#allocation6 + $0x218] sm:$0xff] %vm1958_vm6, %v4241_v34 }
 0x629   : > { %3825 = vst.msk [vmem:[#allocation6 + $0x258] sm:$0xff] %vm2019_vm7, %v3743_v33  ;;  %4478 = vrot.lane.b32.xlu0 %v4373_v36, %s8883_s18  ;;  %4542 = vst.msk [vmem:[#allocation6 + $0x218] sm:$0xff] %vm2019_vm7, %v4457_v8 }
 0x62a   : > { %4262 = vrot.lane.b32.xlu1 %v4157_v35, %s8881_s23 }
 0x62b   : > { %v4459_v39 = vpop.permute.xlu0 %4458  ;;  %v4700_v6 = vld [vmem:[#allocation6 + $0x240] sm:$0xff] }
 0x62c   : > { %v4243_v37 = vpop.permute.xlu1 %4242 }
 0x62d   : > { %4327 = vst.msk [vmem:[#allocation6 + $0x230] sm:$0xff] %vm1958_vm6, %v4243_v37  ;;  %4264 = vrot.lane.b32.xlu0 %v4158_v40, %s8881_s23 }
 0x62e   : > { %4543 = vst.msk [vmem:[#allocation6 + $0x230] sm:$0xff] %vm2019_vm7, %v4459_v39  ;;  %4050 = vrot.lane.b32.xlu1 %v4157_v35, %s8882_s24 }
 0x62f   : > { %v4031_v43 = vpop.permute.xlu0 %4030 }
 0x630   : > { %v4461_v42 = vpop.permute.xlu1 %4460  ;;  %4113 = vst.msk [vmem:[#allocation6 + $0x260] sm:$0xff] %vm1897_vm5, %v4031_v43  ;;  %v4695_v45 = vld [vmem:[#allocation6 + $0x218] sm:$0xff] }
 0x631   : > { %4482 = vrot.lane.b32.xlu0 %v4375_v41, %s8883_s18  ;;  %5054 = vmatprep.mubr.f32.mxu0 %v4695_v45  ;;  %v4703_v15 = vld [vmem:[#allocation6 + $0x258] sm:$0xff] }
 0x632   : > { %4480 = vrot.lane.b32.xlu1 %v4374_v44, %s8883_s18  ;;  %5055 = vmatmul.mubr.f32.gmra.mxu0 %v4694_v46 }
 0x633   : > { %v10654_v48 = vpop.f32.mrf.mxu0  ;;  %v3317_v50 = vpop.permute.xlu0 %3316 }
 0x634   : > { %v4033_v49 = vpop.permute.xlu1 %4032  ;;  %3396 = vst.msk [vmem:[#allocation6 + $0x2a0] sm:$0xff] %vm1897_vm5, %v3317_v50 }
 0x635   : > { %4114 = vst.msk [vmem:[#allocation6 + $0x278] sm:$0xff] %vm1897_vm5, %v4033_v49  ;;  %v4698_v52 = vld [vmem:[#allocation6 + $0x230] sm:$0xff]  ;;  %v4978_v53 = vpop.f32.mrf.mxu0 }
 0x636   : > { %4266 = vrot.lane.b32.xlu1 %v4159_v51, %s8881_s23  ;;  %5059 = vmatprep.mubr.f32.mxu0 %v4698_v52 }
 0x637   : > { %v10659_v56 = vpop.f32.mrf.mxu0  ;;  %5060 = vmatmul.mubr.f32.gmra.mxu0 %v4697_v54  ;;  %v3533_v62 = vpop.permute.xlu0 %3532 }
 0x638   : > { %v3319_v61 = vpop.permute.xlu1 %3318  ;;  %3612 = vst.msk [vmem:[#allocation6 + $0x2a0] sm:$0xff] %vm1958_vm6, %v3533_v62 }
 0x639   : > { %3397 = vst.msk [vmem:[#allocation6 + $0x2b8] sm:$0xff] %vm1897_vm5, %v3319_v61  ;;  %v4983_v63 = vpop.f32.mrf.mxu0 }
 0x63b   : > { %v3745_v1 = vpop.permute.xlu0 %3744 }
 0x63c   : > { %v3535_v0 = vpop.permute.xlu1 %3534  ;;  %3826 = vst.msk [vmem:[#allocation6 + $0x270] sm:$0xff] %vm2019_vm7, %v3745_v1 }
 0x63d   : > { %3613 = vst.msk [vmem:[#allocation6 + $0x2b8] sm:$0xff] %vm1958_vm6, %v3535_v0 }
 0x63f   : > { %v4245_v4 = vpop.permute.xlu0 %4244 }
 0x640   : > { %v3747_v3 = vpop.permute.xlu1 %3746  ;;  %4328 = vst.msk [vmem:[#allocation6 + $0x248] sm:$0xff] %vm1958_vm6, %v4245_v4 }
 0x641   : > { %3827 = vst.msk [vmem:[#allocation6 + $0x288] sm:$0xff] %vm2019_vm7, %v3747_v3  ;;  %4544 = vst.msk [vmem:[#allocation6 + $0x248] sm:$0xff] %vm2019_vm7, %v4461_v42 }
 0x643   : > { %v4463_v60 = vpop.permute.xlu0 %4462  ;;  %v4706_v32 = vld [vmem:[#allocation6 + $0x270] sm:$0xff] }
 0x644   : > { %v4247_v59 = vpop.permute.xlu1 %4246 }
 0x645   : > { %4329 = vst.msk [vmem:[#allocation6 + $0x260] sm:$0xff] %vm1958_vm6, %v4247_v59 }
 0x646   : > { %4545 = vst.msk [vmem:[#allocation6 + $0x260] sm:$0xff] %vm2019_vm7, %v4463_v60 }
 0x647   : > { %v4035_v57 = vpop.permute.xlu0 %4034 }
 0x648   : > { %v4465_v5 = vpop.permute.xlu1 %4464  ;;  %4115 = vst.msk [vmem:[#allocation6 + $0x290] sm:$0xff] %vm1897_vm5, %v4035_v57  ;;  %v4701_v58 = vld [vmem:[#allocation6 + $0x248] sm:$0xff] }
 0x649   : > { %5064 = vmatprep.mubr.f32.mxu0 %v4701_v58  ;;  %v4709_v39 = vld [vmem:[#allocation6 + $0x288] sm:$0xff] }
 0x64a   : > { %5065 = vmatmul.mubr.f32.gmra.mxu0 %v4700_v6 }
 0x64b   : > { %v10671_v8 = vpop.f32.mrf.mxu0  ;;  %v3321_v11 = vpop.permute.xlu0 %3320 }
 0x64c   : > { %v4037_v9 = vpop.permute.xlu1 %4036  ;;  %3398 = vst.msk [vmem:[#allocation6 + $0x2d0] sm:$0xff] %vm1897_vm5, %v3321_v11 }
 0x64d   : > { %4116 = vst.msk [vmem:[#allocation6 + $0x2a8] sm:$0xff] %vm1897_vm5, %v4037_v9  ;;  %v4704_v12 = vld [vmem:[#allocation6 + $0x260] sm:$0xff]  ;;  %v4988_v13 = vpop.f32.mrf.mxu0 }
 0x64e   : > { %5069 = vmatprep.mubr.f32.mxu0 %v4704_v12 }
 0x64f   : > { %v10675_v16 = vpop.f32.mrf.mxu0  ;;  %5070 = vmatmul.mubr.f32.gmra.mxu0 %v4703_v15  ;;  %v3537_v18 = vpop.permute.xlu0 %3536 }
 0x650   : > { %v3323_v17 = vpop.permute.xlu1 %3322  ;;  %3614 = vst.msk [vmem:[#allocation6 + $0x2d0] sm:$0xff] %vm1958_vm6, %v3537_v18 }
 0x651   : > { %3399 = vst.msk [vmem:[#allocation6 + $0x2e8] sm:$0xff] %vm1897_vm5, %v3323_v17  ;;  %v4993_v19 = vpop.f32.mrf.mxu0 }
 0x653   : > { %v3749_v21 = vpop.permute.xlu0 %3748 }
 0x654   : > { %v3539_v20 = vpop.permute.xlu1 %3538  ;;  %3828 = vst.msk [vmem:[#allocation6 + $0x2a0] sm:$0xff] %vm2019_vm7, %v3749_v21 }
 0x655   : > { %3615 = vst.msk [vmem:[#allocation6 + $0x2e8] sm:$0xff] %vm1958_vm6, %v3539_v20 }
 0x657   : > { %v4249_v25 = vpop.permute.xlu0 %4248 }
 0x658   : > { %v3751_v23 = vpop.permute.xlu1 %3750  ;;  %4330 = vst.msk [vmem:[#allocation6 + $0x278] sm:$0xff] %vm1958_vm6, %v4249_v25 }
 0x659   : > { %3829 = vst.msk [vmem:[#allocation6 + $0x2b8] sm:$0xff] %vm2019_vm7, %v3751_v23  ;;  %4546 = vst.msk [vmem:[#allocation6 + $0x278] sm:$0xff] %vm2019_vm7, %v4465_v5 }
 0x65b   : > { %v4467_v27 = vpop.permute.xlu0 %4466  ;;  %v4712_v61 = vld [vmem:[#allocation6 + $0x2a0] sm:$0xff] }
 0x65c   : > { %v4251_v26 = vpop.permute.xlu1 %4250 }
 0x65d   : > { %4331 = vst.msk [vmem:[#allocation6 + $0x290] sm:$0xff] %vm1958_vm6, %v4251_v26 }
 0x65e   : > { %4547 = vst.msk [vmem:[#allocation6 + $0x290] sm:$0xff] %vm2019_vm7, %v4467_v27 }
 0x65f   : > { %v4039_v29 = vpop.permute.xlu0 %4038 }
 0x660   : > { %v4469_v28 = vpop.permute.xlu1 %4468  ;;  %4117 = vst.msk [vmem:[#allocation6 + $0x2c0] sm:$0xff] %vm1897_vm5, %v4039_v29  ;;  %v4707_v30 = vld [vmem:[#allocation6 + $0x278] sm:$0xff] }
 0x661   : > { %5074 = vmatprep.mubr.f32.mxu0 %v4707_v30  ;;  %v4715_v4 = vld [vmem:[#allocation6 + $0x2b8] sm:$0xff] }
 0x662   : > { %5075 = vmatmul.mubr.f32.gmra.mxu0 %v4706_v32 }
 0x663   : > { %v10687_v33 = vpop.f32.mrf.mxu0  ;;  %v3325_v35 = vpop.permute.xlu0 %3324 }
 0x664   : > { %v4041_v34 = vpop.permute.xlu1 %4040  ;;  %3400 = vst.msk [vmem:[#allocation6 + $0x300] sm:$0xff] %vm1897_vm5, %v3325_v35 }
 0x665   : > { %4118 = vst.msk [vmem:[#allocation6 + $0x2d8] sm:$0xff] %vm1897_vm5, %v4041_v34  ;;  %v4710_v36 = vld [vmem:[#allocation6 + $0x290] sm:$0xff]  ;;  %v4998_v37 = vpop.f32.mrf.mxu0 }
 0x666   : > { %5079 = vmatprep.mubr.f32.mxu0 %v4710_v36 }
 0x667   : > { %v10691_v40 = vpop.f32.mrf.mxu0  ;;  %5080 = vmatmul.mubr.f32.gmra.mxu0 %v4709_v39  ;;  %v3541_v42 = vpop.permute.xlu0 %3540 }
 0x668   : > { %v3327_v41 = vpop.permute.xlu1 %3326  ;;  %3616 = vst.msk [vmem:[#allocation6 + $0x300] sm:$0xff] %vm1958_vm6, %v3541_v42 }
 0x669   : > { %3401 = vst.msk [vmem:[#allocation6 + $0x318] sm:$0xff] %vm1897_vm5, %v3327_v41  ;;  %v5003_v43 = vpop.f32.mrf.mxu0 }
 0x66b   : > { %v3753_v45 = vpop.permute.xlu0 %3752 }
 0x66c   : > { %v3543_v44 = vpop.permute.xlu1 %3542  ;;  %3830 = vst.msk [vmem:[#allocation6 + $0x2d0] sm:$0xff] %vm2019_vm7, %v3753_v45  ;;  %v4770_v45 = vld [vmem:[%s11852_s8 + $0x110] sm:$0xff] }
 0x66d   : > { %3617 = vst.msk [vmem:[#allocation6 + $0x318] sm:$0xff] %vm1958_vm6, %v3543_v44 }
 0x66f   : > { %v4253_v49 = vpop.permute.xlu0 %4252 }
 0x670   : > { %v3755_v46 = vpop.permute.xlu1 %3754  ;;  %4332 = vst.msk [vmem:[#allocation6 + $0x2a8] sm:$0xff] %vm1958_vm6, %v4253_v49  ;;  %v4769_v49 = vld [vmem:[%s11852_s8 + $0x108] sm:$0xff] }
 0x671   : > { %3831 = vst.msk [vmem:[#allocation6 + $0x2e8] sm:$0xff] %vm2019_vm7, %v3755_v46  ;;  %4548 = vst.msk [vmem:[#allocation6 + $0x2a8] sm:$0xff] %vm2019_vm7, %v4469_v28 }
 0x673   : > { %v4471_v51 = vpop.permute.xlu0 %4470  ;;  %v4718_v19 = vld [vmem:[#allocation6 + $0x2d0] sm:$0xff] }
 0x674   : > { %v4255_v50 = vpop.permute.xlu1 %4254 }
 0x675   : > { %4333 = vst.msk [vmem:[#allocation6 + $0x2c0] sm:$0xff] %vm1958_vm6, %v4255_v50 }
 0x676   : > { %4549 = vst.msk [vmem:[#allocation6 + $0x2c0] sm:$0xff] %vm2019_vm7, %v4471_v51  ;;  %v4768_v51 = vld [vmem:[%s11852_s8 + $0x100] sm:$0xff] }
 0x677   : > { %v4043_v53 = vpop.permute.xlu0 %4042 }
 0x678   : > { %v4473_v52 = vpop.permute.xlu1 %4472  ;;  %4119 = vst.msk [vmem:[#allocation6 + $0x2f0] sm:$0xff] %vm1897_vm5, %v4043_v53  ;;  %v4713_v54 = vld [vmem:[#allocation6 + $0x2a8] sm:$0xff] }
 0x679   : > { %5084 = vmatprep.mubr.f32.mxu0 %v4713_v54  ;;  %v4721_v32 = vld [vmem:[#allocation6 + $0x2e8] sm:$0xff] }
 0x67a   : > { %v10703_v62 = vpop.f32.mrf.mxu0  ;;  %5085 = vmatmul.mubr.f32.gmra.mxu0 %v4712_v61 }
 0x67b   : > { %v3329_v0 = vpop.permute.xlu0 %3328 }
 0x67c   : > { %v4045_v63 = vpop.permute.xlu1 %4044  ;;  %3402 = vst.msk [vmem:[#allocation6 + $0x330] sm:$0xff] %vm1897_vm5, %v3329_v0  ;;  %v5008_v3 = vpop.f32.mrf.mxu0 }
 0x67d   : > { %4120 = vst.msk [vmem:[#allocation6 + $0x308] sm:$0xff] %vm1897_vm5, %v4045_v63  ;;  %v4716_v1 = vld [vmem:[#allocation6 + $0x2c0] sm:$0xff]  ;;  %v4630_v3 = vld [vmem:[#allocation6 + $0x10] sm:$0xff] }
 0x67e   : > { %5089 = vmatprep.mubr.f32.mxu0 %v4716_v1 }
 0x67f   : > { %v10707_v59 = vpop.f32.mrf.mxu0  ;;  %5090 = vmatmul.mubr.f32.gmra.mxu0 %v4715_v4  ;;  %v3545_v5 = vpop.permute.xlu0 %3544  ;;  %v4633_v4 = vld [vmem:[#allocation6 + $0x28] sm:$0xff] }
 0x680   : > { %v3331_v60 = vpop.permute.xlu1 %3330  ;;  %3618 = vst.msk [vmem:[#allocation6 + $0x330] sm:$0xff] %vm1958_vm6, %v3545_v5  ;;  %v4639_v5 = vld [vmem:[#allocation6 + $0x58] sm:$0xff] }
 0x681   : > { %3403 = vst.msk [vmem:[#allocation6 + $0x348] sm:$0xff] %vm1897_vm5, %v3331_v60  ;;  %v5013_v57 = vpop.f32.mrf.mxu0  ;;  %v4636_v60 = vld [vmem:[#allocation6 + $0x40] sm:$0xff] }
 0x682   : > { %v4642_v57 = vld [vmem:[#allocation6 + $0x70] sm:$0xff] }
 0x683   : > { %v3757_v6 = vpop.permute.xlu0 %3756 }
 0x684   : > { %v3547_v58 = vpop.permute.xlu1 %3546  ;;  %3832 = vst.msk [vmem:[#allocation6 + $0x300] sm:$0xff] %vm2019_vm7, %v3757_v6  ;;  %v4648_v6 = vld [vmem:[#allocation6 + $0xa0] sm:$0xff] }
 0x685   : > { %3619 = vst.msk [vmem:[#allocation6 + $0x348] sm:$0xff] %vm1958_vm6, %v3547_v58  ;;  %v4645_v58 = vld [vmem:[#allocation6 + $0x88] sm:$0xff] }
 0x687   : > { %v4257_v11 = vpop.permute.xlu0 %4256 }
 0x688   : > { %v3759_v9 = vpop.permute.xlu1 %3758  ;;  %4334 = vst.msk [vmem:[#allocation6 + $0x2d8] sm:$0xff] %vm1958_vm6, %v4257_v11  ;;  %v4654_v11 = vld [vmem:[#allocation6 + $0xd0] sm:$0xff] }
 0x689   : > { %3833 = vst.msk [vmem:[#allocation6 + $0x318] sm:$0xff] %vm2019_vm7, %v3759_v9  ;;  %4550 = vst.msk [vmem:[#allocation6 + $0x2d8] sm:$0xff] %vm2019_vm7, %v4473_v52  ;;  %v4651_v9 = vld [vmem:[#allocation6 + $0xb8] sm:$0xff] }
 0x68b   : > { %v4047_v13 = vpop.permute.xlu0 %4046  ;;  %v4724_v41 = vld [vmem:[#allocation6 + $0x300] sm:$0xff] }
 0x68c   : > { %v4259_v12 = vpop.permute.xlu1 %4258  ;;  %4121 = vst.msk [vmem:[#allocation6 + $0x320] sm:$0xff] %vm1897_vm5, %v4047_v13 }
 0x68d   : > { %4335 = vst.msk [vmem:[#allocation6 + $0x2f0] sm:$0xff] %vm1958_vm6, %v4259_v12 }
 0x68f   : > { %v4475_v17 = vpop.permute.xlu0 %4474 }
 0x690   : > { %v4049_v15 = vpop.permute.xlu1 %4048  ;;  %4551 = vst.msk [vmem:[#allocation6 + $0x2f0] sm:$0xff] %vm2019_vm7, %v4475_v17  ;;  %v4719_v18 = vld [vmem:[#allocation6 + $0x2d8] sm:$0xff]  ;;  %v4660_v17 = vld [vmem:[#allocation6 + $0x100] sm:$0xff] }
 0x691   : > { %4122 = vst.msk [vmem:[#allocation6 + $0x338] sm:$0xff] %vm1897_vm5, %v4049_v15  ;;  %5094 = vmatprep.mubr.f32.mxu0 %v4719_v18  ;;  %v4727_v44 = vld [vmem:[#allocation6 + $0x318] sm:$0xff]  ;;  %v4657_v15 = vld [vmem:[#allocation6 + $0xe8] sm:$0xff] }
 0x692   : > { %v10720_v20 = vpop.f32.mrf.mxu0  ;;  %5095 = vmatmul.mubr.f32.gmra.mxu0 %v4718_v19 }
 0x693   : > { %v3761_v23 = vpop.permute.xlu0 %3760 }
 0x694   : > { %v4477_v21 = vpop.permute.xlu1 %4476  ;;  %3834 = vst.msk [vmem:[#allocation6 + $0x330] sm:$0xff] %vm2019_vm7, %v3761_v23  ;;  %v5018_v25 = vpop.f32.mrf.mxu0  ;;  %v4666_v23 = vld [vmem:[#allocation6 + $0x130] sm:$0xff] }
 0x695   : > { %v4669_v25 = vld [vmem:[#allocation6 + $0x148] sm:$0xff] }
 0x697   : > { %v10723_v26 = vpop.f32.mrf.mxu0  ;;  %v4261_v28 = vpop.permute.xlu0 %4260  ;;  %v4722_v29 = vld [vmem:[#allocation6 + $0x2f0] sm:$0xff] }
 0x698   : > { %v3763_v27 = vpop.permute.xlu1 %3762  ;;  %4336 = vst.msk [vmem:[#allocation6 + $0x308] sm:$0xff] %vm1958_vm6, %v4261_v28  ;;  %5099 = vmatprep.mubr.f32.mxu0 %v4722_v29  ;;  %v4675_v28 = vld [vmem:[#allocation6 + $0x178] sm:$0xff]  ;;  %v4678_v29 = vld [vmem:[#allocation6 + $0x190] sm:$0xff] }
 0x699   : > { %3835 = vst.msk [vmem:[#allocation6 + $0x348] sm:$0xff] %vm2019_vm7, %v3763_v27  ;;  %v5023_v30 = vpop.f32.mrf.mxu0  ;;  %4552 = vst.msk [vmem:[#allocation6 + $0x308] sm:$0xff] %vm2019_vm7, %v4477_v21  ;;  %5100 = vmatmul.mubr.f32.gmra.mxu0 %v4721_v32  ;;  %v4663_v21 = vld [vmem:[#allocation6 + $0x118] sm:$0xff]  ;;  %v4672_v27 = vld [vmem:[#allocation6 + $0x160] sm:$0xff] }
 0x69a   : > { %v4681_v30 = vld [vmem:[#allocation6 + $0x1a8] sm:$0xff]  ;;  %v4684_v32 = vld [vmem:[#allocation6 + $0x1c0] sm:$0xff] }
 0x69b   : > { %v4479_v35 = vpop.permute.xlu0 %4478 }
 0x69c   : > { %v4263_v34 = vpop.permute.xlu1 %4262 }
 0x69d   : > { %4337 = vst.msk [vmem:[#allocation6 + $0x320] sm:$0xff] %vm1958_vm6, %v4263_v34  ;;  %v4687_v34 = vld [vmem:[#allocation6 + $0x1d8] sm:$0xff] }
 0x69e   : > { %4553 = vst.msk [vmem:[#allocation6 + $0x320] sm:$0xff] %vm2019_vm7, %v4479_v35  ;;  %v4690_v35 = vld [vmem:[#allocation6 + $0x1f0] sm:$0xff] }
 0x69f   : > { %v4265_v37 = vpop.permute.xlu0 %4264 }
 0x6a0   : > { %v4051_v36 = vpop.permute.xlu1 %4050  ;;  %4338 = vst.msk [vmem:[#allocation6 + $0x338] sm:$0xff] %vm1958_vm6, %v4265_v37  ;;  %v4725_v39 = vld [vmem:[#allocation6 + $0x308] sm:$0xff] }
 0x6a1   : > { %4123 = vst.msk [vmem:[#allocation6 + $0x350] sm:$0xff] %vm1897_vm5, %v4051_v36  ;;  %5104 = vmatprep.mubr.f32.mxu0 %v4725_v39  ;;  %v4733_v1 = vld [vmem:[#allocation6 + $0x348] sm:$0xff] }
 0x6a2   : > { %5105 = vmatmul.mubr.f32.gmra.mxu0 %v4724_v41  ;;  %v4693_v39 = vld [vmem:[#allocation6 + $0x208] sm:$0xff]  ;;  %v4696_v41 = vld [vmem:[#allocation6 + $0x220] sm:$0xff] }
 0x6a3   : > { %v4483_v50 = vpop.permute.xlu0 %4482 }
 0x6a4   : > { %v4481_v42 = vpop.permute.xlu1 %4480 }
 0x6a5   : > { %4554 = vst.msk [vmem:[#allocation6 + $0x338] sm:$0xff] %vm2019_vm7, %v4481_v42  ;;  %v4728_v43 = vld [vmem:[#allocation6 + $0x320] sm:$0xff] }
 0x6a6   : > { %5109 = vmatprep.mubr.f32.mxu1 %v4728_v43 }
 0x6a7   : > { %5110 = vmatmul.mubr.f32.vlgmr.msra.gmra.mxu1 %v4727_v44  ;;  %v4699_v44 = vld [vmem:[#allocation6 + $0x238] sm:$0xff] }
 0x6a8   : > { %v4267_v46 = vpop.permute.xlu1 %4266  ;;  %8656 = vmatpush3.msra.mxu1 %v10644_v38  ;;  %v4730_v38 = vld [vmem:[#allocation6 + $0x330] sm:$0xff] }
 0x6a9   : > { %4339 = vst.msk [vmem:[#allocation6 + $0x350] sm:$0xff] %vm1958_vm6, %v4267_v46  ;;  %8657 = vmatprep.subr.mxu1 %v4770_v45  ;;  %v4705_v46 = vld [vmem:[#allocation6 + $0x268] sm:$0xff] }
 0x6aa   : > { %4555 = vst.msk [vmem:[#allocation6 + $0x350] sm:$0xff] %vm2019_vm7, %v4483_v50  ;;  %8658 = vmatpush3.msra.mxu1 %v4770_v45  ;;  %v10745_v52 = vpop.f32.mrf.mxu0  ;;  %v4702_v45 = vld [vmem:[#allocation6 + $0x250] sm:$0xff]  ;;  %v4711_v50 = vld [vmem:[#allocation6 + $0x298] sm:$0xff]  ;;  %vm5608_vm7 = vcmask 130050  }
 0x6ab   : > { %8659 = vmatprep.subr.mxu1 %v4769_v49 }
 0x6ac   : > { %v4731_v53 = vld [vmem:[#allocation6 + $0x338] sm:$0xff]  ;;  %8660 = vmatpush3.msra.mxu1 %v4769_v49  ;;  %v5028_v54 = vpop.f32.mrf.mxu0  ;;  %v4708_v49 = vld [vmem:[#allocation6 + $0x280] sm:$0xff] }
 0x6ad   : > { %5114 = vmatprep.mubr.f32.mxu1 %v4731_v53  ;;  %8661 = vmatprep.subr.mxu1 %v4768_v51  ;;  %v4717_v53 = vld [vmem:[#allocation6 + $0x2c8] sm:$0xff]  ;;  %v4723_v54 = vld [vmem:[#allocation6 + $0x2f8] sm:$0xff] }
 0x6ae   : > { %5115 = vmatmul.mubr.f32.gmra.mxu1 %v4730_v38  ;;  %v4720_v38 = vld [vmem:[#allocation6 + $0x2e0] sm:$0xff] }
 0x6af   : > { %8662 = vmatpush3.msra.mxu1 %v4768_v51  ;;  %v10747_v61 = vpop.f32.mrf.mxu0  ;;  %v4714_v51 = vld [vmem:[#allocation6 + $0x2b0] sm:$0xff] }
 0x6b1   : > { %v4734_v63 = vld [vmem:[#allocation6 + $0x350] sm:$0xff]  ;;  %v5033_v0 = vpop.f32.mrf.mxu0 }
 0x6b2   : > { %5119 = vmatprep.mubr.f32.mxu1 %v4734_v63  ;;  %v4726_v63 = vld [vmem:[#allocation6 + $0x310] sm:$0xff] }
 0x6b3   : > { %5120 = vmatmul.mubr.f32.gmra.mxu1 %v4733_v1 }
 0x6b4   : > { %8663 = vmatprep.mubr.msk.f32.mxu1 %vm1812_vm3, %v4630_v3  ;;  %v4729_v3 = vld [vmem:[#allocation6 + $0x328] sm:$0xff] }
 0x6b7   : > { %8664 = vmatmul.mubr.msk.f32.vlgmr.msra.gmra.mxu1 %vm1812_vm3, %v4633_v4  ;;  %v4732_v4 = vld [vmem:[#allocation6 + $0x340] sm:$0xff] }
 0x6b8   : > { %8666 = vmatprep.mubr.msk.f32.mxu1 %vm1812_vm3, %v4636_v60 }
 0x6bb   : > { %8667 = vmatmul.mubr.msk.f32.gmra.mxu1 %vm1812_vm3, %v4639_v5 }
 0x6bc   : > { %8669 = vmatprep.mubr.msk.f32.mxu1 %vm1812_vm3, %v4642_v57  ;;  %v4735_v57 = vld [vmem:[#allocation6 + $0x358] sm:$0xff] }
 0x6bf   : > { %8670 = vmatmul.mubr.msk.f32.gmra.mxu1 %vm1812_vm3, %v4645_v58 }
 0x6c0   : > { %8672 = vmatprep.mubr.msk.f32.mxu1 %vm1812_vm3, %v4648_v6 }
 0x6c2   : > { %v10757_v12 = vpop.f32.mrf.mxu0 }
 0x6c3   : > { %8673 = vmatmul.mubr.msk.f32.gmra.mxu1 %vm1812_vm3, %v4651_v9 }
 0x6c4   : > { %8675 = vmatprep.mubr.msk.f32.mxu1 %vm1812_vm3, %v4654_v11  ;;  %v5038_v13 = vpop.f32.mrf.mxu0 }
 0x6c7   : > { %8676 = vmatmul.mubr.msk.f32.gmra.mxu1 %vm1812_vm3, %v4657_v15  ;;  %v10761_v18 = vpop.f32.mrf.mxu0 }
 0x6c8   : > { %8678 = vmatprep.mubr.msk.f32.mxu1 %vm1812_vm3, %v4660_v17 }
 0x6c9   : > { %v5043_v19 = vpop.f32.mrf.mxu0 }
 0x6cb   : > { %8679 = vmatmul.mubr.msk.f32.gmra.mxu1 %vm1812_vm3, %v4663_v21 }
 0x6cc   : > { %8681 = vmatprep.mubr.msk.f32.mxu1 %vm1812_vm3, %v4666_v23 }
 0x6cf   : > { %8682 = vmatmul.mubr.msk.f32.gmra.mxu1 %vm1812_vm3, %v4669_v25 }
 0x6d0   : > { %8684 = vmatprep.mubr.msk.f32.mxu1 %vm1812_vm3, %v4672_v27 }
 0x6d3   : > { %8685 = vmatmul.mubr.msk.f32.gmra.mxu1 %vm1812_vm3, %v4675_v28 }
 0x6d4   : > { %8687 = vmatprep.mubr.msk.f32.mxu1 %vm1812_vm3, %v4678_v29 }
 0x6d7   : > { %8688 = vmatmul.mubr.msk.f32.gmra.mxu1 %vm1812_vm3, %v4681_v30 }
 0x6d8   : > { %8690 = vmatprep.mubr.msk.f32.mxu1 %vm1812_vm3, %v4684_v32 }
 0x6da   : > { %v10773_v36 = vpop.f32.mrf.mxu0 }
 0x6db   : > { %8691 = vmatmul.mubr.msk.f32.gmra.mxu1 %vm1812_vm3, %v4687_v34 }
 0x6dc   : > { %8693 = vmatprep.mubr.msk.f32.mxu1 %vm1812_vm3, %v4690_v35  ;;  %v5048_v37 = vpop.f32.mrf.mxu0 }
 0x6df   : > { %8694 = vmatmul.mubr.msk.f32.gmra.mxu1 %vm1812_vm3, %v4693_v39  ;;  %v10777_v42 = vpop.f32.mrf.mxu0 }
 0x6e0   : > { %8696 = vmatprep.mubr.msk.f32.mxu1 %vm1812_vm3, %v4696_v41 }
 0x6e1   : > { %v5053_v43 = vpop.f32.mrf.mxu0 }
 0x6e3   : > { %8697 = vmatmul.mubr.msk.f32.gmra.mxu1 %vm1812_vm3, %v4699_v44 }
 0x6e4   : > { %8699 = vmatprep.mubr.msk.f32.mxu1 %vm1812_vm3, %v4702_v45 }
 0x6e7   : > { %8700 = vmatmul.mubr.msk.f32.gmra.mxu1 %vm1812_vm3, %v4705_v46 }
 0x6e8   : > { %8702 = vmatprep.mubr.msk.f32.mxu1 %vm1812_vm3, %v4708_v49  ;;  %v10826_v49 = vld [vmem:[%s11853_s9] ss:$0 sm:$0xff] }
 0x6eb   : > { %8703 = vmatmul.mubr.msk.f32.gmra.mxu1 %vm1812_vm3, %v4711_v50 }
 0x6ec   : > { %8705 = vmatprep.mubr.msk.f32.mxu1 %vm1812_vm3, %v4714_v51  ;;  %v10832_v51 = vld [vmem:[%s11854_s10] ss:$0 sm:$0xff] }
 0x6ef   : > { %8706 = vmatmul.mubr.msk.f32.gmra.mxu1 %vm1812_vm3, %v4717_v53 }
 0x6f0   : > { %8708 = vmatprep.mubr.msk.f32.mxu1 %vm1812_vm3, %v4720_v38 }
 0x6f2   : > { %v10789_v0 = vpop.f32.mrf.mxu0 }
 0x6f3   : > { %8709 = vmatmul.mubr.msk.f32.gmra.mxu1 %vm1812_vm3, %v4723_v54 }
 0x6f4   : > { %8711 = vmatprep.mubr.msk.f32.mxu1 %vm1812_vm3, %v4726_v63  ;;  %v5058_v1 = vpop.f32.mrf.mxu0 }
 0x6f5   : > { %v7405_v1 = vld [vmem:[%s11855_s11 + $0x78] sm:$0xff] }
 0x6f6   : > { %7524 = vmatpush1.msra.mxu0 %v7405_v1 }
 0x6f7   : > { %8712 = vmatmul.mubr.msk.f32.gmra.mxu1 %vm1812_vm3, %v4729_v3  ;;  %v10793_v60 = vpop.f32.mrf.mxu0  ;;  %7525 = vmatprep.subr.mxu0 %v8879_v2 }
 0x6f8   : > { %8714 = vmatprep.mubr.msk.f32.mxu1 %vm1812_vm3, %v4732_v4 }
 0x6f9   : > { %v5063_v5 = vpop.f32.mrf.mxu0 }
 0x6fb   : > { %8715 = vmatmul.mubr.msk.f32.gmra.mxu1 %vm1812_vm3, %v4735_v57  ;;  %v7404_v57 = vld [vmem:[%s11855_s11 + $0x70] sm:$0xff] }
 0x6fc   : > { %7526 = vmatpush1.msra.mxu0 %v7404_v57 }
 0x6fd   : > { %7527 = vmatprep.subr.mxu0 %v8879_v2 }
 0x70a   : > { %v10797_v58 = vpop.f32.mrf.mxu0 }
 0x70c   : > { %v5068_v6 = vpop.f32.mrf.mxu0 }
 0x70f   : > { %v10799_v9 = vpop.f32.mrf.mxu0 }
 0x711   : > { %v5073_v11 = vpop.f32.mrf.mxu0 }
 0x722   : > { %v10803_v13 = vpop.f32.mrf.mxu0 }
 0x724   : > { %v5078_v15 = vpop.f32.mrf.mxu0 }
 0x727   : > { %v10805_v17 = vpop.f32.mrf.mxu0 }
 0x729   : > { %v5083_v19 = vpop.f32.mrf.mxu0 }
 0x73a   : > { %v10807_v21 = vpop.f32.mrf.mxu0 }
 0x73c   : > { %v5088_v23 = vpop.f32.mrf.mxu0 }
 0x73f   : > { %v10809_v25 = vpop.f32.mrf.mxu0 }
 0x741   : > { %v5093_v27 = vpop.f32.mrf.mxu0 }
 0x752   : > { %v10811_v28 = vpop.f32.mrf.mxu0 }
 0x754   : > { %v5098_v29 = vpop.f32.mrf.mxu0 }
 0x755   : > { %v7403_v29 = vld [vmem:[%s11855_s11 + $0x68] sm:$0xff] }
 0x756   : > { %7528 = vmatpush1.msra.mxu0 %v7403_v29 }
 0x757   : > { %7529 = vmatprep.subr.mxu0 %v8879_v2 }
 0x759   : > { %v10813_v30 = vpop.f32.mrf.mxu0 }
 0x75b   : > { %v5103_v32 = vpop.f32.mrf.mxu0 }
 0x762   : > { %v10815_v34 = vpop.f32.mrf.mxu0 }
 0x764   : > { %v5108_v35 = vpop.f32.mrf.mxu0 }
 0x767   : > { %v10817_v37 = vpop.f32.mrf.mxu1 }
 0x769   : > { %v5113_v39 = vpop.f32.mrf.mxu1 }
 0x76e   : > { %v10819_v41 = vpop.f32.mrf.mxu1 }
 0x770   : > { %v5118_v43 = vpop.f32.mrf.mxu1 }
 0x773   : > { %v10821_v44 = vpop.f32.mrf.mxu1 }
 0x775   : > { %v5123_v45 = vpop.f32.mrf.mxu1 }
 0x777   : > { %v8665_v46 = vpop.f32.mrf.mxu1 }
 0x778   : > { %v5197_v50 = vadd.f32 %v8665_v46, %v10574_v31 }
 0x779   : > { %v5191_v53 = vpop.f32.mrf.mxu1 }
 0x77a   : > { %v5378_v38 = vmul.f32 %v10826_v49, %v5197_v50  ;;  %v5192_v54 = vadd.f32 %v5191_v53, %v10568_v24 }
 0x77b   : > { %v8668_v63 = vpop.f32.mrf.mxu1 }
 0x77c   : > { %v5421_v3 = vadd.f32 %v10832_v51, %v5378_v38  ;;  %v5377_v4 = vmul.f32 %v10826_v49, %v5192_v54  ;;  %v5207_v31 = vadd.f32 %v8668_v63, %v10598_v55 }
 0x77d   : > { %v5201_v5 = vpop.f32.mrf.mxu1 }
 0x77e   : > { %vm5457_vm3 = vcmp.gt.f32.partialorder %v5421_v3, 0.0  ;;  %v5493_v24 = vmul.f32 0.2, %v5421_v3  ;;  %v5420_v6 = vadd.f32 %v10832_v51, %v5377_v4  ;;  %v5380_v11 = vmul.f32 %v10826_v49, %v5207_v31  ;;  %v7400_v31 = vld [vmem:[%s11855_s11 + $0x50] sm:$0xff] }
 0x77f   : > { %v5202_v15 = vadd.f32 %v5201_v5, %v10592_v47  ;;  %v8671_v19 = vpop.f32.mrf.mxu1  ;;  %v7402_v47 = vld [vmem:[%s11855_s11 + $0x60] sm:$0xff] }
 0x780   : > { %v5529_v55 = vsel %vm5457_vm3, %v5421_v3, %v5493_v24  ;;  %vm5456_vm4 = vcmp.gt.f32.partialorder %v5420_v6, 0.0  ;;  %v5492_v23 = vmul.f32 0.2, %v5420_v6  ;;  %v5423_v27 = vadd.f32 %v10832_v51, %v5380_v11  ;;  %7530 = vmatpush1.msra.mxu0 %v7402_v47 }
 0x781   : > { %5607 = vst.msk [vmem:[#allocation7 + $0x1b] sm:$0xff] %vm438_vm0, %v5529_v55  ;;  %v5379_v32 = vmul.f32 %v10826_v49, %v5202_v15  ;;  %v5217_v35 = vadd.f32 %v8671_v19, %v10626_v22  ;;  %v5211_v39 = vpop.f32.mrf.mxu1  ;;  %7531 = vmatprep.subr.mxu0 %v8879_v2 }
 0x782   : > { %v5528_v43 = vsel %vm5456_vm4, %v5420_v6, %v5492_v23  ;;  %vm5459_vm5 = vcmp.gt.f32.partialorder %v5423_v27, 0.0  ;;  %v5495_v45 = vmul.f32 0.2, %v5423_v27  ;;  %v5212_v46 = vadd.f32 %v5211_v39, %v10620_v14  ;;  %v7401_v14 = vld [vmem:[%s11855_s11 + $0x58] sm:$0xff]  ;;  %v7398_v39 = vld [vmem:[%s11855_s11 + $0x40] sm:$0xff] }
 0x783   : > { %5606 = vst.msk [vmem:[#allocation7 + $0x13] sm:$0xff] %vm438_vm0, %v5528_v43  ;;  %v5422_v50 = vadd.f32 %v10832_v51, %v5379_v32  ;;  %v5382_v53 = vmul.f32 %v10826_v49, %v5217_v35  ;;  %v8674_v22 = vpop.f32.mrf.mxu1  ;;  %7532 = vmatpush1.msra.mxu0 %v7401_v14 }
 0x784   : > { %v5531_v38 = vsel %vm5459_vm5, %v5423_v27, %v5495_v45  ;;  %v5381_v54 = vmul.f32 %v10826_v49, %v5212_v46  ;;  %v5227_v63 = vadd.f32 %v8674_v22, %v10659_v56  ;;  %7533 = vmatprep.subr.mxu0 %v8879_v2 }
 0x785   : > { %5610 = vst.msk [vmem:[#allocation7 + $0x2b] sm:$0xff] %vm438_vm0, %v5531_v38  ;;  %vm5458_vm6 = vcmp.gt.f32.partialorder %v5422_v50, 0.0  ;;  %v5494_v1 = vmul.f32 0.2, %v5422_v50  ;;  %v5425_v3 = vadd.f32 %v10832_v51, %v5382_v53  ;;  %v5221_v4 = vpop.f32.mrf.mxu1  ;;  %7534 = vmatpush1.msra.mxu0 %v7400_v31 }
 0x786   : > { %v5424_v56 = vadd.f32 %v10832_v51, %v5381_v54  ;;  %v5384_v5 = vmul.f32 %v10826_v49, %v5227_v63  ;;  %v5222_v57 = vadd.f32 %v5221_v4, %v10654_v48  ;;  %7535 = vmatprep.subr.mxu0 %v8879_v2  ;;  %v7399_v48 = vld [vmem:[%s11855_s11 + $0x48] sm:$0xff] }
 0x787   : > { %v5530_v24 = vsel %vm5458_vm6, %v5422_v50, %v5494_v1  ;;  %vm5461_vm13 = vcmp.gt.f32.partialorder %v5425_v3, 0.0  ;;  %v5497_v6 = vmul.f32 0.2, %v5425_v3  ;;  %v8677_v11 = vpop.f32.mrf.mxu1  ;;  %7536 = vmatpush1.msra.mxu0 %v7399_v48 }
 0x788   : > { %5609 = vst.msk [vmem:[#allocation7 + $0x23] sm:$0xfc] %vm5608_vm7, %v5530_v24  ;;  %vm5460_vm15 = vcmp.gt.f32.partialorder %v5424_v56, 0.0  ;;  %v5496_v15 = vmul.f32 0.2, %v5424_v56  ;;  %v5427_v19 = vadd.f32 %v10832_v51, %v5384_v5  ;;  %v5383_v55 = vmul.f32 %v10826_v49, %v5222_v57  ;;  %v6596_v23 = vld [vmem:[#allocation7 + $0x1c] sm:$0xff]  ;;  %7537 = vmatprep.subr.mxu0 %v8879_v2 }
 0x789   : > { %v6379_v27 = vld [vmem:[#allocation7 + $0x1b] sm:$0xff]  ;;  %v5533_v29 = vsel %vm5461_vm13, %v5425_v3, %v5497_v6  ;;  %v5237_v32 = vadd.f32 %v8677_v11, %v10675_v16  ;;  %v5231_v35 = vpop.f32.mrf.mxu1  ;;  %6669 = vrot.lane.b32.xlu0 %v6596_v23, %s8886_s27  ;;  %7538 = vmatpush1.msra.mxu0 %v7398_v39 }
 0x78a   : > { %6452 = vrot.lane.b32.xlu1 %v6379_v27, %s8881_s23  ;;  %5615 = vst.msk [vmem:[#allocation7 + $0x3b] sm:$0xff] %vm438_vm0, %v5533_v29  ;;  %v5532_v47 = vsel %vm5460_vm15, %v5424_v56, %v5496_v15  ;;  %vm5463_vm2 = vcmp.gt.f32.partialorder %v5427_v19, 0.0  ;;  %v5499_v43 = vmul.f32 0.2, %v5427_v19  ;;  %v5426_v45 = vadd.f32 %v10832_v51, %v5383_v55  ;;  %v5729_v53 = vld [vmem:[#allocation7 + $0x11] sm:$0xff]  ;;  %v5730_v63 = vld [vmem:[#allocation7 + $0x19] sm:$0xff]  ;;  %7539 = vmatprep.subr.mxu0 %v8879_v2 }
 0x78b   : > { %5612 = vst.msk [vmem:[#allocation7 + $0x33] sm:$0x3] %vm5611_vm12, %v5532_v47  ;;  %v5386_v16 = vmul.f32 %v10826_v49, %v5237_v32  ;;  %v5232_v46 = vadd.f32 %v5231_v35, %v10671_v8  ;;  %v8680_v50 = vpop.f32.mrf.mxu1  ;;  %v5657_v14 = vld [vmem:[#allocation7 + $0x10] sm:$0xff]  ;;  %v5658_v1 = vld [vmem:[#allocation7 + $0x18] sm:$0xff]  ;;  %v7396_v15 = vld [vmem:[%s11855_s11 + $0x30] sm:$0xff] }
 0x78c   : > { %5614 = vst.msk [vmem:[#allocation7 + $0x33] sm:$0xf0] %vm5613_vm14, %v5532_v47  ;;  %v5535_v22 = vsel %vm5463_vm2, %v5427_v19, %v5499_v43  ;;  %vm5462_vm3 = vcmp.gt.f32.partialorder %v5426_v45, 0.0  ;;  %v5498_v38 = vmul.f32 0.2, %v5426_v45  ;;  %v5247_v54 = vadd.f32 %v8680_v50, %v10691_v40  ;;  %v7397_v40 = vld [vmem:[%s11855_s11 + $0x38] sm:$0xff] }
 0x78d   : > { %5620 = vst.msk [vmem:[#allocation7 + $0x4b] sm:$0xff] %vm438_vm0, %v5535_v22  ;;  %v5429_v3 = vadd.f32 %v10832_v51, %v5386_v16  ;;  %v5385_v4 = vmul.f32 %v10826_v49, %v5232_v46  ;;  %v5241_v8 = vpop.f32.mrf.mxu1  ;;  %5803 = vrot.lane.b32.xlu0 %v5729_v53, %s8884_s14  ;;  %5693 = vst.msk [vmem:[#allocation8 + $0x20] sm:$0xff] %vm438_vm0, %v5657_v14  ;;  %7540 = vmatpush1.msra.mxu0 %v7397_v40  ;;  %v5946_v23 = vld [vmem:[#allocation7 + $0x12] sm:$0xff]  ;;  %v10925_v27 = vld [vmem:[#allocation7 + $0x1a] sm:$0xff] }
 0x78e   : > { %5805 = vrot.lane.b32.xlu1 %v5730_v63, %s8884_s14  ;;  %5694 = vst.msk [vmem:[#allocation8 + $0x30] sm:$0xff] %vm438_vm0, %v5658_v1  ;;  %v5534_v31 = vsel %vm5462_vm3, %v5426_v45, %v5498_v38  ;;  %v5388_v56 = vmul.f32 %v10826_v49, %v5247_v54  ;;  %v5242_v5 = vadd.f32 %v5241_v8, %v10687_v33  ;;  %v6378_v53 = vld [vmem:[#allocation7 + $0x13] sm:$0xff] }
 0x78f   : > { %5617 = vst.msk [vmem:[#allocation7 + $0x43] sm:$0xf] %vm5616_vm8, %v5534_v31  ;;  %vm5465_vm4 = vcmp.gt.f32.partialorder %v5429_v3, 0.0  ;;  %v5501_v57 = vmul.f32 0.2, %v5429_v3  ;;  %v5428_v24 = vadd.f32 %v10832_v51, %v5385_v4  ;;  %v8683_v6 = vpop.f32.mrf.mxu1  ;;  %v7246_v11 = vld [vmem:[#allocation7 + $0x26] sm:$0xff]  ;;  %7541 = vmatprep.subr.mxu0 %v8879_v2 }
 0x790   : > { %5619 = vst.msk [vmem:[#allocation7 + $0x43] sm:$0xc0] %vm5618_vm9, %v5534_v31  ;;  %v5431_v19 = vadd.f32 %v10832_v51, %v5388_v56  ;;  %v5387_v33 = vmul.f32 %v10826_v49, %v5242_v5  ;;  %v5257_v55 = vadd.f32 %v8683_v6, %v10707_v59  ;;  %7542 = vmatpush1.msra.mxu0 %v7396_v15  ;;  %v7395_v63 = vld [vmem:[%s11855_s11 + $0x28] sm:$0xff] }
 0x791   : > { %7282 = vst.msk [vmem:[#allocation8 + $0x8] sm:$0xff] %vm438_vm0, %v7246_v11  ;;  %v5537_v48 = vsel %vm5465_vm4, %v5429_v3, %v5501_v57  ;;  %vm5464_vm5 = vcmp.gt.f32.partialorder %v5428_v24, 0.0  ;;  %v5500_v29 = vmul.f32 0.2, %v5428_v24  ;;  %v5251_v32 = vpop.f32.mrf.mxu1  ;;  %6020 = vrot.lane.b32.xlu0 %v5946_v23, %s8882_s24  ;;  %7543 = vmatprep.subr.mxu0 %v8879_v2  ;;  %v5731_v57 = vld [vmem:[#allocation7 + $0x21] sm:$0xff] }
 0x792   : > { %6022 = vrot.lane.b32.xlu1 %v10925_v27, %s8882_s24  ;;  %5622 = vst.msk [vmem:[#allocation7 + $0x5b] sm:$0xff] %vm438_vm0, %v5537_v48  ;;  %vm5467_vm6 = vcmp.gt.f32.partialorder %v5431_v19, 0.0  ;;  %v5503_v59 = vmul.f32 0.2, %v5431_v19  ;;  %v5430_v35 = vadd.f32 %v10832_v51, %v5387_v33  ;;  %v5390_v39 = vmul.f32 %v10826_v49, %v5257_v55  ;;  %7544 = vmatpush1.msra.mxu0 %v7395_v63  ;;  %v7394_v33 = vld [vmem:[%s11855_s11 + $0x20] sm:$0xff]  ;;  %v10992_v63 = vld [vmem:[#allocation7 + $0x24] sm:$0xff] }
 0x793   : > { %v5536_v47 = vsel %vm5464_vm5, %v5428_v24, %v5500_v29  ;;  %v5252_v43 = vadd.f32 %v5251_v32, %v10703_v62  ;;  %v8686_v45 = vpop.f32.mrf.mxu1  ;;  %v5659_v62 = vld [vmem:[#allocation7 + $0x20] sm:$0xff]  ;;  %7545 = vmatprep.subr.mxu0 %v8879_v2  ;;  %v7393_v29 = vld [vmem:[%s11855_s11 + $0x18] sm:$0xff] }
 0x794   : > { %5621 = vst.msk [vmem:[#allocation7 + $0x53] sm:$0x3f] %vm5604_vm1, %v5536_v47  ;;  %v5539_v16 = vsel %vm5467_vm6, %v5431_v19, %v5503_v59  ;;  %vm5466_vm13 = vcmp.gt.f32.partialorder %v5430_v35, 0.0  ;;  %v5502_v46 = vmul.f32 0.2, %v5430_v35  ;;  %v5433_v50 = vadd.f32 %v10832_v51, %v5390_v39  ;;  %7546 = vmatpush1.msra.mxu0 %v7394_v33 }
 0x795   : > { %5624 = vst.msk [vmem:[#allocation7 + $0x6b] sm:$0xfc] %vm5608_vm7, %v5539_v16  ;;  %v5389_v22 = vmul.f32 %v10826_v49, %v5252_v43  ;;  %v5267_v38 = vadd.f32 %v8686_v45, %v10723_v26  ;;  %v5261_v54 = vpop.f32.mrf.mxu1  ;;  %6450 = vrot.lane.b32.xlu0 %v6378_v53, %s8881_s23  ;;  %7547 = vmatprep.subr.mxu0 %v8879_v2  ;;  %v7392_v45 = vld [vmem:[%s11855_s11 + $0x10] sm:$0xff] }
 0x796   : > { %6233 = vrot.lane.b32.xlu1 %v5946_v23, %s8887_s19  ;;  %v5538_v14 = vsel %vm5466_vm13, %v5430_v35, %v5502_v46  ;;  %vm5469_vm15 = vcmp.gt.f32.partialorder %v5433_v50, 0.0  ;;  %v5505_v1 = vmul.f32 0.2, %v5433_v50  ;;  %v5262_v3 = vadd.f32 %v5261_v54, %v10720_v20  ;;  %5695 = vst.msk [vmem:[#allocation8 + $0x40] sm:$0xff] %vm438_vm0, %v5659_v62  ;;  %v6595_v20 = vld [vmem:[#allocation7 + $0x14] sm:$0xff]  ;;  %v10973_v35 = vld [vmem:[#allocation7 + $0x22] sm:$0xff]  ;;  %7548 = vmatpush1.msra.mxu0 %v7393_v29 }
 0x797   : > { %5623 = vst.msk [vmem:[#allocation7 + $0x63] sm:$0xff] %vm438_vm0, %v5538_v14  ;;  %v5432_v26 = vadd.f32 %v10832_v51, %v5389_v22  ;;  %v5392_v4 = vmul.f32 %v10826_v49, %v5267_v38  ;;  %v8689_v8 = vpop.f32.mrf.mxu1  ;;  %7549 = vmatprep.subr.mxu0 %v8879_v2  ;;  %v5660_v22 = vld [vmem:[#allocation7 + $0x28] sm:$0xff] }
 0x798   : > { %v7319_v40 = vld [vmem:[#allocation8 + $0x8] sm:$0xff]  ;;  %v5541_v31 = vsel %vm5469_vm15, %v5433_v50, %v5505_v1  ;;  %v5391_v56 = vmul.f32 %v10826_v49, %v5262_v3  ;;  %v5277_v5 = vadd.f32 %v8689_v8, %v10747_v61  ;;  %7550 = vmatpush1.msra.mxu0 %v7392_v45  ;;  %5696 = vst.msk [vmem:[#allocation8 + $0x50] sm:$0xff] %vm438_vm0, %v5660_v22  ;;  %v7391_v1 = vld [vmem:[%s11855_s11 + $0x8] sm:$0xff]  ;;  %v5663_v22 = vld [vmem:[#allocation7 + $0x40] sm:$0xff] }
 0x799   : > { %8065 = vmatprep.mubr.msk.f32.mxu0 %vm438_vm0, %v7319_v40  ;;  %5626 = vst.msk [vmem:[#allocation7 + $0x7b] sm:$0x3] %vm5611_vm12, %v5541_v31  ;;  %vm5468_vm2 = vcmp.gt.f32.partialorder %v5432_v26, 0.0  ;;  %v5504_v24 = vmul.f32 0.2, %v5432_v26  ;;  %v5435_v6 = vadd.f32 %v10832_v51, %v5392_v4  ;;  %v5271_v11 = vpop.f32.mrf.mxu1  ;;  %5807 = vrot.lane.b32.xlu0 %v5731_v57, %s8884_s14  ;;  %v6381_v14 = vld [vmem:[#allocation7 + $0x2b] sm:$0xff] }
 0x79a   : > { %5627 = vst.msk [vmem:[#allocation7 + $0x7b] sm:$0xf0] %vm5613_vm14, %v5541_v31  ;;  %6667 = vrot.lane.b32.xlu1 %v6595_v20, %s8886_s27  ;;  %v5434_v15 = vadd.f32 %v10832_v51, %v5391_v56  ;;  %v5394_v61 = vmul.f32 %v10826_v49, %v5277_v5  ;;  %v5272_v19 = vadd.f32 %v5271_v11, %v10745_v52  ;;  %v7247_v40 = vld [vmem:[#allocation7 + $0x2e] sm:$0xff]  ;;  %v7029_v11 = vld [vmem:[#allocation7 + $0x25] sm:$0xff] }
 0x79b   : > { %v5540_v55 = vsel %vm5468_vm2, %v5432_v26, %v5504_v24  ;;  %vm5471_vm3 = vcmp.gt.f32.partialorder %v5435_v6, 0.0  ;;  %v5507_v23 = vmul.f32 0.2, %v5435_v6  ;;  %v8692_v48 = vpop.f32.mrf.mxu1  ;;  %7551 = vmatprep.subr.mxu0 %v8879_v2  ;;  %v5661_v31 = vld [vmem:[#allocation7 + $0x30] sm:$0xff]  ;;  %7283 = vst.msk [vmem:[#allocation8 + $0x18] sm:$0xff] %vm438_vm0, %v7247_v40  ;;  %5699 = vst.msk [vmem:[#allocation8 + $0x80] sm:$0xff] %vm438_vm0, %v5663_v22 }
 0x79c   : > { %5625 = vst.msk [vmem:[#allocation7 + $0x73] sm:$0xff] %vm438_vm0, %v5540_v55  ;;  %vm5470_vm4 = vcmp.gt.f32.partialorder %v5434_v15, 0.0  ;;  %v5506_v32 = vmul.f32 0.2, %v5434_v15  ;;  %v5437_v59 = vadd.f32 %v10832_v51, %v5394_v61  ;;  %v5393_v52 = vmul.f32 %v10826_v49, %v5272_v19  ;;  %7552 = vmatpush1.msra.mxu0 %v7391_v1  ;;  %v7390_v57 = vld [vmem:[%s11855_s11] sm:$0xff]  ;;  %5697 = vst.msk [vmem:[#allocation8 + $0x60] sm:$0xff] %vm438_vm0, %v5661_v31 }
 0x79d   : > { %v5543_v39 = vsel %vm5471_vm3, %v5435_v6, %v5507_v23  ;;  %v5287_v47 = vadd.f32 %v8692_v48, %v10761_v18  ;;  %v5281_v43 = vpop.f32.mrf.mxu1  ;;  %6024 = vrot.lane.b32.xlu0 %v10973_v35, %s8882_s24  ;;  %7553 = vmatprep.subr.mxu0 %v8879_v2  ;;  %v7407_v55 = vld [vmem:[%s11855_s11 + $0x88] sm:$0xff]  ;;  %v7251_v40 = vld [vmem:[#allocation7 + $0x4e] sm:$0xff] }
 0x79e   : > { %6235 = vrot.lane.b32.xlu1 %v10925_v27, %s8887_s19  ;;  %5629 = vst.msk [vmem:[#allocation7 + $0x8b] sm:$0xf] %vm5616_vm8, %v5543_v39  ;;  %v5542_v16 = vsel %vm5470_vm4, %v5434_v15, %v5506_v32  ;;  %vm5473_vm5 = vcmp.gt.f32.partialorder %v5437_v59, 0.0  ;;  %v5509_v46 = vmul.f32 0.2, %v5437_v59  ;;  %v5436_v18 = vadd.f32 %v10832_v51, %v5393_v52  ;;  %v5732_v15 = vld [vmem:[#allocation7 + $0x29] sm:$0xff]  ;;  %7554 = vmatpush1.msra.mxu0 %v7390_v57 }
 0x79f   : > { %5630 = vst.msk [vmem:[#allocation7 + $0x8b] sm:$0xc0] %vm5618_vm9, %v5543_v39  ;;  %v5396_v27 = vmul.f32 %v10826_v49, %v5287_v47  ;;  %v5282_v50 = vadd.f32 %v5281_v43, %v10757_v12  ;;  %v8695_v53 = vpop.f32.mrf.mxu1  ;;  %v5662_v23 = vld [vmem:[#allocation7 + $0x38] sm:$0xff]  ;;  %v11028_v39 = vld [vmem:[#allocation7 + $0x2a] sm:$0xff]  ;;  %7583 = vmatprep.subr.mxu0 %v8879_v2 }
 0x7a0   : > { %5628 = vst.msk [vmem:[#allocation7 + $0x83] sm:$0xff] %vm438_vm0, %v5542_v16  ;;  %v5545_v38 = vsel %vm5473_vm5, %v5437_v59, %v5509_v46  ;;  %vm5472_vm6 = vcmp.gt.f32.partialorder %v5436_v18, 0.0  ;;  %v5508_v54 = vmul.f32 0.2, %v5436_v18  ;;  %v5297_v62 = vadd.f32 %v8695_v53, %v10777_v42  ;;  %5698 = vst.msk [vmem:[#allocation8 + $0x70] sm:$0xff] %vm438_vm0, %v5662_v23  ;;  %v7248_v47 = vld [vmem:[#allocation7 + $0x36] sm:$0xff]  ;;  %7584 = vmatpush2.msra.mxu0 %v7407_v55 }
 0x7a1   : > { %5632 = vst.msk [vmem:[#allocation7 + $0x9b] sm:$0x3f] %vm5604_vm1, %v5545_v38  ;;  %v5439_v12 = vadd.f32 %v10832_v51, %v5396_v27  ;;  %v5395_v3 = vmul.f32 %v10826_v49, %v5282_v50  ;;  %v5291_v26 = vpop.f32.mrf.mxu1  ;;  %6884 = vrot.lane.b32.xlu0 %v10992_v63, %s8883_s18  ;;  %v7406_v46 = vld [vmem:[%s11855_s11 + $0x80] sm:$0xff]  ;;  %7585 = vmatprep.subr.mxu0 %v8879_v2  ;;  %v5666_v1 = vld [vmem:[#allocation7 + $0x58] sm:$0xff] }
 0x7a2   : > { %6456 = vrot.lane.b32.xlu1 %v6381_v14, %s8881_s23  ;;  %v5544_v42 = vsel %vm5472_vm6, %v5436_v18, %v5508_v54  ;;  %v5398_v4 = vmul.f32 %v10826_v49, %v5297_v62  ;;  %v5292_v8 = vadd.f32 %v5291_v26, %v10773_v36  ;;  %7284 = vst.msk [vmem:[#allocation8 + $0x28] sm:$0xff] %vm438_vm0, %v7248_v47  ;;  %v7249_v18 = vld [vmem:[#allocation7 + $0x3e] sm:$0xff]  ;;  %5702 = vst.msk [vmem:[#allocation8 + $0xb0] sm:$0xff] %vm438_vm0, %v5666_v1  ;;  %v11085_v47 = vld [vmem:[#allocation7 + $0x32] sm:$0xff] }
 0x7a3   : > { %5631 = vst.msk [vmem:[#allocation7 + $0x93] sm:$0xff] %vm438_vm0, %v5544_v42  ;;  %vm5475_vm13 = vcmp.gt.f32.partialorder %v5439_v12, 0.0  ;;  %v5511_v56 = vmul.f32 0.2, %v5439_v12  ;;  %v5438_v5 = vadd.f32 %v10832_v51, %v5395_v3  ;;  %v8698_v20 = vpop.f32.mrf.mxu1  ;;  %7285 = vst.msk [vmem:[#allocation8 + $0x38] sm:$0xff] %vm438_vm0, %v7249_v18  ;;  %7586 = vmatpush2.msra.mxu0 %v7406_v46 }
 0x7a4   : > { %v5441_v36 = vadd.f32 %v10832_v51, %v5398_v4  ;;  %v5397_v24 = vmul.f32 %v10826_v49, %v5292_v8  ;;  %v5307_v6 = vadd.f32 %v8698_v20, %v10793_v60  ;;  %7287 = vst.msk [vmem:[#allocation8 + $0x58] sm:$0xff] %vm438_vm0, %v7251_v40 }
 0x7a5   : > { %v5547_v61 = vsel %vm5475_vm13, %v5439_v12, %v5511_v56  ;;  %vm5474_vm15 = vcmp.gt.f32.partialorder %v5438_v5, 0.0  ;;  %v5510_v19 = vmul.f32 0.2, %v5438_v5  ;;  %v5301_v33 = vpop.f32.mrf.mxu1  ;;  %7101 = vrot.lane.b32.xlu0 %v7029_v11, %s8885_s22  ;;  %v7250_v12 = vld [vmem:[#allocation7 + $0x46] sm:$0xff]  ;;  %v5733_v11 = vld [vmem:[#allocation7 + $0x31] sm:$0xff] }
 0x7a6   : > { %5809 = vrot.lane.b32.xlu1 %v5732_v15, %s8884_s14  ;;  %5634 = vst.msk [vmem:[#allocation7 + $0xab] sm:$0xff] %vm438_vm0, %v5547_v61  ;;  %vm5477_vm2 = vcmp.gt.f32.partialorder %v5441_v36, 0.0  ;;  %v5513_v60 = vmul.f32 0.2, %v5441_v36  ;;  %v5440_v48 = vadd.f32 %v10832_v51, %v5397_v24  ;;  %v5400_v29 = vmul.f32 %v10826_v49, %v5307_v6  ;;  %7286 = vst.msk [vmem:[#allocation8 + $0x48] sm:$0xff] %vm438_vm0, %v7250_v12  ;;  %v7253_v24 = vld [vmem:[#allocation7 + $0x5e] sm:$0xff] }
 0x7a7   : > { %v5546_v32 = vsel %vm5474_vm15, %v5438_v5, %v5510_v19  ;;  %v5302_v59 = vadd.f32 %v5301_v33, %v10789_v0  ;;  %v8701_v52 = vpop.f32.mrf.mxu1  ;;  %v5664_v0 = vld [vmem:[#allocation7 + $0x48] sm:$0xff]  ;;  %v7252_v5 = vld [vmem:[#allocation7 + $0x56] sm:$0xff]  ;;  %7289 = vst.msk [vmem:[#allocation8 + $0x78] sm:$0xff] %vm438_vm0, %v7253_v24 }
 0x7a8   : > { %5633 = vst.msk [vmem:[#allocation7 + $0xa3] sm:$0xff] %vm438_vm0, %v5546_v32  ;;  %v5549_v43 = vsel %vm5477_vm2, %v5441_v36, %v5513_v60  ;;  %vm5476_vm3 = vcmp.gt.f32.partialorder %v5440_v48, 0.0  ;;  %v5512_v45 = vmul.f32 0.2, %v5440_v48  ;;  %v5443_v16 = vadd.f32 %v10832_v51, %v5400_v29  ;;  %5700 = vst.msk [vmem:[#allocation8 + $0x90] sm:$0xff] %vm438_vm0, %v5664_v0  ;;  %v5668_v15 = vld [vmem:[#allocation7 + $0x68] sm:$0xff] }
 0x7a9   : > { %5636 = vst.msk [vmem:[#allocation7 + $0xbb] sm:$0xff] %vm438_vm0, %v5549_v43  ;;  %v5399_v27 = vmul.f32 %v10826_v49, %v5302_v59  ;;  %v5317_v50 = vadd.f32 %v8701_v52, %v10799_v9  ;;  %v5311_v53 = vpop.f32.mrf.mxu1  ;;  %6237 = vrot.lane.b32.xlu0 %v10973_v35, %s8887_s19  ;;  %7288 = vst.msk [vmem:[#allocation8 + $0x68] sm:$0xff] %vm438_vm0, %v7252_v5  ;;  %v6383_v43 = vld [vmem:[#allocation7 + $0x3b] sm:$0xff] }
 0x7aa   : > { %6026 = vrot.lane.b32.xlu1 %v11028_v39, %s8882_s24  ;;  %v5548_v38 = vsel %vm5476_vm3, %v5440_v48, %v5512_v45  ;;  %vm5479_vm4 = vcmp.gt.f32.partialorder %v5443_v16, 0.0  ;;  %v5515_v54 = vmul.f32 0.2, %v5443_v16  ;;  %v5312_v62 = vadd.f32 %v5311_v53, %v10797_v58  ;;  %v6380_v58 = vld [vmem:[#allocation7 + $0x23] sm:$0xff]  ;;  %5704 = vst.msk [vmem:[#allocation8 + $0xd0] sm:$0xff] %vm438_vm0, %v5668_v15  ;;  %v5665_v48 = vld [vmem:[#allocation7 + $0x50] sm:$0xff] }
 0x7ab   : > { %5635 = vst.msk [vmem:[#allocation7 + $0xb3] sm:$0xfc] %vm5608_vm7, %v5548_v38  ;;  %v5442_v9 = vadd.f32 %v10832_v51, %v5399_v27  ;;  %v5402_v35 = vmul.f32 %v10826_v49, %v5317_v50  ;;  %v8704_v14 = vpop.f32.mrf.mxu1  ;;  %v7254_v45 = vld [vmem:[#allocation7 + $0x66] sm:$0xff]  ;;  %v5670_v27 = vld [vmem:[#allocation7 + $0x78] sm:$0xff] }
 0x7ac   : > { %v5551_v3 = vsel %vm5479_vm4, %v5443_v16, %v5515_v54  ;;  %v5401_v26 = vmul.f32 %v10826_v49, %v5312_v62  ;;  %v5327_v42 = vadd.f32 %v8704_v14, %v10805_v17  ;;  %5701 = vst.msk [vmem:[#allocation8 + $0xa0] sm:$0xff] %vm438_vm0, %v5665_v48  ;;  %7290 = vst.msk [vmem:[#allocation8 + $0x88] sm:$0xff] %vm438_vm0, %v7254_v45  ;;  %v5667_v38 = vld [vmem:[#allocation7 + $0x60] sm:$0xff]  ;;  %v7255_v54 = vld [vmem:[#allocation7 + $0x6e] sm:$0xff] }
 0x7ad   : > { %5639 = vst.msk [vmem:[#allocation7 + $0xcb] sm:$0xff] %vm438_vm0, %v5551_v3  ;;  %vm5478_vm5 = vcmp.gt.f32.partialorder %v5442_v9, 0.0  ;;  %v5514_v2 = vmul.f32 0.2, %v5442_v9  ;;  %v5445_v4 = vadd.f32 %v10832_v51, %v5402_v35  ;;  %v5321_v8 = vpop.f32.mrf.mxu1  ;;  %6454 = vrot.lane.b32.xlu0 %v6380_v58, %s8881_s23  ;;  %5706 = vst.msk [vmem:[#allocation8 + $0xf0] sm:$0xff] %vm438_vm0, %v5670_v27  ;;  %v11102_v14 = vld [vmem:[#allocation7 + $0x34] sm:$0xff] }
 0x7ae   : > { %6671 = vrot.lane.b32.xlu1 %v10992_v63, %s8886_s27  ;;  %v5444_v17 = vadd.f32 %v10832_v51, %v5401_v26  ;;  %v5404_v31 = vmul.f32 %v10826_v49, %v5327_v42  ;;  %v5322_v56 = vadd.f32 %v5321_v8, %v10803_v13  ;;  %5703 = vst.msk [vmem:[#allocation8 + $0xc0] sm:$0xff] %vm438_vm0, %v5667_v38  ;;  %7291 = vst.msk [vmem:[#allocation8 + $0x98] sm:$0xff] %vm438_vm0, %v7255_v54  ;;  %v7256_v26 = vld [vmem:[#allocation7 + $0x76] sm:$0xff] }
 0x7af   : > { %v5550_v20 = vsel %vm5478_vm5, %v5442_v9, %v5514_v2  ;;  %vm5481_vm6 = vcmp.gt.f32.partialorder %v5445_v4, 0.0  ;;  %v5517_v57 = vmul.f32 0.2, %v5445_v4  ;;  %v8707_v36 = vpop.f32.mrf.mxu1  ;;  %7292 = vst.msk [vmem:[#allocation8 + $0xa8] sm:$0xff] %vm438_vm0, %v7256_v26  ;;  %v7257_v2 = vld [vmem:[#allocation7 + $0x7e] sm:$0xff]  ;;  %v5673_v45 = vld [vmem:[#allocation7 + $0x90] sm:$0xff] }
 0x7b0   : > { %5637 = vst.msk [vmem:[#allocation7 + $0xc3] sm:$0x3] %vm5611_vm12, %v5550_v20  ;;  %vm5480_vm13 = vcmp.gt.f32.partialorder %v5444_v17, 0.0  ;;  %v5516_v63 = vmul.f32 0.2, %v5444_v17  ;;  %v5447_v6 = vadd.f32 %v10832_v51, %v5404_v31  ;;  %v5403_v13 = vmul.f32 %v10826_v49, %v5322_v56 }
 0x7b1   : > { %5638 = vst.msk [vmem:[#allocation7 + $0xc3] sm:$0xf0] %vm5613_vm14, %v5550_v20  ;;  %v5553_v61 = vsel %vm5481_vm6, %v5445_v4, %v5517_v57  ;;  %v5337_v19 = vadd.f32 %v8707_v36, %v10809_v25  ;;  %v5331_v33 = vpop.f32.mrf.mxu1  ;;  %5811 = vrot.lane.b32.xlu0 %v5733_v11, %s8884_s14  ;;  %v7031_v20 = vld [vmem:[#allocation7 + $0x35] sm:$0xff]  ;;  %v6813_v57 = vld [vmem:[#allocation7 + $0x2c] sm:$0xff] }
 0x7b2   : > { %6239 = vrot.lane.b32.xlu1 %v11028_v39, %s8887_s19  ;;  %5642 = vst.msk [vmem:[#allocation7 + $0xdb] sm:$0xff] %vm438_vm0, %v5553_v61  ;;  %v5552_v55 = vsel %vm5480_vm13, %v5444_v17, %v5516_v63  ;;  %vm5483_vm15 = vcmp.gt.f32.partialorder %v5447_v6, 0.0  ;;  %v5519_v23 = vmul.f32 0.2, %v5447_v6  ;;  %v5446_v60 = vadd.f32 %v10832_v51, %v5403_v13  ;;  %7293 = vst.msk [vmem:[#allocation8 + $0xb8] sm:$0xff] %vm438_vm0, %v7257_v2  ;;  %v5672_v17 = vld [vmem:[#allocation7 + $0x88] sm:$0xff] }
 0x7b3   : > { %5640 = vst.msk [vmem:[#allocation7 + $0xd3] sm:$0xf] %vm5616_vm8, %v5552_v55  ;;  %v5406_v25 = vmul.f32 %v10826_v49, %v5337_v19  ;;  %v5332_v29 = vadd.f32 %v5331_v33, %v10807_v21  ;;  %v8710_v32 = vpop.f32.mrf.mxu1  ;;  %v5669_v36 = vld [vmem:[#allocation7 + $0x70] sm:$0xff]  ;;  %v7258_v19 = vld [vmem:[#allocation7 + $0x86] sm:$0xff]  ;;  %v5678_v27 = vld [vmem:[#allocation7 + $0xb8] sm:$0xff]  ;;  %vm6775_vm13 = vcmask 786048  }
 0x7b4   : > { %5641 = vst.msk [vmem:[#allocation7 + $0xd3] sm:$0xc0] %vm5618_vm9, %v5552_v55  ;;  %v5555_v59 = vsel %vm5483_vm15, %v5447_v6, %v5519_v23  ;;  %vm5482_vm2 = vcmp.gt.f32.partialorder %v5446_v60, 0.0  ;;  %v5518_v52 = vmul.f32 0.2, %v5446_v60  ;;  %v5347_v39 = vadd.f32 %v8710_v32, %v10813_v30  ;;  %v7030_v23 = vld [vmem:[#allocation7 + $0x2d] sm:$0xff] }
 0x7b5   : > { %5644 = vst.msk [vmem:[#allocation7 + $0xeb] sm:$0xff] %vm438_vm0, %v5555_v59  ;;  %v5449_v16 = vadd.f32 %v10832_v51, %v5406_v25  ;;  %v5405_v46 = vmul.f32 %v10826_v49, %v5332_v29  ;;  %v5341_v0 = vpop.f32.mrf.mxu1  ;;  %6028 = vrot.lane.b32.xlu0 %v11085_v47, %s8882_s24  ;;  %5708 = vst.msk [vmem:[#allocation8 + $0x110] sm:$0xff] %vm438_vm0, %v5672_v17  ;;  %v5671_v25 = vld [vmem:[#allocation7 + $0x80] sm:$0xff]  ;;  %vm6992_vm15 = vcmask 917248  }
 0x7b6   : > { %6460 = vrot.lane.b32.xlu1 %v6383_v43, %s8881_s23  ;;  %v5554_v21 = vsel %vm5482_vm2, %v5446_v60, %v5518_v52  ;;  %v5408_v30 = vmul.f32 %v10826_v49, %v5347_v39  ;;  %v5342_v18 = vadd.f32 %v5341_v0, %v10811_v28  ;;  %v5734_v28 = vld [vmem:[#allocation7 + $0x39] sm:$0xff]  ;;  %5705 = vst.msk [vmem:[#allocation8 + $0xe0] sm:$0xff] %vm438_vm0, %v5669_v36  ;;  %7294 = vst.msk [vmem:[#allocation8 + $0xc8] sm:$0xff] %vm438_vm0, %v7258_v19  ;;  %v7262_v0 = vld [vmem:[#allocation7 + $0xa6] sm:$0xff]  ;;  %vm7209_vm2 = vcmask 1048448  }
 0x7b7   : > { %5643 = vst.msk [vmem:[#allocation7 + $0xe3] sm:$0x3f] %vm5604_vm1, %v5554_v21  ;;  %vm5485_vm3 = vcmp.gt.f32.partialorder %v5449_v16, 0.0  ;;  %v5521_v50 = vmul.f32 0.2, %v5449_v16  ;;  %v5448_v53 = vadd.f32 %v10832_v51, %v5405_v46  ;;  %v8713_v22 = vpop.f32.mrf.mxu1  ;;  %v5674_v60 = vld [vmem:[#allocation7 + $0x98] sm:$0xff] }
 0x7b8   : > { %v5451_v62 = vadd.f32 %v10832_v51, %v5408_v30  ;;  %v5407_v9 = vmul.f32 %v10826_v49, %v5342_v18  ;;  %v5357_v35 = vadd.f32 %v8713_v22, %v10817_v37  ;;  %5710 = vst.msk [vmem:[#allocation8 + $0x130] sm:$0xff] %vm438_vm0, %v5674_v60  ;;  %5707 = vst.msk [vmem:[#allocation8 + $0x100] sm:$0xff] %vm438_vm0, %v5671_v25  ;;  %v7260_v52 = vld [vmem:[#allocation7 + $0x96] sm:$0xff]  ;;  %v5675_v21 = vld [vmem:[#allocation7 + $0xa0] sm:$0xff] }
 0x7b9   : > { %v5557_v1 = vsel %vm5485_vm3, %v5449_v16, %v5521_v50  ;;  %vm5484_vm4 = vcmp.gt.f32.partialorder %v5448_v53, 0.0  ;;  %v5520_v12 = vmul.f32 0.2, %v5448_v53  ;;  %v5351_v3 = vpop.f32.mrf.mxu1  ;;  %6888 = vrot.lane.b32.xlu0 %v11102_v14, %s8883_s18  ;;  %7296 = vst.msk [vmem:[#allocation8 + $0xe8] sm:$0xff] %vm438_vm0, %v7260_v52  ;;  %5709 = vst.msk [vmem:[#allocation8 + $0x120] sm:$0xff] %vm438_vm0, %v5673_v45  ;;  %v6382_v16 = vld [vmem:[#allocation7 + $0x33] sm:$0xff] }
 0x7ba   : > { %5813 = vrot.lane.b32.xlu1 %v5734_v28, %s8884_s14  ;;  %5646 = vst.msk [vmem:[#allocation7 + $0xfb] sm:$0xfc] %vm5608_vm7, %v5557_v1  ;;  %vm5487_vm5 = vcmp.gt.f32.partialorder %v5451_v62, 0.0  ;;  %v5523_v37 = vmul.f32 0.2, %v5451_v62  ;;  %v5450_v42 = vadd.f32 %v10832_v51, %v5407_v9  ;;  %v5410_v58 = vmul.f32 %v10826_v49, %v5357_v35  ;;  %v6166_v46 = vld [vmem:[#allocation7 + $0x3a] sm:$0xff] }
 0x7bb   : > { %v5556_v4 = vsel %vm5484_vm4, %v5448_v53, %v5520_v12  ;;  %v5352_v8 = vadd.f32 %v5351_v3, %v10815_v34  ;;  %v8716_v40 = vpop.f32.mrf.mxu1  ;;  %7298 = vst.msk [vmem:[#allocation8 + $0x108] sm:$0xff] %vm438_vm0, %v7262_v0  ;;  %v5736_v30 = vld [vmem:[#allocation7 + $0x49] sm:$0xff]  ;;  %5711 = vst.msk [vmem:[#allocation8 + $0x140] sm:$0xff] %vm438_vm0, %v5675_v21  ;;  %v7264_v53 = vld [vmem:[#allocation7 + $0xb6] sm:$0xff]  ;;  %vm7804_vm3 = vcmask 31744   ;;  %vm7807_vm4 = vcmask 31746  }
 0x7bc   : > { %5645 = vst.msk [vmem:[#allocation7 + $0xf3] sm:$0xff] %vm438_vm0, %v5556_v4  ;;  %v5559_v31 = vsel %vm5487_vm5, %v5451_v62, %v5523_v37  ;;  %vm5486_vm7 = vcmp.gt.f32.partialorder %v5450_v42, 0.0  ;;  %v5522_v56 = vmul.f32 0.2, %v5450_v42  ;;  %v5453_v5 = vadd.f32 %v10832_v51, %v5410_v58  ;;  %v7263_v18 = vld [vmem:[#allocation7 + $0xae] sm:$0xff]  ;;  %5714 = vst.msk [vmem:[#allocation8 + $0x170] sm:$0xff] %vm438_vm0, %v5678_v27 }
 0x7bd   : > { %5648 = vst.msk [vmem:[#allocation7 + $0x10b] sm:$0x3] %vm5611_vm12, %v5559_v31  ;;  %v5409_v34 = vmul.f32 %v10826_v49, %v5352_v8  ;;  %v5367_v24 = vadd.f32 %v8716_v40, %v10821_v44  ;;  %v5361_v63 = vpop.f32.mrf.mxu1  ;;  %7105 = vrot.lane.b32.xlu0 %v7031_v20, %s8885_s22  ;;  %v7259_v44 = vld [vmem:[#allocation7 + $0x8e] sm:$0xff]  ;;  %v6815_v22 = vld [vmem:[#allocation7 + $0x3c] sm:$0xff]  ;;  %v6816_v3 = vld [vmem:[#allocation7 + $0x44] sm:$0xff]  ;;  %vm7810_vm5 = vcmask 25600  }
 0x7be   : > { %5649 = vst.msk [vmem:[#allocation7 + $0x10b] sm:$0xf0] %vm5613_vm14, %v5559_v31  ;;  %6886 = vrot.lane.b32.xlu1 %v6813_v57, %s8883_s18  ;;  %v5558_v6 = vsel %vm5486_vm7, %v5450_v42, %v5522_v56  ;;  %vm5489_vm6 = vcmp.gt.f32.partialorder %v5453_v5, 0.0  ;;  %v5525_v13 = vmul.f32 0.2, %v5453_v5  ;;  %v5362_v11 = vadd.f32 %v5361_v63, %v10819_v41  ;;  %v6385_v50 = vld [vmem:[#allocation7 + $0x4b] sm:$0xff] }
 0x7bf   : > { %5647 = vst.msk [vmem:[#allocation7 + $0x103] sm:$0xff] %vm438_vm0, %v5558_v6  ;;  %v5452_v15 = vadd.f32 %v10832_v51, %v5409_v34  ;;  %v5412_v61 = vmul.f32 %v10826_v49, %v5367_v24  ;;  %7295 = vst.msk [vmem:[#allocation8 + $0xd8] sm:$0xff] %vm438_vm0, %v7259_v44  ;;  %v5680_v38 = vld [vmem:[#allocation7 + $0xc8] sm:$0xff]  ;;  %v7265_v54 = vld [vmem:[#allocation7 + $0xbe] sm:$0xff]  ;;  %vm7812_vm7 = vcmask 31748  }
 0x7c0   : > { %v5561_v33 = vsel %vm5489_vm6, %v5453_v5, %v5525_v13  ;;  %v5411_v55 = vmul.f32 %v10826_v49, %v5362_v11  ;;  %7299 = vst.msk [vmem:[#allocation8 + $0x118] sm:$0xff] %vm438_vm0, %v7263_v18  ;;  %7300 = vst.msk [vmem:[#allocation8 + $0x128] sm:$0xff] %vm438_vm0, %v7264_v53  ;;  %v5677_v62 = vld [vmem:[#allocation7 + $0xb0] sm:$0xff]  ;;  %v5735_v9 = vld [vmem:[#allocation7 + $0x41] sm:$0xff]  ;;  %vm7815_vm6 = vcmask 27648  }
 0x7c1   : > { %5651 = vst.msk [vmem:[#allocation7 + $0x11b] sm:$0xf] %vm5616_vm8, %v5561_v33  ;;  %vm5488_vm12 = vcmp.gt.f32.partialorder %v5452_v15, 0.0  ;;  %v5524_v41 = vmul.f32 0.2, %v5452_v15  ;;  %v5455_v48 = vadd.f32 %v10832_v51, %v5412_v61  ;;  %6673 = vrot.lane.b32.xlu0 %v6813_v57, %s8886_s27  ;;  %v7032_v35 = vld [vmem:[#allocation7 + $0x3d] sm:$0xff] }
 0x7c2   : > { %5652 = vst.msk [vmem:[#allocation7 + $0x11b] sm:$0xc0] %vm5618_vm9, %v5561_v33  ;;  %7103 = vrot.lane.b32.xlu1 %v7030_v23, %s8885_s22  ;;  %v5454_v49 = vadd.f32 %v10832_v51, %v5411_v55  ;;  %v7261_v51 = vld [vmem:[#allocation7 + $0x9e] sm:$0xff]  ;;  %v7267_v28 = vld [vmem:[#allocation7 + $0xce] sm:$0xff]  ;;  %v7268_v26 = vld [vmem:[#allocation7 + $0xd6] sm:$0xff]  ;;  %vm6558_vm9 = vcmask 654848  }
 0x7c3   : > { %v5560_v29 = vsel %vm5488_vm12, %v5452_v15, %v5524_v41  ;;  %vm5491_vm14 = vcmp.gt.f32.partialorder %v5455_v48, 0.0  ;;  %v5527_v32 = vmul.f32 0.2, %v5455_v48  ;;  %7297 = vst.msk [vmem:[#allocation8 + $0xf8] sm:$0xff] %vm438_vm0, %v7261_v51  ;;  %5716 = vst.msk [vmem:[#allocation8 + $0x190] sm:$0xff] %vm438_vm0, %v5680_v38  ;;  %v5682_v1 = vld [vmem:[#allocation7 + $0xd8] sm:$0xff] }
 0x7c4   : > { %5650 = vst.msk [vmem:[#allocation7 + $0x113] sm:$0xff] %vm438_vm0, %v5560_v29  ;;  %vm5490_vm8 = vcmp.gt.f32.partialorder %v5454_v49, 0.0  ;;  %v5526_v59 = vmul.f32 0.2, %v5454_v49  ;;  %7301 = vst.msk [vmem:[#allocation8 + $0x138] sm:$0xff] %vm438_vm0, %v7265_v54  ;;  %v5679_v12 = vld [vmem:[#allocation7 + $0xc0] sm:$0xff] }
 0x7c5   : > { %v5563_v39 = vsel %vm5491_vm14, %v5455_v48, %v5527_v32  ;;  %6241 = vrot.lane.b32.xlu0 %v11085_v47, %s8887_s19  ;;  %v5676_v47 = vld [vmem:[#allocation7 + $0xa8] sm:$0xff]  ;;  %5713 = vst.msk [vmem:[#allocation8 + $0x160] sm:$0xff] %vm438_vm0, %v5677_v62  ;;  %7303 = vst.msk [vmem:[#allocation8 + $0x158] sm:$0xff] %vm438_vm0, %v7267_v28  ;;  %v7269_v37 = vld [vmem:[#allocation7 + $0xde] sm:$0xff]  ;;  %vm7817_vm12 = vcmask 31750   ;;  %vm7820_vm14 = vcmask 29696  }
 0x7c6   : > { %6675 = vrot.lane.b32.xlu1 %v11102_v14, %s8886_s27  ;;  %5654 = vst.msk [vmem:[#allocation7 + $0x12b] sm:$0x3f] %vm5604_vm1, %v5563_v39  ;;  %v5562_v43 = vsel %vm5490_vm8, %v5454_v49, %v5526_v59  ;;  %v7266_v14 = vld [vmem:[#allocation7 + $0xc6] sm:$0xff]  ;;  %v5738_v2 = vld [vmem:[#allocation7 + $0x59] sm:$0xff]  ;;  %v5681_v4 = vld [vmem:[#allocation7 + $0xd0] sm:$0xff]  ;;  %vm6341_vm1 = vcmask 523648  }
 0x7c7   : > { %5653 = vst.msk [vmem:[#allocation7 + $0x123] sm:$0xff] %vm438_vm0, %v5562_v43  ;;  %5712 = vst.msk [vmem:[#allocation8 + $0x150] sm:$0xff] %vm438_vm0, %v5676_v47  ;;  %v5684_v42 = vld [vmem:[#allocation7 + $0xe8] sm:$0xff]  ;;  %v5686_v31 = vld [vmem:[#allocation7 + $0xf8] sm:$0xff] }
 0x7c8   : > { %7302 = vst.msk [vmem:[#allocation8 + $0x148] sm:$0xff] %vm438_vm0, %v7266_v14  ;;  %5718 = vst.msk [vmem:[#allocation8 + $0x1b0] sm:$0xff] %vm438_vm0, %v5682_v1  ;;  %v7033_v58 = vld [vmem:[#allocation7 + $0x45] sm:$0xff]  ;;  %v7271_v17 = vld [vmem:[#allocation7 + $0xee] sm:$0xff] }
 0x7c9   : > { %6458 = vrot.lane.b32.xlu0 %v6382_v16, %s8881_s23  ;;  %5715 = vst.msk [vmem:[#allocation8 + $0x180] sm:$0xff] %vm438_vm0, %v5679_v12  ;;  %7304 = vst.msk [vmem:[#allocation8 + $0x168] sm:$0xff] %vm438_vm0, %v7268_v26  ;;  %v7270_v8 = vld [vmem:[#allocation7 + $0xe6] sm:$0xff]  ;;  %v7272_v57 = vld [vmem:[#allocation7 + $0xf6] sm:$0xff] }
 0x7ca   : > { %6243 = vrot.lane.b32.xlu1 %v6166_v46, %s8887_s19  ;;  %7305 = vst.msk [vmem:[#allocation8 + $0x178] sm:$0xff] %vm438_vm0, %v7269_v37  ;;  %5720 = vst.msk [vmem:[#allocation8 + $0x1d0] sm:$0xff] %vm438_vm0, %v5684_v42  ;;  %v6817_v40 = vld [vmem:[#allocation7 + $0x4c] sm:$0xff]  ;;  %v6167_v56 = vld [vmem:[#allocation7 + $0x42] sm:$0xff] }
 0x7cb   : > { %5717 = vst.msk [vmem:[#allocation8 + $0x1a0] sm:$0xff] %vm438_vm0, %v5681_v4  ;;  %7306 = vst.msk [vmem:[#allocation8 + $0x188] sm:$0xff] %vm438_vm0, %v7270_v8  ;;  %v7034_v5 = vld [vmem:[#allocation7 + $0x4d] sm:$0xff]  ;;  %v5683_v20 = vld [vmem:[#allocation7 + $0xe0] sm:$0xff] }
 0x7cc   : > { %7307 = vst.msk [vmem:[#allocation8 + $0x198] sm:$0xff] %vm438_vm0, %v7271_v17  ;;  %5722 = vst.msk [vmem:[#allocation8 + $0x1f0] sm:$0xff] %vm438_vm0, %v5686_v31  ;;  %v5688_v36 = vld [vmem:[#allocation7 + $0x108] sm:$0xff]  ;;  %v5685_v34 = vld [vmem:[#allocation7 + $0xf0] sm:$0xff] }
 0x7cd   : > { %6030 = vrot.lane.b32.xlu0 %v6166_v46, %s8882_s24  ;;  %5719 = vst.msk [vmem:[#allocation8 + $0x1c0] sm:$0xff] %vm438_vm0, %v5683_v20  ;;  %7308 = vst.msk [vmem:[#allocation8 + $0x1a8] sm:$0xff] %vm438_vm0, %v7272_v57  ;;  %v7273_v24 = vld [vmem:[#allocation7 + $0xfe] sm:$0xff]  ;;  %v7274_v63 = vld [vmem:[#allocation7 + $0x106] sm:$0xff] }
 0x7ce   : > { %5817 = vrot.lane.b32.xlu1 %v5736_v30, %s8884_s14  ;;  %5724 = vst.msk [vmem:[#allocation8 + $0x210] sm:$0xff] %vm438_vm0, %v5688_v36  ;;  %5721 = vst.msk [vmem:[#allocation8 + $0x1e0] sm:$0xff] %vm438_vm0, %v5685_v34  ;;  %v7275_v6 = vld [vmem:[#allocation7 + $0x10e] sm:$0xff]  ;;  %v5690_v13 = vld [vmem:[#allocation7 + $0x118] sm:$0xff] }
 0x7cf   : > { %7309 = vst.msk [vmem:[#allocation8 + $0x1b8] sm:$0xff] %vm438_vm0, %v7273_v24  ;;  %7310 = vst.msk [vmem:[#allocation8 + $0x1c8] sm:$0xff] %vm438_vm0, %v7274_v63  ;;  %v5687_v11 = vld [vmem:[#allocation7 + $0x100] sm:$0xff]  ;;  %v7276_v15 = vld [vmem:[#allocation7 + $0x116] sm:$0xff] }
 0x7d0   : > { %7311 = vst.msk [vmem:[#allocation8 + $0x1d8] sm:$0xff] %vm438_vm0, %v7275_v6  ;;  %5726 = vst.msk [vmem:[#allocation8 + $0x230] sm:$0xff] %vm438_vm0, %v5690_v13  ;;  %v7277_v61 = vld [vmem:[#allocation7 + $0x11e] sm:$0xff]  ;;  %v5689_v19 = vld [vmem:[#allocation7 + $0x110] sm:$0xff] }
 0x7d1   : > { %6464 = vrot.lane.b32.xlu0 %v6385_v50, %s8881_s23  ;;  %5723 = vst.msk [vmem:[#allocation8 + $0x200] sm:$0xff] %vm438_vm0, %v5687_v11  ;;  %7312 = vst.msk [vmem:[#allocation8 + $0x1e8] sm:$0xff] %vm438_vm0, %v7276_v15  ;;  %v7278_v44 = vld [vmem:[#allocation7 + $0x126] sm:$0xff]  ;;  %v7279_v33 = vld [vmem:[#allocation7 + $0x12e] sm:$0xff] }
 0x7d2   : > { %6890 = vrot.lane.b32.xlu1 %v6815_v22, %s8883_s18  ;;  %7313 = vst.msk [vmem:[#allocation8 + $0x1f8] sm:$0xff] %vm438_vm0, %v7277_v61  ;;  %5725 = vst.msk [vmem:[#allocation8 + $0x220] sm:$0xff] %vm438_vm0, %v5689_v19  ;;  %v6384_v55 = vld [vmem:[#allocation7 + $0x43] sm:$0xff]  ;;  %v6818_v23 = vld [vmem:[#allocation7 + $0x54] sm:$0xff] }
 0x7d3   : > { %7314 = vst.msk [vmem:[#allocation8 + $0x208] sm:$0xff] %vm438_vm0, %v7278_v44  ;;  %7315 = vst.msk [vmem:[#allocation8 + $0x218] sm:$0xff] %vm438_vm0, %v7279_v33  ;;  %v6168_v60 = vld [vmem:[#allocation7 + $0x4a] sm:$0xff]  ;;  %v7035_v41 = vld [vmem:[#allocation7 + $0x55] sm:$0xff] }
 0x7d4   : > { %v6170_v48 = vld [vmem:[#allocation7 + $0x5a] sm:$0xff]  ;;  %v5740_v49 = vld [vmem:[#allocation7 + $0x69] sm:$0xff]  ;;  %v5737_v16 = vld [vmem:[#allocation7 + $0x51] sm:$0xff] }
 0x7d5   : > { %5815 = vrot.lane.b32.xlu0 %v5735_v9, %s8884_s14  ;;  %v6387_v32 = vld [vmem:[#allocation7 + $0x5b] sm:$0xff]  ;;  %v6820_v46 = vld [vmem:[#allocation7 + $0x64] sm:$0xff]  ;;  %v6169_v21 = vld [vmem:[#allocation7 + $0x52] sm:$0xff] }
 0x7d6   : > { %7107 = vrot.lane.b32.xlu1 %v7032_v35, %s8885_s22  ;;  %v6819_v59 = vld [vmem:[#allocation7 + $0x5c] sm:$0xff]  ;;  %v7037_v30 = vld [vmem:[#allocation7 + $0x65] sm:$0xff]  ;;  %v6386_v50 = vld [vmem:[#allocation7 + $0x53] sm:$0xff] }
 0x7d7   : > { %v7036_v51 = vld [vmem:[#allocation7 + $0x5d] sm:$0xff]  ;;  %v6389_v62 = vld [vmem:[#allocation7 + $0x6b] sm:$0xff] }
 0x7d8   : > { %v5742_v9 = vld [vmem:[#allocation7 + $0x79] sm:$0xff]  ;;  %v5739_v28 = vld [vmem:[#allocation7 + $0x61] sm:$0xff]  ;;  %v6821_v1 = vld [vmem:[#allocation7 + $0x6c] sm:$0xff] }
 0x7d9   : > { %6892 = vrot.lane.b32.xlu0 %v6816_v3, %s8883_s18  ;;  %v6171_v26 = vld [vmem:[#allocation7 + $0x62] sm:$0xff]  ;;  %v7038_v37 = vld [vmem:[#allocation7 + $0x6d] sm:$0xff] }
 0x7da   : > { %6679 = vrot.lane.b32.xlu1 %v6816_v3, %s8886_s27  ;;  %v7321_v4 = vld [vmem:[#allocation8 + $0x18] sm:$0xff]  ;;  %v5744_v13 = vld [vmem:[#allocation7 + $0x89] sm:$0xff]  ;;  %v5741_v61 = vld [vmem:[#allocation7 + $0x71] sm:$0xff] }
 0x7db   : > { %v6388_v8 = vld [vmem:[#allocation7 + $0x63] sm:$0xff]  ;;  %v6391_v6 = vld [vmem:[#allocation7 + $0x7b] sm:$0xff] }
 0x7dc   : > { %v6823_v19 = vld [vmem:[#allocation7 + $0x7c] sm:$0xff] }
 0x7dd   : > { %7109 = vrot.lane.b32.xlu0 %v7033_v58, %s8885_s22 }
 0x7de   : > { %5821 = vrot.lane.b32.xlu1 %v5738_v2, %s8884_s14 }
 0x7e1   : > { %6677 = vrot.lane.b32.xlu0 %v6815_v22, %s8886_s27 }
 0x7e2   : > { %6894 = vrot.lane.b32.xlu1 %v6817_v40, %s8883_s18 }
 0x7e5   : > { %6245 = vrot.lane.b32.xlu0 %v6167_v56, %s8887_s19 }
 0x7e6   : > { %7111 = vrot.lane.b32.xlu1 %v7034_v5, %s8885_s22  ;;  %v7039_v5 = vld [vmem:[#allocation7 + $0x75] sm:$0xff] }
 0x7e9   : > { %6462 = vrot.lane.b32.xlu0 %v6384_v55, %s8881_s23  ;;  %v6173_v55 = vld [vmem:[#allocation7 + $0x72] sm:$0xff] }
 0x7ea   : > { %6896 = vrot.lane.b32.xlu1 %v6818_v23, %s8883_s18 }
 0x7ed   : > { %6247 = vrot.lane.b32.xlu0 %v6168_v60, %s8887_s19 }
 0x7ee   : > { %7113 = vrot.lane.b32.xlu1 %v7035_v41, %s8885_s22 }
 0x7f1   : > { %6032 = vrot.lane.b32.xlu0 %v6167_v56, %s8882_s24  ;;  %v6172_v56 = vld [vmem:[#allocation7 + $0x6a] sm:$0xff] }
 0x7f2   : > { %6681 = vrot.lane.b32.xlu1 %v6817_v40, %s8886_s27  ;;  %v6822_v40 = vld [vmem:[#allocation7 + $0x74] sm:$0xff] }
 0x7f5   : > { %6034 = vrot.lane.b32.xlu0 %v6168_v60, %s8882_s24 }
 0x7f6   : > { %6683 = vrot.lane.b32.xlu1 %v6818_v23, %s8886_s27  ;;  %v7040_v23 = vld [vmem:[#allocation7 + $0x7d] sm:$0xff] }
 0x7f9   : > { %6251 = vrot.lane.b32.xlu0 %v6170_v48, %s8887_s19 }
 0x7fa   : > { %5825 = vrot.lane.b32.xlu1 %v5740_v49, %s8884_s14  ;;  %v7323_v49 = vld [vmem:[#allocation8 + $0x28] sm:$0xff] }
 0x7fb   : > { %v6670_v25 = vpop.permute.xlu0 %6669 }
 0x7fc   : > { %v6453_v29 = vpop.permute.xlu1 %6452 }
 0x7fd   : > { %6468 = vrot.lane.b32.xlu0 %v6387_v32, %s8881_s23 }
 0x7fe   : > { %6898 = vrot.lane.b32.xlu1 %v6819_v59, %s8883_s18 }
 0x7ff   : > { %v5804_v52 = vpop.permute.xlu0 %5803 }
 0x800   : > { %v5806_v39 = vpop.permute.xlu1 %5805  ;;  %5910 = vst.msk [vmem:[#allocation8 + $0x20] sm:$0xff] %vm5907_vm10, %v5804_v52 }
 0x801   : > { %5911 = vst.msk [vmem:[#allocation8 + $0x30] sm:$0xff] %vm5907_vm10, %v5806_v39  ;;  %6038 = vrot.lane.b32.xlu0 %v6170_v48, %s8882_s24  ;;  %v7325_v39 = vld [vmem:[#allocation8 + $0x38] sm:$0xff] }
 0x802   : > { %7115 = vrot.lane.b32.xlu1 %v7036_v51, %s8885_s22  ;;  %v6174_v51 = vld [vmem:[#allocation7 + $0x7a] sm:$0xff] }
 0x803   : > { %v6021_v43 = vpop.permute.xlu0 %6020 }
 0x804   : > { %v6023_v45 = vpop.permute.xlu1 %6022  ;;  %6127 = vst.msk [vmem:[#allocation8 + $0x20] sm:$0xff] %vm6124_vm11, %v6021_v43  ;;  %v7041_v43 = vld [vmem:[#allocation7 + $0x85] sm:$0xff] }
 0x805   : > { %6128 = vst.msk [vmem:[#allocation8 + $0x30] sm:$0xff] %vm6124_vm11, %v6023_v45  ;;  %5819 = vrot.lane.b32.xlu0 %v5737_v16, %s8884_s14 }
 0x806   : > { %6900 = vrot.lane.b32.xlu1 %v6820_v46, %s8883_s18 }
 0x807   : > { %v6451_v47 = vpop.permute.xlu0 %6450 }
 0x808   : > { %v6234_v0 = vpop.permute.xlu1 %6233 }
 0x809   : > { %6342 = vst.msk [vmem:[#allocation8] sm:$0xff] %vm6341_vm1, %v6234_v0  ;;  %6249 = vrot.lane.b32.xlu0 %v6169_v21, %s8887_s19 }
 0x80a   : > { %7117 = vrot.lane.b32.xlu1 %v7037_v30, %s8885_s22  ;;  %6559 = vst.msk [vmem:[#allocation8] sm:$0xff] %vm6558_vm9, %v6451_v47  ;;  %v6393_v30 = vld [vmem:[#allocation7 + $0x8b] sm:$0xff] }
 0x80b   : > { %v5808_v27 = vpop.permute.xlu0 %5807 }
 0x80c   : > { %v6668_v18 = vpop.permute.xlu1 %6667  ;;  %5912 = vst.msk [vmem:[#allocation8 + $0x40] sm:$0xff] %vm5907_vm10, %v5808_v27 }
 0x80d   : > { %6776 = vst.msk [vmem:[#allocation8] sm:$0xff] %vm6775_vm13, %v6668_v18  ;;  %6466 = vrot.lane.b32.xlu0 %v6386_v50, %s8881_s23  ;;  %v5746_v18 = vld [vmem:[#allocation7 + $0x99] sm:$0xff] }
 0x80e   : > { %6685 = vrot.lane.b32.xlu1 %v6819_v59, %s8886_s27 }
 0x80f   : > { %v6025_v22 = vpop.permute.xlu0 %6024 }
 0x810   : > { %v6236_v53 = vpop.permute.xlu1 %6235  ;;  %6129 = vst.msk [vmem:[#allocation8 + $0x40] sm:$0xff] %vm6124_vm11, %v6025_v22  ;;  %v7327_v22 = vld [vmem:[#allocation8 + $0x48] sm:$0xff] }
 0x811   : > { %6343 = vst.msk [vmem:[#allocation8 + $0x10] sm:$0xff] %vm6341_vm1, %v6236_v53  ;;  %6036 = vrot.lane.b32.xlu0 %v6169_v21, %s8882_s24 }
 0x812   : > { %6560 = vst.msk [vmem:[#allocation8 + $0x10] sm:$0xff] %vm6558_vm9, %v6453_v29  ;;  %6687 = vrot.lane.b32.xlu1 %v6820_v46, %s8886_s27  ;;  %v6824_v29 = vld [vmem:[#allocation7 + $0x84] sm:$0xff] }
 0x813   : > { %6777 = vst.msk [vmem:[#allocation8 + $0x10] sm:$0xff] %vm6775_vm13, %v6670_v25  ;;  %v6885_v38 = vpop.permute.xlu0 %6884  ;;  %v6390_v25 = vld [vmem:[#allocation7 + $0x73] sm:$0xff] }
 0x814   : > { %v6457_v54 = vpop.permute.xlu1 %6456  ;;  %6993 = vst.msk [vmem:[#allocation8] sm:$0xff] %vm6992_vm15, %v6885_v38  ;;  %v5743_v38 = vld [vmem:[#allocation7 + $0x81] sm:$0xff] }
 0x815   : > { %6472 = vrot.lane.b32.xlu0 %v6389_v62, %s8881_s23 }
 0x816   : > { %5829 = vrot.lane.b32.xlu1 %v5742_v9, %s8884_s14 }
 0x817   : > { %v7102_v35 = vpop.permute.xlu0 %7101 }
 0x818   : > { %v5810_v14 = vpop.permute.xlu1 %5809  ;;  %7210 = vst.msk [vmem:[#allocation8] sm:$0xff] %vm7209_vm2, %v7102_v35  ;;  %v6175_v35 = vld [vmem:[#allocation7 + $0x82] sm:$0xff] }
 0x819   : > { %5913 = vst.msk [vmem:[#allocation8 + $0x50] sm:$0xff] %vm5907_vm10, %v5810_v14  ;;  %5823 = vrot.lane.b32.xlu0 %v5739_v28, %s8884_s14  ;;  %v7042_v14 = vld [vmem:[#allocation7 + $0x8d] sm:$0xff] }
 0x81a   : > { %6902 = vrot.lane.b32.xlu1 %v6821_v1, %s8883_s18 }
 0x81b   : > { %v6238_v12 = vpop.permute.xlu0 %6237 }
 0x81c   : > { %v6027_v3 = vpop.permute.xlu1 %6026  ;;  %6344 = vst.msk [vmem:[#allocation8 + $0x20] sm:$0xff] %vm6341_vm1, %v6238_v12 }
 0x81d   : > { %6130 = vst.msk [vmem:[#allocation8 + $0x50] sm:$0xff] %vm6124_vm11, %v6027_v3  ;;  %6253 = vrot.lane.b32.xlu0 %v6171_v26, %s8887_s19  ;;  %v7329_v3 = vld [vmem:[#allocation8 + $0x58] sm:$0xff] }
 0x81e   : > { %7119 = vrot.lane.b32.xlu1 %v7038_v37, %s8885_s22  ;;  %v6826_v37 = vld [vmem:[#allocation7 + $0x94] sm:$0xff] }
 0x81f   : > { %v6455_v42 = vpop.permute.xlu0 %6454  ;;  %v7318_v2 = vld [vmem:[#allocation8] sm:$0xff] }
 0x820   : > { %v6672_v58 = vpop.permute.xlu1 %6671  ;;  %6561 = vst.msk [vmem:[#allocation8 + $0x20] sm:$0xff] %vm6558_vm9, %v6455_v42  ;;  %7588 = vmatmul.mubr.f32.vlgmr.msra.gmra.mxu0 %v7318_v2  ;;  %v6176_v2 = vld [vmem:[#allocation7 + $0x8a] sm:$0xff] }
 0x821   : > { %6778 = vst.msk [vmem:[#allocation8 + $0x20] sm:$0xff] %vm6775_vm13, %v6672_v58  ;;  %8066 = vmatprep.mubr.msk.f32.mxu0 %vm438_vm0, %v7321_v4  ;;  %6470 = vrot.lane.b32.xlu0 %v6388_v8, %s8881_s23  ;;  %v7043_v4 = vld [vmem:[#allocation7 + $0x95] sm:$0xff] }
 0x822   : > { %6904 = vrot.lane.b32.xlu1 %v6822_v40, %s8883_s18 }
 0x823   : > { %v5812_v31 = vpop.permute.xlu0 %5811 }
 0x824   : > { %v6240_v17 = vpop.permute.xlu1 %6239  ;;  %5914 = vst.msk [vmem:[#allocation8 + $0x60] sm:$0xff] %vm5907_vm10, %v5812_v31  ;;  %v7331_v31 = vld [vmem:[#allocation8 + $0x68] sm:$0xff] }
 0x825   : > { %6345 = vst.msk [vmem:[#allocation8 + $0x30] sm:$0xff] %vm6341_vm1, %v6240_v17  ;;  %6255 = vrot.lane.b32.xlu0 %v6172_v56, %s8887_s19 }
 0x826   : > { %6562 = vst.msk [vmem:[#allocation8 + $0x30] sm:$0xff] %vm6558_vm9, %v6457_v54  ;;  %7121 = vrot.lane.b32.xlu1 %v7039_v5, %s8885_s22  ;;  %v6825_v54 = vld [vmem:[#allocation7 + $0x8c] sm:$0xff] }
 0x827   : > { %v6029_v20 = vpop.permute.xlu0 %6028 }
 0x828   : > { %v6461_v57 = vpop.permute.xlu1 %6460  ;;  %6131 = vst.msk [vmem:[#allocation8 + $0x60] sm:$0xff] %vm6124_vm11, %v6029_v20 }
 0x829   : > { %6040 = vrot.lane.b32.xlu0 %v6171_v26, %s8882_s24  ;;  %v6392_v26 = vld [vmem:[#allocation7 + $0x83] sm:$0xff] }
 0x82a   : > { %6689 = vrot.lane.b32.xlu1 %v6821_v1, %s8886_s27 }
 0x82b   : > { %v6889_v36 = vpop.permute.xlu0 %6888 }
 0x82c   : > { %v5814_v34 = vpop.permute.xlu1 %5813  ;;  %6995 = vst.msk [vmem:[#allocation8 + $0x20] sm:$0xff] %vm6992_vm15, %v6889_v36 }
 0x82d   : > { %5915 = vst.msk [vmem:[#allocation8 + $0x70] sm:$0xff] %vm5907_vm10, %v5814_v34  ;;  %6042 = vrot.lane.b32.xlu0 %v6172_v56, %s8882_s24  ;;  %v7333_v34 = vld [vmem:[#allocation8 + $0x78] sm:$0xff] }
 0x82e   : > { %6691 = vrot.lane.b32.xlu1 %v6822_v40, %s8886_s27 }
 0x82f   : > { %v7106_v24 = vpop.permute.xlu0 %7105 }
 0x830   : > { %v6887_v63 = vpop.permute.xlu1 %6886  ;;  %7212 = vst.msk [vmem:[#allocation8 + $0x20] sm:$0xff] %vm7209_vm2, %v7106_v24  ;;  %v6395_v24 = vld [vmem:[#allocation7 + $0x9b] sm:$0xff] }
 0x831   : > { %6994 = vst.msk [vmem:[#allocation8 + $0x10] sm:$0xff] %vm6992_vm15, %v6887_v63  ;;  %6476 = vrot.lane.b32.xlu0 %v6391_v6, %s8881_s23  ;;  %v6829_v63 = vld [vmem:[#allocation7 + $0xac] sm:$0xff] }
 0x832   : > { %5833 = vrot.lane.b32.xlu1 %v5744_v13, %s8884_s14 }
 0x833   : > { %v6674_v11 = vpop.permute.xlu0 %6673 }
 0x834   : > { %v7104_v15 = vpop.permute.xlu1 %7103  ;;  %6779 = vst.msk [vmem:[#allocation8 + $0x30] sm:$0xff] %vm6775_vm13, %v6674_v11  ;;  %v5745_v11 = vld [vmem:[#allocation7 + $0x91] sm:$0xff] }
 0x835   : > { %7211 = vst.msk [vmem:[#allocation8 + $0x10] sm:$0xff] %vm7209_vm2, %v7104_v15  ;;  %5827 = vrot.lane.b32.xlu0 %v5741_v61, %s8884_s14  ;;  %v7046_v15 = vld [vmem:[#allocation7 + $0xad] sm:$0xff] }
 0x836   : > { %6906 = vrot.lane.b32.xlu1 %v6823_v19, %s8883_s18 }
 0x837   : > { %v6242_v44 = vpop.permute.xlu0 %6241  ;;  %v7322_v52 = vld [vmem:[#allocation8 + $0x20] sm:$0xff] }
 0x838   : > { %v6676_v33 = vpop.permute.xlu1 %6675  ;;  %6346 = vst.msk [vmem:[#allocation8 + $0x40] sm:$0xff] %vm6341_vm1, %v6242_v44  ;;  %v6177_v44 = vld [vmem:[#allocation7 + $0x92] sm:$0xff] }
 0x839   : > { %6257 = vrot.lane.b32.xlu0 %v6173_v55, %s8887_s19 }
 0x83a   : > { %7123 = vrot.lane.b32.xlu1 %v7040_v23, %s8885_s22  ;;  %v6394_v23 = vld [vmem:[#allocation7 + $0x93] sm:$0xff] }
 0x83b   : > { %v6459_v60 = vpop.permute.xlu0 %6458 }
 0x83c   : > { %v6244_v41 = vpop.permute.xlu1 %6243  ;;  %v7320_v48 = vld [vmem:[#allocation8 + $0x10] sm:$0xff]  ;;  %6563 = vst.msk [vmem:[#allocation8 + $0x40] sm:$0xff] %vm6558_vm9, %v6459_v60  ;;  %v5748_v60 = vld [vmem:[#allocation7 + $0xa9] sm:$0xff] }
 0x83d   : > { %6347 = vst.msk [vmem:[#allocation8 + $0x50] sm:$0xff] %vm6341_vm1, %v6244_v41  ;;  %7593 = vmatmul.mubr.f32.gmra.mxu0 %v7320_v48  ;;  %6474 = vrot.lane.b32.xlu0 %v6390_v25, %s8881_s23  ;;  %v6827_v25 = vld [vmem:[#allocation7 + $0x9c] sm:$0xff] }
 0x83e   : > { %6780 = vst.msk [vmem:[#allocation8 + $0x40] sm:$0xff] %vm6775_vm13, %v6676_v33  ;;  %8067 = vmatprep.mubr.msk.f32.mxu0 %vm438_vm0, %v7323_v49  ;;  %6908 = vrot.lane.b32.xlu1 %v6824_v29, %s8883_s18  ;;  %v6178_v49 = vld [vmem:[#allocation7 + $0x9a] sm:$0xff] }
 0x83f   : > { %6564 = vst.msk [vmem:[#allocation8 + $0x50] sm:$0xff] %vm6558_vm9, %v6461_v57  ;;  %v6031_v32 = vpop.permute.xlu0 %6030 }
 0x840   : > { %v5818_v59 = vpop.permute.xlu1 %5817  ;;  %6132 = vst.msk [vmem:[#allocation8 + $0x70] sm:$0xff] %vm6124_vm11, %v6031_v32 }
 0x841   : > { %5917 = vst.msk [vmem:[#allocation8 + $0x90] sm:$0xff] %vm5907_vm10, %v5818_v59  ;;  %7598 = vmatmul.mubr.f32.gmra.mxu0 %v7322_v52  ;;  %6259 = vrot.lane.b32.xlu0 %v6174_v51, %s8887_s19  ;;  %v7335_v52 = vld [vmem:[#allocation8 + $0x88] sm:$0xff] }
 0x842   : > { %8068 = vmatprep.mubr.msk.f32.mxu0 %vm438_vm0, %v7325_v39  ;;  %7125 = vrot.lane.b32.xlu1 %v7041_v43, %s8885_s22  ;;  %v7044_v39 = vld [vmem:[#allocation7 + $0x9d] sm:$0xff] }
 0x843   : > { %v11285_v45 = vpop.permute.xlu0 %6464 }
 0x844   : > { %v6891_v16 = vpop.permute.xlu1 %6890 }
 0x845   : > { %6996 = vst.msk [vmem:[#allocation8 + $0x30] sm:$0xff] %vm6992_vm15, %v6891_v16  ;;  %6044 = vrot.lane.b32.xlu0 %v6173_v55, %s8882_s24 }
 0x846   : > { %6693 = vrot.lane.b32.xlu1 %v6823_v19, %s8886_s27 }
 0x847   : > { %v5816_v46 = vpop.permute.xlu0 %5815 }
 0x848   : > { %v7108_v47 = vpop.permute.xlu1 %7107  ;;  %5916 = vst.msk [vmem:[#allocation8 + $0x80] sm:$0xff] %vm5907_vm10, %v5816_v46 }
 0x849   : > { %7213 = vst.msk [vmem:[#allocation8 + $0x30] sm:$0xff] %vm7209_vm2, %v7108_v47  ;;  %6046 = vrot.lane.b32.xlu0 %v6174_v51, %s8882_s24  ;;  %v6397_v47 = vld [vmem:[#allocation7 + $0xab] sm:$0xff] }
 0x84a   : > { %6695 = vrot.lane.b32.xlu1 %v6824_v29, %s8886_s27 }
 0x84b   : > { %v6893_v0 = vpop.permute.xlu0 %6892 }
 0x84c   : > { %v6680_v21 = vpop.permute.xlu1 %6679  ;;  %6997 = vst.msk [vmem:[#allocation8 + $0x40] sm:$0xff] %vm6992_vm15, %v6893_v0  ;;  %v7045_v0 = vld [vmem:[#allocation7 + $0xa5] sm:$0xff] }
 0x84d   : > { %6480 = vrot.lane.b32.xlu0 %v6393_v30, %s8881_s23 }
 0x84e   : > { %5837 = vrot.lane.b32.xlu1 %v5746_v18, %s8884_s14  ;;  %v5747_v18 = vld [vmem:[#allocation7 + $0xa1] sm:$0xff] }
 0x84f   : > { %v7110_v27 = vpop.permute.xlu0 %7109 }
 0x850   : > { %v5822_v50 = vpop.permute.xlu1 %5821  ;;  %v7324_v53 = vld [vmem:[#allocation8 + $0x30] sm:$0xff]  ;;  %7214 = vst.msk [vmem:[#allocation8 + $0x40] sm:$0xff] %vm7209_vm2, %v7110_v27 }
 0x851   : > { %5919 = vst.msk [vmem:[#allocation8 + $0xb0] sm:$0xff] %vm5907_vm10, %v5822_v50  ;;  %7603 = vmatmul.mubr.f32.gmra.mxu0 %v7324_v53  ;;  %5831 = vrot.lane.b32.xlu0 %v5743_v38, %s8884_s14  ;;  %v6179_v38 = vld [vmem:[#allocation7 + $0xa2] sm:$0xff] }
 0x852   : > { %8069 = vmatprep.mubr.msk.f32.mxu0 %vm438_vm0, %v7327_v22  ;;  %6910 = vrot.lane.b32.xlu1 %v6825_v54, %s8883_s18  ;;  %v7337_v22 = vld [vmem:[#allocation8 + $0x98] sm:$0xff] }
 0x853   : > { %v6678_v62 = vpop.permute.xlu0 %6677 }
 0x854   : > { %v6895_v9 = vpop.permute.xlu1 %6894  ;;  %6781 = vst.msk [vmem:[#allocation8 + $0x50] sm:$0xff] %vm6775_vm13, %v6678_v62 }
 0x855   : > { %6998 = vst.msk [vmem:[#allocation8 + $0x50] sm:$0xff] %vm6992_vm15, %v6895_v9  ;;  %6261 = vrot.lane.b32.xlu0 %v6175_v35, %s8887_s19  ;;  %v6396_v9 = vld [vmem:[#allocation7 + $0xa3] sm:$0xff] }
 0x856   : > { %7127 = vrot.lane.b32.xlu1 %v7042_v14, %s8885_s22 }
 0x857   : > { %v6246_v28 = vpop.permute.xlu0 %6245  ;;  %v7326_v12 = vld [vmem:[#allocation8 + $0x40] sm:$0xff] }
 0x858   : > { %v7112_v1 = vpop.permute.xlu1 %7111  ;;  %6348 = vst.msk [vmem:[#allocation8 + $0x60] sm:$0xff] %vm6341_vm1, %v6246_v28  ;;  %7608 = vmatmul.mubr.f32.gmra.mxu0 %v7326_v12  ;;  %v6830_v12 = vld [vmem:[#allocation7 + $0xb4] sm:$0xff] }
 0x859   : > { %7215 = vst.msk [vmem:[#allocation8 + $0x50] sm:$0xff] %vm7209_vm2, %v7112_v1  ;;  %8070 = vmatprep.mubr.msk.f32.mxu0 %vm438_vm0, %v7329_v3  ;;  %6478 = vrot.lane.b32.xlu0 %v6392_v26, %s8881_s23  ;;  %v6180_v1 = vld [vmem:[#allocation7 + $0xaa] sm:$0xff] }
 0x85a   : > { %6912 = vrot.lane.b32.xlu1 %v6826_v37, %s8883_s18 }
 0x85b   : > { %v6463_v42 = vpop.permute.xlu0 %6462 }
 0x85c   : > { %v6897_v58 = vpop.permute.xlu1 %6896  ;;  %6565 = vst.msk [vmem:[#allocation8 + $0x60] sm:$0xff] %vm6558_vm9, %v6463_v42  ;;  %v7339_v42 = vld [vmem:[#allocation8 + $0xa8] sm:$0xff] }
 0x85d   : > { %6782 = vst.msk [vmem:[#allocation8 + $0x60] sm:$0xff] %vm6775_vm13, %v6680_v21  ;;  %6263 = vrot.lane.b32.xlu0 %v6176_v2, %s8887_s19 }
 0x85e   : > { %6999 = vst.msk [vmem:[#allocation8 + $0x60] sm:$0xff] %vm6992_vm15, %v6897_v58  ;;  %7129 = vrot.lane.b32.xlu1 %v7043_v4, %s8885_s22  ;;  %v7047_v58 = vld [vmem:[#allocation7 + $0xb5] sm:$0xff] }
 0x85f   : > { %v6248_v8 = vpop.permute.xlu0 %6247 }
 0x860   : > { %v7114_v40 = vpop.permute.xlu1 %7113  ;;  %v7328_v17 = vld [vmem:[#allocation8 + $0x50] sm:$0xff]  ;;  %6349 = vst.msk [vmem:[#allocation8 + $0x70] sm:$0xff] %vm6341_vm1, %v6248_v8 }
 0x861   : > { %7216 = vst.msk [vmem:[#allocation8 + $0x60] sm:$0xff] %vm7209_vm2, %v7114_v40  ;;  %7613 = vmatmul.mubr.f32.gmra.mxu0 %v7328_v17  ;;  %6048 = vrot.lane.b32.xlu0 %v6175_v35, %s8882_s24  ;;  %v5750_v35 = vld [vmem:[#allocation7 + $0xb9] sm:$0xff] }
 0x862   : > { %6566 = vst.msk [vmem:[#allocation8 + $0x70] sm:$0xff] %vm6558_vm9, %v11285_v45  ;;  %8071 = vmatprep.mubr.msk.f32.mxu0 %vm438_vm0, %v7331_v31  ;;  %6697 = vrot.lane.b32.xlu1 %v6825_v54, %s8886_s27  ;;  %v6828_v45 = vld [vmem:[#allocation7 + $0xa4] sm:$0xff]  ;;  %v6399_v31 = vld [vmem:[#allocation7 + $0xbb] sm:$0xff] }
 0x863   : > { %v6033_v56 = vpop.permute.xlu0 %6032 }
 0x864   : > { %v6682_v5 = vpop.permute.xlu1 %6681  ;;  %6133 = vst.msk [vmem:[#allocation8 + $0x80] sm:$0xff] %vm6124_vm11, %v6033_v56  ;;  %v7341_v56 = vld [vmem:[#allocation8 + $0xb8] sm:$0xff] }
 0x865   : > { %6783 = vst.msk [vmem:[#allocation8 + $0x70] sm:$0xff] %vm6775_vm13, %v6682_v5  ;;  %6050 = vrot.lane.b32.xlu0 %v6176_v2, %s8882_s24  ;;  %v5752_v5 = vld [vmem:[#allocation7 + $0xc9] sm:$0xff] }
 0x866   : > { %6699 = vrot.lane.b32.xlu1 %v6826_v37, %s8886_s27 }
 0x867   : > { %v6035_v20 = vpop.permute.xlu0 %6034 }
 0x868   : > { %v6684_v57 = vpop.permute.xlu1 %6683  ;;  %v7330_v36 = vld [vmem:[#allocation8 + $0x60] sm:$0xff]  ;;  %6134 = vst.msk [vmem:[#allocation8 + $0x90] sm:$0xff] %vm6124_vm11, %v6035_v20 }
 0x869   : > { %7618 = vmatmul.mubr.f32.gmra.mxu0 %v7330_v36  ;;  %6484 = vrot.lane.b32.xlu0 %v6395_v24, %s8881_s23  ;;  %v5749_v36 = vld [vmem:[#allocation7 + $0xb1] sm:$0xff] }
 0x86a   : > { %8072 = vmatprep.mubr.msk.f32.mxu0 %vm438_vm0, %v7333_v34  ;;  %6918 = vrot.lane.b32.xlu1 %v6829_v63, %s8883_s18  ;;  %v6831_v34 = vld [vmem:[#allocation7 + $0xbc] sm:$0xff] }
 0x86b   : > { %v6252_v6 = vpop.permute.xlu0 %6251 }
 0x86c   : > { %v5826_v13 = vpop.permute.xlu1 %5825  ;;  %6351 = vst.msk [vmem:[#allocation8 + $0x90] sm:$0xff] %vm6341_vm1, %v6252_v6  ;;  %v6181_v6 = vld [vmem:[#allocation7 + $0xb2] sm:$0xff] }
 0x86d   : > { %5921 = vst.msk [vmem:[#allocation8 + $0xd0] sm:$0xff] %vm5907_vm10, %v5826_v13  ;;  %5835 = vrot.lane.b32.xlu0 %v5745_v11, %s8884_s14  ;;  %v7048_v13 = vld [vmem:[#allocation7 + $0xbd] sm:$0xff] }
 0x86e   : > { %7135 = vrot.lane.b32.xlu1 %v7046_v15, %s8885_s22 }
 0x86f   : > { %v6469_v61 = vpop.permute.xlu0 %6468 }
 0x870   : > { %v6899_v19 = vpop.permute.xlu1 %6898  ;;  %6568 = vst.msk [vmem:[#allocation8 + $0x90] sm:$0xff] %vm6558_vm9, %v6469_v61  ;;  %v6398_v61 = vld [vmem:[#allocation7 + $0xb3] sm:$0xff] }
 0x871   : > { %7000 = vst.msk [vmem:[#allocation8 + $0x70] sm:$0xff] %vm6992_vm15, %v6899_v19  ;;  %6265 = vrot.lane.b32.xlu0 %v6177_v44, %s8887_s19  ;;  %v6832_v19 = vld [vmem:[#allocation7 + $0xc4] sm:$0xff] }
 0x872   : > { %6705 = vrot.lane.b32.xlu1 %v6829_v63, %s8886_s27 }
 0x873   : > { %v6039_v33 = vpop.permute.xlu0 %6038 }
 0x874   : > { %v7116_v55 = vpop.permute.xlu1 %7115  ;;  %6136 = vst.msk [vmem:[#allocation8 + $0xb0] sm:$0xff] %vm6124_vm11, %v6039_v33 }
 0x875   : > { %7217 = vst.msk [vmem:[#allocation8 + $0x70] sm:$0xff] %vm7209_vm2, %v7116_v55  ;;  %6482 = vrot.lane.b32.xlu0 %v6394_v23, %s8881_s23  ;;  %v6182_v55 = vld [vmem:[#allocation7 + $0xba] sm:$0xff]  ;;  %v7049_v23 = vld [vmem:[#allocation7 + $0xc5] sm:$0xff] }
 0x876   : > { %5841 = vrot.lane.b32.xlu1 %v5748_v60, %s8884_s14 }
 0x877   : > { %v5820_v41 = vpop.permute.xlu0 %5819 }
 0x878   : > { %v6901_v48 = vpop.permute.xlu1 %6900  ;;  %5918 = vst.msk [vmem:[#allocation8 + $0xa0] sm:$0xff] %vm5907_vm10, %v5820_v41 }
 0x879   : > { %6267 = vrot.lane.b32.xlu0 %v6178_v49, %s8887_s19 }
 0x87a   : > { %6914 = vrot.lane.b32.xlu1 %v6827_v25, %s8883_s18 }
 0x87b   : > { %v6250_v29 = vpop.permute.xlu0 %6249 }
 0x87c   : > { %v7118_v32 = vpop.permute.xlu1 %7117  ;;  %v7332_v59 = vld [vmem:[#allocation8 + $0x70] sm:$0xff]  ;;  %6350 = vst.msk [vmem:[#allocation8 + $0x80] sm:$0xff] %vm6341_vm1, %v6250_v29 }
 0x87d   : > { %7623 = vmatmul.mubr.f32.gmra.mxu0 %v7332_v59  ;;  %6052 = vrot.lane.b32.xlu0 %v6177_v44, %s8882_s24 }
 0x87e   : > { %8073 = vmatprep.mubr.msk.f32.mxu0 %vm438_vm0, %v7335_v52  ;;  %7131 = vrot.lane.b32.xlu1 %v7044_v39, %s8885_s22  ;;  %v6401_v39 = vld [vmem:[#allocation7 + $0xcb] sm:$0xff] }
 0x87f   : > { %v6467_v51 = vpop.permute.xlu0 %6466 }
 0x880   : > { %v6686_v43 = vpop.permute.xlu1 %6685  ;;  %6567 = vst.msk [vmem:[#allocation8 + $0x80] sm:$0xff] %vm6558_vm9, %v6467_v51  ;;  %v7345_v51 = vld [vmem:[#allocation8 + $0xd8] sm:$0xff] }
 0x881   : > { %6785 = vst.msk [vmem:[#allocation8 + $0x90] sm:$0xff] %vm6775_vm13, %v6686_v43  ;;  %6784 = vst.msk [vmem:[#allocation8 + $0x80] sm:$0xff] %vm6775_vm13, %v6684_v57  ;;  %6054 = vrot.lane.b32.xlu0 %v6178_v49, %s8882_s24  ;;  %v7343_v49 = vld [vmem:[#allocation8 + $0xc8] sm:$0xff]  ;;  %v5754_v43 = vld [vmem:[#allocation7 + $0xd9] sm:$0xff] }
 0x882   : > { %7001 = vst.msk [vmem:[#allocation8 + $0x80] sm:$0xff] %vm6992_vm15, %v6901_v48  ;;  %6916 = vrot.lane.b32.xlu1 %v6828_v45, %s8883_s18 }
 0x883   : > { %7218 = vst.msk [vmem:[#allocation8 + $0x80] sm:$0xff] %vm7209_vm2, %v7118_v32  ;;  %v6037_v16 = vpop.permute.xlu0 %6036 }
 0x884   : > { %v6688_v46 = vpop.permute.xlu1 %6687  ;;  %6135 = vst.msk [vmem:[#allocation8 + $0xa0] sm:$0xff] %vm6124_vm11, %v6037_v16 }
 0x885   : > { %6488 = vrot.lane.b32.xlu0 %v6397_v47, %s8881_s23  ;;  %v6833_v47 = vld [vmem:[#allocation7 + $0xcc] sm:$0xff] }
 0x886   : > { %7133 = vrot.lane.b32.xlu1 %v7045_v0, %s8885_s22 }
 0x887   : > { %v6473_v21 = vpop.permute.xlu0 %6472 }
 0x888   : > { %v5830_v30 = vpop.permute.xlu1 %5829 }
 0x889   : > { %5923 = vst.msk [vmem:[#allocation8 + $0xf0] sm:$0xff] %vm5907_vm10, %v5830_v30  ;;  %5839 = vrot.lane.b32.xlu0 %v5747_v18, %s8884_s14  ;;  %v6183_v30 = vld [vmem:[#allocation7 + $0xc2] sm:$0xff]  ;;  %v7050_v18 = vld [vmem:[#allocation7 + $0xcd] sm:$0xff] }
 0x88a   : > { %6701 = vrot.lane.b32.xlu1 %v6827_v25, %s8886_s27  ;;  %v7334_v27 = vld [vmem:[#allocation8 + $0x80] sm:$0xff] }
 0x88b   : > { %v5824_v50 = vpop.permute.xlu0 %5823  ;;  %7628 = vmatmul.mubr.f32.gmra.mxu0 %v7334_v27 }
 0x88c   : > { %v6903_v53 = vpop.permute.xlu1 %6902  ;;  %5920 = vst.msk [vmem:[#allocation8 + $0xc0] sm:$0xff] %vm5907_vm10, %v5824_v50  ;;  %8074 = vmatprep.mubr.msk.f32.mxu0 %vm438_vm0, %v7337_v22  ;;  %v6834_v22 = vld [vmem:[#allocation7 + $0xd4] sm:$0xff] }
 0x88d   : > { %7002 = vst.msk [vmem:[#allocation8 + $0x90] sm:$0xff] %vm6992_vm15, %v6903_v53  ;;  %6269 = vrot.lane.b32.xlu0 %v6179_v38, %s8887_s19  ;;  %v6400_v53 = vld [vmem:[#allocation7 + $0xc3] sm:$0xff] }
 0x88e   : > { %6703 = vrot.lane.b32.xlu1 %v6828_v45, %s8886_s27 }
 0x88f   : > { %v6254_v54 = vpop.permute.xlu0 %6253 }
 0x890   : > { %v7120_v62 = vpop.permute.xlu1 %7119  ;;  %6352 = vst.msk [vmem:[#allocation8 + $0xa0] sm:$0xff] %vm6341_vm1, %v6254_v54 }
 0x891   : > { %7219 = vst.msk [vmem:[#allocation8 + $0x90] sm:$0xff] %vm7209_vm2, %v7120_v62  ;;  %6486 = vrot.lane.b32.xlu0 %v6396_v9, %s8881_s23  ;;  %v6184_v62 = vld [vmem:[#allocation7 + $0xca] sm:$0xff]  ;;  %v7051_v9 = vld [vmem:[#allocation7 + $0xd5] sm:$0xff] }
 0x892   : > { %5845 = vrot.lane.b32.xlu1 %v5750_v35, %s8884_s14 }
 0x893   : > { %v6471_v14 = vpop.permute.xlu0 %6470 }
 0x894   : > { %6569 = vst.msk [vmem:[#allocation8 + $0xa0] sm:$0xff] %vm6558_vm9, %v6471_v14  ;;  %v6905_v28 = vpop.permute.xlu1 %6904 }
 0x895   : > { %6786 = vst.msk [vmem:[#allocation8 + $0xa0] sm:$0xff] %vm6775_vm13, %v6688_v46  ;;  %6271 = vrot.lane.b32.xlu0 %v6180_v1, %s8887_s19  ;;  %v5751_v46 = vld [vmem:[#allocation7 + $0xc1] sm:$0xff] }
 0x896   : > { %7003 = vst.msk [vmem:[#allocation8 + $0xa0] sm:$0xff] %vm6992_vm15, %v6905_v28  ;;  %6920 = vrot.lane.b32.xlu1 %v6830_v12, %s8883_s18 }
 0x897   : > { %v6256_v3 = vpop.permute.xlu0 %6255 }
 0x898   : > { %v7336_v26 = vld [vmem:[#allocation8 + $0x90] sm:$0xff]  ;;  %6353 = vst.msk [vmem:[#allocation8 + $0xb0] sm:$0xff] %vm6341_vm1, %v6256_v3  ;;  %v7122_v37 = vpop.permute.xlu1 %7121 }
 0x899   : > { %7633 = vmatmul.mubr.f32.gmra.mxu0 %v7336_v26  ;;  %6570 = vst.msk [vmem:[#allocation8 + $0xb0] sm:$0xff] %vm6558_vm9, %v6473_v21  ;;  %6056 = vrot.lane.b32.xlu0 %v6179_v38, %s8882_s24 }
 0x89a   : > { %7220 = vst.msk [vmem:[#allocation8 + $0xa0] sm:$0xff] %vm7209_vm2, %v7122_v37  ;;  %8075 = vmatprep.mubr.msk.f32.mxu0 %vm438_vm0, %v7339_v42  ;;  %7137 = vrot.lane.b32.xlu1 %v7047_v58, %s8885_s22  ;;  %v6403_v58 = vld [vmem:[#allocation7 + $0xdb] sm:$0xff] }
 0x89b   : > { %v6041_v2 = vpop.permute.xlu0 %6040 }
 0x89c   : > { %6137 = vst.msk [vmem:[#allocation8 + $0xc0] sm:$0xff] %vm6124_vm11, %v6041_v2  ;;  %v6690_v4 = vpop.permute.xlu1 %6689  ;;  %v7349_v2 = vld [vmem:[#allocation8 + $0xf8] sm:$0xff] }
 0x89d   : > { %6787 = vst.msk [vmem:[#allocation8 + $0xb0] sm:$0xff] %vm6775_vm13, %v6690_v4  ;;  %6058 = vrot.lane.b32.xlu0 %v6180_v1, %s8882_s24  ;;  %v7347_v1 = vld [vmem:[#allocation8 + $0xe8] sm:$0xff] }
 0x89e   : > { %6707 = vrot.lane.b32.xlu1 %v6830_v12, %s8886_s27  ;;  %v5756_v4 = vld [vmem:[#allocation7 + $0xe9] sm:$0xff] }
 0x89f   : > { %v6043_v8 = vpop.permute.xlu0 %6042 }
 0x8a0   : > { %6138 = vst.msk [vmem:[#allocation8 + $0xd0] sm:$0xff] %vm6124_vm11, %v6043_v8  ;;  %v6692_v40 = vpop.permute.xlu1 %6691 }
 0x8a1   : > { %v7338_v17 = vld [vmem:[#allocation8 + $0xa0] sm:$0xff]  ;;  %6492 = vrot.lane.b32.xlu0 %v6399_v31, %s8881_s23  ;;  %v6835_v31 = vld [vmem:[#allocation7 + $0xdc] sm:$0xff] }
 0x8a2   : > { %7638 = vmatmul.mubr.f32.gmra.mxu0 %v7338_v17  ;;  %5849 = vrot.lane.b32.xlu1 %v5752_v5, %s8884_s14  ;;  %v5753_v17 = vld [vmem:[#allocation7 + $0xd1] sm:$0xff] }
 0x8a3   : > { %8076 = vmatprep.mubr.msk.f32.mxu0 %vm438_vm0, %v7341_v56  ;;  %v6477_v20 = vpop.permute.xlu0 %6476  ;;  %v11458_v56 = vld [vmem:[%s11856_s12] ss:$0 sm:$0xff] }
 0x8a4   : > { %v5834_v57 = vpop.permute.xlu1 %5833 }
 0x8a5   : > { %5925 = vst.msk [vmem:[#allocation8 + $0x110] sm:$0xff] %vm5907_vm10, %v5834_v57  ;;  %5843 = vrot.lane.b32.xlu0 %v5749_v36, %s8884_s14  ;;  %v6185_v36 = vld [vmem:[#allocation7 + $0xd2] sm:$0xff] }
 0x8a6   : > { %6922 = vrot.lane.b32.xlu1 %v6831_v34, %s8883_s18 }
 0x8a7   : > { %v5828_v24 = vpop.permute.xlu0 %5827 }
 0x8a8   : > { %5922 = vst.msk [vmem:[#allocation8 + $0xe0] sm:$0xff] %vm5907_vm10, %v5828_v24  ;;  %v6907_v63 = vpop.permute.xlu1 %6906  ;;  %v7052_v24 = vld [vmem:[#allocation7 + $0xdd] sm:$0xff] }
 0x8a9   : > { %7004 = vst.msk [vmem:[#allocation8 + $0xb0] sm:$0xff] %vm6992_vm15, %v6907_v63  ;;  %6273 = vrot.lane.b32.xlu0 %v6181_v6, %s8887_s19 }
 0x8aa   : > { %7139 = vrot.lane.b32.xlu1 %v7048_v13, %s8885_s22 }
 0x8ab   : > { %v6258_v11 = vpop.permute.xlu0 %6257 }
 0x8ac   : > { %6354 = vst.msk [vmem:[#allocation8 + $0xc0] sm:$0xff] %vm6341_vm1, %v6258_v11  ;;  %v7124_v15 = vpop.permute.xlu1 %7123  ;;  %v6402_v11 = vld [vmem:[#allocation7 + $0xd3] sm:$0xff] }
 0x8ad   : > { %7221 = vst.msk [vmem:[#allocation8 + $0xb0] sm:$0xff] %vm7209_vm2, %v7124_v15  ;;  %6490 = vrot.lane.b32.xlu0 %v6398_v61, %s8881_s23  ;;  %v6836_v15 = vld [vmem:[#allocation7 + $0xe4] sm:$0xff] }
 0x8ae   : > { %6924 = vrot.lane.b32.xlu1 %v6832_v19, %s8883_s18 }
 0x8af   : > { %v6475_v44 = vpop.permute.xlu0 %6474 }
 0x8b0   : > { %6571 = vst.msk [vmem:[#allocation8 + $0xc0] sm:$0xff] %vm6558_vm9, %v6475_v44  ;;  %v6909_v33 = vpop.permute.xlu1 %6908  ;;  %v6186_v44 = vld [vmem:[#allocation7 + $0xda] sm:$0xff] }
 0x8b1   : > { %6788 = vst.msk [vmem:[#allocation8 + $0xc0] sm:$0xff] %vm6775_vm13, %v6692_v40  ;;  %6275 = vrot.lane.b32.xlu0 %v6182_v55, %s8887_s19 }
 0x8b2   : > { %7005 = vst.msk [vmem:[#allocation8 + $0xc0] sm:$0xff] %vm6992_vm15, %v6909_v33  ;;  %7141 = vrot.lane.b32.xlu1 %v7049_v23, %s8885_s22  ;;  %v7053_v33 = vld [vmem:[#allocation7 + $0xe5] sm:$0xff] }
 0x8b3   : > { %v6260_v60 = vpop.permute.xlu0 %6259 }
 0x8b4   : > { %6355 = vst.msk [vmem:[#allocation8 + $0xd0] sm:$0xff] %vm6341_vm1, %v6260_v60  ;;  %v7126_v41 = vpop.permute.xlu1 %7125  ;;  %v7340_v48 = vld [vmem:[#allocation8 + $0xb0] sm:$0xff] }
 0x8b5   : > { %6572 = vst.msk [vmem:[#allocation8 + $0xd0] sm:$0xff] %vm6558_vm9, %v6477_v20  ;;  %7643 = vmatmul.mubr.f32.gmra.mxu0 %v7340_v48  ;;  %6060 = vrot.lane.b32.xlu0 %v6181_v6, %s8882_s24 }
 0x8b6   : > { %7222 = vst.msk [vmem:[#allocation8 + $0xc0] sm:$0xff] %vm7209_vm2, %v7126_v41  ;;  %8077 = vmatprep.mubr.msk.f32.mxu0 %vm438_vm0, %v7343_v49  ;;  %6709 = vrot.lane.b32.xlu1 %v6831_v34, %s8886_s27 }
 0x8b7   : > { %v6045_v25 = vpop.permute.xlu0 %6044 }
 0x8b8   : > { %6139 = vst.msk [vmem:[#allocation8 + $0xe0] sm:$0xff] %vm6124_vm11, %v6045_v25  ;;  %v6694_v29 = vpop.permute.xlu1 %6693 }
 0x8b9   : > { %6789 = vst.msk [vmem:[#allocation8 + $0xd0] sm:$0xff] %vm6775_vm13, %v6694_v29  ;;  %6062 = vrot.lane.b32.xlu0 %v6182_v55, %s8882_s24  ;;  %v6188_v29 = vld [vmem:[#allocation7 + $0xea] sm:$0xff] }
 0x8ba   : > { %6711 = vrot.lane.b32.xlu1 %v6832_v19, %s8886_s27 }
 0x8bb   : > { %v6047_v32 = vpop.permute.xlu0 %6046 }
 0x8bc   : > { %6140 = vst.msk [vmem:[#allocation8 + $0xf0] sm:$0xff] %vm6124_vm11, %v6047_v32  ;;  %v6696_v59 = vpop.permute.xlu1 %6695  ;;  %v5758_v32 = vld [vmem:[#allocation7 + $0xf9] sm:$0xff] }
 0x8bd   : > { %v7342_v52 = vld [vmem:[#allocation8 + $0xc0] sm:$0xff]  ;;  %6496 = vrot.lane.b32.xlu0 %v6401_v39, %s8881_s23 }
 0x8be   : > { %7648 = vmatmul.mubr.f32.gmra.mxu0 %v7342_v52  ;;  %5853 = vrot.lane.b32.xlu1 %v5754_v43, %s8884_s14  ;;  %v7351_v43 = vld [vmem:[#allocation8 + $0x108] sm:$0xff] }
 0x8bf   : > { %8078 = vmatprep.mubr.msk.f32.mxu0 %vm438_vm0, %v7345_v51  ;;  %v6481_v45 = vpop.permute.xlu0 %6480  ;;  %v6405_v51 = vld [vmem:[#allocation7 + $0xeb] sm:$0xff] }
 0x8c0   : > { %v5838_v16 = vpop.permute.xlu1 %5837 }
 0x8c1   : > { %5927 = vst.msk [vmem:[#allocation8 + $0x130] sm:$0xff] %vm5907_vm10, %v5838_v16  ;;  %5847 = vrot.lane.b32.xlu0 %v5751_v46, %s8884_s14 }
 0x8c2   : > { %6926 = vrot.lane.b32.xlu1 %v6833_v47, %s8883_s18 }
 0x8c3   : > { %v5832_v0 = vpop.permute.xlu0 %5831 }
 0x8c4   : > { %5924 = vst.msk [vmem:[#allocation8 + $0x100] sm:$0xff] %vm5907_vm10, %v5832_v0  ;;  %v6911_v21 = vpop.permute.xlu1 %6910 }
 0x8c5   : > { %7006 = vst.msk [vmem:[#allocation8 + $0xd0] sm:$0xff] %vm6992_vm15, %v6911_v21  ;;  %6277 = vrot.lane.b32.xlu0 %v6183_v30, %s8887_s19  ;;  %v7054_v21 = vld [vmem:[#allocation7 + $0xed] sm:$0xff] }
 0x8c6   : > { %7143 = vrot.lane.b32.xlu1 %v7050_v18, %s8885_s22 }
 0x8c7   : > { %v6262_v27 = vpop.permute.xlu0 %6261 }
 0x8c8   : > { %6356 = vst.msk [vmem:[#allocation8 + $0xe0] sm:$0xff] %vm6341_vm1, %v6262_v27  ;;  %v7128_v50 = vpop.permute.xlu1 %7127 }
 0x8c9   : > { %7223 = vst.msk [vmem:[#allocation8 + $0xd0] sm:$0xff] %vm7209_vm2, %v7128_v50  ;;  %6494 = vrot.lane.b32.xlu0 %v6400_v53, %s8881_s23 }
 0x8ca   : > { %6928 = vrot.lane.b32.xlu1 %v6834_v22, %s8883_s18 }
 0x8cb   : > { %v6479_v38 = vpop.permute.xlu0 %6478 }
 0x8cc   : > { %6573 = vst.msk [vmem:[#allocation8 + $0xe0] sm:$0xff] %vm6558_vm9, %v6479_v38  ;;  %v6913_v54 = vpop.permute.xlu1 %6912 }
 0x8cd   : > { %6790 = vst.msk [vmem:[#allocation8 + $0xe0] sm:$0xff] %vm6775_vm13, %v6696_v59  ;;  %6279 = vrot.lane.b32.xlu0 %v6184_v62, %s8887_s19 }
 0x8ce   : > { %7007 = vst.msk [vmem:[#allocation8 + $0xe0] sm:$0xff] %vm6992_vm15, %v6913_v54  ;;  %7145 = vrot.lane.b32.xlu1 %v7051_v9, %s8885_s22  ;;  %v7353_v54 = vld [vmem:[#allocation8 + $0x118] sm:$0xff] }
 0x8cf   : > { %v6264_v35 = vpop.permute.xlu0 %6263 }
 0x8d0   : > { %6357 = vst.msk [vmem:[#allocation8 + $0xf0] sm:$0xff] %vm6341_vm1, %v6264_v35  ;;  %v7130_v14 = vpop.permute.xlu1 %7129  ;;  %v7344_v28 = vld [vmem:[#allocation8 + $0xd0] sm:$0xff] }
 0x8d1   : > { %6574 = vst.msk [vmem:[#allocation8 + $0xf0] sm:$0xff] %vm6558_vm9, %v6481_v45  ;;  %7653 = vmatmul.mubr.f32.gmra.mxu0 %v7344_v28  ;;  %6064 = vrot.lane.b32.xlu0 %v6183_v30, %s8882_s24  ;;  %v6837_v45 = vld [vmem:[#allocation7 + $0xec] sm:$0xff]  ;;  %v6187_v28 = vld [vmem:[#allocation7 + $0xe2] sm:$0xff] }
 0x8d2   : > { %7224 = vst.msk [vmem:[#allocation8 + $0xe0] sm:$0xff] %vm7209_vm2, %v7130_v14  ;;  %8079 = vmatprep.mubr.msk.f32.mxu0 %vm438_vm0, %v7347_v1  ;;  %6713 = vrot.lane.b32.xlu1 %v6833_v47, %s8886_s27  ;;  %v7055_v1 = vld [vmem:[#allocation7 + $0xf5] sm:$0xff] }
 0x8d3   : > { %v6049_v12 = vpop.permute.xlu0 %6048 }
 0x8d4   : > { %6141 = vst.msk [vmem:[#allocation8 + $0x100] sm:$0xff] %vm6124_vm11, %v6049_v12  ;;  %v6698_v3 = vpop.permute.xlu1 %6697 }
 0x8d5   : > { %6791 = vst.msk [vmem:[#allocation8 + $0xf0] sm:$0xff] %vm6775_vm13, %v6698_v3  ;;  %6066 = vrot.lane.b32.xlu0 %v6184_v62, %s8882_s24  ;;  %v6838_v62 = vld [vmem:[#allocation7 + $0xf4] sm:$0xff] }
 0x8d6   : > { %6715 = vrot.lane.b32.xlu1 %v6834_v22, %s8886_s27  ;;  %v5755_v22 = vld [vmem:[#allocation7 + $0xe1] sm:$0xff] }
 0x8d7   : > { %v6051_v26 = vpop.permute.xlu0 %6050 }
 0x8d8   : > { %6142 = vst.msk [vmem:[#allocation8 + $0x110] sm:$0xff] %vm6124_vm11, %v6051_v26  ;;  %v6700_v37 = vpop.permute.xlu1 %6699  ;;  %v7355_v26 = vld [vmem:[#allocation8 + $0x128] sm:$0xff] }
 0x8d9   : > { %v7346_v42 = vld [vmem:[#allocation8 + $0xe0] sm:$0xff]  ;;  %6500 = vrot.lane.b32.xlu0 %v6403_v58, %s8881_s23 }
 0x8da   : > { %7658 = vmatmul.mubr.f32.gmra.mxu0 %v7346_v42  ;;  %5857 = vrot.lane.b32.xlu1 %v5756_v4, %s8884_s14  ;;  %v6404_v42 = vld [vmem:[#allocation7 + $0xe3] sm:$0xff] }
 0x8db   : > { %8080 = vmatprep.mubr.msk.f32.mxu0 %vm438_vm0, %v7349_v2  ;;  %v6485_v8 = vpop.permute.xlu0 %6484 }
 0x8dc   : > { %v11451_v40 = vpop.permute.xlu1 %6918 }
 0x8dd   : > { %5851 = vrot.lane.b32.xlu0 %v5753_v17, %s8884_s14 }
 0x8de   : > { %6930 = vrot.lane.b32.xlu1 %v6835_v31, %s8883_s18 }
 0x8df   : > { %v5836_v5 = vpop.permute.xlu0 %5835 }
 0x8e0   : > { %5926 = vst.msk [vmem:[#allocation8 + $0x120] sm:$0xff] %vm5907_vm10, %v5836_v5  ;;  %v11461_v20 = vpop.permute.xlu1 %7135  ;;  %v7589_v57 = vpop.f32.mrf.mxu0  ;;  %v6407_v5 = vld [vmem:[#allocation7 + $0xfb] sm:$0xff] }
 0x8e1   : > { %v7590_v34 = vadd.f32 %v11458_v56, %v7589_v57  ;;  %6281 = vrot.lane.b32.xlu0 %v6185_v36, %s8887_s19  ;;  %v5760_v57 = vld [vmem:[#allocation7 + $0x109] sm:$0xff] }
 0x8e2   : > { %7147 = vrot.lane.b32.xlu1 %v7052_v24, %s8885_s22  ;;  %v7591_v63 = vpop.f32.mrf.mxu0 }
 0x8e3   : > { %8798 = vtanh.f32 %v7590_v34  ;;  %v6266_v6 = vpop.permute.xlu0 %6265 }
 0x8e4   : > { %6358 = vst.msk [vmem:[#allocation8 + $0x100] sm:$0xff] %vm6341_vm1, %v6266_v6  ;;  %v11467_v13 = vpop.permute.xlu1 %6705  ;;  %v5757_v6 = vld [vmem:[#allocation7 + $0xf1] sm:$0xff] }
 0x8e5   : > { %6498 = vrot.lane.b32.xlu0 %v6402_v11, %s8881_s23  ;;  %v6839_v11 = vld [vmem:[#allocation7 + $0xfc] sm:$0xff] }
 0x8e6   : > { %6932 = vrot.lane.b32.xlu1 %v6836_v15, %s8883_s18 }
 0x8e7   : > { %v6483_v61 = vpop.permute.xlu0 %6482 }
 0x8e8   : > { %6575 = vst.msk [vmem:[#allocation8 + $0x100] sm:$0xff] %vm6558_vm9, %v6483_v61  ;;  %v5842_v19 = vpop.permute.xlu1 %5841 }
 0x8e9   : > { %6792 = vst.msk [vmem:[#allocation8 + $0x100] sm:$0xff] %vm6775_vm13, %v6700_v37  ;;  %6283 = vrot.lane.b32.xlu0 %v6186_v44, %s8887_s19 }
 0x8ea   : > { %5929 = vst.msk [vmem:[#allocation8 + $0x150] sm:$0xff] %vm5907_vm10, %v5842_v19  ;;  %7149 = vrot.lane.b32.xlu1 %v7053_v33, %s8885_s22 }
 0x8eb   : > { %v6268_v55 = vpop.permute.xlu0 %6267 }
 0x8ec   : > { %6359 = vst.msk [vmem:[#allocation8 + $0x110] sm:$0xff] %vm6341_vm1, %v6268_v55  ;;  %v6915_v23 = vpop.permute.xlu1 %6914  ;;  %v7056_v55 = vld [vmem:[#allocation7 + $0xfd] sm:$0xff] }
 0x8ed   : > { %6576 = vst.msk [vmem:[#allocation8 + $0x110] sm:$0xff] %vm6558_vm9, %v6485_v8  ;;  %6068 = vrot.lane.b32.xlu0 %v6185_v36, %s8882_s24 }
 0x8ee   : > { %7008 = vst.msk [vmem:[#allocation8 + $0xf0] sm:$0xff] %vm6992_vm15, %v6915_v23  ;;  %6717 = vrot.lane.b32.xlu1 %v6835_v31, %s8886_s27 }
 0x8ef   : > { %v6053_v60 = vpop.permute.xlu0 %6052 }
 0x8f0   : > { %v8799_v41 = vpop.eup %8798  ;;  %6143 = vst.msk [vmem:[#allocation8 + $0x120] sm:$0xff] %vm6124_vm11, %v6053_v60  ;;  %v7132_v48 = vpop.permute.xlu1 %7131 }
 0x8f1   : > { %7805 = vst.msk [vmem:[%s11484_s15] sm:$0xff] %vm7804_vm3, %v8799_v41  ;;  %6070 = vrot.lane.b32.xlu0 %v6186_v44, %s8882_s24  ;;  %v6189_v44 = vld [vmem:[#allocation7 + $0xf2] sm:$0xff] }
 0x8f2   : > { %7225 = vst.msk [vmem:[#allocation8 + $0xf0] sm:$0xff] %vm7209_vm2, %v7132_v48  ;;  %6719 = vrot.lane.b32.xlu1 %v6836_v15, %s8886_s27  ;;  %v6406_v48 = vld [vmem:[#allocation7 + $0xf3] sm:$0xff] }
 0x8f3   : > { %v6055_v49 = vpop.permute.xlu0 %6054 }
 0x8f4   : > { %6144 = vst.msk [vmem:[#allocation8 + $0x130] sm:$0xff] %vm6124_vm11, %v6055_v49  ;;  %v6917_v25 = vpop.permute.xlu1 %6916  ;;  %v6840_v49 = vld [vmem:[#allocation7 + $0x104] sm:$0xff] }
 0x8f5   : > { %7009 = vst.msk [vmem:[#allocation8 + $0x100] sm:$0xff] %vm6992_vm15, %v6917_v25  ;;  %6287 = vrot.lane.b32.xlu0 %v6188_v29, %s8887_s19 }
 0x8f6   : > { %5861 = vrot.lane.b32.xlu1 %v5758_v32, %s8884_s14 }
 0x8f7   : > { %v6489_v59 = vpop.permute.xlu0 %6488 }
 0x8f8   : > { %v7134_v52 = vpop.permute.xlu1 %7133 }
 0x8f9   : > { %v7348_v39 = vld [vmem:[#allocation8 + $0xf0] sm:$0xff]  ;;  %7226 = vst.msk [vmem:[#allocation8 + $0x100] sm:$0xff] %vm7209_vm2, %v7134_v52  ;;  %6504 = vrot.lane.b32.xlu0 %v6405_v51, %s8881_s23  ;;  %v7057_v51 = vld [vmem:[#allocation7 + $0x105] sm:$0xff] }
 0x8fa   : > { %7663 = vmatmul.mubr.f32.gmra.mxu0 %v7348_v39  ;;  %6934 = vrot.lane.b32.xlu1 %v6837_v45, %s8883_s18  ;;  %v6190_v52 = vld [vmem:[#allocation7 + $0xfa] sm:$0xff] }
 0x8fb   : > { %8081 = vmatprep.mubr.msk.f32.mxu0 %vm438_vm0, %v7351_v43  ;;  %v5840_v16 = vpop.permute.xlu0 %5839 }
 0x8fc   : > { %5928 = vst.msk [vmem:[#allocation8 + $0x140] sm:$0xff] %vm5907_vm10, %v5840_v16  ;;  %v6702_v46 = vpop.permute.xlu1 %6701 }
 0x8fd   : > { %v7594_v47 = vpop.f32.mrf.mxu0  ;;  %6793 = vst.msk [vmem:[#allocation8 + $0x110] sm:$0xff] %vm6775_vm13, %v6702_v46  ;;  %6074 = vrot.lane.b32.xlu0 %v6188_v29, %s8882_s24 }
 0x8fe   : > { %v7595_v0 = vadd.f32 %v11458_v56, %v7594_v47  ;;  %7010 = vst.msk [vmem:[#allocation8 + $0x110] sm:$0xff] %vm6992_vm15, %v11451_v40  ;;  %7151 = vrot.lane.b32.xlu1 %v7054_v21, %s8885_s22  ;;  %v7359_v47 = vld [vmem:[#allocation8 + $0x148] sm:$0xff] }
 0x8ff   : > { %v7596_v30 = vpop.f32.mrf.mxu0  ;;  %7227 = vst.msk [vmem:[#allocation8 + $0x110] sm:$0xff] %vm7209_vm2, %v11461_v20  ;;  %v6270_v18 = vpop.permute.xlu0 %6269 }
 0x900   : > { %8800 = vtanh.f32 %v7595_v0  ;;  %6360 = vst.msk [vmem:[#allocation8 + $0x120] sm:$0xff] %vm6341_vm1, %v6270_v18  ;;  %v6704_v27 = vpop.permute.xlu1 %6703  ;;  %v7350_v53 = vld [vmem:[#allocation8 + $0x100] sm:$0xff] }
 0x901   : > { %v7599_v50 = vpop.f32.mrf.mxu0  ;;  %7668 = vmatmul.mubr.f32.gmra.mxu0 %v7350_v53  ;;  %5855 = vrot.lane.b32.xlu0 %v5755_v22, %s8884_s14 }
 0x902   : > { %v7600_v38 = vadd.f32 %v11458_v56, %v7599_v50  ;;  %8082 = vmatprep.mubr.msk.f32.mxu0 %vm438_vm0, %v7353_v54  ;;  %6936 = vrot.lane.b32.xlu1 %v6838_v62, %s8883_s18  ;;  %v6409_v54 = vld [vmem:[#allocation7 + $0x10b] sm:$0xff] }
 0x903   : > { %v7601_v9 = vpop.f32.mrf.mxu0  ;;  %v6487_v35 = vpop.permute.xlu0 %6486 }
 0x904   : > { %8802 = vtanh.f32 %v7600_v38  ;;  %6577 = vst.msk [vmem:[#allocation8 + $0x120] sm:$0xff] %vm6558_vm9, %v6487_v35  ;;  %v5846_v14 = vpop.permute.xlu1 %5845  ;;  %v5762_v9 = vld [vmem:[#allocation7 + $0x119] sm:$0xff] }
 0x905   : > { %6794 = vst.msk [vmem:[#allocation8 + $0x120] sm:$0xff] %vm6775_vm13, %v6704_v27  ;;  %6285 = vrot.lane.b32.xlu0 %v6187_v28, %s8887_s19 }
 0x906   : > { %5931 = vst.msk [vmem:[#allocation8 + $0x170] sm:$0xff] %vm5907_vm10, %v5846_v14  ;;  %7153 = vrot.lane.b32.xlu1 %v7055_v1, %s8885_s22  ;;  %v7352_v12 = vld [vmem:[#allocation8 + $0x110] sm:$0xff]  ;;  %v5759_v1 = vld [vmem:[#allocation7 + $0x101] sm:$0xff] }
 0x907   : > { %7673 = vmatmul.mubr.f32.gmra.mxu0 %v7352_v12  ;;  %v6272_v3 = vpop.permute.xlu0 %6271  ;;  %v6841_v12 = vld [vmem:[#allocation7 + $0x10c] sm:$0xff] }
 0x908   : > { %6361 = vst.msk [vmem:[#allocation8 + $0x130] sm:$0xff] %vm6341_vm1, %v6272_v3  ;;  %8083 = vmatprep.mubr.msk.f32.mxu0 %vm438_vm0, %v7355_v26  ;;  %v6921_v37 = vpop.permute.xlu1 %6920 }
 0x909   : > { %6578 = vst.msk [vmem:[#allocation8 + $0x130] sm:$0xff] %vm6558_vm9, %v6489_v59  ;;  %6502 = vrot.lane.b32.xlu0 %v6404_v42, %s8881_s23  ;;  %v7058_v42 = vld [vmem:[#allocation7 + $0x10d] sm:$0xff] }
 0x90a   : > { %7011 = vst.msk [vmem:[#allocation8 + $0x120] sm:$0xff] %vm6992_vm15, %v6921_v37  ;;  %6721 = vrot.lane.b32.xlu1 %v6837_v45, %s8886_s27  ;;  %v6191_v37 = vld [vmem:[#allocation7 + $0x102] sm:$0xff] }
 0x90b   : > { %6795 = vst.msk [vmem:[#allocation8 + $0x130] sm:$0xff] %vm6775_vm13, %v11467_v13  ;;  %v6057_v58 = vpop.permute.xlu0 %6056  ;;  %v7357_v13 = vld [vmem:[#allocation8 + $0x138] sm:$0xff] }
 0x90c   : > { %6145 = vst.msk [vmem:[#allocation8 + $0x140] sm:$0xff] %vm6124_vm11, %v6057_v58  ;;  %v7138_v4 = vpop.permute.xlu1 %7137 }
 0x90d   : > { %v8801_v2 = vpop.eup %8800  ;;  %7228 = vst.msk [vmem:[#allocation8 + $0x120] sm:$0xff] %vm7209_vm2, %v7138_v4  ;;  %6072 = vrot.lane.b32.xlu0 %v6187_v28, %s8882_s24 }
 0x90e   : > { %7806 = vst.msk [vmem:[%s11484_s15 + $0x8] sm:$0xff] %vm7804_vm3, %v8801_v2  ;;  %6723 = vrot.lane.b32.xlu1 %v6838_v62, %s8886_s27  ;;  %v7361_v62 = vld [vmem:[#allocation8 + $0x158] sm:$0xff] }
 0x90f   : > { %v6059_v8 = vpop.permute.xlu0 %6058 }
 0x910   : > { %6146 = vst.msk [vmem:[#allocation8 + $0x150] sm:$0xff] %vm6124_vm11, %v6059_v8  ;;  %v6708_v17 = vpop.permute.xlu1 %6707  ;;  %v6408_v8 = vld [vmem:[#allocation7 + $0x103] sm:$0xff] }
 0x911   : > { %v8803_v40 = vpop.eup %8802  ;;  %v7604_v31 = vpop.f32.mrf.mxu0  ;;  %6508 = vrot.lane.b32.xlu0 %v6407_v5, %s8881_s23 }
 0x912   : > { %7808 = vst.msk [vmem:[%s11484_s15 + $0xe] sm:$0xfc] %vm7807_vm4, %v8803_v40  ;;  %v7605_v20 = vadd.f32 %v11458_v56, %v7604_v31  ;;  %5865 = vrot.lane.b32.xlu1 %v5760_v57, %s8884_s14  ;;  %v6842_v40 = vld [vmem:[#allocation7 + $0x114] sm:$0xff] }
 0x913   : > { %v7606_v36 = vpop.f32.mrf.mxu0  ;;  %v6493_v34 = vpop.permute.xlu0 %6492 }
 0x914   : > { %8804 = vtanh.f32 %v7605_v20  ;;  %v5850_v24 = vpop.permute.xlu1 %5849  ;;  %v7354_v63 = vld [vmem:[#allocation8 + $0x120] sm:$0xff]  ;;  %v7059_v36 = vld [vmem:[#allocation7 + $0x115] sm:$0xff] }
 0x915   : > { %5933 = vst.msk [vmem:[#allocation8 + $0x190] sm:$0xff] %vm5907_vm10, %v5850_v24  ;;  %7678 = vmatmul.mubr.f32.gmra.mxu0 %v7354_v63  ;;  %5859 = vrot.lane.b32.xlu0 %v5757_v6, %s8884_s14  ;;  %v6192_v20 = vld [vmem:[#allocation7 + $0x10a] sm:$0xff] }
 0x916   : > { %8084 = vmatprep.mubr.msk.f32.mxu0 %vm438_vm0, %v7357_v13  ;;  %6938 = vrot.lane.b32.xlu1 %v6839_v11, %s8883_s18  ;;  %v7363_v13 = vld [vmem:[#allocation8 + $0x168] sm:$0xff] }
 0x917   : > { %v5844_v15 = vpop.permute.xlu0 %5843 }
 0x918   : > { %5930 = vst.msk [vmem:[#allocation8 + $0x160] sm:$0xff] %vm5907_vm10, %v5844_v15  ;;  %v6923_v61 = vpop.permute.xlu1 %6922  ;;  %v7609_v19 = vpop.f32.mrf.mxu0 }
 0x919   : > { %7012 = vst.msk [vmem:[#allocation8 + $0x130] sm:$0xff] %vm6992_vm15, %v6923_v61  ;;  %v7610_v33 = vadd.f32 %v11458_v56, %v7609_v19  ;;  %6289 = vrot.lane.b32.xlu0 %v6189_v44, %s8887_s19 }
 0x91a   : > { %7155 = vrot.lane.b32.xlu1 %v7056_v55, %s8885_s22  ;;  %v7611_v23 = vpop.f32.mrf.mxu0  ;;  %v7365_v55 = vld [vmem:[#allocation8 + $0x178] sm:$0xff] }
 0x91b   : > { %8806 = vtanh.f32 %v7610_v33  ;;  %v6274_v60 = vpop.permute.xlu0 %6273  ;;  %v6411_v33 = vld [vmem:[#allocation7 + $0x11b] sm:$0xff]  ;;  %v11615_v23 = vld [vmem:[#allocation7 + $0x12c] sm:$0xff] }
 0x91c   : > { %6362 = vst.msk [vmem:[#allocation8 + $0x140] sm:$0xff] %vm6341_vm1, %v6274_v60  ;;  %v7140_v41 = vpop.permute.xlu1 %7139 }
 0x91d   : > { %7229 = vst.msk [vmem:[#allocation8 + $0x130] sm:$0xff] %vm7209_vm2, %v7140_v41  ;;  %6506 = vrot.lane.b32.xlu0 %v6406_v48, %s8881_s23 }
 0x91e   : > { %6940 = vrot.lane.b32.xlu1 %v6840_v49, %s8883_s18 }
 0x91f   : > { %v6491_v25 = vpop.permute.xlu0 %6490 }
 0x920   : > { %6579 = vst.msk [vmem:[#allocation8 + $0x140] sm:$0xff] %vm6558_vm9, %v6491_v25  ;;  %v6925_v32 = vpop.permute.xlu1 %6924 }
 0x921   : > { %v8805_v29 = vpop.eup %8804  ;;  %v7614_v59 = vpop.f32.mrf.mxu0  ;;  %6796 = vst.msk [vmem:[#allocation8 + $0x140] sm:$0xff] %vm6775_vm13, %v6708_v17  ;;  %6291 = vrot.lane.b32.xlu0 %v6190_v52, %s8887_s19 }
 0x922   : > { %7809 = vst.msk [vmem:[%s11484_s15 + $0x16] sm:$0xff] %vm7804_vm3, %v8805_v29  ;;  %v7615_v39 = vadd.f32 %v11458_v56, %v7614_v59  ;;  %7157 = vrot.lane.b32.xlu1 %v7057_v51, %s8885_s22  ;;  %v5761_v29 = vld [vmem:[#allocation7 + $0x111] sm:$0xff] }
 0x923   : > { %7013 = vst.msk [vmem:[#allocation8 + $0x140] sm:$0xff] %vm6992_vm15, %v6925_v32  ;;  %v7616_v43 = vpop.f32.mrf.mxu0  ;;  %v6276_v45 = vpop.permute.xlu0 %6275  ;;  %v7062_v32 = vld [vmem:[#allocation7 + $0x12d] sm:$0xff] }
 0x924   : > { %8808 = vtanh.f32 %v7615_v39  ;;  %6363 = vst.msk [vmem:[#allocation8 + $0x150] sm:$0xff] %vm6341_vm1, %v6276_v45  ;;  %v7142_v16 = vpop.permute.xlu1 %7141  ;;  %v7356_v46 = vld [vmem:[#allocation8 + $0x130] sm:$0xff] }
 0x925   : > { %6580 = vst.msk [vmem:[#allocation8 + $0x150] sm:$0xff] %vm6558_vm9, %v6493_v34  ;;  %7683 = vmatmul.mubr.f32.gmra.mxu0 %v7356_v46  ;;  %6076 = vrot.lane.b32.xlu0 %v6189_v44, %s8882_s24  ;;  %v6193_v51 = vld [vmem:[#allocation7 + $0x112] sm:$0xff]  ;;  %v6843_v43 = vld [vmem:[#allocation7 + $0x11c] sm:$0xff] }
 0x926   : > { %7230 = vst.msk [vmem:[#allocation8 + $0x140] sm:$0xff] %vm7209_vm2, %v7142_v16  ;;  %8085 = vmatprep.mubr.msk.f32.mxu0 %vm438_vm0, %v7359_v47  ;;  %6725 = vrot.lane.b32.xlu1 %v6839_v11, %s8886_s27  ;;  %v6410_v46 = vld [vmem:[#allocation7 + $0x113] sm:$0xff]  ;;  %v7060_v47 = vld [vmem:[#allocation7 + $0x11d] sm:$0xff] }
 0x927   : > { %v6061_v0 = vpop.permute.xlu0 %6060 }
 0x928   : > { %v8807_v21 = vpop.eup %8806  ;;  %6147 = vst.msk [vmem:[#allocation8 + $0x160] sm:$0xff] %vm6124_vm11, %v6061_v0  ;;  %v6710_v30 = vpop.permute.xlu1 %6709 }
 0x929   : > { %v7619_v18 = vpop.f32.mrf.mxu0  ;;  %7811 = vst.msk [vmem:[%s11484_s15 + $0x1e] sm:$0x3] %vm7810_vm5, %v8807_v21  ;;  %6078 = vrot.lane.b32.xlu0 %v6190_v52, %s8882_s24 }
 0x92a   : > { %7813 = vst.msk [vmem:[%s11484_s15 + $0x1c] sm:$0xf0] %vm7812_vm7, %v8807_v21  ;;  %v7620_v27 = vadd.f32 %v11458_v56, %v7619_v18  ;;  %6727 = vrot.lane.b32.xlu1 %v6840_v49, %s8886_s27  ;;  %v6194_v18 = vld [vmem:[#allocation7 + $0x11a] sm:$0xff] }
 0x92b   : > { %6797 = vst.msk [vmem:[#allocation8 + $0x150] sm:$0xff] %vm6775_vm13, %v6710_v30  ;;  %v7621_v50 = vpop.f32.mrf.mxu0  ;;  %v6063_v53 = vpop.permute.xlu0 %6062 }
 0x92c   : > { %8810 = vtanh.f32 %v7620_v27  ;;  %6148 = vst.msk [vmem:[#allocation8 + $0x170] sm:$0xff] %vm6124_vm11, %v6063_v53  ;;  %v6712_v22 = vpop.permute.xlu1 %6711  ;;  %v6844_v50 = vld [vmem:[#allocation7 + $0x124] sm:$0xff] }
 0x92d   : > { %v7358_v38 = vld [vmem:[#allocation8 + $0x140] sm:$0xff]  ;;  %6512 = vrot.lane.b32.xlu0 %v6409_v54, %s8881_s23 }
 0x92e   : > { %7688 = vmatmul.mubr.f32.gmra.mxu0 %v7358_v38  ;;  %5869 = vrot.lane.b32.xlu1 %v5762_v9, %s8884_s14  ;;  %v7367_v9 = vld [vmem:[#allocation8 + $0x188] sm:$0xff] }
 0x92f   : > { %8086 = vmatprep.mubr.msk.f32.mxu0 %vm438_vm0, %v7361_v62  ;;  %v6497_v35 = vpop.permute.xlu0 %6496 }
 0x930   : > { %v5854_v28 = vpop.permute.xlu1 %5853 }
 0x931   : > { %v8809_v14 = vpop.eup %8808  ;;  %5935 = vst.msk [vmem:[#allocation8 + $0x1b0] sm:$0xff] %vm5907_vm10, %v5854_v28  ;;  %5863 = vrot.lane.b32.xlu0 %v5759_v1, %s8884_s14 }
 0x932   : > { %7814 = vst.msk [vmem:[%s11484_s15 + $0x24] sm:$0xff] %vm7804_vm3, %v8809_v14  ;;  %6942 = vrot.lane.b32.xlu1 %v6841_v12, %s8883_s18 }
 0x933   : > { %v5848_v3 = vpop.permute.xlu0 %5847 }
 0x934   : > { %5932 = vst.msk [vmem:[#allocation8 + $0x180] sm:$0xff] %vm5907_vm10, %v5848_v3  ;;  %v6927_v26 = vpop.permute.xlu1 %6926 }
 0x935   : > { %7014 = vst.msk [vmem:[#allocation8 + $0x150] sm:$0xff] %vm6992_vm15, %v6927_v26  ;;  %6293 = vrot.lane.b32.xlu0 %v6191_v37, %s8887_s19 }
 0x936   : > { %7159 = vrot.lane.b32.xlu1 %v7058_v42, %s8885_s22 }
 0x937   : > { %v6278_v58 = vpop.permute.xlu0 %6277 }
 0x938   : > { %6364 = vst.msk [vmem:[#allocation8 + $0x160] sm:$0xff] %vm6341_vm1, %v6278_v58  ;;  %v7144_v4 = vpop.permute.xlu1 %7143  ;;  %v6413_v58 = vld [vmem:[#allocation7 + $0x12b] sm:$0xff] }
 0x939   : > { %v8811_v2 = vpop.eup %8810  ;;  %7231 = vst.msk [vmem:[#allocation8 + $0x150] sm:$0xff] %vm7209_vm2, %v7144_v4  ;;  %6510 = vrot.lane.b32.xlu0 %v6408_v8, %s8881_s23 }
 0x93a   : > { %7816 = vst.msk [vmem:[%s11484_s15 + $0x2c] sm:$0xf] %vm7815_vm6, %v8811_v2  ;;  %6944 = vrot.lane.b32.xlu1 %v6842_v40, %s8883_s18 }
 0x93b   : > { %7818 = vst.msk [vmem:[%s11484_s15 + $0x2a] sm:$0xc0] %vm7817_vm12, %v8811_v2  ;;  %v6495_v17 = vpop.permute.xlu0 %6494  ;;  %v7369_v2 = vld [vmem:[#allocation8 + $0x198] sm:$0xff] }
 0x93c   : > { %6581 = vst.msk [vmem:[#allocation8 + $0x160] sm:$0xff] %vm6558_vm9, %v6495_v17  ;;  %v6929_v31 = vpop.permute.xlu1 %6928  ;;  %v6195_v17 = vld [vmem:[#allocation7 + $0x122] sm:$0xff] }
 0x93d   : > { %v7624_v5 = vpop.f32.mrf.mxu0  ;;  %6798 = vst.msk [vmem:[#allocation8 + $0x160] sm:$0xff] %vm6775_vm13, %v6712_v22  ;;  %6295 = vrot.lane.b32.xlu0 %v6192_v20, %s8887_s19 }
 0x93e   : > { %v7625_v57 = vadd.f32 %v11458_v56, %v7624_v5  ;;  %7015 = vst.msk [vmem:[#allocation8 + $0x160] sm:$0xff] %vm6992_vm15, %v6929_v31  ;;  %7161 = vrot.lane.b32.xlu1 %v7059_v36, %s8885_s22  ;;  %v7064_v5 = vld [vmem:[#allocation7 + $0x13d] sm:$0xff] }
 0x93f   : > { %v7626_v34 = vpop.f32.mrf.mxu0  ;;  %v6280_v24 = vpop.permute.xlu0 %6279 }
 0x940   : > { %8812 = vtanh.f32 %v7625_v57  ;;  %6365 = vst.msk [vmem:[#allocation8 + $0x170] sm:$0xff] %vm6341_vm1, %v6280_v24  ;;  %v7146_v63 = vpop.permute.xlu1 %7145  ;;  %v7360_v6 = vld [vmem:[#allocation8 + $0x150] sm:$0xff]  ;;  %v6412_v57 = vld [vmem:[#allocation7 + $0x123] sm:$0xff] }
 0x941   : > { %6582 = vst.msk [vmem:[#allocation8 + $0x170] sm:$0xff] %vm6558_vm9, %v6497_v35  ;;  %7693 = vmatmul.mubr.f32.gmra.mxu0 %v7360_v6  ;;  %6080 = vrot.lane.b32.xlu0 %v6191_v37, %s8882_s24  ;;  %v7061_v35 = vld [vmem:[#allocation7 + $0x125] sm:$0xff]  ;;  %v6847_v6 = vld [vmem:[#allocation7 + $0x13c] sm:$0xff] }
 0x942   : > { %7232 = vst.msk [vmem:[#allocation8 + $0x160] sm:$0xff] %vm7209_vm2, %v7146_v63  ;;  %8087 = vmatprep.mubr.msk.f32.mxu0 %vm438_vm0, %v7363_v13  ;;  %6729 = vrot.lane.b32.xlu1 %v6841_v12, %s8886_s27  ;;  %v6196_v24 = vld [vmem:[#allocation7 + $0x12a] sm:$0xff] }
 0x943   : > { %v6065_v11 = vpop.permute.xlu0 %6064 }
 0x944   : > { %6149 = vst.msk [vmem:[#allocation8 + $0x180] sm:$0xff] %vm6124_vm11, %v6065_v11  ;;  %v6714_v15 = vpop.permute.xlu1 %6713 }
 0x945   : > { %6799 = vst.msk [vmem:[#allocation8 + $0x170] sm:$0xff] %vm6775_vm13, %v6714_v15  ;;  %6082 = vrot.lane.b32.xlu0 %v6192_v20, %s8882_s24 }
 0x946   : > { %6731 = vrot.lane.b32.xlu1 %v6842_v40, %s8886_s27 }
 0x947   : > { %v6067_v61 = vpop.permute.xlu0 %6066 }
 0x948   : > { %6150 = vst.msk [vmem:[#allocation8 + $0x190] sm:$0xff] %vm6124_vm11, %v6067_v61  ;;  %v6716_v19 = vpop.permute.xlu1 %6715 }
 0x949   : > { %v7362_v44 = vld [vmem:[#allocation8 + $0x160] sm:$0xff]  ;;  %6516 = vrot.lane.b32.xlu0 %v6411_v33, %s8881_s23 }
 0x94a   : > { %7698 = vmatmul.mubr.f32.gmra.mxu0 %v7362_v44  ;;  %6950 = vrot.lane.b32.xlu1 %v11615_v23, %s8883_s18 }
 0x94b   : > { %8088 = vmatprep.mubr.msk.f32.mxu0 %vm438_vm0, %v7365_v55  ;;  %v6501_v60 = vpop.permute.xlu0 %6500  ;;  %v7629_v41 = vpop.f32.mrf.mxu0 }
 0x94c   : > { %v5858_v49 = vpop.permute.xlu1 %5857  ;;  %v7630_v25 = vadd.f32 %v11458_v56, %v7629_v41 }
 0x94d   : > { %v8813_v48 = vpop.eup %8812  ;;  %5937 = vst.msk [vmem:[#allocation8 + $0x1d0] sm:$0xff] %vm5907_vm10, %v5858_v49  ;;  %5867 = vrot.lane.b32.xlu0 %v5761_v29, %s8884_s14  ;;  %v7631_v59 = vpop.f32.mrf.mxu0  ;;  %v7281_v29 = vld [vmem:[#allocation7 + $0x13e] sm:$0xff] }
 0x94e   : > { %7819 = vst.msk [vmem:[%s11484_s15 + $0x32] sm:$0xff] %vm7804_vm3, %v8813_v48  ;;  %8814 = vtanh.f32 %v7630_v25  ;;  %7167 = vrot.lane.b32.xlu1 %v7062_v32, %s8885_s22 }
 0x94f   : > { %v5852_v52 = vpop.permute.xlu0 %5851  ;;  %7317 = vst.msk [vmem:[#allocation8 + $0x238] sm:$0xff] %vm438_vm0, %v7281_v29 }
 0x950   : > { %5934 = vst.msk [vmem:[#allocation8 + $0x1a0] sm:$0xff] %vm5907_vm10, %v5852_v52  ;;  %v6931_v39 = vpop.permute.xlu1 %6930 }
 0x951   : > { %7016 = vst.msk [vmem:[#allocation8 + $0x170] sm:$0xff] %vm6992_vm15, %v6931_v39  ;;  %6297 = vrot.lane.b32.xlu0 %v6193_v51, %s8887_s19 }
 0x952   : > { %6946 = vrot.lane.b32.xlu1 %v6843_v43, %s8883_s18 }
 0x953   : > { %v6282_v45 = vpop.permute.xlu0 %6281 }
 0x954   : > { %6366 = vst.msk [vmem:[#allocation8 + $0x180] sm:$0xff] %vm6341_vm1, %v6282_v45  ;;  %v7148_v16 = vpop.permute.xlu1 %7147 }
 0x955   : > { %7233 = vst.msk [vmem:[#allocation8 + $0x170] sm:$0xff] %vm7209_vm2, %v7148_v16  ;;  %6514 = vrot.lane.b32.xlu0 %v6410_v46, %s8881_s23  ;;  %v7373_v46 = vld [vmem:[#allocation8 + $0x1b8] sm:$0xff] }
 0x956   : > { %7163 = vrot.lane.b32.xlu1 %v7060_v47, %s8885_s22 }
 0x957   : > { %v6499_v0 = vpop.permute.xlu0 %6498 }
 0x958   : > { %6583 = vst.msk [vmem:[#allocation8 + $0x180] sm:$0xff] %vm6558_vm9, %v6499_v0  ;;  %v6933_v21 = vpop.permute.xlu1 %6932 }
 0x959   : > { %v7634_v30 = vpop.f32.mrf.mxu0  ;;  %6800 = vst.msk [vmem:[#allocation8 + $0x180] sm:$0xff] %vm6775_vm13, %v6716_v19  ;;  %6299 = vrot.lane.b32.xlu0 %v6194_v18, %s8887_s19  ;;  %v7280_v19 = vld [vmem:[#allocation7 + $0x136] sm:$0xff] }
 0x95a   : > { %v7635_v27 = vadd.f32 %v11458_v56, %v7634_v30  ;;  %7017 = vst.msk [vmem:[#allocation8 + $0x180] sm:$0xff] %vm6992_vm15, %v6933_v21  ;;  %6948 = vrot.lane.b32.xlu1 %v6844_v50, %s8883_s18 }
 0x95b   : > { %v7636_v53 = vpop.f32.mrf.mxu0  ;;  %v8815_v22 = vpop.eup %8814  ;;  %7316 = vst.msk [vmem:[#allocation8 + $0x228] sm:$0xff] %vm438_vm0, %v7280_v19  ;;  %v7381_v19 = vld [vmem:[#allocation8 + $0x1f8] sm:$0xff] }
 0x95c   : > { %8816 = vtanh.f32 %v7635_v27  ;;  %v6284_v38 = vpop.permute.xlu0 %6283  ;;  %7821 = vst.msk [vmem:[%s11484_s15 + $0x3a] sm:$0x3f] %vm7820_vm14, %v8815_v22  ;;  %v7150_v54 = vpop.permute.xlu1 %7149  ;;  %v7364_v62 = vld [vmem:[#allocation8 + $0x170] sm:$0xff] }
 0x95d   : > { %6367 = vst.msk [vmem:[#allocation8 + $0x190] sm:$0xff] %vm6341_vm1, %v6284_v38  ;;  %7703 = vmatmul.mubr.f32.gmra.mxu0 %v7364_v62  ;;  %6084 = vrot.lane.b32.xlu0 %v6193_v51, %s8882_s24 }
 0x95e   : > { %6584 = vst.msk [vmem:[#allocation8 + $0x190] sm:$0xff] %vm6558_vm9, %v6501_v60  ;;  %8089 = vmatprep.mubr.msk.f32.mxu0 %vm438_vm0, %v7367_v9  ;;  %7165 = vrot.lane.b32.xlu1 %v7061_v35, %s8885_s22  ;;  %v7371_v60 = vld [vmem:[#allocation8 + $0x1a8] sm:$0xff] }
 0x95f   : > { %7234 = vst.msk [vmem:[#allocation8 + $0x180] sm:$0xff] %vm7209_vm2, %v7150_v54  ;;  %v7375_v9 = vld [vmem:[#allocation8 + $0x1c8] sm:$0xff] }
 0x960   : > { %v6069_v14 = vpop.permute.xlu0 %6068  ;;  %v6718_v28 = vpop.permute.xlu1 %6717 }
 0x961   : > { %6151 = vst.msk [vmem:[#allocation8 + $0x1a0] sm:$0xff] %vm6124_vm11, %v6069_v14  ;;  %6086 = vrot.lane.b32.xlu0 %v6194_v18, %s8882_s24 }
 0x962   : > { %6801 = vst.msk [vmem:[#allocation8 + $0x190] sm:$0xff] %vm6775_vm13, %v6718_v28  ;;  %v7639_v1 = vpop.f32.mrf.mxu0  ;;  %6733 = vrot.lane.b32.xlu1 %v6843_v43, %s8886_s27 }
 0x963   : > { %v7640_v12 = vadd.f32 %v11458_v56, %v7639_v1 }
 0x964   : > { %v7641_v3 = vpop.f32.mrf.mxu0  ;;  %v6071_v26 = vpop.permute.xlu0 %6070 }
 0x965   : > { %8818 = vtanh.f32 %v7640_v12  ;;  %6152 = vst.msk [vmem:[#allocation8 + $0x1b0] sm:$0xff] %vm6124_vm11, %v6071_v26  ;;  %v6720_v37 = vpop.permute.xlu1 %6719  ;;  %6520 = vrot.lane.b32.xlu0 %v6413_v58, %s8881_s23 }
 0x966   : > { %v7366_v42 = vld [vmem:[#allocation8 + $0x180] sm:$0xff]  ;;  %6735 = vrot.lane.b32.xlu1 %v6844_v50, %s8886_s27 }
 0x967   : > { %7708 = vmatmul.mubr.f32.gmra.mxu0 %v7366_v42  ;;  %v7377_v42 = vld [vmem:[#allocation8 + $0x1d8] sm:$0xff] }
 0x968   : > { %8090 = vmatprep.mubr.msk.f32.mxu0 %vm438_vm0, %v7369_v2  ;;  %v6288_v4 = vpop.permute.xlu0 %6287 }
 0x969   : > { %v8817_v8 = vpop.eup %8816  ;;  %6369 = vst.msk [vmem:[#allocation8 + $0x1b0] sm:$0xff] %vm6341_vm1, %v6288_v4  ;;  %v5862_v40 = vpop.permute.xlu1 %5861  ;;  %6301 = vrot.lane.b32.xlu0 %v6195_v17, %s8887_s19 }
 0x96a   : > { %7822 = vst.msk [vmem:[%s11484_s15 + $0x40] sm:$0xff] %vm7804_vm3, %v8817_v8  ;;  %6737 = vrot.lane.b32.xlu1 %v11615_v23, %s8886_s27 }
 0x96b   : > { %5939 = vst.msk [vmem:[#allocation8 + $0x1f0] sm:$0xff] %vm5907_vm10, %v5862_v40 }
 0x96c   : > { %v6505_v31 = vpop.permute.xlu0 %6504 }
 0x96d   : > { %6586 = vst.msk [vmem:[#allocation8 + $0x1b0] sm:$0xff] %vm6558_vm9, %v6505_v31  ;;  %v6935_v20 = vpop.permute.xlu1 %6934  ;;  %6518 = vrot.lane.b32.xlu0 %v6412_v57, %s8881_s23 }
 0x96e   : > { %7018 = vst.msk [vmem:[#allocation8 + $0x190] sm:$0xff] %vm6992_vm15, %v6935_v20  ;;  %7171 = vrot.lane.b32.xlu1 %v7064_v5, %s8885_s22 }
 0x970   : > { %v6075_v36 = vpop.permute.xlu0 %6074 }
 0x971   : > { %6154 = vst.msk [vmem:[#allocation8 + $0x1d0] sm:$0xff] %vm6124_vm11, %v6075_v36  ;;  %v7152_v34 = vpop.permute.xlu1 %7151  ;;  %6303 = vrot.lane.b32.xlu0 %v6196_v24, %s8887_s19  ;;  %v7379_v24 = vld [vmem:[#allocation8 + $0x1e8] sm:$0xff] }
 0x972   : > { %v8819_v63 = vpop.eup %8818  ;;  %7235 = vst.msk [vmem:[#allocation8 + $0x190] sm:$0xff] %vm7209_vm2, %v7152_v34 }
 0x973   : > { %7823 = vst.msk [vmem:[%s11484_s15 + $0x48] sm:$0xff] %vm7804_vm3, %v8819_v63 }
 0x974   : > { %v5856_v13 = vpop.permute.xlu0 %5855 }
 0x975   : > { %5936 = vst.msk [vmem:[#allocation8 + $0x1c0] sm:$0xff] %vm5907_vm10, %v5856_v13  ;;  %v6937_v11 = vpop.permute.xlu1 %6936  ;;  %v7644_v15 = vpop.f32.mrf.mxu0  ;;  %6954 = vrot.lane.b32.xlu0 %v6847_v6, %s8883_s18 }
 0x976   : > { %v7645_v61 = vadd.f32 %v11458_v56, %v7644_v15 }
 0x977   : > { %v7646_v44 = vpop.f32.mrf.mxu0 }
 0x978   : > { %v6286_v33 = vpop.permute.xlu0 %6285  ;;  %8820 = vtanh.f32 %v7645_v61  ;;  %v11734_v44 = vld [vmem:[%s11856_s12] ss:$0 sm:$0xff] }
 0x979   : > { %6368 = vst.msk [vmem:[#allocation8 + $0x1a0] sm:$0xff] %vm6341_vm1, %v6286_v33  ;;  %v7154_v55 = vpop.permute.xlu1 %7153  ;;  %v7368_v23 = vld [vmem:[#allocation8 + $0x190] sm:$0xff] }
 0x97a   : > { %7713 = vmatmul.mubr.f32.gmra.mxu0 %v7368_v23 }
 0x97b   : > { %8091 = vmatprep.mubr.msk.f32.mxu0 %vm438_vm0, %v7371_v60 }
 0x97c   : > { %v6503_v41 = vpop.permute.xlu0 %6502 }
 0x97d   : > { %6585 = vst.msk [vmem:[#allocation8 + $0x1a0] sm:$0xff] %vm6558_vm9, %v6503_v41  ;;  %v6722_v48 = vpop.permute.xlu1 %6721 }
 0x97e   : > { %6802 = vst.msk [vmem:[#allocation8 + $0x1a0] sm:$0xff] %vm6775_vm13, %v6720_v37  ;;  %6803 = vst.msk [vmem:[#allocation8 + $0x1b0] sm:$0xff] %vm6775_vm13, %v6722_v48  ;;  %v7649_v49 = vpop.f32.mrf.mxu0 }
 0x97f   : > { %7019 = vst.msk [vmem:[#allocation8 + $0x1a0] sm:$0xff] %vm6992_vm15, %v6937_v11  ;;  %v7650_v25 = vadd.f32 %v11458_v56, %v7649_v49 }
 0x980   : > { %7236 = vst.msk [vmem:[#allocation8 + $0x1a0] sm:$0xff] %vm7209_vm2, %v7154_v55  ;;  %v7651_v32 = vpop.f32.mrf.mxu0  ;;  %v6073_v59 = vpop.permute.xlu0 %6072 }
 0x981   : > { %8822 = vtanh.f32 %v7650_v25  ;;  %6153 = vst.msk [vmem:[#allocation8 + $0x1c0] sm:$0xff] %vm6124_vm11, %v6073_v59  ;;  %v6724_v52 = vpop.permute.xlu1 %6723 }
 0x984   : > { %v6509_v39 = vpop.permute.xlu0 %6508 }
 0x985   : > { %v5866_v51 = vpop.permute.xlu1 %5865  ;;  %v8821_v43 = vpop.eup %8820 }
 0x986   : > { %5941 = vst.msk [vmem:[#allocation8 + $0x210] sm:$0xff] %vm5907_vm10, %v5866_v51 }
 0x987   : > { %7824 = vst.msk [vmem:[%s11484_s15 + $0x4e] sm:$0xfc] %vm7807_vm4, %v8821_v43  ;;  %v7370_v45 = vld [vmem:[#allocation8 + $0x1a0] sm:$0xff] }
 0x988   : > { %v5860_v16 = vpop.permute.xlu0 %5859  ;;  %7718 = vmatmul.mubr.f32.gmra.mxu0 %v7370_v45 }
 0x989   : > { %5938 = vst.msk [vmem:[#allocation8 + $0x1e0] sm:$0xff] %vm5907_vm10, %v5860_v16  ;;  %v6939_v47 = vpop.permute.xlu1 %6938  ;;  %8092 = vmatprep.mubr.msk.f32.mxu0 %vm438_vm0, %v7373_v46 }
 0x98a   : > { %7020 = vst.msk [vmem:[#allocation8 + $0x1b0] sm:$0xff] %vm6992_vm15, %v6939_v47 }
 0x98c   : > { %v6290_v0 = vpop.permute.xlu0 %6289 }
 0x98d   : > { %6370 = vst.msk [vmem:[#allocation8 + $0x1c0] sm:$0xff] %vm6341_vm1, %v6290_v0  ;;  %v7156_v21 = vpop.permute.xlu1 %7155 }
 0x98e   : > { %v8823_v30 = vpop.eup %8822  ;;  %7237 = vst.msk [vmem:[#allocation8 + $0x1b0] sm:$0xff] %vm7209_vm2, %v7156_v21 }
 0x98f   : > { %7825 = vst.msk [vmem:[%s11484_s15 + $0x56] sm:$0xff] %vm7804_vm3, %v8823_v30 }
 0x990   : > { %v6507_v18 = vpop.permute.xlu0 %6506 }
 0x991   : > { %6587 = vst.msk [vmem:[#allocation8 + $0x1c0] sm:$0xff] %vm6558_vm9, %v6507_v18  ;;  %v6941_v27 = vpop.permute.xlu1 %6940  ;;  %v7654_v50 = vpop.f32.mrf.mxu0 }
 0x992   : > { %6804 = vst.msk [vmem:[#allocation8 + $0x1c0] sm:$0xff] %vm6775_vm13, %v6724_v52  ;;  %v7655_v53 = vadd.f32 %v11458_v56, %v7654_v50 }
 0x993   : > { %7021 = vst.msk [vmem:[#allocation8 + $0x1c0] sm:$0xff] %vm6992_vm15, %v6941_v27  ;;  %v7656_v22 = vpop.f32.mrf.mxu0  ;;  %v7383_v27 = vld [vmem:[#allocation8 + $0x208] sm:$0xff] }
 0x994   : > { %v6292_v38 = vpop.permute.xlu0 %6291  ;;  %8824 = vtanh.f32 %v7655_v53 }
 0x995   : > { %6371 = vst.msk [vmem:[#allocation8 + $0x1d0] sm:$0xff] %vm6341_vm1, %v6292_v38  ;;  %v7158_v54 = vpop.permute.xlu1 %7157  ;;  %v7372_v62 = vld [vmem:[#allocation8 + $0x1b0] sm:$0xff] }
 0x996   : > { %6588 = vst.msk [vmem:[#allocation8 + $0x1d0] sm:$0xff] %vm6558_vm9, %v6509_v39  ;;  %7723 = vmatmul.mubr.f32.gmra.mxu0 %v7372_v62 }
 0x997   : > { %7238 = vst.msk [vmem:[#allocation8 + $0x1c0] sm:$0xff] %vm7209_vm2, %v7158_v54  ;;  %8093 = vmatprep.mubr.msk.f32.mxu0 %vm438_vm0, %v7375_v9 }
 0x998   : > { %v6077_v35 = vpop.permute.xlu0 %6076 }
 0x999   : > { %6155 = vst.msk [vmem:[#allocation8 + $0x1e0] sm:$0xff] %vm6124_vm11, %v6077_v35  ;;  %v6726_v14 = vpop.permute.xlu1 %6725 }
 0x99a   : > { %6805 = vst.msk [vmem:[#allocation8 + $0x1d0] sm:$0xff] %vm6775_vm13, %v6726_v14  ;;  %v7659_v28 = vpop.f32.mrf.mxu0  ;;  %v7385_v14 = vld [vmem:[#allocation8 + $0x218] sm:$0xff] }
 0x99b   : > { %v7660_v1 = vadd.f32 %v11458_v56, %v7659_v28 }
 0x99c   : > { %v7661_v12 = vpop.f32.mrf.mxu0  ;;  %v6079_v3 = vpop.permute.xlu0 %6078 }
 0x99d   : > { %8826 = vtanh.f32 %v7660_v1  ;;  %6156 = vst.msk [vmem:[#allocation8 + $0x1f0] sm:$0xff] %vm6124_vm11, %v6079_v3  ;;  %v6728_v26 = vpop.permute.xlu1 %6727  ;;  %v7387_v12 = vld [vmem:[#allocation8 + $0x228] sm:$0xff] }
 0x99e   : > { %v7374_v37 = vld [vmem:[#allocation8 + $0x1c0] sm:$0xff] }
 0x99f   : > { %7728 = vmatmul.mubr.f32.gmra.mxu0 %v7374_v37 }
 0x9a0   : > { %8094 = vmatprep.mubr.msk.f32.mxu0 %vm438_vm0, %v7377_v42  ;;  %v6513_v58 = vpop.permute.xlu0 %6512 }
 0x9a1   : > { %v5870_v2 = vpop.permute.xlu1 %5869  ;;  %v8825_v4 = vpop.eup %8824 }
 0x9a2   : > { %5943 = vst.msk [vmem:[#allocation8 + $0x230] sm:$0xff] %vm5907_vm10, %v5870_v2 }
 0x9a3   : > { %7826 = vst.msk [vmem:[%s11484_s15 + $0x5e] sm:$0x3] %vm7810_vm5, %v8825_v4 }
 0x9a4   : > { %7827 = vst.msk [vmem:[%s11484_s15 + $0x5c] sm:$0xf0] %vm7812_vm7, %v8825_v4  ;;  %v5864_v56 = vpop.permute.xlu0 %5863 }
 0x9a5   : > { %5940 = vst.msk [vmem:[#allocation8 + $0x200] sm:$0xff] %vm5907_vm10, %v5864_v56  ;;  %v6943_v8 = vpop.permute.xlu1 %6942 }
 0x9a6   : > { %7022 = vst.msk [vmem:[#allocation8 + $0x1d0] sm:$0xff] %vm6992_vm15, %v6943_v8 }
 0x9a8   : > { %v6294_v40 = vpop.permute.xlu0 %6293 }
 0x9a9   : > { %6372 = vst.msk [vmem:[#allocation8 + $0x1e0] sm:$0xff] %vm6341_vm1, %v6294_v40  ;;  %v7160_v17 = vpop.permute.xlu1 %7159 }
 0x9aa   : > { %v8827_v31 = vpop.eup %8826  ;;  %7239 = vst.msk [vmem:[#allocation8 + $0x1d0] sm:$0xff] %vm7209_vm2, %v7160_v17 }
 0x9ab   : > { %7828 = vst.msk [vmem:[%s11484_s15 + $0x64] sm:$0xff] %vm7804_vm3, %v8827_v31 }
 0x9ac   : > { %v6511_v5 = vpop.permute.xlu0 %6510 }
 0x9ad   : > { %6589 = vst.msk [vmem:[#allocation8 + $0x1e0] sm:$0xff] %vm6558_vm9, %v6511_v5  ;;  %v6945_v20 = vpop.permute.xlu1 %6944 }
 0x9ae   : > { %6806 = vst.msk [vmem:[#allocation8 + $0x1e0] sm:$0xff] %vm6775_vm13, %v6728_v26 }
 0x9af   : > { %7023 = vst.msk [vmem:[#allocation8 + $0x1e0] sm:$0xff] %vm6992_vm15, %v6945_v20 }
 0x9b0   : > { %v6296_v57 = vpop.permute.xlu0 %6295 }
 0x9b1   : > { %6373 = vst.msk [vmem:[#allocation8 + $0x1f0] sm:$0xff] %vm6341_vm1, %v6296_v57  ;;  %v7162_v36 = vpop.permute.xlu1 %7161  ;;  %v7376_v34 = vld [vmem:[#allocation8 + $0x1d0] sm:$0xff] }
 0x9b2   : > { %6590 = vst.msk [vmem:[#allocation8 + $0x1f0] sm:$0xff] %vm6558_vm9, %v6513_v58  ;;  %7733 = vmatmul.mubr.f32.gmra.mxu0 %v7376_v34 }
 0x9b3   : > { %7240 = vst.msk [vmem:[#allocation8 + $0x1e0] sm:$0xff] %vm7209_vm2, %v7162_v36  ;;  %8095 = vmatprep.mubr.msk.f32.mxu0 %vm438_vm0, %v7379_v24 }
 0x9b4   : > { %v6081_v63 = vpop.permute.xlu0 %6080 }
 0x9b5   : > { %6157 = vst.msk [vmem:[#allocation8 + $0x200] sm:$0xff] %vm6124_vm11, %v6081_v63  ;;  %v6730_v6 = vpop.permute.xlu1 %6729 }
 0x9b6   : > { %6807 = vst.msk [vmem:[#allocation8 + $0x1f0] sm:$0xff] %vm6775_vm13, %v6730_v6 }
 0x9b8   : > { %v6083_v13 = vpop.permute.xlu0 %6082 }
 0x9b9   : > { %6158 = vst.msk [vmem:[#allocation8 + $0x210] sm:$0xff] %vm6124_vm11, %v6083_v13  ;;  %v6732_v11 = vpop.permute.xlu1 %6731 }
 0x9ba   : > { %v7378_v15 = vld [vmem:[#allocation8 + $0x1e0] sm:$0xff]  ;;  %v7664_v61 = vpop.f32.mrf.mxu0 }
 0x9bb   : > { %7738 = vmatmul.mubr.f32.gmra.mxu0 %v7378_v15  ;;  %v7665_v33 = vadd.f32 %v11734_v44, %v7664_v61 }
 0x9bc   : > { %8096 = vmatprep.mubr.msk.f32.mxu0 %vm438_vm0, %v7381_v19  ;;  %v7666_v55 = vpop.f32.mrf.mxu0  ;;  %v6517_v23 = vpop.permute.xlu0 %6516 }
 0x9bd   : > { %8828 = vtanh.f32 %v7665_v33  ;;  %v6951_v60 = vpop.permute.xlu1 %6950 }
 0x9c0   : > { %v5868_v41 = vpop.permute.xlu0 %5867 }
 0x9c1   : > { %v7168_v48 = vpop.permute.xlu1 %7167  ;;  %5942 = vst.msk [vmem:[#allocation8 + $0x220] sm:$0xff] %vm5907_vm10, %v5868_v41  ;;  %v7669_v49 = vpop.f32.mrf.mxu0 }
 0x9c2   : > { %v7670_v25 = vadd.f32 %v11734_v44, %v7669_v49 }
 0x9c3   : > { %v7671_v29 = vpop.f32.mrf.mxu0 }
 0x9c4   : > { %v6298_v32 = vpop.permute.xlu0 %6297  ;;  %8830 = vtanh.f32 %v7670_v25 }
 0x9c5   : > { %v6947_v59 = vpop.permute.xlu1 %6946  ;;  %6374 = vst.msk [vmem:[#allocation8 + $0x200] sm:$0xff] %vm6341_vm1, %v6298_v32 }
 0x9c6   : > { %7024 = vst.msk [vmem:[#allocation8 + $0x1f0] sm:$0xff] %vm6992_vm15, %v6947_v59 }
 0x9c7   : > { %v7674_v52 = vpop.f32.mrf.mxu0 }
 0x9c8   : > { %v6515_v39 = vpop.permute.xlu0 %6514  ;;  %v7675_v51 = vadd.f32 %v11734_v44, %v7674_v52 }
 0x9c9   : > { %v7164_v43 = vpop.permute.xlu1 %7163  ;;  %6591 = vst.msk [vmem:[#allocation8 + $0x200] sm:$0xff] %vm6558_vm9, %v6515_v39  ;;  %v7676_v16 = vpop.f32.mrf.mxu0 }
 0x9ca   : > { %v8829_v45 = vpop.eup %8828  ;;  %7241 = vst.msk [vmem:[#allocation8 + $0x1f0] sm:$0xff] %vm7209_vm2, %v7164_v43  ;;  %8832 = vtanh.f32 %v7675_v51 }
 0x9cb   : > { %6808 = vst.msk [vmem:[#allocation8 + $0x200] sm:$0xff] %vm6775_vm13, %v6732_v11 }
 0x9cc   : > { %7829 = vst.msk [vmem:[%s11484_s15 + $0x6c] sm:$0xf] %vm7815_vm6, %v8829_v45  ;;  %v6300_v46 = vpop.permute.xlu0 %6299 }
 0x9cd   : > { %7830 = vst.msk [vmem:[%s11484_s15 + $0x6a] sm:$0xc0] %vm7817_vm12, %v8829_v45  ;;  %v6949_v47 = vpop.permute.xlu1 %6948 }
 0x9ce   : > { %6375 = vst.msk [vmem:[#allocation8 + $0x210] sm:$0xff] %vm6341_vm1, %v6300_v46 }
 0x9cf   : > { %7025 = vst.msk [vmem:[#allocation8 + $0x200] sm:$0xff] %vm6992_vm15, %v6949_v47 }
 0x9d0   : > { %6592 = vst.msk [vmem:[#allocation8 + $0x210] sm:$0xff] %vm6558_vm9, %v6517_v23  ;;  %v6085_v0 = vpop.permute.xlu0 %6084 }
 0x9d1   : > { %v7166_v21 = vpop.permute.xlu1 %7165  ;;  %6159 = vst.msk [vmem:[#allocation8 + $0x220] sm:$0xff] %vm6124_vm11, %v6085_v0  ;;  %v7380_v30 = vld [vmem:[#allocation8 + $0x1f0] sm:$0xff]  ;;  %v8831_v18 = vpop.eup %8830 }
 0x9d2   : > { %7242 = vst.msk [vmem:[#allocation8 + $0x200] sm:$0xff] %vm7209_vm2, %v7166_v21  ;;  %7743 = vmatmul.mubr.f32.gmra.mxu0 %v7380_v30 }
 0x9d3   : > { %7831 = vst.msk [vmem:[%s11484_s15 + $0x72] sm:$0xff] %vm7804_vm3, %v8831_v18  ;;  %8097 = vmatprep.mubr.msk.f32.mxu0 %vm438_vm0, %v7383_v27 }
 0x9d4   : > { %v6087_v50 = vpop.permute.xlu0 %6086 }
 0x9d5   : > { %v6734_v53 = vpop.permute.xlu1 %6733  ;;  %6160 = vst.msk [vmem:[#allocation8 + $0x230] sm:$0xff] %vm6124_vm11, %v6087_v50  ;;  %v7679_v22 = vpop.f32.mrf.mxu0 }
 0x9d6   : > { %6809 = vst.msk [vmem:[#allocation8 + $0x210] sm:$0xff] %vm6775_vm13, %v6734_v53  ;;  %v7680_v38 = vadd.f32 %v11734_v44, %v7679_v22 }
 0x9d7   : > { %7026 = vst.msk [vmem:[#allocation8 + $0x210] sm:$0xff] %vm6992_vm15, %v6951_v60  ;;  %v8833_v54 = vpop.eup %8832  ;;  %v7681_v62 = vpop.f32.mrf.mxu0 }
 0x9d8   : > { %7243 = vst.msk [vmem:[#allocation8 + $0x210] sm:$0xff] %vm7209_vm2, %v7168_v48  ;;  %v6521_v9 = vpop.permute.xlu0 %6520  ;;  %8834 = vtanh.f32 %v7680_v38 }
 0x9d9   : > { %7832 = vst.msk [vmem:[%s11484_s15 + $0x7a] sm:$0x3f] %vm7820_vm14, %v8833_v54  ;;  %v7382_v35 = vld [vmem:[#allocation8 + $0x200] sm:$0xff]  ;;  %v6736_v1 = vpop.permute.xlu1 %6735 }
 0x9da   : > { %7748 = vmatmul.mubr.f32.gmra.mxu0 %v7382_v35 }
 0x9db   : > { %8098 = vmatprep.mubr.msk.f32.mxu0 %vm438_vm0, %v7385_v14 }
 0x9dc   : > { %v6302_v28 = vpop.permute.xlu0 %6301 }
 0x9dd   : > { %6376 = vst.msk [vmem:[#allocation8 + $0x220] sm:$0xff] %vm6341_vm1, %v6302_v28  ;;  %v6738_v37 = vpop.permute.xlu1 %6737 }
 0x9df   : > { %v7384_v3 = vld [vmem:[#allocation8 + $0x210] sm:$0xff] }
 0x9e0   : > { %7753 = vmatmul.mubr.f32.gmra.mxu0 %v7384_v3  ;;  %v6519_v26 = vpop.permute.xlu0 %6518 }
 0x9e1   : > { %6593 = vst.msk [vmem:[#allocation8 + $0x220] sm:$0xff] %vm6558_vm9, %v6519_v26  ;;  %8099 = vmatprep.mubr.msk.f32.mxu0 %vm438_vm0, %v7387_v12  ;;  %v7172_v56 = vpop.permute.xlu1 %7171 }
 0x9e2   : > { %6810 = vst.msk [vmem:[#allocation8 + $0x220] sm:$0xff] %vm6775_vm13, %v6736_v1 }
 0x9e3   : > { %7027 = vst.msk [vmem:[#allocation8 + $0x220] sm:$0xff] %vm6992_vm15, %v10253_v7 }
 0x9e4   : > { %7244 = vst.msk [vmem:[#allocation8 + $0x220] sm:$0xff] %vm7209_vm2, %v10259_v10  ;;  %v6304_v42 = vpop.permute.xlu0 %6303  ;;  %v7389_v10 = vld [vmem:[#allocation8 + $0x238] sm:$0xff] }
 0x9e5   : > { %6377 = vst.msk [vmem:[#allocation8 + $0x230] sm:$0xff] %vm6341_vm1, %v6304_v42  ;;  %v8835_v58 = vpop.eup %8834  ;;  %v7684_v2 = vpop.f32.mrf.mxu0 }
 0x9e6   : > { %6594 = vst.msk [vmem:[#allocation8 + $0x230] sm:$0xff] %vm6558_vm9, %v6521_v9  ;;  %v7685_v4 = vadd.f32 %v11734_v44, %v7684_v2 }
 0x9e7   : > { %7833 = vst.msk [vmem:[%s11484_s15 + $0x80] sm:$0xff] %vm7804_vm3, %v8835_v58  ;;  %v7686_v8 = vpop.f32.mrf.mxu0 }
 0x9e8   : > { %6811 = vst.msk [vmem:[#allocation8 + $0x230] sm:$0xff] %vm6775_vm13, %v6738_v37  ;;  %v6955_v7 = vpop.permute.xlu0 %6954  ;;  %8836 = vtanh.f32 %v7685_v4 }
 0x9e9   : > { %7028 = vst.msk [vmem:[#allocation8 + $0x230] sm:$0xff] %vm6992_vm15, %v6955_v7 }
 0x9ea   : > { %7245 = vst.msk [vmem:[#allocation8 + $0x230] sm:$0xff] %vm7209_vm2, %v7172_v56 }
 0x9eb   : > { %v7386_v40 = vld [vmem:[#allocation8 + $0x220] sm:$0xff] }
 0x9ec   : > { %7758 = vmatmul.mubr.f32.gmra.mxu0 %v7386_v40 }
 0x9ed   : > { %8100 = vmatprep.mubr.msk.f32.mxu0 %vm438_vm0, %v7389_v10 }
 0x9ee   : > { %v7689_v17 = vpop.f32.mrf.mxu0 }
 0x9ef   : > { %v7690_v31 = vadd.f32 %v11734_v44, %v7689_v17 }
 0x9f0   : > { %v7691_v5 = vpop.f32.mrf.mxu0 }
 0x9f1   : > { %8838 = vtanh.f32 %v7690_v31  ;;  %v7388_v20 = vld [vmem:[#allocation8 + $0x230] sm:$0xff] }
 0x9f2   : > { %7763 = vmatmul.mubr.f32.gmra.mxu0 %v7388_v20 }
 0x9f5   : > { %v8837_v57 = vpop.eup %8836 }
 0x9f6   : > { %7834 = vst.msk [vmem:[%s11484_s15 + $0x88] sm:$0xff] %vm7804_vm3, %v8837_v57 }
 0x9fe   : > { %v8839_v36 = vpop.eup %8838 }
 0x9ff   : > { %7835 = vst.msk [vmem:[%s11484_s15 + $0x8e] sm:$0xfc] %vm7807_vm4, %v8839_v36 }
 0xa01   : > { %v7694_v34 = vpop.f32.mrf.mxu0 }
 0xa02   : > { %v7695_v24 = vadd.f32 %v11734_v44, %v7694_v34 }
 0xa03   : > { %v7696_v63 = vpop.f32.mrf.mxu0 }
 0xa04   : > { %8840 = vtanh.f32 %v7695_v24 }
 0xa0a   : > { %v7699_v6 = vpop.f32.mrf.mxu0 }
 0xa0b   : > { %v7700_v13 = vadd.f32 %v11734_v44, %v7699_v6 }
 0xa0c   : > { %v7701_v11 = vpop.f32.mrf.mxu0 }
 0xa0d   : > { %8842 = vtanh.f32 %v7700_v13 }
 0xa11   : > { %v8841_v15 = vpop.eup %8840 }
 0xa12   : > { %7836 = vst.msk [vmem:[%s11484_s15 + $0x96] sm:$0xff] %vm7804_vm3, %v8841_v15 }
 0xa1a   : > { %v8843_v61 = vpop.eup %8842 }
 0xa1b   : > { %7837 = vst.msk [vmem:[%s11484_s15 + $0x9e] sm:$0x3] %vm7810_vm5, %v8843_v61 }
 0xa1c   : > { %7838 = vst.msk [vmem:[%s11484_s15 + $0x9c] sm:$0xf0] %vm7812_vm7, %v8843_v61 }
 0xa1d   : > { %v7704_v19 = vpop.f32.mrf.mxu0 }
 0xa1e   : > { %v7705_v33 = vadd.f32 %v11734_v44, %v7704_v19 }
 0xa1f   : > { %v7706_v55 = vpop.f32.mrf.mxu0 }
 0xa20   : > { %8844 = vtanh.f32 %v7705_v33 }
 0xa27   : > { %v7709_v23 = vpop.f32.mrf.mxu0 }
 0xa28   : > { %v7710_v60 = vadd.f32 %v11734_v44, %v7709_v23 }
 0xa29   : > { %v7711_v41 = vpop.f32.mrf.mxu0 }
 0xa2a   : > { %8846 = vtanh.f32 %v7710_v60 }
 0xa2d   : > { %v8845_v48 = vpop.eup %8844 }
 0xa2e   : > { %7839 = vst.msk [vmem:[%s11484_s15 + $0xa4] sm:$0xff] %vm7804_vm3, %v8845_v48 }
 0xa37   : > { %v8847_v49 = vpop.eup %8846 }
 0xa38   : > { %7840 = vst.msk [vmem:[%s11484_s15 + $0xac] sm:$0xf] %vm7815_vm6, %v8847_v49 }
 0xa39   : > { %7841 = vst.msk [vmem:[%s11484_s15 + $0xaa] sm:$0xc0] %vm7817_vm12, %v8847_v49 }
 0xa3a   : > { %v7714_v25 = vpop.f32.mrf.mxu0 }
 0xa3b   : > { %v7715_v29 = vadd.f32 %v11734_v44, %v7714_v25 }
 0xa3c   : > { %v7716_v32 = vpop.f32.mrf.mxu0 }
 0xa3d   : > { %8848 = vtanh.f32 %v7715_v29 }
 0xa48   : > { %v7719_v59 = vpop.f32.mrf.mxu0 }
 0xa49   : > { %v7720_v52 = vadd.f32 %v11734_v44, %v7719_v59 }
 0xa4a   : > { %v8849_v39 = vpop.eup %8848  ;;  %v7721_v51 = vpop.f32.mrf.mxu0 }
 0xa4b   : > { %7842 = vst.msk [vmem:[%s11484_s15 + $0xb2] sm:$0xff] %vm7804_vm3, %v8849_v39  ;;  %8850 = vtanh.f32 %v7720_v52 }
 0xa56   : > { %v7724_v43 = vpop.f32.mrf.mxu0 }
 0xa57   : > { %v7725_v45 = vadd.f32 %v11734_v44, %v7724_v43 }
 0xa58   : > { %v8851_v16 = vpop.eup %8850  ;;  %v7726_v46 = vpop.f32.mrf.mxu0 }
 0xa59   : > { %7843 = vst.msk [vmem:[%s11484_s15 + $0xba] sm:$0x3f] %vm7820_vm14, %v8851_v16  ;;  %8852 = vtanh.f32 %v7725_v45 }
 0xa5f   : > { %v7729_v47 = vpop.f32.mrf.mxu0 }
 0xa60   : > { %v7730_v0 = vadd.f32 %v11734_v44, %v7729_v47 }
 0xa61   : > { %v7731_v21 = vpop.f32.mrf.mxu0 }
 0xa62   : > { %8854 = vtanh.f32 %v7730_v0 }
 0xa66   : > { %v8853_v30 = vpop.eup %8852 }
 0xa67   : > { %7844 = vst.msk [vmem:[%s11484_s15 + $0xc0] sm:$0xff] %vm7804_vm3, %v8853_v30 }
 0xa6f   : > { %v8855_v18 = vpop.eup %8854 }
 0xa70   : > { %7845 = vst.msk [vmem:[%s11484_s15 + $0xc8] sm:$0xff] %vm7804_vm3, %v8855_v18 }
 0xa72   : > { %v7734_v27 = vpop.f32.mrf.mxu0 }
 0xa73   : > { %v7735_v50 = vadd.f32 %v11734_v44, %v7734_v27 }
 0xa74   : > { %v7736_v53 = vpop.f32.mrf.mxu0 }
 0xa75   : > { %8856 = vtanh.f32 %v7735_v50 }
 0xa7b   : > { %v7739_v22 = vpop.f32.mrf.mxu0 }
 0xa7c   : > { %v7740_v38 = vadd.f32 %v11734_v44, %v7739_v22 }
 0xa7d   : > { %v7741_v54 = vpop.f32.mrf.mxu0 }
 0xa7e   : > { %8858 = vtanh.f32 %v7740_v38 }
 0xa82   : > { %v8857_v62 = vpop.eup %8856 }
 0xa83   : > { %7846 = vst.msk [vmem:[%s11484_s15 + $0xce] sm:$0xfc] %vm7807_vm4, %v8857_v62 }
 0xa8b   : > { %v8859_v9 = vpop.eup %8858 }
 0xa8c   : > { %7847 = vst.msk [vmem:[%s11484_s15 + $0xd6] sm:$0xff] %vm7804_vm3, %v8859_v9 }
 0xa92   : > { %v7744_v35 = vpop.f32.mrf.mxu0 }
 0xa93   : > { %v7745_v14 = vadd.f32 %v11734_v44, %v7744_v35 }
 0xa94   : > { %v7746_v28 = vpop.f32.mrf.mxu0 }
 0xa95   : > { %8860 = vtanh.f32 %v7745_v14 }
 0xa9a   : > { %v7749_v1 = vpop.f32.mrf.mxu0 }
 0xa9b   : > { %v7750_v12 = vadd.f32 %v11734_v44, %v7749_v1 }
 0xa9c   : > { %v7751_v3 = vpop.f32.mrf.mxu0 }
 0xa9d   : > { %8862 = vtanh.f32 %v7750_v12 }
 0xaa0   : > { %v7754_v26 = vpop.f32.mrf.mxu0 }
 0xaa1   : > { %v7755_v37 = vadd.f32 %v11734_v44, %v7754_v26 }
 0xaa2   : > { %v8861_v42 = vpop.eup %8860  ;;  %v7756_v58 = vpop.f32.mrf.mxu0 }
 0xaa3   : > { %7848 = vst.msk [vmem:[%s11484_s15 + $0xde] sm:$0x3] %vm7810_vm5, %v8861_v42  ;;  %8864 = vtanh.f32 %v7755_v37 }
 0xaa4   : > { %7849 = vst.msk [vmem:[%s11484_s15 + $0xdc] sm:$0xf0] %vm7812_vm7, %v8861_v42 }
 0xaaa   : > { %v8863_v2 = vpop.eup %8862 }
 0xaab   : > { %7850 = vst.msk [vmem:[%s11484_s15 + $0xe4] sm:$0xff] %vm7804_vm3, %v8863_v2 }
 0xaac   : > { %v7759_v4 = vpop.f32.mrf.mxu0 }
 0xaad   : > { %v7760_v56 = vadd.f32 %v11734_v44, %v7759_v4 }
 0xaae   : > { %v7761_v8 = vpop.f32.mrf.mxu0 }
 0xaaf   : > { %8866 = vtanh.f32 %v7760_v56 }
 0xab0   : > { %v8865_v7 = vpop.eup %8864 }
 0xab1   : > { %7851 = vst.msk [vmem:[%s11484_s15 + $0xec] sm:$0xf] %vm7815_vm6, %v8865_v7 }
 0xab2   : > { %7852 = vst.msk [vmem:[%s11484_s15 + $0xea] sm:$0xc0] %vm7817_vm12, %v8865_v7  ;;  %v7764_v10 = vpop.f32.mrf.mxu0 }
 0xab3   : > { %v7765_v40 = vadd.f32 %v11734_v44, %v7764_v10 }
 0xab4   : > { %v7766_v17 = vpop.f32.mrf.mxu0 }
 0xab5   : > { %8868 = vtanh.f32 %v7765_v40 }
 0xabc   : > { %v8867_v31 = vpop.eup %8866 }
 0xabd   : > { %7853 = vst.msk [vmem:[%s11484_s15 + $0xf2] sm:$0xff] %vm7804_vm3, %v8867_v31 }
 0xac2   : > { %v8869_v5 = vpop.eup %8868 }
 0xac3   : > { %7854 = vst.msk [vmem:[%s11484_s15 + $0xfa] sm:$0x3f] %vm7820_vm14, %v8869_v5 }
 0xac4 PF: > { %s23_s25 = sadd.s32 1, %s8877_s25  }
 0xac5   : > { %p20_p4 = scmp.ge.s32.totalorder %s23_s25, 4  }
 0xac7   :  { %22 = sbr.rel (!%p20_p4) target bundleno = 1 (0x1), region = 117 }

</bundles_post_ra>
